<compile_context>
chip_gen: v7x
topology: tpu7x:2x2x1
jax: 0.10.0
libtpu: 0.0.40
codegen_flags: <defaults>
</compile_context>

<pallas_src>
import functools
import jax
import jax.numpy as jnp
from jax.experimental import pallas as pl
from jax.experimental.pallas import tpu as pltpu

LEAKY_SLOPE = 0.1
BN_EPS = 1e-5


def _round_up(n, m):
    return ((n + m - 1) // m) * m


@functools.lru_cache(maxsize=None)
def _vmem_phys_bytes():
    try:
        return int(getattr(pltpu.get_tpu_info(), "vmem_capacity_bytes",
                           64 * 1024 * 1024))
    except Exception:
        return 64 * 1024 * 1024          # conservative fallback


def _vmem_limit():
    # ~48 MiB on v7x (64 MiB physical), 96 MiB on v5e / v6e (128 MiB physical).
    return min(96 * 1024 * 1024, (_vmem_phys_bytes() * 3) // 4)


def _row_block():
    # Bigger M row blocks on 128 MiB-VMEM parts (v5e/v6e); 512 rows on v7x.
    return 1024 if _vmem_phys_bytes() >= 100 * 1024 * 1024 else 512


def _choose_tiling(m):
    """-> (Mp, BM, nsplit): padded row count, M row-block, parallel splits."""
    rb = _row_block()
    if m <= 128:                      # tiny tail layers: one small block
        mp = _round_up(m, 8)
        return mp, mp, 1
    if m <= 2 * rb:                   # still fits comfortably in one block
        mp = _round_up(m, 256)
        return mp, mp, 1
    nsplit = 2                        # 2 parallel M halves -> both TCs on v7x
    mp = _round_up(m, nsplit * rb)
    return mp, rb, nsplit


# ---------------- Pallas kernels ----------------

def _conv_stats_kernel(a_ref, w_ref, pre_ref, sums_ref, *, sub_m, stat_m):
    """Pass 1 of conv+BN+LeakyReLU for one (split, M-block) grid step.

    a_ref:    [BM, Kp]   bf16 im2col patches (padded rows / K columns are zeros)
    w_ref:    [Kp, Cp]   bf16 flattened conv weights (padded rows/cols zeros)
    pre_ref:  [BM, Cp]   f32 pre-activation output block
    sums_ref: [1, 2, Cp] f32 per-split accumulator (sum / sum-of-squares),
              resident across the "arbitrary" M grid axis.
    """
    bm, cp = pre_ref.shape

    @pl.when(pl.program_id(1) == 0)
    def _():
        sums_ref[...] = jnp.zeros_like(sums_ref)

    # MXU matmul in sub_m-row chunks; results go straight to the VMEM output
    # block so the full f32 tile never has to stay live in vregs.
    for r0 in range(0, bm, sub_m):
        pre_ref[pl.ds(r0, sub_m), :] = jnp.dot(
            a_ref[pl.ds(r0, sub_m), :], w_ref[...],
            preferred_element_type=jnp.float32)

    # Single-pass BN statistics, strip-mined over stat_m-row slices re-read from
    # VMEM so only a small tile is live while squaring (bounded vreg pressure).
    s = jnp.zeros((1, cp), jnp.float32)
    ss = jnp.zeros((1, cp), jnp.float32)
    for r0 in range(0, bm, stat_m):
        q = pre_ref[pl.ds(r0, stat_m), :]
        s = s + jnp.sum(q, axis=0, keepdims=True)
        ss = ss + jnp.sum(q * q, axis=0, keepdims=True)
    sums_ref[...] += jnp.concatenate([s, ss], axis=0).reshape(1, 2, cp)


def _bn_act_kernel(pre_ref, sums_ref, g_ref, b_ref, o_ref, *, inv_m):
    """Pass 2: train-mode BN affine + LeakyReLU; exactly one load / one store per element.

    pre_ref:  [BM, Cp]        f32 pre-activation block
    sums_ref: [nsplit, 2, Cp] f32 per-split sum / sum-of-squares
    g_ref, b_ref: [1, Cp]     f32 gamma / beta
    o_ref:    [BM, Cp]        bf16 final activation block
    """
    tot = jnp.sum(sums_ref[...], axis=0)                 # (2, Cp)
    mean = tot[0:1, :] * inv_m
    var = jnp.maximum(tot[1:2, :] * inv_m - mean * mean, 0.0)   # biased, like PyTorch
    scale = g_ref[...] * jax.lax.rsqrt(var + BN_EPS)
    shift = b_ref[...] - mean * scale
    y = pre_ref[...] * scale + shift                     # one load ...
    o_ref[...] = jnp.maximum(y, LEAKY_SLOPE * y).astype(o_ref.dtype)   # ... one store


def _linear_kernel(x_ref, w_ref, b_ref, o_ref):
    o_ref[...] = (
        jnp.dot(x_ref[...], w_ref[...], preferred_element_type=jnp.float32)
        + b_ref[...]
    )


# ---------------- pallas_call wrappers ----------------

def conv_stats_call(a_p, w_p, mp, bm, nsplit):
    kp, cp = w_p.shape
    bpc = mp // (bm * nsplit)            # M blocks per parallel split
    return pl.pallas_call(
        functools.partial(_conv_stats_kernel,
                          sub_m=min(256, bm), stat_m=min(128, bm)),
        grid=(nsplit, bpc),
        in_specs=[
            pl.BlockSpec((bm, kp), lambda c, i: (c * bpc + i, 0)),
            pl.BlockSpec((kp, cp), lambda c, i: (0, 0)),
        ],
        out_specs=[
            pl.BlockSpec((bm, cp), lambda c, i: (c * bpc + i, 0)),
            pl.BlockSpec((1, 2, cp), lambda c, i: (c, 0, 0)),
        ],
        out_shape=[
            jax.ShapeDtypeStruct((mp, cp), jnp.float32),
            jax.ShapeDtypeStruct((nsplit, 2, cp), jnp.float32),
        ],
        compiler_params=pltpu.CompilerParams(
            dimension_semantics=("parallel", "arbitrary"),
            vmem_limit_bytes=_vmem_limit()),
        cost_estimate=pl.CostEstimate(
            flops=2 * mp * kp * cp + 3 * mp * cp,
            transcendentals=0,
            bytes_accessed=mp * kp * 2 + kp * cp * 2 + mp * cp * 4
                           + nsplit * 2 * cp * 4),
    )(a_p, w_p)


def bn_act_call(pre, sums, g_p, b_p, m_true, bm):
    mp, cp = pre.shape
    nsplit = sums.shape[0]
    nblk = mp // bm
    return pl.pallas_call(
        functools.partial(_bn_act_kernel, inv_m=float(1.0 / m_true)),
        grid=(nblk,),
        in_specs=[
            pl.BlockSpec((bm, cp), lambda i: (i, 0)),
            pl.BlockSpec((nsplit, 2, cp), lambda i: (0, 0, 0)),
            pl.BlockSpec((1, cp), lambda i: (0, 0)),
            pl.BlockSpec((1, cp), lambda i: (0, 0)),
        ],
        out_specs=pl.BlockSpec((bm, cp), lambda i: (i, 0)),
        out_shape=jax.ShapeDtypeStruct((mp, cp), jnp.bfloat16),
        compiler_params=pltpu.CompilerParams(
            dimension_semantics=("parallel",),
            vmem_limit_bytes=_vmem_limit()),
        cost_estimate=pl.CostEstimate(
            flops=5 * mp * cp,
            transcendentals=cp * nblk,
            bytes_accessed=mp * cp * 4 + mp * cp * 2 + (nsplit * 2 + 2) * cp * 4),
    )(pre, sums, g_p, b_p)


def linear_call(x_p, w_p, b_p):
    mp, kp = x_p.shape
    cp = w_p.shape[1]
    return pl.pallas_call(
        _linear_kernel,
        out_shape=jax.ShapeDtypeStruct((mp, cp), jnp.float32),
        in_specs=[pl.BlockSpec(memory_space=pltpu.MemorySpace.VMEM)] * 3,
        out_specs=pl.BlockSpec(memory_space=pltpu.MemorySpace.VMEM),
        compiler_params=pltpu.CompilerParams(vmem_limit_bytes=_vmem_limit()),
        cost_estimate=pl.CostEstimate(
            flops=2 * mp * kp * cp, transcendentals=0,
            bytes_accessed=(mp * kp + kp * cp + cp + mp * cp) * 4),
    )(x_p, w_p, b_p)


# ---------------- JAX glue ----------------

def _im2col_bf16(x, k, stride, pad, mp, kp):
    """NHWC activation -> bf16 patch matrix zero-padded to [Mp, Kp].

    The bf16 cast happens BEFORE the pad/slice/concat so every 9x-expanded
    intermediate XLA materializes is bf16 (halves im2col HBM traffic).  For
    layers >= 2 the activation already arrives bf16 from the previous layer's
    Pallas epilogue, so the cast is a no-op.
    """
    x = x.astype(jnp.bfloat16)
    n, h, w, c = x.shape
    oh = (h + 2 * pad - k) // stride + 1
    ow = (w + 2 * pad - k) // stride + 1
    xp = jnp.pad(x, ((0, 0), (pad, pad), (pad, pad), (0, 0)))
    cols = []
    for i in range(k):
        for j in range(k):
            cols.append(xp[:, i:i + stride * oh:stride, j:j + stride * ow:stride, :])
    a = jnp.concatenate(cols, axis=-1).reshape(n * oh * ow, k * k * c)
    return jnp.pad(a, ((0, mp - n * oh * ow), (0, kp - k * k * c)))


def conv_bn_leaky(x, lp, cout, k, stride, pad):
    """conv2d (bias folded into BN) + BatchNorm2d (batch stats) + LeakyReLU(0.1), NHWC."""
    n, h, w, _cin = x.shape
    oh = (h + 2 * pad - k) // stride + 1
    ow = (w + 2 * pad - k) // stride + 1
    m = n * oh * ow
    mp, bm, nsplit = _choose_tiling(m)
    kp, cp = lp["w"].shape                         # weights already padded/cast at init
    a_p = _im2col_bf16(x, k, stride, pad, mp, kp)
    # TODO(synk): build the 3x3 patches inside the kernel from a halo'd NHWC row block
    # (memory_space=pl.ANY + make_async_copy) to remove the XLA-side 9x im2col expansion.
    pre, sums = conv_stats_call(a_p, lp["w"], mp, bm, nsplit)
    act = bn_act_call(pre, sums, lp["gamma"], lp["beta"], m, bm)
    return act[:m, :cout].reshape(n, oh, ow, cout)


# ---------------- model definition ----------------

def allcnn_configs(scale):
    c1, c2, c3, c4 = (int(96 * scale), int(192 * scale),
                      int(256 * scale), int(384 * scale))
    cfgs = [
        # (cin, cout, kernel, stride, pad) — same topology as the PyTorch module
        (3,  c1, 3, 1, 1), (c1, c1, 3, 1, 1), (c1, c1, 3, 2, 1),
        (c1, c2, 3, 1, 1), (c2, c2, 3, 1, 1), (c2, c2, 3, 2, 1),
        (c2, c3, 3, 1, 1), (c3, c3, 3, 1, 1), (c3, c3, 3, 2, 1),
        (c3, c4, 3, 1, 1), (c4, c4, 3, 1, 1), (c4, c4, 1, 1, 0),
    ]
    return cfgs, c4


def init_params(key, cfgs, c4, nb_class=10):
    """Deterministic synthetic init mimicking kaiming_normal_ / normal_ / BN const."""
    params = {"convs": []}
    for (cin, cout, k, _s, _p) in cfgs:
        key, k1, k2 = jax.random.split(key, 3)
        fan_in = cin * k * k
        params["convs"].append({
            "w": jax.random.normal(k1, (k, k, cin, cout), jnp.float32)
                 * jnp.sqrt(2.0 / fan_in),
            # conv bias exists in the PyTorch module, but a constant per-channel bias is
            # exactly cancelled by the train-mode BatchNorm that follows, so it is never
            # fed to the kernels (correctness-neutral optimization).
            "b": jax.random.normal(k2, (cout,), jnp.float32),
            "gamma": jnp.ones((cout,), jnp.float32),
            "beta": jnp.zeros((cout,), jnp.float32),
        })
    key, k1, k2 = jax.random.split(key, 3)
    params["fc"] = {
        "w": jax.random.normal(k1, (c4, nb_class), jnp.float32) * jnp.sqrt(2.0 / c4),
        "b": jax.random.normal(k2, (nb_class,), jnp.float32),
    }
    return params


def prepare_params(params, cfgs):
    """One-time (outside jit) flatten + zero-pad + bf16 cast of the kernel weights."""
    prep = {"convs": []}
    for p, (cin, cout, k, _s, _p) in zip(params["convs"], cfgs):
        kk = k * k * cin
        kp, cp = _round_up(kk, 128), _round_up(cout, 128)
        w = jnp.pad(p["w"].reshape(kk, cout), ((0, kp - kk), (0, cp - cout)))
        prep["convs"].append({
            "w": w.astype(jnp.bfloat16),                              # MXU operand
            "gamma": jnp.pad(p["gamma"], (0, cp - cout)).reshape(1, cp),
            "beta": jnp.pad(p["beta"], (0, cp - cout)).reshape(1, cp),
        })
    c4, nb = params["fc"]["w"].shape
    kp, cp = _round_up(c4, 128), _round_up(nb, 128)
    prep["fc"] = {
        "w": jnp.pad(params["fc"]["w"], ((0, kp - c4), (0, cp - nb))),
        "b": jnp.pad(params["fc"]["b"], (0, cp - nb)).reshape(1, cp),
    }
    return prep


def allcnn_forward(prep, x_nchw, cfgs, nb_class):
    # PyTorch conv input is NCHW; transpose to NHWC and cast to bf16 once.
    x = jnp.transpose(x_nchw, (0, 2, 3, 1)).astype(jnp.bfloat16)
    for lp, (_cin, cout, k, s, pad) in zip(prep["convs"], cfgs):
        x = conv_bn_leaky(x, lp, cout, k, s, pad)
    # F.avg_pool2d(x, 4) on the final 4x4 map == global spatial mean; then flatten.
    # TODO(synk): fold avg-pool + Linear into the last conv layer's pass-2 kernel to
    # drop two launches / HBM round trips on the tiny tail.
    x = jnp.mean(x.astype(jnp.float32), axis=(1, 2))           # [N, c4]
    n, c4 = x.shape
    mp, kp = _round_up(n, 8), prep["fc"]["w"].shape[0]
    x_p = jnp.pad(x, ((0, mp - n), (0, kp - c4)))
    y_p = linear_call(x_p, prep["fc"]["w"], prep["fc"]["b"])
    return y_p[:n, :nb_class]


if __name__ == "__main__":
    scale = 0.25          # smaller width than the 0.66 default to keep the demo small
    nb_class = 10
    cfgs, c4 = allcnn_configs(scale)

    key = jax.random.PRNGKey(0)
    key, pkey, xkey = jax.random.split(key, 3)
    params = init_params(pkey, cfgs, c4, nb_class)
    prep = prepare_params(params, cfgs)       # pad + bf16-cast weights once, outside jit

    # CIFAR-like input (NCHW, as the PyTorch module expects): batch=2, 3x32x32.
    x = jax.random.normal(xkey, (2, 3, 32, 32), jnp.float32)

    fwd = jax.jit(functools.partial(allcnn_forward, cfgs=cfgs, nb_class=nb_class))
    logits = fwd(prep, x)
    jax.block_until_ready(logits)
    assert logits.shape == (2, nb_class), logits.shape
    assert bool(jnp.all(jnp.isfinite(logits)))
    print("KERNEL_OK")
</pallas_src>

<mosaic_0001>
module attributes {stable_mosaic.version = 11 : i64} {
  func.func @_conv_stats_kernel(%arg0: i32, %arg1: i32, %arg2: memref<512x128xbf16, #tpu.memory_space<vmem>>, %arg3: memref<128x128xbf16, #tpu.memory_space<vmem>>, %arg4: memref<512x128xf32, #tpu.memory_space<vmem>>, %arg5: memref<1x2x128xf32, #tpu.memory_space<vmem>>) attributes {dimension_semantics = [#tpu.dimension_semantics<parallel>, #tpu.dimension_semantics<arbitrary>], iteration_bounds = array<i64: 2, 2>, scalar_prefetch = 0 : i64, scratch_operands = 0 : i64, tpu.core_type = #tpu.core_type<tc>, window_params = [{transform_indices = @transform_0, window_bounds = array<i64: 512, 128>}, {pipeline_mode = #tpu.pipeline_mode<synchronous>, transform_indices = @transform_1, window_bounds = array<i64: 128, 128>}, {transform_indices = @transform_2, window_bounds = array<i64: 512, 128>}, {transform_indices = @transform_3, window_bounds = array<i64: 1, 2, 128>}]} {
    %c0_i32 = arith.constant 0 : i32
    %0 = arith.cmpi eq, %arg1, %c0_i32 : i32
    %1 = arith.extui %0 : i1 to i32
    %c0_i32_0 = arith.constant 0 : i32
    %2 = arith.cmpi ne, %1, %c0_i32_0 : i32
    scf.if %2 {
      %cst_34 = arith.constant 0.000000e+00 : f32
      %50 = vector.broadcast %cst_34 : f32 to vector<1x2x128xf32>
      %c0_35 = arith.constant 0 : index
      %c0_36 = arith.constant 0 : index
      %c0_37 = arith.constant 0 : index
      %51 = vector.load %arg5[%c0_35, %c0_36, %c0_37] : memref<1x2x128xf32, #tpu.memory_space<vmem>>, vector<1x2x128xf32>
      tpu.vector_store %arg5[%c0_35, %c0_36, %c0_37], %50 {strides = array<i32>} : memref<1x2x128xf32, #tpu.memory_space<vmem>>, vector<1x2x128xf32>,
    } else {
    }
    %c0 = arith.constant 0 : index
    %c0_1 = arith.constant 0 : index
    %3 = vector.load %arg2[%c0, %c0_1] : memref<512x128xbf16, #tpu.memory_space<vmem>>, vector<256x128xbf16>
    %c0_2 = arith.constant 0 : index
    %c0_3 = arith.constant 0 : index
    %4 = vector.load %arg3[%c0_2, %c0_3] : memref<128x128xbf16, #tpu.memory_space<vmem>>, vector<128x128xbf16>
    %cst = arith.constant dense<0.000000e+00> : vector<256x128xf32>
    %5 = tpu.matmul %3, %4, %cst {dimension_numbers = #tpu.dot_dimension_numbers<[1], [0], [0], [1], [0, 0, 1, 1], [], []>} : vector<256x128xbf16>, vector<128x128xbf16>, vector<256x128xf32> -> vector<256x128xf32>
    %c0_4 = arith.constant 0 : index
    %c0_5 = arith.constant 0 : index
    %6 = vector.load %arg4[%c0_4, %c0_5] : memref<512x128xf32, #tpu.memory_space<vmem>>, vector<256x128xf32>
    tpu.vector_store %arg4[%c0_4, %c0_5], %5 {strides = array<i32>} : memref<512x128xf32, #tpu.memory_space<vmem>>, vector<256x128xf32>,
    %c256 = arith.constant 256 : index
    %c0_6 = arith.constant 0 : index
    %7 = vector.load %arg2[%c256, %c0_6] : memref<512x128xbf16, #tpu.memory_space<vmem>>, vector<256x128xbf16>
    %c0_7 = arith.constant 0 : index
    %c0_8 = arith.constant 0 : index
    %8 = vector.load %arg3[%c0_7, %c0_8] : memref<128x128xbf16, #tpu.memory_space<vmem>>, vector<128x128xbf16>
    %cst_9 = arith.constant dense<0.000000e+00> : vector<256x128xf32>
    %9 = tpu.matmul %7, %8, %cst_9 {dimension_numbers = #tpu.dot_dimension_numbers<[1], [0], [0], [1], [0, 0, 1, 1], [], []>} : vector<256x128xbf16>, vector<128x128xbf16>, vector<256x128xf32> -> vector<256x128xf32>
    %c256_10 = arith.constant 256 : index
    %c0_11 = arith.constant 0 : index
    %10 = vector.load %arg4[%c256_10, %c0_11] : memref<512x128xf32, #tpu.memory_space<vmem>>, vector<256x128xf32>
    tpu.vector_store %arg4[%c256_10, %c0_11], %9 {strides = array<i32>} : memref<512x128xf32, #tpu.memory_space<vmem>>, vector<256x128xf32>,
    %cst_12 = arith.constant 0.000000e+00 : f32
    %11 = vector.broadcast %cst_12 : f32 to vector<1x128xf32>
    %cst_13 = arith.constant 0.000000e+00 : f32
    %12 = vector.broadcast %cst_13 : f32 to vector<1x128xf32>
    %c0_14 = arith.constant 0 : index
    %c0_15 = arith.constant 0 : index
    %13 = vector.load %arg4[%c0_14, %c0_15] : memref<512x128xf32, #tpu.memory_space<vmem>>, vector<128x128xf32>
    %cst_16 = arith.constant dense<0.000000e+00> : vector<128xf32>
    %14 = vector.multi_reduction <add>, %13, %cst_16 [0] : vector<128x128xf32> to vector<128xf32>
    %15 = vector.shape_cast %14 : vector<128xf32> to vector<1x128xf32>
    %16 = arith.addf %11, %15 : vector<1x128xf32>
    %17 = arith.mulf %13, %13 : vector<128x128xf32>
    %cst_17 = arith.constant dense<0.000000e+00> : vector<128xf32>
    %18 = vector.multi_reduction <add>, %17, %cst_17 [0] : vector<128x128xf32> to vector<128xf32>
    %19 = vector.shape_cast %18 : vector<128xf32> to vector<1x128xf32>
    %20 = arith.addf %12, %19 : vector<1x128xf32>
    %c128 = arith.constant 128 : index
    %c0_18 = arith.constant 0 : index
    %21 = vector.load %arg4[%c128, %c0_18] : memref<512x128xf32, #tpu.memory_space<vmem>>, vector<128x128xf32>
    %cst_19 = arith.constant dense<0.000000e+00> : vector<128xf32>
    %22 = vector.multi_reduction <add>, %21, %cst_19 [0] : vector<128x128xf32> to vector<128xf32>
    %23 = vector.shape_cast %22 : vector<128xf32> to vector<1x128xf32>
    %24 = arith.addf %16, %23 : vector<1x128xf32>
    %25 = arith.mulf %21, %21 : vector<128x128xf32>
    %cst_20 = arith.constant dense<0.000000e+00> : vector<128xf32>
    %26 = vector.multi_reduction <add>, %25, %cst_20 [0] : vector<128x128xf32> to vector<128xf32>
    %27 = vector.shape_cast %26 : vector<128xf32> to vector<1x128xf32>
    %28 = arith.addf %20, %27 : vector<1x128xf32>
    %c256_21 = arith.constant 256 : index
    %c0_22 = arith.constant 0 : index
    %29 = vector.load %arg4[%c256_21, %c0_22] : memref<512x128xf32, #tpu.memory_space<vmem>>, vector<128x128xf32>
    %cst_23 = arith.constant dense<0.000000e+00> : vector<128xf32>
    %30 = vector.multi_reduction <add>, %29, %cst_23 [0] : vector<128x128xf32> to vector<128xf32>
    %31 = vector.shape_cast %30 : vector<128xf32> to vector<1x128xf32>
    %32 = arith.addf %24, %31 : vector<1x128xf32>
    %33 = arith.mulf %29, %29 : vector<128x128xf32>
    %cst_24 = arith.constant dense<0.000000e+00> : vector<128xf32>
    %34 = vector.multi_reduction <add>, %33, %cst_24 [0] : vector<128x128xf32> to vector<128xf32>
    %35 = vector.shape_cast %34 : vector<128xf32> to vector<1x128xf32>
    %36 = arith.addf %28, %35 : vector<1x128xf32>
    %c384 = arith.constant 384 : index
    %c0_25 = arith.constant 0 : index
    %37 = vector.load %arg4[%c384, %c0_25] : memref<512x128xf32, #tpu.memory_space<vmem>>, vector<128x128xf32>
    %cst_26 = arith.constant dense<0.000000e+00> : vector<128xf32>
    %38 = vector.multi_reduction <add>, %37, %cst_26 [0] : vector<128x128xf32> to vector<128xf32>
    %39 = vector.shape_cast %38 : vector<128xf32> to vector<1x128xf32>
    %40 = arith.addf %32, %39 : vector<1x128xf32>
    %41 = arith.mulf %37, %37 : vector<128x128xf32>
    %cst_27 = arith.constant dense<0.000000e+00> : vector<128xf32>
    %42 = vector.multi_reduction <add>, %41, %cst_27 [0] : vector<128x128xf32> to vector<128xf32>
    %43 = vector.shape_cast %42 : vector<128xf32> to vector<1x128xf32>
    %44 = arith.addf %36, %43 : vector<1x128xf32>
    %c0_28 = arith.constant 0 : index
    %c0_29 = arith.constant 0 : index
    %c0_30 = arith.constant 0 : index
    %45 = vector.load %arg5[%c0_28, %c0_29, %c0_30] : memref<1x2x128xf32, #tpu.memory_space<vmem>>, vector<1x2x128xf32>
    %46 = tpu.concatenate %40, %44 in 0 : vector<1x128xf32>, vector<1x128xf32> -> vector<2x128xf32>
    %47 = vector.shape_cast %46 : vector<2x128xf32> to vector<1x2x128xf32>
    %48 = arith.addf %45, %47 : vector<1x2x128xf32>
    %c0_31 = arith.constant 0 : index
    %c0_32 = arith.constant 0 : index
    %c0_33 = arith.constant 0 : index
    %49 = vector.load %arg5[%c0_31, %c0_32, %c0_33] : memref<1x2x128xf32, #tpu.memory_space<vmem>>, vector<1x2x128xf32>
    tpu.vector_store %arg5[%c0_31, %c0_32, %c0_33], %48 {strides = array<i32>} : memref<1x2x128xf32, #tpu.memory_space<vmem>>, vector<1x2x128xf32>,
    return
  }
  func.func @transform_0(%arg0: i32, %arg1: i32) -> (i32, i32) {
    %c2_i32 = arith.constant 2 : i32
    %0 = arith.muli %arg0, %c2_i32 : i32
    %1 = arith.addi %0, %arg1 : i32
    %c0_i32 = arith.constant 0 : i32
    %c0_i32_0 = arith.constant 0 : i32
    return %1, %c0_i32 : i32, i32
  }
  func.func @transform_1(%arg0: i32, %arg1: i32) -> (i32, i32) {
    %c0_i32 = arith.constant 0 : i32
    %c0_i32_0 = arith.constant 0 : i32
    %c0_i32_1 = arith.constant 0 : i32
    return %c0_i32, %c0_i32_0 : i32, i32
  }
  func.func @transform_2(%arg0: i32, %arg1: i32) -> (i32, i32) {
    %c2_i32 = arith.constant 2 : i32
    %0 = arith.muli %arg0, %c2_i32 : i32
    %1 = arith.addi %0, %arg1 : i32
    %c0_i32 = arith.constant 0 : i32
    %c0_i32_0 = arith.constant 0 : i32
    return %1, %c0_i32 : i32, i32
  }
  func.func @transform_3(%arg0: i32, %arg1: i32) -> (i32, i32, i32) {
    %c0_i32 = arith.constant 0 : i32
    %c0_i32_0 = arith.constant 0 : i32
    %c0_i32_1 = arith.constant 0 : i32
    return %arg0, %c0_i32, %c0_i32_0 : i32, i32, i32
  }
}

module attributes {stable_mosaic.version = 11 : i64} {
  func.func @_bn_act_kernel(%arg0: i32, %arg1: memref<512x128xf32, #tpu.memory_space<vmem>>, %arg2: memref<2x2x128xf32, #tpu.memory_space<vmem>>, %arg3: memref<1x128xf32, #tpu.memory_space<vmem>>, %arg4: memref<1x128xf32, #tpu.memory_space<vmem>>, %arg5: memref<512x128xbf16, #tpu.memory_space<vmem>>) attributes {dimension_semantics = [#tpu.dimension_semantics<parallel>], iteration_bounds = array<i64: 4>, scalar_prefetch = 0 : i64, scratch_operands = 0 : i64, tpu.core_type = #tpu.core_type<tc>, window_params = [{transform_indices = @transform_0, window_bounds = array<i64: 512, 128>}, {pipeline_mode = #tpu.pipeline_mode<synchronous>, transform_indices = @transform_1, window_bounds = array<i64: 2, 2, 128>}, {pipeline_mode = #tpu.pipeline_mode<synchronous>, transform_indices = @transform_2, window_bounds = array<i64: 1, 128>}, {pipeline_mode = #tpu.pipeline_mode<synchronous>, transform_indices = @transform_3, window_bounds = array<i64: 1, 128>}, {transform_indices = @transform_4, window_bounds = array<i64: 512, 128>}]} {
    %c0 = arith.constant 0 : index
    %c0_0 = arith.constant 0 : index
    %c0_1 = arith.constant 0 : index
    %0 = vector.load %arg2[%c0, %c0_0, %c0_1] : memref<2x2x128xf32, #tpu.memory_space<vmem>>, vector<2x2x128xf32>
    %cst = arith.constant dense<0.000000e+00> : vector<2x128xf32>
    %1 = vector.multi_reduction <add>, %0, %cst [0] : vector<2x2x128xf32> to vector<2x128xf32>
    %2 = vector.extract_strided_slice %1 {offsets = [0, 0], sizes = [1, 128], strides = [1, 1]} : vector<2x128xf32> to vector<1x128xf32>
    %cst_2 = arith.constant 4.8828125E-4 : f32
    %3 = vector.broadcast %cst_2 : f32 to vector<1x128xf32>
    %4 = arith.mulf %2, %3 : vector<1x128xf32>
    %5 = vector.extract_strided_slice %1 {offsets = [1, 0], sizes = [1, 128], strides = [1, 1]} : vector<2x128xf32> to vector<1x128xf32>
    %cst_3 = arith.constant 4.8828125E-4 : f32
    %6 = vector.broadcast %cst_3 : f32 to vector<1x128xf32>
    %7 = arith.mulf %5, %6 : vector<1x128xf32>
    %8 = arith.mulf %4, %4 : vector<1x128xf32>
    %9 = arith.subf %7, %8 : vector<1x128xf32>
    %cst_4 = arith.constant 0.000000e+00 : f32
    %10 = vector.broadcast %cst_4 : f32 to vector<1x128xf32>
    %11 = arith.maximumf %9, %10 : vector<1x128xf32>
    %c0_5 = arith.constant 0 : index
    %c0_6 = arith.constant 0 : index
    %12 = vector.load %arg3[%c0_5, %c0_6] : memref<1x128xf32, #tpu.memory_space<vmem>>, vector<1x128xf32>
    %cst_7 = arith.constant 9.99999974E-6 : f32
    %13 = vector.broadcast %cst_7 : f32 to vector<1x128xf32>
    %14 = arith.addf %11, %13 : vector<1x128xf32>
    %15 = math.rsqrt %14 : vector<1x128xf32>
    %16 = arith.mulf %12, %15 : vector<1x128xf32>
    %c0_8 = arith.constant 0 : index
    %c0_9 = arith.constant 0 : index
    %17 = vector.load %arg4[%c0_8, %c0_9] : memref<1x128xf32, #tpu.memory_space<vmem>>, vector<1x128xf32>
    %18 = arith.mulf %4, %16 : vector<1x128xf32>
    %19 = arith.subf %17, %18 : vector<1x128xf32>
    %c0_10 = arith.constant 0 : index
    %c0_11 = arith.constant 0 : index
    %20 = vector.load %arg1[%c0_10, %c0_11] : memref<512x128xf32, #tpu.memory_space<vmem>>, vector<512x128xf32>
    %21 = vector.broadcast %16 : vector<1x128xf32> to vector<512x128xf32>
    %22 = arith.mulf %20, %21 : vector<512x128xf32>
    %23 = vector.broadcast %19 : vector<1x128xf32> to vector<512x128xf32>
    %24 = arith.addf %22, %23 : vector<512x128xf32>
    %cst_12 = arith.constant 1.000000e-01 : f32
    %25 = vector.broadcast %cst_12 : f32 to vector<512x128xf32>
    %26 = arith.mulf %25, %24 : vector<512x128xf32>
    %27 = arith.maximumf %24, %26 : vector<512x128xf32>
    %28 = arith.truncf %27 : vector<512x128xf32> to vector<512x128xbf16>
    %c0_13 = arith.constant 0 : index
    %c0_14 = arith.constant 0 : index
    %29 = vector.load %arg5[%c0_13, %c0_14] : memref<512x128xbf16, #tpu.memory_space<vmem>>, vector<512x128xbf16>
    tpu.vector_store %arg5[%c0_13, %c0_14], %28 {strides = array<i32>} : memref<512x128xbf16, #tpu.memory_space<vmem>>, vector<512x128xbf16>,
    return
  }
  func.func @transform_0(%arg0: i32) -> (i32, i32) {
    %c0_i32 = arith.constant 0 : i32
    %c0_i32_0 = arith.constant 0 : i32
    return %arg0, %c0_i32 : i32, i32
  }
  func.func @transform_1(%arg0: i32) -> (i32, i32, i32) {
    %c0_i32 = arith.constant 0 : i32
    %c0_i32_0 = arith.constant 0 : i32
    %c0_i32_1 = arith.constant 0 : i32
    %c0_i32_2 = arith.constant 0 : i32
    return %c0_i32, %c0_i32_0, %c0_i32_1 : i32, i32, i32
  }
  func.func @transform_2(%arg0: i32) -> (i32, i32) {
    %c0_i32 = arith.constant 0 : i32
    %c0_i32_0 = arith.constant 0 : i32
    %c0_i32_1 = arith.constant 0 : i32
    return %c0_i32, %c0_i32_0 : i32, i32
  }
  func.func @transform_3(%arg0: i32) -> (i32, i32) {
    %c0_i32 = arith.constant 0 : i32
    %c0_i32_0 = arith.constant 0 : i32
    %c0_i32_1 = arith.constant 0 : i32
    return %c0_i32, %c0_i32_0 : i32, i32
  }
  func.func @transform_4(%arg0: i32) -> (i32, i32) {
    %c0_i32 = arith.constant 0 : i32
    %c0_i32_0 = arith.constant 0 : i32
    return %arg0, %c0_i32 : i32, i32
  }
}

module attributes {stable_mosaic.version = 11 : i64} {
  func.func @_conv_stats_kernel(%arg0: i32, %arg1: i32, %arg2: memref<512x256xbf16, #tpu.memory_space<vmem>>, %arg3: memref<256x128xbf16, #tpu.memory_space<vmem>>, %arg4: memref<512x128xf32, #tpu.memory_space<vmem>>, %arg5: memref<1x2x128xf32, #tpu.memory_space<vmem>>) attributes {dimension_semantics = [#tpu.dimension_semantics<parallel>, #tpu.dimension_semantics<arbitrary>], iteration_bounds = array<i64: 2, 2>, scalar_prefetch = 0 : i64, scratch_operands = 0 : i64, tpu.core_type = #tpu.core_type<tc>, window_params = [{transform_indices = @transform_0, window_bounds = array<i64: 512, 256>}, {pipeline_mode = #tpu.pipeline_mode<synchronous>, transform_indices = @transform_1, window_bounds = array<i64: 256, 128>}, {transform_indices = @transform_2, window_bounds = array<i64: 512, 128>}, {transform_indices = @transform_3, window_bounds = array<i64: 1, 2, 128>}]} {
    %c0_i32 = arith.constant 0 : i32
    %0 = arith.cmpi eq, %arg1, %c0_i32 : i32
    %1 = arith.extui %0 : i1 to i32
    %c0_i32_0 = arith.constant 0 : i32
    %2 = arith.cmpi ne, %1, %c0_i32_0 : i32
    scf.if %2 {
      %cst_34 = arith.constant 0.000000e+00 : f32
      %50 = vector.broadcast %cst_34 : f32 to vector<1x2x128xf32>
      %c0_35 = arith.constant 0 : index
      %c0_36 = arith.constant 0 : index
      %c0_37 = arith.constant 0 : index
      %51 = vector.load %arg5[%c0_35, %c0_36, %c0_37] : memref<1x2x128xf32, #tpu.memory_space<vmem>>, vector<1x2x128xf32>
      tpu.vector_store %arg5[%c0_35, %c0_36, %c0_37], %50 {strides = array<i32>} : memref<1x2x128xf32, #tpu.memory_space<vmem>>, vector<1x2x128xf32>,
    } else {
    }
    %c0 = arith.constant 0 : index
    %c0_1 = arith.constant 0 : index
    %3 = vector.load %arg2[%c0, %c0_1] : memref<512x256xbf16, #tpu.memory_space<vmem>>, vector<256x256xbf16>
    %c0_2 = arith.constant 0 : index
    %c0_3 = arith.constant 0 : index
    %4 = vector.load %arg3[%c0_2, %c0_3] : memref<256x128xbf16, #tpu.memory_space<vmem>>, vector<256x128xbf16>
    %cst = arith.constant dense<0.000000e+00> : vector<256x128xf32>
    %5 = tpu.matmul %3, %4, %cst {dimension_numbers = #tpu.dot_dimension_numbers<[1], [0], [0], [1], [0, 0, 1, 1], [], []>} : vector<256x256xbf16>, vector<256x128xbf16>, vector<256x128xf32> -> vector<256x128xf32>
    %c0_4 = arith.constant 0 : index
    %c0_5 = arith.constant 0 : index
    %6 = vector.load %arg4[%c0_4, %c0_5] : memref<512x128xf32, #tpu.memory_space<vmem>>, vector<256x128xf32>
    tpu.vector_store %arg4[%c0_4, %c0_5], %5 {strides = array<i32>} : memref<512x128xf32, #tpu.memory_space<vmem>>, vector<256x128xf32>,
    %c256 = arith.constant 256 : index
    %c0_6 = arith.constant 0 : index
    %7 = vector.load %arg2[%c256, %c0_6] : memref<512x256xbf16, #tpu.memory_space<vmem>>, vector<256x256xbf16>
    %c0_7 = arith.constant 0 : index
    %c0_8 = arith.constant 0 : index
    %8 = vector.load %arg3[%c0_7, %c0_8] : memref<256x128xbf16, #tpu.memory_space<vmem>>, vector<256x128xbf16>
    %cst_9 = arith.constant dense<0.000000e+00> : vector<256x128xf32>
    %9 = tpu.matmul %7, %8, %cst_9 {dimension_numbers = #tpu.dot_dimension_numbers<[1], [0], [0], [1], [0, 0, 1, 1], [], []>} : vector<256x256xbf16>, vector<256x128xbf16>, vector<256x128xf32> -> vector<256x128xf32>
    %c256_10 = arith.constant 256 : index
    %c0_11 = arith.constant 0 : index
    %10 = vector.load %arg4[%c256_10, %c0_11] : memref<512x128xf32, #tpu.memory_space<vmem>>, vector<256x128xf32>
    tpu.vector_store %arg4[%c256_10, %c0_11], %9 {strides = array<i32>} : memref<512x128xf32, #tpu.memory_space<vmem>>, vector<256x128xf32>,
    %cst_12 = arith.constant 0.000000e+00 : f32
    %11 = vector.broadcast %cst_12 : f32 to vector<1x128xf32>
    %cst_13 = arith.constant 0.000000e+00 : f32
    %12 = vector.broadcast %cst_13 : f32 to vector<1x128xf32>
    %c0_14 = arith.constant 0 : index
    %c0_15 = arith.constant 0 : index
    %13 = vector.load %arg4[%c0_14, %c0_15] : memref<512x128xf32, #tpu.memory_space<vmem>>, vector<128x128xf32>
    %cst_16 = arith.constant dense<0.000000e+00> : vector<128xf32>
    %14 = vector.multi_reduction <add>, %13, %cst_16 [0] : vector<128x128xf32> to vector<128xf32>
    %15 = vector.shape_cast %14 : vector<128xf32> to vector<1x128xf32>
    %16 = arith.addf %11, %15 : vector<1x128xf32>
    %17 = arith.mulf %13, %13 : vector<128x128xf32>
    %cst_17 = arith.constant dense<0.000000e+00> : vector<128xf32>
    %18 = vector.multi_reduction <add>, %17, %cst_17 [0] : vector<128x128xf32> to vector<128xf32>
    %19 = vector.shape_cast %18 : vector<128xf32> to vector<1x128xf32>
    %20 = arith.addf %12, %19 : vector<1x128xf32>
    %c128 = arith.constant 128 : index
    %c0_18 = arith.constant 0 : index
    %21 = vector.load %arg4[%c128, %c0_18] : memref<512x128xf32, #tpu.memory_space<vmem>>, vector<128x128xf32>
    %cst_19 = arith.constant dense<0.000000e+00> : vector<128xf32>
    %22 = vector.multi_reduction <add>, %21, %cst_19 [0] : vector<128x128xf32> to vector<128xf32>
    %23 = vector.shape_cast %22 : vector<128xf32> to vector<1x128xf32>
    %24 = arith.addf %16, %23 : vector<1x128xf32>
    %25 = arith.mulf %21, %21 : vector<128x128xf32>
    %cst_20 = arith.constant dense<0.000000e+00> : vector<128xf32>
    %26 = vector.multi_reduction <add>, %25, %cst_20 [0] : vector<128x128xf32> to vector<128xf32>
    %27 = vector.shape_cast %26 : vector<128xf32> to vector<1x128xf32>
    %28 = arith.addf %20, %27 : vector<1x128xf32>
    %c256_21 = arith.constant 256 : index
    %c0_22 = arith.constant 0 : index
    %29 = vector.load %arg4[%c256_21, %c0_22] : memref<512x128xf32, #tpu.memory_space<vmem>>, vector<128x128xf32>
    %cst_23 = arith.constant dense<0.000000e+00> : vector<128xf32>
    %30 = vector.multi_reduction <add>, %29, %cst_23 [0] : vector<128x128xf32> to vector<128xf32>
    %31 = vector.shape_cast %30 : vector<128xf32> to vector<1x128xf32>
    %32 = arith.addf %24, %31 : vector<1x128xf32>
    %33 = arith.mulf %29, %29 : vector<128x128xf32>
    %cst_24 = arith.constant dense<0.000000e+00> : vector<128xf32>
    %34 = vector.multi_reduction <add>, %33, %cst_24 [0] : vector<128x128xf32> to vector<128xf32>
    %35 = vector.shape_cast %34 : vector<128xf32> to vector<1x128xf32>
    %36 = arith.addf %28, %35 : vector<1x128xf32>
    %c384 = arith.constant 384 : index
    %c0_25 = arith.constant 0 : index
    %37 = vector.load %arg4[%c384, %c0_25] : memref<512x128xf32, #tpu.memory_space<vmem>>, vector<128x128xf32>
    %cst_26 = arith.constant dense<0.000000e+00> : vector<128xf32>
    %38 = vector.multi_reduction <add>, %37, %cst_26 [0] : vector<128x128xf32> to vector<128xf32>
    %39 = vector.shape_cast %38 : vector<128xf32> to vector<1x128xf32>
    %40 = arith.addf %32, %39 : vector<1x128xf32>
    %41 = arith.mulf %37, %37 : vector<128x128xf32>
    %cst_27 = arith.constant dense<0.000000e+00> : vector<128xf32>
    %42 = vector.multi_reduction <add>, %41, %cst_27 [0] : vector<128x128xf32> to vector<128xf32>
    %43 = vector.shape_cast %42 : vector<128xf32> to vector<1x128xf32>
    %44 = arith.addf %36, %43 : vector<1x128xf32>
    %c0_28 = arith.constant 0 : index
    %c0_29 = arith.constant 0 : index
    %c0_30 = arith.constant 0 : index
    %45 = vector.load %arg5[%c0_28, %c0_29, %c0_30] : memref<1x2x128xf32, #tpu.memory_space<vmem>>, vector<1x2x128xf32>
    %46 = tpu.concatenate %40, %44 in 0 : vector<1x128xf32>, vector<1x128xf32> -> vector<2x128xf32>
    %47 = vector.shape_cast %46 : vector<2x128xf32> to vector<1x2x128xf32>
    %48 = arith.addf %45, %47 : vector<1x2x128xf32>
    %c0_31 = arith.constant 0 : index
    %c0_32 = arith.constant 0 : index
    %c0_33 = arith.constant 0 : index
    %49 = vector.load %arg5[%c0_31, %c0_32, %c0_33] : memref<1x2x128xf32, #tpu.memory_space<vmem>>, vector<1x2x128xf32>
    tpu.vector_store %arg5[%c0_31, %c0_32, %c0_33], %48 {strides = array<i32>} : memref<1x2x128xf32, #tpu.memory_space<vmem>>, vector<1x2x128xf32>,
    return
  }
  func.func @transform_0(%arg0: i32, %arg1: i32) -> (i32, i32) {
    %c2_i32 = arith.constant 2 : i32
    %0 = arith.muli %arg0, %c2_i32 : i32
    %1 = arith.addi %0, %arg1 : i32
    %c0_i32 = arith.constant 0 : i32
    %c0_i32_0 = arith.constant 0 : i32
    return %1, %c0_i32 : i32, i32
  }
  func.func @transform_1(%arg0: i32, %arg1: i32) -> (i32, i32) {
    %c0_i32 = arith.constant 0 : i32
    %c0_i32_0 = arith.constant 0 : i32
    %c0_i32_1 = arith.constant 0 : i32
    return %c0_i32, %c0_i32_0 : i32, i32
  }
  func.func @transform_2(%arg0: i32, %arg1: i32) -> (i32, i32) {
    %c2_i32 = arith.constant 2 : i32
    %0 = arith.muli %arg0, %c2_i32 : i32
    %1 = arith.addi %0, %arg1 : i32
    %c0_i32 = arith.constant 0 : i32
    %c0_i32_0 = arith.constant 0 : i32
    return %1, %c0_i32 : i32, i32
  }
  func.func @transform_3(%arg0: i32, %arg1: i32) -> (i32, i32, i32) {
    %c0_i32 = arith.constant 0 : i32
    %c0_i32_0 = arith.constant 0 : i32
    %c0_i32_1 = arith.constant 0 : i32
    return %arg0, %c0_i32, %c0_i32_0 : i32, i32, i32
  }
}

module attributes {stable_mosaic.version = 11 : i64} {
  func.func @_conv_stats_kernel(%arg0: i32, %arg1: i32, %arg2: memref<512x256xbf16, #tpu.memory_space<vmem>>, %arg3: memref<256x128xbf16, #tpu.memory_space<vmem>>, %arg4: memref<512x128xf32, #tpu.memory_space<vmem>>, %arg5: memref<1x2x128xf32, #tpu.memory_space<vmem>>) attributes {dimension_semantics = [#tpu.dimension_semantics<parallel>, #tpu.dimension_semantics<arbitrary>], iteration_bounds = array<i64: 1, 1>, scalar_prefetch = 0 : i64, scratch_operands = 0 : i64, tpu.core_type = #tpu.core_type<tc>, window_params = [{transform_indices = @transform_0, window_bounds = array<i64: 512, 256>}, {pipeline_mode = #tpu.pipeline_mode<synchronous>, transform_indices = @transform_1, window_bounds = array<i64: 256, 128>}, {transform_indices = @transform_2, window_bounds = array<i64: 512, 128>}, {transform_indices = @transform_3, window_bounds = array<i64: 1, 2, 128>}]} {
    %c0_i32 = arith.constant 0 : i32
    %0 = arith.cmpi eq, %arg1, %c0_i32 : i32
    %1 = arith.extui %0 : i1 to i32
    %c0_i32_0 = arith.constant 0 : i32
    %2 = arith.cmpi ne, %1, %c0_i32_0 : i32
    scf.if %2 {
      %cst_34 = arith.constant 0.000000e+00 : f32
      %50 = vector.broadcast %cst_34 : f32 to vector<1x2x128xf32>
      %c0_35 = arith.constant 0 : index
      %c0_36 = arith.constant 0 : index
      %c0_37 = arith.constant 0 : index
      %51 = vector.load %arg5[%c0_35, %c0_36, %c0_37] : memref<1x2x128xf32, #tpu.memory_space<vmem>>, vector<1x2x128xf32>
      tpu.vector_store %arg5[%c0_35, %c0_36, %c0_37], %50 {strides = array<i32>} : memref<1x2x128xf32, #tpu.memory_space<vmem>>, vector<1x2x128xf32>,
    } else {
    }
    %c0 = arith.constant 0 : index
    %c0_1 = arith.constant 0 : index
    %3 = vector.load %arg2[%c0, %c0_1] : memref<512x256xbf16, #tpu.memory_space<vmem>>, vector<256x256xbf16>
    %c0_2 = arith.constant 0 : index
    %c0_3 = arith.constant 0 : index
    %4 = vector.load %arg3[%c0_2, %c0_3] : memref<256x128xbf16, #tpu.memory_space<vmem>>, vector<256x128xbf16>
    %cst = arith.constant dense<0.000000e+00> : vector<256x128xf32>
    %5 = tpu.matmul %3, %4, %cst {dimension_numbers = #tpu.dot_dimension_numbers<[1], [0], [0], [1], [0, 0, 1, 1], [], []>} : vector<256x256xbf16>, vector<256x128xbf16>, vector<256x128xf32> -> vector<256x128xf32>
    %c0_4 = arith.constant 0 : index
    %c0_5 = arith.constant 0 : index
    %6 = vector.load %arg4[%c0_4, %c0_5] : memref<512x128xf32, #tpu.memory_space<vmem>>, vector<256x128xf32>
    tpu.vector_store %arg4[%c0_4, %c0_5], %5 {strides = array<i32>} : memref<512x128xf32, #tpu.memory_space<vmem>>, vector<256x128xf32>,
    %c256 = arith.constant 256 : index
    %c0_6 = arith.constant 0 : index
    %7 = vector.load %arg2[%c256, %c0_6] : memref<512x256xbf16, #tpu.memory_space<vmem>>, vector<256x256xbf16>
    %c0_7 = arith.constant 0 : index
    %c0_8 = arith.constant 0 : index
    %8 = vector.load %arg3[%c0_7, %c0_8] : memref<256x128xbf16, #tpu.memory_space<vmem>>, vector<256x128xbf16>
    %cst_9 = arith.constant dense<0.000000e+00> : vector<256x128xf32>
    %9 = tpu.matmul %7, %8, %cst_9 {dimension_numbers = #tpu.dot_dimension_numbers<[1], [0], [0], [1], [0, 0, 1, 1], [], []>} : vector<256x256xbf16>, vector<256x128xbf16>, vector<256x128xf32> -> vector<256x128xf32>
    %c256_10 = arith.constant 256 : index
    %c0_11 = arith.constant 0 : index
    %10 = vector.load %arg4[%c256_10, %c0_11] : memref<512x128xf32, #tpu.memory_space<vmem>>, vector<256x128xf32>
    tpu.vector_store %arg4[%c256_10, %c0_11], %9 {strides = array<i32>} : memref<512x128xf32, #tpu.memory_space<vmem>>, vector<256x128xf32>,
    %cst_12 = arith.constant 0.000000e+00 : f32
    %11 = vector.broadcast %cst_12 : f32 to vector<1x128xf32>
    %cst_13 = arith.constant 0.000000e+00 : f32
    %12 = vector.broadcast %cst_13 : f32 to vector<1x128xf32>
    %c0_14 = arith.constant 0 : index
    %c0_15 = arith.constant 0 : index
    %13 = vector.load %arg4[%c0_14, %c0_15] : memref<512x128xf32, #tpu.memory_space<vmem>>, vector<128x128xf32>
    %cst_16 = arith.constant dense<0.000000e+00> : vector<128xf32>
    %14 = vector.multi_reduction <add>, %13, %cst_16 [0] : vector<128x128xf32> to vector<128xf32>
    %15 = vector.shape_cast %14 : vector<128xf32> to vector<1x128xf32>
    %16 = arith.addf %11, %15 : vector<1x128xf32>
    %17 = arith.mulf %13, %13 : vector<128x128xf32>
    %cst_17 = arith.constant dense<0.000000e+00> : vector<128xf32>
    %18 = vector.multi_reduction <add>, %17, %cst_17 [0] : vector<128x128xf32> to vector<128xf32>
    %19 = vector.shape_cast %18 : vector<128xf32> to vector<1x128xf32>
    %20 = arith.addf %12, %19 : vector<1x128xf32>
    %c128 = arith.constant 128 : index
    %c0_18 = arith.constant 0 : index
    %21 = vector.load %arg4[%c128, %c0_18] : memref<512x128xf32, #tpu.memory_space<vmem>>, vector<128x128xf32>
    %cst_19 = arith.constant dense<0.000000e+00> : vector<128xf32>
    %22 = vector.multi_reduction <add>, %21, %cst_19 [0] : vector<128x128xf32> to vector<128xf32>
    %23 = vector.shape_cast %22 : vector<128xf32> to vector<1x128xf32>
    %24 = arith.addf %16, %23 : vector<1x128xf32>
    %25 = arith.mulf %21, %21 : vector<128x128xf32>
    %cst_20 = arith.constant dense<0.000000e+00> : vector<128xf32>
    %26 = vector.multi_reduction <add>, %25, %cst_20 [0] : vector<128x128xf32> to vector<128xf32>
    %27 = vector.shape_cast %26 : vector<128xf32> to vector<1x128xf32>
    %28 = arith.addf %20, %27 : vector<1x128xf32>
    %c256_21 = arith.constant 256 : index
    %c0_22 = arith.constant 0 : index
    %29 = vector.load %arg4[%c256_21, %c0_22] : memref<512x128xf32, #tpu.memory_space<vmem>>, vector<128x128xf32>
    %cst_23 = arith.constant dense<0.000000e+00> : vector<128xf32>
    %30 = vector.multi_reduction <add>, %29, %cst_23 [0] : vector<128x128xf32> to vector<128xf32>
    %31 = vector.shape_cast %30 : vector<128xf32> to vector<1x128xf32>
    %32 = arith.addf %24, %31 : vector<1x128xf32>
    %33 = arith.mulf %29, %29 : vector<128x128xf32>
    %cst_24 = arith.constant dense<0.000000e+00> : vector<128xf32>
    %34 = vector.multi_reduction <add>, %33, %cst_24 [0] : vector<128x128xf32> to vector<128xf32>
    %35 = vector.shape_cast %34 : vector<128xf32> to vector<1x128xf32>
    %36 = arith.addf %28, %35 : vector<1x128xf32>
    %c384 = arith.constant 384 : index
    %c0_25 = arith.constant 0 : index
    %37 = vector.load %arg4[%c384, %c0_25] : memref<512x128xf32, #tpu.memory_space<vmem>>, vector<128x128xf32>
    %cst_26 = arith.constant dense<0.000000e+00> : vector<128xf32>
    %38 = vector.multi_reduction <add>, %37, %cst_26 [0] : vector<128x128xf32> to vector<128xf32>
    %39 = vector.shape_cast %38 : vector<128xf32> to vector<1x128xf32>
    %40 = arith.addf %32, %39 : vector<1x128xf32>
    %41 = arith.mulf %37, %37 : vector<128x128xf32>
    %cst_27 = arith.constant dense<0.000000e+00> : vector<128xf32>
    %42 = vector.multi_reduction <add>, %41, %cst_27 [0] : vector<128x128xf32> to vector<128xf32>
    %43 = vector.shape_cast %42 : vector<128xf32> to vector<1x128xf32>
    %44 = arith.addf %36, %43 : vector<1x128xf32>
    %c0_28 = arith.constant 0 : index
    %c0_29 = arith.constant 0 : index
    %c0_30 = arith.constant 0 : index
    %45 = vector.load %arg5[%c0_28, %c0_29, %c0_30] : memref<1x2x128xf32, #tpu.memory_space<vmem>>, vector<1x2x128xf32>
    %46 = tpu.concatenate %40, %44 in 0 : vector<1x128xf32>, vector<1x128xf32> -> vector<2x128xf32>
    %47 = vector.shape_cast %46 : vector<2x128xf32> to vector<1x2x128xf32>
    %48 = arith.addf %45, %47 : vector<1x2x128xf32>
    %c0_31 = arith.constant 0 : index
    %c0_32 = arith.constant 0 : index
    %c0_33 = arith.constant 0 : index
    %49 = vector.load %arg5[%c0_31, %c0_32, %c0_33] : memref<1x2x128xf32, #tpu.memory_space<vmem>>, vector<1x2x128xf32>
    tpu.vector_store %arg5[%c0_31, %c0_32, %c0_33], %48 {strides = array<i32>} : memref<1x2x128xf32, #tpu.memory_space<vmem>>, vector<1x2x128xf32>,
    return
  }
  func.func @transform_0(%arg0: i32, %arg1: i32) -> (i32, i32) {
    %c1_i32 = arith.constant 1 : i32
    %0 = arith.muli %arg0, %c1_i32 : i32
    %1 = arith.addi %0, %arg1 : i32
    %c0_i32 = arith.constant 0 : i32
    %c0_i32_0 = arith.constant 0 : i32
    return %1, %c0_i32 : i32, i32
  }
  func.func @transform_1(%arg0: i32, %arg1: i32) -> (i32, i32) {
    %c0_i32 = arith.constant 0 : i32
    %c0_i32_0 = arith.constant 0 : i32
    %c0_i32_1 = arith.constant 0 : i32
    return %c0_i32, %c0_i32_0 : i32, i32
  }
  func.func @transform_2(%arg0: i32, %arg1: i32) -> (i32, i32) {
    %c1_i32 = arith.constant 1 : i32
    %0 = arith.muli %arg0, %c1_i32 : i32
    %1 = arith.addi %0, %arg1 : i32
    %c0_i32 = arith.constant 0 : i32
    %c0_i32_0 = arith.constant 0 : i32
    return %1, %c0_i32 : i32, i32
  }
  func.func @transform_3(%arg0: i32, %arg1: i32) -> (i32, i32, i32) {
    %c0_i32 = arith.constant 0 : i32
    %c0_i32_0 = arith.constant 0 : i32
    %c0_i32_1 = arith.constant 0 : i32
    return %arg0, %c0_i32, %c0_i32_0 : i32, i32, i32
  }
}

module attributes {stable_mosaic.version = 11 : i64} {
  func.func @_bn_act_kernel(%arg0: i32, %arg1: memref<512x128xf32, #tpu.memory_space<vmem>>, %arg2: memref<1x2x128xf32, #tpu.memory_space<vmem>>, %arg3: memref<1x128xf32, #tpu.memory_space<vmem>>, %arg4: memref<1x128xf32, #tpu.memory_space<vmem>>, %arg5: memref<512x128xbf16, #tpu.memory_space<vmem>>) attributes {dimension_semantics = [#tpu.dimension_semantics<parallel>], iteration_bounds = array<i64: 1>, scalar_prefetch = 0 : i64, scratch_operands = 0 : i64, tpu.core_type = #tpu.core_type<tc>, window_params = [{transform_indices = @transform_0, window_bounds = array<i64: 512, 128>}, {pipeline_mode = #tpu.pipeline_mode<synchronous>, transform_indices = @transform_1, window_bounds = array<i64: 1, 2, 128>}, {pipeline_mode = #tpu.pipeline_mode<synchronous>, transform_indices = @transform_2, window_bounds = array<i64: 1, 128>}, {pipeline_mode = #tpu.pipeline_mode<synchronous>, transform_indices = @transform_3, window_bounds = array<i64: 1, 128>}, {transform_indices = @transform_4, window_bounds = array<i64: 512, 128>}]} {
    %c0 = arith.constant 0 : index
    %c0_0 = arith.constant 0 : index
    %c0_1 = arith.constant 0 : index
    %0 = vector.load %arg2[%c0, %c0_0, %c0_1] : memref<1x2x128xf32, #tpu.memory_space<vmem>>, vector<1x2x128xf32>
    %cst = arith.constant dense<0.000000e+00> : vector<2x128xf32>
    %1 = vector.multi_reduction <add>, %0, %cst [0] : vector<1x2x128xf32> to vector<2x128xf32>
    %2 = vector.extract_strided_slice %1 {offsets = [0, 0], sizes = [1, 128], strides = [1, 1]} : vector<2x128xf32> to vector<1x128xf32>
    %cst_2 = arith.constant 0.001953125 : f32
    %3 = vector.broadcast %cst_2 : f32 to vector<1x128xf32>
    %4 = arith.mulf %2, %3 : vector<1x128xf32>
    %5 = vector.extract_strided_slice %1 {offsets = [1, 0], sizes = [1, 128], strides = [1, 1]} : vector<2x128xf32> to vector<1x128xf32>
    %cst_3 = arith.constant 0.001953125 : f32
    %6 = vector.broadcast %cst_3 : f32 to vector<1x128xf32>
    %7 = arith.mulf %5, %6 : vector<1x128xf32>
    %8 = arith.mulf %4, %4 : vector<1x128xf32>
    %9 = arith.subf %7, %8 : vector<1x128xf32>
    %cst_4 = arith.constant 0.000000e+00 : f32
    %10 = vector.broadcast %cst_4 : f32 to vector<1x128xf32>
    %11 = arith.maximumf %9, %10 : vector<1x128xf32>
    %c0_5 = arith.constant 0 : index
    %c0_6 = arith.constant 0 : index
    %12 = vector.load %arg3[%c0_5, %c0_6] : memref<1x128xf32, #tpu.memory_space<vmem>>, vector<1x128xf32>
    %cst_7 = arith.constant 9.99999974E-6 : f32
    %13 = vector.broadcast %cst_7 : f32 to vector<1x128xf32>
    %14 = arith.addf %11, %13 : vector<1x128xf32>
    %15 = math.rsqrt %14 : vector<1x128xf32>
    %16 = arith.mulf %12, %15 : vector<1x128xf32>
    %c0_8 = arith.constant 0 : index
    %c0_9 = arith.constant 0 : index
    %17 = vector.load %arg4[%c0_8, %c0_9] : memref<1x128xf32, #tpu.memory_space<vmem>>, vector<1x128xf32>
    %18 = arith.mulf %4, %16 : vector<1x128xf32>
    %19 = arith.subf %17, %18 : vector<1x128xf32>
    %c0_10 = arith.constant 0 : index
    %c0_11 = arith.constant 0 : index
    %20 = vector.load %arg1[%c0_10, %c0_11] : memref<512x128xf32, #tpu.memory_space<vmem>>, vector<512x128xf32>
    %21 = vector.broadcast %16 : vector<1x128xf32> to vector<512x128xf32>
    %22 = arith.mulf %20, %21 : vector<512x128xf32>
    %23 = vector.broadcast %19 : vector<1x128xf32> to vector<512x128xf32>
    %24 = arith.addf %22, %23 : vector<512x128xf32>
    %cst_12 = arith.constant 1.000000e-01 : f32
    %25 = vector.broadcast %cst_12 : f32 to vector<512x128xf32>
    %26 = arith.mulf %25, %24 : vector<512x128xf32>
    %27 = arith.maximumf %24, %26 : vector<512x128xf32>
    %28 = arith.truncf %27 : vector<512x128xf32> to vector<512x128xbf16>
    %c0_13 = arith.constant 0 : index
    %c0_14 = arith.constant 0 : index
    %29 = vector.load %arg5[%c0_13, %c0_14] : memref<512x128xbf16, #tpu.memory_space<vmem>>, vector<512x128xbf16>
    tpu.vector_store %arg5[%c0_13, %c0_14], %28 {strides = array<i32>} : memref<512x128xbf16, #tpu.memory_space<vmem>>, vector<512x128xbf16>,
    return
  }
  func.func @transform_0(%arg0: i32) -> (i32, i32) {
    %c0_i32 = arith.constant 0 : i32
    %c0_i32_0 = arith.constant 0 : i32
    return %arg0, %c0_i32 : i32, i32
  }
  func.func @transform_1(%arg0: i32) -> (i32, i32, i32) {
    %c0_i32 = arith.constant 0 : i32
    %c0_i32_0 = arith.constant 0 : i32
    %c0_i32_1 = arith.constant 0 : i32
    %c0_i32_2 = arith.constant 0 : i32
    return %c0_i32, %c0_i32_0, %c0_i32_1 : i32, i32, i32
  }
  func.func @transform_2(%arg0: i32) -> (i32, i32) {
    %c0_i32 = arith.constant 0 : i32
    %c0_i32_0 = arith.constant 0 : i32
    %c0_i32_1 = arith.constant 0 : i32
    return %c0_i32, %c0_i32_0 : i32, i32
  }
  func.func @transform_3(%arg0: i32) -> (i32, i32) {
    %c0_i32 = arith.constant 0 : i32
    %c0_i32_0 = arith.constant 0 : i32
    %c0_i32_1 = arith.constant 0 : i32
    return %c0_i32, %c0_i32_0 : i32, i32
  }
  func.func @transform_4(%arg0: i32) -> (i32, i32) {
    %c0_i32 = arith.constant 0 : i32
    %c0_i32_0 = arith.constant 0 : i32
    return %arg0, %c0_i32 : i32, i32
  }
}

module attributes {stable_mosaic.version = 11 : i64} {
  func.func @_conv_stats_kernel(%arg0: i32, %arg1: i32, %arg2: memref<512x512xbf16, #tpu.memory_space<vmem>>, %arg3: memref<512x128xbf16, #tpu.memory_space<vmem>>, %arg4: memref<512x128xf32, #tpu.memory_space<vmem>>, %arg5: memref<1x2x128xf32, #tpu.memory_space<vmem>>) attributes {dimension_semantics = [#tpu.dimension_semantics<parallel>, #tpu.dimension_semantics<arbitrary>], iteration_bounds = array<i64: 1, 1>, scalar_prefetch = 0 : i64, scratch_operands = 0 : i64, tpu.core_type = #tpu.core_type<tc>, window_params = [{transform_indices = @transform_0, window_bounds = array<i64: 512, 512>}, {pipeline_mode = #tpu.pipeline_mode<synchronous>, transform_indices = @transform_1, window_bounds = array<i64: 512, 128>}, {transform_indices = @transform_2, window_bounds = array<i64: 512, 128>}, {transform_indices = @transform_3, window_bounds = array<i64: 1, 2, 128>}]} {
    %c0_i32 = arith.constant 0 : i32
    %0 = arith.cmpi eq, %arg1, %c0_i32 : i32
    %1 = arith.extui %0 : i1 to i32
    %c0_i32_0 = arith.constant 0 : i32
    %2 = arith.cmpi ne, %1, %c0_i32_0 : i32
    scf.if %2 {
      %cst_34 = arith.constant 0.000000e+00 : f32
      %50 = vector.broadcast %cst_34 : f32 to vector<1x2x128xf32>
      %c0_35 = arith.constant 0 : index
      %c0_36 = arith.constant 0 : index
      %c0_37 = arith.constant 0 : index
      %51 = vector.load %arg5[%c0_35, %c0_36, %c0_37] : memref<1x2x128xf32, #tpu.memory_space<vmem>>, vector<1x2x128xf32>
      tpu.vector_store %arg5[%c0_35, %c0_36, %c0_37], %50 {strides = array<i32>} : memref<1x2x128xf32, #tpu.memory_space<vmem>>, vector<1x2x128xf32>,
    } else {
    }
    %c0 = arith.constant 0 : index
    %c0_1 = arith.constant 0 : index
    %3 = vector.load %arg2[%c0, %c0_1] : memref<512x512xbf16, #tpu.memory_space<vmem>>, vector<256x512xbf16>
    %c0_2 = arith.constant 0 : index
    %c0_3 = arith.constant 0 : index
    %4 = vector.load %arg3[%c0_2, %c0_3] : memref<512x128xbf16, #tpu.memory_space<vmem>>, vector<512x128xbf16>
    %cst = arith.constant dense<0.000000e+00> : vector<256x128xf32>
    %5 = tpu.matmul %3, %4, %cst {dimension_numbers = #tpu.dot_dimension_numbers<[1], [0], [0], [1], [0, 0, 1, 1], [], []>} : vector<256x512xbf16>, vector<512x128xbf16>, vector<256x128xf32> -> vector<256x128xf32>
    %c0_4 = arith.constant 0 : index
    %c0_5 = arith.constant 0 : index
    %6 = vector.load %arg4[%c0_4, %c0_5] : memref<512x128xf32, #tpu.memory_space<vmem>>, vector<256x128xf32>
    tpu.vector_store %arg4[%c0_4, %c0_5], %5 {strides = array<i32>} : memref<512x128xf32, #tpu.memory_space<vmem>>, vector<256x128xf32>,
    %c256 = arith.constant 256 : index
    %c0_6 = arith.constant 0 : index
    %7 = vector.load %arg2[%c256, %c0_6] : memref<512x512xbf16, #tpu.memory_space<vmem>>, vector<256x512xbf16>
    %c0_7 = arith.constant 0 : index
    %c0_8 = arith.constant 0 : index
    %8 = vector.load %arg3[%c0_7, %c0_8] : memref<512x128xbf16, #tpu.memory_space<vmem>>, vector<512x128xbf16>
    %cst_9 = arith.constant dense<0.000000e+00> : vector<256x128xf32>
    %9 = tpu.matmul %7, %8, %cst_9 {dimension_numbers = #tpu.dot_dimension_numbers<[1], [0], [0], [1], [0, 0, 1, 1], [], []>} : vector<256x512xbf16>, vector<512x128xbf16>, vector<256x128xf32> -> vector<256x128xf32>
    %c256_10 = arith.constant 256 : index
    %c0_11 = arith.constant 0 : index
    %10 = vector.load %arg4[%c256_10, %c0_11] : memref<512x128xf32, #tpu.memory_space<vmem>>, vector<256x128xf32>
    tpu.vector_store %arg4[%c256_10, %c0_11], %9 {strides = array<i32>} : memref<512x128xf32, #tpu.memory_space<vmem>>, vector<256x128xf32>,
    %cst_12 = arith.constant 0.000000e+00 : f32
    %11 = vector.broadcast %cst_12 : f32 to vector<1x128xf32>
    %cst_13 = arith.constant 0.000000e+00 : f32
    %12 = vector.broadcast %cst_13 : f32 to vector<1x128xf32>
    %c0_14 = arith.constant 0 : index
    %c0_15 = arith.constant 0 : index
    %13 = vector.load %arg4[%c0_14, %c0_15] : memref<512x128xf32, #tpu.memory_space<vmem>>, vector<128x128xf32>
    %cst_16 = arith.constant dense<0.000000e+00> : vector<128xf32>
    %14 = vector.multi_reduction <add>, %13, %cst_16 [0] : vector<128x128xf32> to vector<128xf32>
    %15 = vector.shape_cast %14 : vector<128xf32> to vector<1x128xf32>
    %16 = arith.addf %11, %15 : vector<1x128xf32>
    %17 = arith.mulf %13, %13 : vector<128x128xf32>
    %cst_17 = arith.constant dense<0.000000e+00> : vector<128xf32>
    %18 = vector.multi_reduction <add>, %17, %cst_17 [0] : vector<128x128xf32> to vector<128xf32>
    %19 = vector.shape_cast %18 : vector<128xf32> to vector<1x128xf32>
    %20 = arith.addf %12, %19 : vector<1x128xf32>
    %c128 = arith.constant 128 : index
    %c0_18 = arith.constant 0 : index
    %21 = vector.load %arg4[%c128, %c0_18] : memref<512x128xf32, #tpu.memory_space<vmem>>, vector<128x128xf32>
    %cst_19 = arith.constant dense<0.000000e+00> : vector<128xf32>
    %22 = vector.multi_reduction <add>, %21, %cst_19 [0] : vector<128x128xf32> to vector<128xf32>
    %23 = vector.shape_cast %22 : vector<128xf32> to vector<1x128xf32>
    %24 = arith.addf %16, %23 : vector<1x128xf32>
    %25 = arith.mulf %21, %21 : vector<128x128xf32>
    %cst_20 = arith.constant dense<0.000000e+00> : vector<128xf32>
    %26 = vector.multi_reduction <add>, %25, %cst_20 [0] : vector<128x128xf32> to vector<128xf32>
    %27 = vector.shape_cast %26 : vector<128xf32> to vector<1x128xf32>
    %28 = arith.addf %20, %27 : vector<1x128xf32>
    %c256_21 = arith.constant 256 : index
    %c0_22 = arith.constant 0 : index
    %29 = vector.load %arg4[%c256_21, %c0_22] : memref<512x128xf32, #tpu.memory_space<vmem>>, vector<128x128xf32>
    %cst_23 = arith.constant dense<0.000000e+00> : vector<128xf32>
    %30 = vector.multi_reduction <add>, %29, %cst_23 [0] : vector<128x128xf32> to vector<128xf32>
    %31 = vector.shape_cast %30 : vector<128xf32> to vector<1x128xf32>
    %32 = arith.addf %24, %31 : vector<1x128xf32>
    %33 = arith.mulf %29, %29 : vector<128x128xf32>
    %cst_24 = arith.constant dense<0.000000e+00> : vector<128xf32>
    %34 = vector.multi_reduction <add>, %33, %cst_24 [0] : vector<128x128xf32> to vector<128xf32>
    %35 = vector.shape_cast %34 : vector<128xf32> to vector<1x128xf32>
    %36 = arith.addf %28, %35 : vector<1x128xf32>
    %c384 = arith.constant 384 : index
    %c0_25 = arith.constant 0 : index
    %37 = vector.load %arg4[%c384, %c0_25] : memref<512x128xf32, #tpu.memory_space<vmem>>, vector<128x128xf32>
    %cst_26 = arith.constant dense<0.000000e+00> : vector<128xf32>
    %38 = vector.multi_reduction <add>, %37, %cst_26 [0] : vector<128x128xf32> to vector<128xf32>
    %39 = vector.shape_cast %38 : vector<128xf32> to vector<1x128xf32>
    %40 = arith.addf %32, %39 : vector<1x128xf32>
    %41 = arith.mulf %37, %37 : vector<128x128xf32>
    %cst_27 = arith.constant dense<0.000000e+00> : vector<128xf32>
    %42 = vector.multi_reduction <add>, %41, %cst_27 [0] : vector<128x128xf32> to vector<128xf32>
    %43 = vector.shape_cast %42 : vector<128xf32> to vector<1x128xf32>
    %44 = arith.addf %36, %43 : vector<1x128xf32>
    %c0_28 = arith.constant 0 : index
    %c0_29 = arith.constant 0 : index
    %c0_30 = arith.constant 0 : index
    %45 = vector.load %arg5[%c0_28, %c0_29, %c0_30] : memref<1x2x128xf32, #tpu.memory_space<vmem>>, vector<1x2x128xf32>
    %46 = tpu.concatenate %40, %44 in 0 : vector<1x128xf32>, vector<1x128xf32> -> vector<2x128xf32>
    %47 = vector.shape_cast %46 : vector<2x128xf32> to vector<1x2x128xf32>
    %48 = arith.addf %45, %47 : vector<1x2x128xf32>
    %c0_31 = arith.constant 0 : index
    %c0_32 = arith.constant 0 : index
    %c0_33 = arith.constant 0 : index
    %49 = vector.load %arg5[%c0_31, %c0_32, %c0_33] : memref<1x2x128xf32, #tpu.memory_space<vmem>>, vector<1x2x128xf32>
    tpu.vector_store %arg5[%c0_31, %c0_32, %c0_33], %48 {strides = array<i32>} : memref<1x2x128xf32, #tpu.memory_space<vmem>>, vector<1x2x128xf32>,
    return
  }
  func.func @transform_0(%arg0: i32, %arg1: i32) -> (i32, i32) {
    %c1_i32 = arith.constant 1 : i32
    %0 = arith.muli %arg0, %c1_i32 : i32
    %1 = arith.addi %0, %arg1 : i32
    %c0_i32 = arith.constant 0 : i32
    %c0_i32_0 = arith.constant 0 : i32
    return %1, %c0_i32 : i32, i32
  }
  func.func @transform_1(%arg0: i32, %arg1: i32) -> (i32, i32) {
    %c0_i32 = arith.constant 0 : i32
    %c0_i32_0 = arith.constant 0 : i32
    %c0_i32_1 = arith.constant 0 : i32
    return %c0_i32, %c0_i32_0 : i32, i32
  }
  func.func @transform_2(%arg0: i32, %arg1: i32) -> (i32, i32) {
    %c1_i32 = arith.constant 1 : i32
    %0 = arith.muli %arg0, %c1_i32 : i32
    %1 = arith.addi %0, %arg1 : i32
    %c0_i32 = arith.constant 0 : i32
    %c0_i32_0 = arith.constant 0 : i32
    return %1, %c0_i32 : i32, i32
  }
  func.func @transform_3(%arg0: i32, %arg1: i32) -> (i32, i32, i32) {
    %c0_i32 = arith.constant 0 : i32
    %c0_i32_0 = arith.constant 0 : i32
    %c0_i32_1 = arith.constant 0 : i32
    return %arg0, %c0_i32, %c0_i32_0 : i32, i32, i32
  }
}

module attributes {stable_mosaic.version = 11 : i64} {
  func.func @_conv_stats_kernel(%arg0: i32, %arg1: i32, %arg2: memref<128x512xbf16, #tpu.memory_space<vmem>>, %arg3: memref<512x128xbf16, #tpu.memory_space<vmem>>, %arg4: memref<128x128xf32, #tpu.memory_space<vmem>>, %arg5: memref<1x2x128xf32, #tpu.memory_space<vmem>>) attributes {dimension_semantics = [#tpu.dimension_semantics<parallel>, #tpu.dimension_semantics<arbitrary>], iteration_bounds = array<i64: 1, 1>, scalar_prefetch = 0 : i64, scratch_operands = 0 : i64, tpu.core_type = #tpu.core_type<tc>, window_params = [{transform_indices = @transform_0, window_bounds = array<i64: 128, 512>}, {pipeline_mode = #tpu.pipeline_mode<synchronous>, transform_indices = @transform_1, window_bounds = array<i64: 512, 128>}, {transform_indices = @transform_2, window_bounds = array<i64: 128, 128>}, {transform_indices = @transform_3, window_bounds = array<i64: 1, 2, 128>}]} {
    %c0_i32 = arith.constant 0 : i32
    %0 = arith.cmpi eq, %arg1, %c0_i32 : i32
    %1 = arith.extui %0 : i1 to i32
    %c0_i32_0 = arith.constant 0 : i32
    %2 = arith.cmpi ne, %1, %c0_i32_0 : i32
    scf.if %2 {
      %cst_18 = arith.constant 0.000000e+00 : f32
      %22 = vector.broadcast %cst_18 : f32 to vector<1x2x128xf32>
      %c0_19 = arith.constant 0 : index
      %c0_20 = arith.constant 0 : index
      %c0_21 = arith.constant 0 : index
      %23 = vector.load %arg5[%c0_19, %c0_20, %c0_21] : memref<1x2x128xf32, #tpu.memory_space<vmem>>, vector<1x2x128xf32>
      tpu.vector_store %arg5[%c0_19, %c0_20, %c0_21], %22 {strides = array<i32>} : memref<1x2x128xf32, #tpu.memory_space<vmem>>, vector<1x2x128xf32>,
    } else {
    }
    %c0 = arith.constant 0 : index
    %c0_1 = arith.constant 0 : index
    %3 = vector.load %arg2[%c0, %c0_1] : memref<128x512xbf16, #tpu.memory_space<vmem>>, vector<128x512xbf16>
    %c0_2 = arith.constant 0 : index
    %c0_3 = arith.constant 0 : index
    %4 = vector.load %arg3[%c0_2, %c0_3] : memref<512x128xbf16, #tpu.memory_space<vmem>>, vector<512x128xbf16>
    %cst = arith.constant dense<0.000000e+00> : vector<128x128xf32>
    %5 = tpu.matmul %3, %4, %cst {dimension_numbers = #tpu.dot_dimension_numbers<[1], [0], [0], [1], [0, 0, 1, 1], [], []>} : vector<128x512xbf16>, vector<512x128xbf16>, vector<128x128xf32> -> vector<128x128xf32>
    %c0_4 = arith.constant 0 : index
    %c0_5 = arith.constant 0 : index
    %6 = vector.load %arg4[%c0_4, %c0_5] : memref<128x128xf32, #tpu.memory_space<vmem>>, vector<128x128xf32>
    tpu.vector_store %arg4[%c0_4, %c0_5], %5 {strides = array<i32>} : memref<128x128xf32, #tpu.memory_space<vmem>>, vector<128x128xf32>,
    %cst_6 = arith.constant 0.000000e+00 : f32
    %7 = vector.broadcast %cst_6 : f32 to vector<1x128xf32>
    %cst_7 = arith.constant 0.000000e+00 : f32
    %8 = vector.broadcast %cst_7 : f32 to vector<1x128xf32>
    %c0_8 = arith.constant 0 : index
    %c0_9 = arith.constant 0 : index
    %9 = vector.load %arg4[%c0_8, %c0_9] : memref<128x128xf32, #tpu.memory_space<vmem>>, vector<128x128xf32>
    %cst_10 = arith.constant dense<0.000000e+00> : vector<128xf32>
    %10 = vector.multi_reduction <add>, %9, %cst_10 [0] : vector<128x128xf32> to vector<128xf32>
    %11 = vector.shape_cast %10 : vector<128xf32> to vector<1x128xf32>
    %12 = arith.addf %7, %11 : vector<1x128xf32>
    %13 = arith.mulf %9, %9 : vector<128x128xf32>
    %cst_11 = arith.constant dense<0.000000e+00> : vector<128xf32>
    %14 = vector.multi_reduction <add>, %13, %cst_11 [0] : vector<128x128xf32> to vector<128xf32>
    %15 = vector.shape_cast %14 : vector<128xf32> to vector<1x128xf32>
    %16 = arith.addf %8, %15 : vector<1x128xf32>
    %c0_12 = arith.constant 0 : index
    %c0_13 = arith.constant 0 : index
    %c0_14 = arith.constant 0 : index
    %17 = vector.load %arg5[%c0_12, %c0_13, %c0_14] : memref<1x2x128xf32, #tpu.memory_space<vmem>>, vector<1x2x128xf32>
    %18 = tpu.concatenate %12, %16 in 0 : vector<1x128xf32>, vector<1x128xf32> -> vector<2x128xf32>
    %19 = vector.shape_cast %18 : vector<2x128xf32> to vector<1x2x128xf32>
    %20 = arith.addf %17, %19 : vector<1x2x128xf32>
    %c0_15 = arith.constant 0 : index
    %c0_16 = arith.constant 0 : index
    %c0_17 = arith.constant 0 : index
    %21 = vector.load %arg5[%c0_15, %c0_16, %c0_17] : memref<1x2x128xf32, #tpu.memory_space<vmem>>, vector<1x2x128xf32>
    tpu.vector_store %arg5[%c0_15, %c0_16, %c0_17], %20 {strides = array<i32>} : memref<1x2x128xf32, #tpu.memory_space<vmem>>, vector<1x2x128xf32>,
    return
  }
  func.func @transform_0(%arg0: i32, %arg1: i32) -> (i32, i32) {
    %c1_i32 = arith.constant 1 : i32
    %0 = arith.muli %arg0, %c1_i32 : i32
    %1 = arith.addi %0, %arg1 : i32
    %c0_i32 = arith.constant 0 : i32
    %c0_i32_0 = arith.constant 0 : i32
    return %1, %c0_i32 : i32, i32
  }
  func.func @transform_1(%arg0: i32, %arg1: i32) -> (i32, i32) {
    %c0_i32 = arith.constant 0 : i32
    %c0_i32_0 = arith.constant 0 : i32
    %c0_i32_1 = arith.constant 0 : i32
    return %c0_i32, %c0_i32_0 : i32, i32
  }
  func.func @transform_2(%arg0: i32, %arg1: i32) -> (i32, i32) {
    %c1_i32 = arith.constant 1 : i32
    %0 = arith.muli %arg0, %c1_i32 : i32
    %1 = arith.addi %0, %arg1 : i32
    %c0_i32 = arith.constant 0 : i32
    %c0_i32_0 = arith.constant 0 : i32
    return %1, %c0_i32 : i32, i32
  }
  func.func @transform_3(%arg0: i32, %arg1: i32) -> (i32, i32, i32) {
    %c0_i32 = arith.constant 0 : i32
    %c0_i32_0 = arith.constant 0 : i32
    %c0_i32_1 = arith.constant 0 : i32
    return %arg0, %c0_i32, %c0_i32_0 : i32, i32, i32
  }
}

module attributes {stable_mosaic.version = 11 : i64} {
  func.func @_bn_act_kernel(%arg0: i32, %arg1: memref<128x128xf32, #tpu.memory_space<vmem>>, %arg2: memref<1x2x128xf32, #tpu.memory_space<vmem>>, %arg3: memref<1x128xf32, #tpu.memory_space<vmem>>, %arg4: memref<1x128xf32, #tpu.memory_space<vmem>>, %arg5: memref<128x128xbf16, #tpu.memory_space<vmem>>) attributes {dimension_semantics = [#tpu.dimension_semantics<parallel>], iteration_bounds = array<i64: 1>, scalar_prefetch = 0 : i64, scratch_operands = 0 : i64, tpu.core_type = #tpu.core_type<tc>, window_params = [{transform_indices = @transform_0, window_bounds = array<i64: 128, 128>}, {pipeline_mode = #tpu.pipeline_mode<synchronous>, transform_indices = @transform_1, window_bounds = array<i64: 1, 2, 128>}, {pipeline_mode = #tpu.pipeline_mode<synchronous>, transform_indices = @transform_2, window_bounds = array<i64: 1, 128>}, {pipeline_mode = #tpu.pipeline_mode<synchronous>, transform_indices = @transform_3, window_bounds = array<i64: 1, 128>}, {transform_indices = @transform_4, window_bounds = array<i64: 128, 128>}]} {
    %c0 = arith.constant 0 : index
    %c0_0 = arith.constant 0 : index
    %c0_1 = arith.constant 0 : index
    %0 = vector.load %arg2[%c0, %c0_0, %c0_1] : memref<1x2x128xf32, #tpu.memory_space<vmem>>, vector<1x2x128xf32>
    %cst = arith.constant dense<0.000000e+00> : vector<2x128xf32>
    %1 = vector.multi_reduction <add>, %0, %cst [0] : vector<1x2x128xf32> to vector<2x128xf32>
    %2 = vector.extract_strided_slice %1 {offsets = [0, 0], sizes = [1, 128], strides = [1, 1]} : vector<2x128xf32> to vector<1x128xf32>
    %cst_2 = arith.constant 7.812500e-03 : f32
    %3 = vector.broadcast %cst_2 : f32 to vector<1x128xf32>
    %4 = arith.mulf %2, %3 : vector<1x128xf32>
    %5 = vector.extract_strided_slice %1 {offsets = [1, 0], sizes = [1, 128], strides = [1, 1]} : vector<2x128xf32> to vector<1x128xf32>
    %cst_3 = arith.constant 7.812500e-03 : f32
    %6 = vector.broadcast %cst_3 : f32 to vector<1x128xf32>
    %7 = arith.mulf %5, %6 : vector<1x128xf32>
    %8 = arith.mulf %4, %4 : vector<1x128xf32>
    %9 = arith.subf %7, %8 : vector<1x128xf32>
    %cst_4 = arith.constant 0.000000e+00 : f32
    %10 = vector.broadcast %cst_4 : f32 to vector<1x128xf32>
    %11 = arith.maximumf %9, %10 : vector<1x128xf32>
    %c0_5 = arith.constant 0 : index
    %c0_6 = arith.constant 0 : index
    %12 = vector.load %arg3[%c0_5, %c0_6] : memref<1x128xf32, #tpu.memory_space<vmem>>, vector<1x128xf32>
    %cst_7 = arith.constant 9.99999974E-6 : f32
    %13 = vector.broadcast %cst_7 : f32 to vector<1x128xf32>
    %14 = arith.addf %11, %13 : vector<1x128xf32>
    %15 = math.rsqrt %14 : vector<1x128xf32>
    %16 = arith.mulf %12, %15 : vector<1x128xf32>
    %c0_8 = arith.constant 0 : index
    %c0_9 = arith.constant 0 : index
    %17 = vector.load %arg4[%c0_8, %c0_9] : memref<1x128xf32, #tpu.memory_space<vmem>>, vector<1x128xf32>
    %18 = arith.mulf %4, %16 : vector<1x128xf32>
    %19 = arith.subf %17, %18 : vector<1x128xf32>
    %c0_10 = arith.constant 0 : index
    %c0_11 = arith.constant 0 : index
    %20 = vector.load %arg1[%c0_10, %c0_11] : memref<128x128xf32, #tpu.memory_space<vmem>>, vector<128x128xf32>
    %21 = vector.broadcast %16 : vector<1x128xf32> to vector<128x128xf32>
    %22 = arith.mulf %20, %21 : vector<128x128xf32>
    %23 = vector.broadcast %19 : vector<1x128xf32> to vector<128x128xf32>
    %24 = arith.addf %22, %23 : vector<128x128xf32>
    %cst_12 = arith.constant 1.000000e-01 : f32
    %25 = vector.broadcast %cst_12 : f32 to vector<128x128xf32>
    %26 = arith.mulf %25, %24 : vector<128x128xf32>
    %27 = arith.maximumf %24, %26 : vector<128x128xf32>
    %28 = arith.truncf %27 : vector<128x128xf32> to vector<128x128xbf16>
    %c0_13 = arith.constant 0 : index
    %c0_14 = arith.constant 0 : index
    %29 = vector.load %arg5[%c0_13, %c0_14] : memref<128x128xbf16, #tpu.memory_space<vmem>>, vector<128x128xbf16>
    tpu.vector_store %arg5[%c0_13, %c0_14], %28 {strides = array<i32>} : memref<128x128xbf16, #tpu.memory_space<vmem>>, vector<128x128xbf16>,
    return
  }
  func.func @transform_0(%arg0: i32) -> (i32, i32) {
    %c0_i32 = arith.constant 0 : i32
    %c0_i32_0 = arith.constant 0 : i32
    return %arg0, %c0_i32 : i32, i32
  }
  func.func @transform_1(%arg0: i32) -> (i32, i32, i32) {
    %c0_i32 = arith.constant 0 : i32
    %c0_i32_0 = arith.constant 0 : i32
    %c0_i32_1 = arith.constant 0 : i32
    %c0_i32_2 = arith.constant 0 : i32
    return %c0_i32, %c0_i32_0, %c0_i32_1 : i32, i32, i32
  }
  func.func @transform_2(%arg0: i32) -> (i32, i32) {
    %c0_i32 = arith.constant 0 : i32
    %c0_i32_0 = arith.constant 0 : i32
    %c0_i32_1 = arith.constant 0 : i32
    return %c0_i32, %c0_i32_0 : i32, i32
  }
  func.func @transform_3(%arg0: i32) -> (i32, i32) {
    %c0_i32 = arith.constant 0 : i32
    %c0_i32_0 = arith.constant 0 : i32
    %c0_i32_1 = arith.constant 0 : i32
    return %c0_i32, %c0_i32_0 : i32, i32
  }
  func.func @transform_4(%arg0: i32) -> (i32, i32) {
    %c0_i32 = arith.constant 0 : i32
    %c0_i32_0 = arith.constant 0 : i32
    return %arg0, %c0_i32 : i32, i32
  }
}

module attributes {stable_mosaic.version = 11 : i64} {
  func.func @_conv_stats_kernel(%arg0: i32, %arg1: i32, %arg2: memref<128x640xbf16, #tpu.memory_space<vmem>>, %arg3: memref<640x128xbf16, #tpu.memory_space<vmem>>, %arg4: memref<128x128xf32, #tpu.memory_space<vmem>>, %arg5: memref<1x2x128xf32, #tpu.memory_space<vmem>>) attributes {dimension_semantics = [#tpu.dimension_semantics<parallel>, #tpu.dimension_semantics<arbitrary>], iteration_bounds = array<i64: 1, 1>, scalar_prefetch = 0 : i64, scratch_operands = 0 : i64, tpu.core_type = #tpu.core_type<tc>, window_params = [{transform_indices = @transform_0, window_bounds = array<i64: 128, 640>}, {pipeline_mode = #tpu.pipeline_mode<synchronous>, transform_indices = @transform_1, window_bounds = array<i64: 640, 128>}, {transform_indices = @transform_2, window_bounds = array<i64: 128, 128>}, {transform_indices = @transform_3, window_bounds = array<i64: 1, 2, 128>}]} {
    %c0_i32 = arith.constant 0 : i32
    %0 = arith.cmpi eq, %arg1, %c0_i32 : i32
    %1 = arith.extui %0 : i1 to i32
    %c0_i32_0 = arith.constant 0 : i32
    %2 = arith.cmpi ne, %1, %c0_i32_0 : i32
    scf.if %2 {
      %cst_18 = arith.constant 0.000000e+00 : f32
      %22 = vector.broadcast %cst_18 : f32 to vector<1x2x128xf32>
      %c0_19 = arith.constant 0 : index
      %c0_20 = arith.constant 0 : index
      %c0_21 = arith.constant 0 : index
      %23 = vector.load %arg5[%c0_19, %c0_20, %c0_21] : memref<1x2x128xf32, #tpu.memory_space<vmem>>, vector<1x2x128xf32>
      tpu.vector_store %arg5[%c0_19, %c0_20, %c0_21], %22 {strides = array<i32>} : memref<1x2x128xf32, #tpu.memory_space<vmem>>, vector<1x2x128xf32>,
    } else {
    }
    %c0 = arith.constant 0 : index
    %c0_1 = arith.constant 0 : index
    %3 = vector.load %arg2[%c0, %c0_1] : memref<128x640xbf16, #tpu.memory_space<vmem>>, vector<128x640xbf16>
    %c0_2 = arith.constant 0 : index
    %c0_3 = arith.constant 0 : index
    %4 = vector.load %arg3[%c0_2, %c0_3] : memref<640x128xbf16, #tpu.memory_space<vmem>>, vector<640x128xbf16>
    %cst = arith.constant dense<0.000000e+00> : vector<128x128xf32>
    %5 = tpu.matmul %3, %4, %cst {dimension_numbers = #tpu.dot_dimension_numbers<[1], [0], [0], [1], [0, 0, 1, 1], [], []>} : vector<128x640xbf16>, vector<640x128xbf16>, vector<128x128xf32> -> vector<128x128xf32>
    %c0_4 = arith.constant 0 : index
    %c0_5 = arith.constant 0 : index
    %6 = vector.load %arg4[%c0_4, %c0_5] : memref<128x128xf32, #tpu.memory_space<vmem>>, vector<128x128xf32>
    tpu.vector_store %arg4[%c0_4, %c0_5], %5 {strides = array<i32>} : memref<128x128xf32, #tpu.memory_space<vmem>>, vector<128x128xf32>,
    %cst_6 = arith.constant 0.000000e+00 : f32
    %7 = vector.broadcast %cst_6 : f32 to vector<1x128xf32>
    %cst_7 = arith.constant 0.000000e+00 : f32
    %8 = vector.broadcast %cst_7 : f32 to vector<1x128xf32>
    %c0_8 = arith.constant 0 : index
    %c0_9 = arith.constant 0 : index
    %9 = vector.load %arg4[%c0_8, %c0_9] : memref<128x128xf32, #tpu.memory_space<vmem>>, vector<128x128xf32>
    %cst_10 = arith.constant dense<0.000000e+00> : vector<128xf32>
    %10 = vector.multi_reduction <add>, %9, %cst_10 [0] : vector<128x128xf32> to vector<128xf32>
    %11 = vector.shape_cast %10 : vector<128xf32> to vector<1x128xf32>
    %12 = arith.addf %7, %11 : vector<1x128xf32>
    %13 = arith.mulf %9, %9 : vector<128x128xf32>
    %cst_11 = arith.constant dense<0.000000e+00> : vector<128xf32>
    %14 = vector.multi_reduction <add>, %13, %cst_11 [0] : vector<128x128xf32> to vector<128xf32>
    %15 = vector.shape_cast %14 : vector<128xf32> to vector<1x128xf32>
    %16 = arith.addf %8, %15 : vector<1x128xf32>
    %c0_12 = arith.constant 0 : index
    %c0_13 = arith.constant 0 : index
    %c0_14 = arith.constant 0 : index
    %17 = vector.load %arg5[%c0_12, %c0_13, %c0_14] : memref<1x2x128xf32, #tpu.memory_space<vmem>>, vector<1x2x128xf32>
    %18 = tpu.concatenate %12, %16 in 0 : vector<1x128xf32>, vector<1x128xf32> -> vector<2x128xf32>
    %19 = vector.shape_cast %18 : vector<2x128xf32> to vector<1x2x128xf32>
    %20 = arith.addf %17, %19 : vector<1x2x128xf32>
    %c0_15 = arith.constant 0 : index
    %c0_16 = arith.constant 0 : index
    %c0_17 = arith.constant 0 : index
    %21 = vector.load %arg5[%c0_15, %c0_16, %c0_17] : memref<1x2x128xf32, #tpu.memory_space<vmem>>, vector<1x2x128xf32>
    tpu.vector_store %arg5[%c0_15, %c0_16, %c0_17], %20 {strides = array<i32>} : memref<1x2x128xf32, #tpu.memory_space<vmem>>, vector<1x2x128xf32>,
    return
  }
  func.func @transform_0(%arg0: i32, %arg1: i32) -> (i32, i32) {
    %c1_i32 = arith.constant 1 : i32
    %0 = arith.muli %arg0, %c1_i32 : i32
    %1 = arith.addi %0, %arg1 : i32
    %c0_i32 = arith.constant 0 : i32
    %c0_i32_0 = arith.constant 0 : i32
    return %1, %c0_i32 : i32, i32
  }
  func.func @transform_1(%arg0: i32, %arg1: i32) -> (i32, i32) {
    %c0_i32 = arith.constant 0 : i32
    %c0_i32_0 = arith.constant 0 : i32
    %c0_i32_1 = arith.constant 0 : i32
    return %c0_i32, %c0_i32_0 : i32, i32
  }
  func.func @transform_2(%arg0: i32, %arg1: i32) -> (i32, i32) {
    %c1_i32 = arith.constant 1 : i32
    %0 = arith.muli %arg0, %c1_i32 : i32
    %1 = arith.addi %0, %arg1 : i32
    %c0_i32 = arith.constant 0 : i32
    %c0_i32_0 = arith.constant 0 : i32
    return %1, %c0_i32 : i32, i32
  }
  func.func @transform_3(%arg0: i32, %arg1: i32) -> (i32, i32, i32) {
    %c0_i32 = arith.constant 0 : i32
    %c0_i32_0 = arith.constant 0 : i32
    %c0_i32_1 = arith.constant 0 : i32
    return %arg0, %c0_i32, %c0_i32_0 : i32, i32, i32
  }
}

module attributes {stable_mosaic.version = 11 : i64} {
  func.func @_conv_stats_kernel(%arg0: i32, %arg1: i32, %arg2: memref<32x640xbf16, #tpu.memory_space<vmem>>, %arg3: memref<640x128xbf16, #tpu.memory_space<vmem>>, %arg4: memref<32x128xf32, #tpu.memory_space<vmem>>, %arg5: memref<1x2x128xf32, #tpu.memory_space<vmem>>) attributes {dimension_semantics = [#tpu.dimension_semantics<parallel>, #tpu.dimension_semantics<arbitrary>], iteration_bounds = array<i64: 1, 1>, scalar_prefetch = 0 : i64, scratch_operands = 0 : i64, tpu.core_type = #tpu.core_type<tc>, window_params = [{transform_indices = @transform_0, window_bounds = array<i64: 32, 640>}, {pipeline_mode = #tpu.pipeline_mode<synchronous>, transform_indices = @transform_1, window_bounds = array<i64: 640, 128>}, {transform_indices = @transform_2, window_bounds = array<i64: 32, 128>}, {transform_indices = @transform_3, window_bounds = array<i64: 1, 2, 128>}]} {
    %c0_i32 = arith.constant 0 : i32
    %0 = arith.cmpi eq, %arg1, %c0_i32 : i32
    %1 = arith.extui %0 : i1 to i32
    %c0_i32_0 = arith.constant 0 : i32
    %2 = arith.cmpi ne, %1, %c0_i32_0 : i32
    scf.if %2 {
      %cst_18 = arith.constant 0.000000e+00 : f32
      %22 = vector.broadcast %cst_18 : f32 to vector<1x2x128xf32>
      %c0_19 = arith.constant 0 : index
      %c0_20 = arith.constant 0 : index
      %c0_21 = arith.constant 0 : index
      %23 = vector.load %arg5[%c0_19, %c0_20, %c0_21] : memref<1x2x128xf32, #tpu.memory_space<vmem>>, vector<1x2x128xf32>
      tpu.vector_store %arg5[%c0_19, %c0_20, %c0_21], %22 {strides = array<i32>} : memref<1x2x128xf32, #tpu.memory_space<vmem>>, vector<1x2x128xf32>,
    } else {
    }
    %c0 = arith.constant 0 : index
    %c0_1 = arith.constant 0 : index
    %3 = vector.load %arg2[%c0, %c0_1] : memref<32x640xbf16, #tpu.memory_space<vmem>>, vector<32x640xbf16>
    %c0_2 = arith.constant 0 : index
    %c0_3 = arith.constant 0 : index
    %4 = vector.load %arg3[%c0_2, %c0_3] : memref<640x128xbf16, #tpu.memory_space<vmem>>, vector<640x128xbf16>
    %cst = arith.constant dense<0.000000e+00> : vector<32x128xf32>
    %5 = tpu.matmul %3, %4, %cst {dimension_numbers = #tpu.dot_dimension_numbers<[1], [0], [0], [1], [0, 0, 1, 1], [], []>} : vector<32x640xbf16>, vector<640x128xbf16>, vector<32x128xf32> -> vector<32x128xf32>
    %c0_4 = arith.constant 0 : index
    %c0_5 = arith.constant 0 : index
    %6 = vector.load %arg4[%c0_4, %c0_5] : memref<32x128xf32, #tpu.memory_space<vmem>>, vector<32x128xf32>
    tpu.vector_store %arg4[%c0_4, %c0_5], %5 {strides = array<i32>} : memref<32x128xf32, #tpu.memory_space<vmem>>, vector<32x128xf32>,
    %cst_6 = arith.constant 0.000000e+00 : f32
    %7 = vector.broadcast %cst_6 : f32 to vector<1x128xf32>
    %cst_7 = arith.constant 0.000000e+00 : f32
    %8 = vector.broadcast %cst_7 : f32 to vector<1x128xf32>
    %c0_8 = arith.constant 0 : index
    %c0_9 = arith.constant 0 : index
    %9 = vector.load %arg4[%c0_8, %c0_9] : memref<32x128xf32, #tpu.memory_space<vmem>>, vector<32x128xf32>
    %cst_10 = arith.constant dense<0.000000e+00> : vector<128xf32>
    %10 = vector.multi_reduction <add>, %9, %cst_10 [0] : vector<32x128xf32> to vector<128xf32>
    %11 = vector.shape_cast %10 : vector<128xf32> to vector<1x128xf32>
    %12 = arith.addf %7, %11 : vector<1x128xf32>
    %13 = arith.mulf %9, %9 : vector<32x128xf32>
    %cst_11 = arith.constant dense<0.000000e+00> : vector<128xf32>
    %14 = vector.multi_reduction <add>, %13, %cst_11 [0] : vector<32x128xf32> to vector<128xf32>
    %15 = vector.shape_cast %14 : vector<128xf32> to vector<1x128xf32>
    %16 = arith.addf %8, %15 : vector<1x128xf32>
    %c0_12 = arith.constant 0 : index
    %c0_13 = arith.constant 0 : index
    %c0_14 = arith.constant 0 : index
    %17 = vector.load %arg5[%c0_12, %c0_13, %c0_14] : memref<1x2x128xf32, #tpu.memory_space<vmem>>, vector<1x2x128xf32>
    %18 = tpu.concatenate %12, %16 in 0 : vector<1x128xf32>, vector<1x128xf32> -> vector<2x128xf32>
    %19 = vector.shape_cast %18 : vector<2x128xf32> to vector<1x2x128xf32>
    %20 = arith.addf %17, %19 : vector<1x2x128xf32>
    %c0_15 = arith.constant 0 : index
    %c0_16 = arith.constant 0 : index
    %c0_17 = arith.constant 0 : index
    %21 = vector.load %arg5[%c0_15, %c0_16, %c0_17] : memref<1x2x128xf32, #tpu.memory_space<vmem>>, vector<1x2x128xf32>
    tpu.vector_store %arg5[%c0_15, %c0_16, %c0_17], %20 {strides = array<i32>} : memref<1x2x128xf32, #tpu.memory_space<vmem>>, vector<1x2x128xf32>,
    return
  }
  func.func @transform_0(%arg0: i32, %arg1: i32) -> (i32, i32) {
    %c1_i32 = arith.constant 1 : i32
    %0 = arith.muli %arg0, %c1_i32 : i32
    %1 = arith.addi %0, %arg1 : i32
    %c0_i32 = arith.constant 0 : i32
    %c0_i32_0 = arith.constant 0 : i32
    return %1, %c0_i32 : i32, i32
  }
  func.func @transform_1(%arg0: i32, %arg1: i32) -> (i32, i32) {
    %c0_i32 = arith.constant 0 : i32
    %c0_i32_0 = arith.constant 0 : i32
    %c0_i32_1 = arith.constant 0 : i32
    return %c0_i32, %c0_i32_0 : i32, i32
  }
  func.func @transform_2(%arg0: i32, %arg1: i32) -> (i32, i32) {
    %c1_i32 = arith.constant 1 : i32
    %0 = arith.muli %arg0, %c1_i32 : i32
    %1 = arith.addi %0, %arg1 : i32
    %c0_i32 = arith.constant 0 : i32
    %c0_i32_0 = arith.constant 0 : i32
    return %1, %c0_i32 : i32, i32
  }
  func.func @transform_3(%arg0: i32, %arg1: i32) -> (i32, i32, i32) {
    %c0_i32 = arith.constant 0 : i32
    %c0_i32_0 = arith.constant 0 : i32
    %c0_i32_1 = arith.constant 0 : i32
    return %arg0, %c0_i32, %c0_i32_0 : i32, i32, i32
  }
}

module attributes {stable_mosaic.version = 11 : i64} {
  func.func @_bn_act_kernel(%arg0: i32, %arg1: memref<32x128xf32, #tpu.memory_space<vmem>>, %arg2: memref<1x2x128xf32, #tpu.memory_space<vmem>>, %arg3: memref<1x128xf32, #tpu.memory_space<vmem>>, %arg4: memref<1x128xf32, #tpu.memory_space<vmem>>, %arg5: memref<32x128xbf16, #tpu.memory_space<vmem>>) attributes {dimension_semantics = [#tpu.dimension_semantics<parallel>], iteration_bounds = array<i64: 1>, scalar_prefetch = 0 : i64, scratch_operands = 0 : i64, tpu.core_type = #tpu.core_type<tc>, window_params = [{transform_indices = @transform_0, window_bounds = array<i64: 32, 128>}, {pipeline_mode = #tpu.pipeline_mode<synchronous>, transform_indices = @transform_1, window_bounds = array<i64: 1, 2, 128>}, {pipeline_mode = #tpu.pipeline_mode<synchronous>, transform_indices = @transform_2, window_bounds = array<i64: 1, 128>}, {pipeline_mode = #tpu.pipeline_mode<synchronous>, transform_indices = @transform_3, window_bounds = array<i64: 1, 128>}, {transform_indices = @transform_4, window_bounds = array<i64: 32, 128>}]} {
    %c0 = arith.constant 0 : index
    %c0_0 = arith.constant 0 : index
    %c0_1 = arith.constant 0 : index
    %0 = vector.load %arg2[%c0, %c0_0, %c0_1] : memref<1x2x128xf32, #tpu.memory_space<vmem>>, vector<1x2x128xf32>
    %cst = arith.constant dense<0.000000e+00> : vector<2x128xf32>
    %1 = vector.multi_reduction <add>, %0, %cst [0] : vector<1x2x128xf32> to vector<2x128xf32>
    %2 = vector.extract_strided_slice %1 {offsets = [0, 0], sizes = [1, 128], strides = [1, 1]} : vector<2x128xf32> to vector<1x128xf32>
    %cst_2 = arith.constant 3.125000e-02 : f32
    %3 = vector.broadcast %cst_2 : f32 to vector<1x128xf32>
    %4 = arith.mulf %2, %3 : vector<1x128xf32>
    %5 = vector.extract_strided_slice %1 {offsets = [1, 0], sizes = [1, 128], strides = [1, 1]} : vector<2x128xf32> to vector<1x128xf32>
    %cst_3 = arith.constant 3.125000e-02 : f32
    %6 = vector.broadcast %cst_3 : f32 to vector<1x128xf32>
    %7 = arith.mulf %5, %6 : vector<1x128xf32>
    %8 = arith.mulf %4, %4 : vector<1x128xf32>
    %9 = arith.subf %7, %8 : vector<1x128xf32>
    %cst_4 = arith.constant 0.000000e+00 : f32
    %10 = vector.broadcast %cst_4 : f32 to vector<1x128xf32>
    %11 = arith.maximumf %9, %10 : vector<1x128xf32>
    %c0_5 = arith.constant 0 : index
    %c0_6 = arith.constant 0 : index
    %12 = vector.load %arg3[%c0_5, %c0_6] : memref<1x128xf32, #tpu.memory_space<vmem>>, vector<1x128xf32>
    %cst_7 = arith.constant 9.99999974E-6 : f32
    %13 = vector.broadcast %cst_7 : f32 to vector<1x128xf32>
    %14 = arith.addf %11, %13 : vector<1x128xf32>
    %15 = math.rsqrt %14 : vector<1x128xf32>
    %16 = arith.mulf %12, %15 : vector<1x128xf32>
    %c0_8 = arith.constant 0 : index
    %c0_9 = arith.constant 0 : index
    %17 = vector.load %arg4[%c0_8, %c0_9] : memref<1x128xf32, #tpu.memory_space<vmem>>, vector<1x128xf32>
    %18 = arith.mulf %4, %16 : vector<1x128xf32>
    %19 = arith.subf %17, %18 : vector<1x128xf32>
    %c0_10 = arith.constant 0 : index
    %c0_11 = arith.constant 0 : index
    %20 = vector.load %arg1[%c0_10, %c0_11] : memref<32x128xf32, #tpu.memory_space<vmem>>, vector<32x128xf32>
    %21 = vector.broadcast %16 : vector<1x128xf32> to vector<32x128xf32>
    %22 = arith.mulf %20, %21 : vector<32x128xf32>
    %23 = vector.broadcast %19 : vector<1x128xf32> to vector<32x128xf32>
    %24 = arith.addf %22, %23 : vector<32x128xf32>
    %cst_12 = arith.constant 1.000000e-01 : f32
    %25 = vector.broadcast %cst_12 : f32 to vector<32x128xf32>
    %26 = arith.mulf %25, %24 : vector<32x128xf32>
    %27 = arith.maximumf %24, %26 : vector<32x128xf32>
    %28 = arith.truncf %27 : vector<32x128xf32> to vector<32x128xbf16>
    %c0_13 = arith.constant 0 : index
    %c0_14 = arith.constant 0 : index
    %29 = vector.load %arg5[%c0_13, %c0_14] : memref<32x128xbf16, #tpu.memory_space<vmem>>, vector<32x128xbf16>
    tpu.vector_store %arg5[%c0_13, %c0_14], %28 {strides = array<i32>} : memref<32x128xbf16, #tpu.memory_space<vmem>>, vector<32x128xbf16>,
    return
  }
  func.func @transform_0(%arg0: i32) -> (i32, i32) {
    %c0_i32 = arith.constant 0 : i32
    %c0_i32_0 = arith.constant 0 : i32
    return %arg0, %c0_i32 : i32, i32
  }
  func.func @transform_1(%arg0: i32) -> (i32, i32, i32) {
    %c0_i32 = arith.constant 0 : i32
    %c0_i32_0 = arith.constant 0 : i32
    %c0_i32_1 = arith.constant 0 : i32
    %c0_i32_2 = arith.constant 0 : i32
    return %c0_i32, %c0_i32_0, %c0_i32_1 : i32, i32, i32
  }
  func.func @transform_2(%arg0: i32) -> (i32, i32) {
    %c0_i32 = arith.constant 0 : i32
    %c0_i32_0 = arith.constant 0 : i32
    %c0_i32_1 = arith.constant 0 : i32
    return %c0_i32, %c0_i32_0 : i32, i32
  }
  func.func @transform_3(%arg0: i32) -> (i32, i32) {
    %c0_i32 = arith.constant 0 : i32
    %c0_i32_0 = arith.constant 0 : i32
    %c0_i32_1 = arith.constant 0 : i32
    return %c0_i32, %c0_i32_0 : i32, i32
  }
  func.func @transform_4(%arg0: i32) -> (i32, i32) {
    %c0_i32 = arith.constant 0 : i32
    %c0_i32_0 = arith.constant 0 : i32
    return %arg0, %c0_i32 : i32, i32
  }
}

module attributes {stable_mosaic.version = 11 : i64} {
  func.func @_conv_stats_kernel(%arg0: i32, %arg1: i32, %arg2: memref<32x128xbf16, #tpu.memory_space<vmem>>, %arg3: memref<128x128xbf16, #tpu.memory_space<vmem>>, %arg4: memref<32x128xf32, #tpu.memory_space<vmem>>, %arg5: memref<1x2x128xf32, #tpu.memory_space<vmem>>) attributes {dimension_semantics = [#tpu.dimension_semantics<parallel>, #tpu.dimension_semantics<arbitrary>], iteration_bounds = array<i64: 1, 1>, scalar_prefetch = 0 : i64, scratch_operands = 0 : i64, tpu.core_type = #tpu.core_type<tc>, window_params = [{transform_indices = @transform_0, window_bounds = array<i64: 32, 128>}, {pipeline_mode = #tpu.pipeline_mode<synchronous>, transform_indices = @transform_1, window_bounds = array<i64: 128, 128>}, {transform_indices = @transform_2, window_bounds = array<i64: 32, 128>}, {transform_indices = @transform_3, window_bounds = array<i64: 1, 2, 128>}]} {
    %c0_i32 = arith.constant 0 : i32
    %0 = arith.cmpi eq, %arg1, %c0_i32 : i32
    %1 = arith.extui %0 : i1 to i32
    %c0_i32_0 = arith.constant 0 : i32
    %2 = arith.cmpi ne, %1, %c0_i32_0 : i32
    scf.if %2 {
      %cst_18 = arith.constant 0.000000e+00 : f32
      %22 = vector.broadcast %cst_18 : f32 to vector<1x2x128xf32>
      %c0_19 = arith.constant 0 : index
      %c0_20 = arith.constant 0 : index
      %c0_21 = arith.constant 0 : index
      %23 = vector.load %arg5[%c0_19, %c0_20, %c0_21] : memref<1x2x128xf32, #tpu.memory_space<vmem>>, vector<1x2x128xf32>
      tpu.vector_store %arg5[%c0_19, %c0_20, %c0_21], %22 {strides = array<i32>} : memref<1x2x128xf32, #tpu.memory_space<vmem>>, vector<1x2x128xf32>,
    } else {
    }
    %c0 = arith.constant 0 : index
    %c0_1 = arith.constant 0 : index
    %3 = vector.load %arg2[%c0, %c0_1] : memref<32x128xbf16, #tpu.memory_space<vmem>>, vector<32x128xbf16>
    %c0_2 = arith.constant 0 : index
    %c0_3 = arith.constant 0 : index
    %4 = vector.load %arg3[%c0_2, %c0_3] : memref<128x128xbf16, #tpu.memory_space<vmem>>, vector<128x128xbf16>
    %cst = arith.constant dense<0.000000e+00> : vector<32x128xf32>
    %5 = tpu.matmul %3, %4, %cst {dimension_numbers = #tpu.dot_dimension_numbers<[1], [0], [0], [1], [0, 0, 1, 1], [], []>} : vector<32x128xbf16>, vector<128x128xbf16>, vector<32x128xf32> -> vector<32x128xf32>
    %c0_4 = arith.constant 0 : index
    %c0_5 = arith.constant 0 : index
    %6 = vector.load %arg4[%c0_4, %c0_5] : memref<32x128xf32, #tpu.memory_space<vmem>>, vector<32x128xf32>
    tpu.vector_store %arg4[%c0_4, %c0_5], %5 {strides = array<i32>} : memref<32x128xf32, #tpu.memory_space<vmem>>, vector<32x128xf32>,
    %cst_6 = arith.constant 0.000000e+00 : f32
    %7 = vector.broadcast %cst_6 : f32 to vector<1x128xf32>
    %cst_7 = arith.constant 0.000000e+00 : f32
    %8 = vector.broadcast %cst_7 : f32 to vector<1x128xf32>
    %c0_8 = arith.constant 0 : index
    %c0_9 = arith.constant 0 : index
    %9 = vector.load %arg4[%c0_8, %c0_9] : memref<32x128xf32, #tpu.memory_space<vmem>>, vector<32x128xf32>
    %cst_10 = arith.constant dense<0.000000e+00> : vector<128xf32>
    %10 = vector.multi_reduction <add>, %9, %cst_10 [0] : vector<32x128xf32> to vector<128xf32>
    %11 = vector.shape_cast %10 : vector<128xf32> to vector<1x128xf32>
    %12 = arith.addf %7, %11 : vector<1x128xf32>
    %13 = arith.mulf %9, %9 : vector<32x128xf32>
    %cst_11 = arith.constant dense<0.000000e+00> : vector<128xf32>
    %14 = vector.multi_reduction <add>, %13, %cst_11 [0] : vector<32x128xf32> to vector<128xf32>
    %15 = vector.shape_cast %14 : vector<128xf32> to vector<1x128xf32>
    %16 = arith.addf %8, %15 : vector<1x128xf32>
    %c0_12 = arith.constant 0 : index
    %c0_13 = arith.constant 0 : index
    %c0_14 = arith.constant 0 : index
    %17 = vector.load %arg5[%c0_12, %c0_13, %c0_14] : memref<1x2x128xf32, #tpu.memory_space<vmem>>, vector<1x2x128xf32>
    %18 = tpu.concatenate %12, %16 in 0 : vector<1x128xf32>, vector<1x128xf32> -> vector<2x128xf32>
    %19 = vector.shape_cast %18 : vector<2x128xf32> to vector<1x2x128xf32>
    %20 = arith.addf %17, %19 : vector<1x2x128xf32>
    %c0_15 = arith.constant 0 : index
    %c0_16 = arith.constant 0 : index
    %c0_17 = arith.constant 0 : index
    %21 = vector.load %arg5[%c0_15, %c0_16, %c0_17] : memref<1x2x128xf32, #tpu.memory_space<vmem>>, vector<1x2x128xf32>
    tpu.vector_store %arg5[%c0_15, %c0_16, %c0_17], %20 {strides = array<i32>} : memref<1x2x128xf32, #tpu.memory_space<vmem>>, vector<1x2x128xf32>,
    return
  }
  func.func @transform_0(%arg0: i32, %arg1: i32) -> (i32, i32) {
    %c1_i32 = arith.constant 1 : i32
    %0 = arith.muli %arg0, %c1_i32 : i32
    %1 = arith.addi %0, %arg1 : i32
    %c0_i32 = arith.constant 0 : i32
    %c0_i32_0 = arith.constant 0 : i32
    return %1, %c0_i32 : i32, i32
  }
  func.func @transform_1(%arg0: i32, %arg1: i32) -> (i32, i32) {
    %c0_i32 = arith.constant 0 : i32
    %c0_i32_0 = arith.constant 0 : i32
    %c0_i32_1 = arith.constant 0 : i32
    return %c0_i32, %c0_i32_0 : i32, i32
  }
  func.func @transform_2(%arg0: i32, %arg1: i32) -> (i32, i32) {
    %c1_i32 = arith.constant 1 : i32
    %0 = arith.muli %arg0, %c1_i32 : i32
    %1 = arith.addi %0, %arg1 : i32
    %c0_i32 = arith.constant 0 : i32
    %c0_i32_0 = arith.constant 0 : i32
    return %1, %c0_i32 : i32, i32
  }
  func.func @transform_3(%arg0: i32, %arg1: i32) -> (i32, i32, i32) {
    %c0_i32 = arith.constant 0 : i32
    %c0_i32_0 = arith.constant 0 : i32
    %c0_i32_1 = arith.constant 0 : i32
    return %arg0, %c0_i32, %c0_i32_0 : i32, i32, i32
  }
}

module attributes {stable_mosaic.version = 11 : i64} {
  func.func @_conv_stats_kernel(%arg0: i32, %arg1: i32, %arg2: memref<32x896xbf16, #tpu.memory_space<vmem>>, %arg3: memref<896x128xbf16, #tpu.memory_space<vmem>>, %arg4: memref<32x128xf32, #tpu.memory_space<vmem>>, %arg5: memref<1x2x128xf32, #tpu.memory_space<vmem>>) attributes {dimension_semantics = [#tpu.dimension_semantics<parallel>, #tpu.dimension_semantics<arbitrary>], iteration_bounds = array<i64: 1, 1>, scalar_prefetch = 0 : i64, scratch_operands = 0 : i64, tpu.core_type = #tpu.core_type<tc>, window_params = [{transform_indices = @transform_0, window_bounds = array<i64: 32, 896>}, {pipeline_mode = #tpu.pipeline_mode<synchronous>, transform_indices = @transform_1, window_bounds = array<i64: 896, 128>}, {transform_indices = @transform_2, window_bounds = array<i64: 32, 128>}, {transform_indices = @transform_3, window_bounds = array<i64: 1, 2, 128>}]} {
    %c0_i32 = arith.constant 0 : i32
    %0 = arith.cmpi eq, %arg1, %c0_i32 : i32
    %1 = arith.extui %0 : i1 to i32
    %c0_i32_0 = arith.constant 0 : i32
    %2 = arith.cmpi ne, %1, %c0_i32_0 : i32
    scf.if %2 {
      %cst_18 = arith.constant 0.000000e+00 : f32
      %22 = vector.broadcast %cst_18 : f32 to vector<1x2x128xf32>
      %c0_19 = arith.constant 0 : index
      %c0_20 = arith.constant 0 : index
      %c0_21 = arith.constant 0 : index
      %23 = vector.load %arg5[%c0_19, %c0_20, %c0_21] : memref<1x2x128xf32, #tpu.memory_space<vmem>>, vector<1x2x128xf32>
      tpu.vector_store %arg5[%c0_19, %c0_20, %c0_21], %22 {strides = array<i32>} : memref<1x2x128xf32, #tpu.memory_space<vmem>>, vector<1x2x128xf32>,
    } else {
    }
    %c0 = arith.constant 0 : index
    %c0_1 = arith.constant 0 : index
    %3 = vector.load %arg2[%c0, %c0_1] : memref<32x896xbf16, #tpu.memory_space<vmem>>, vector<32x896xbf16>
    %c0_2 = arith.constant 0 : index
    %c0_3 = arith.constant 0 : index
    %4 = vector.load %arg3[%c0_2, %c0_3] : memref<896x128xbf16, #tpu.memory_space<vmem>>, vector<896x128xbf16>
    %cst = arith.constant dense<0.000000e+00> : vector<32x128xf32>
    %5 = tpu.matmul %3, %4, %cst {dimension_numbers = #tpu.dot_dimension_numbers<[1], [0], [0], [1], [0, 0, 1, 1], [], []>} : vector<32x896xbf16>, vector<896x128xbf16>, vector<32x128xf32> -> vector<32x128xf32>
    %c0_4 = arith.constant 0 : index
    %c0_5 = arith.constant 0 : index
    %6 = vector.load %arg4[%c0_4, %c0_5] : memref<32x128xf32, #tpu.memory_space<vmem>>, vector<32x128xf32>
    tpu.vector_store %arg4[%c0_4, %c0_5], %5 {strides = array<i32>} : memref<32x128xf32, #tpu.memory_space<vmem>>, vector<32x128xf32>,
    %cst_6 = arith.constant 0.000000e+00 : f32
    %7 = vector.broadcast %cst_6 : f32 to vector<1x128xf32>
    %cst_7 = arith.constant 0.000000e+00 : f32
    %8 = vector.broadcast %cst_7 : f32 to vector<1x128xf32>
    %c0_8 = arith.constant 0 : index
    %c0_9 = arith.constant 0 : index
    %9 = vector.load %arg4[%c0_8, %c0_9] : memref<32x128xf32, #tpu.memory_space<vmem>>, vector<32x128xf32>
    %cst_10 = arith.constant dense<0.000000e+00> : vector<128xf32>
    %10 = vector.multi_reduction <add>, %9, %cst_10 [0] : vector<32x128xf32> to vector<128xf32>
    %11 = vector.shape_cast %10 : vector<128xf32> to vector<1x128xf32>
    %12 = arith.addf %7, %11 : vector<1x128xf32>
    %13 = arith.mulf %9, %9 : vector<32x128xf32>
    %cst_11 = arith.constant dense<0.000000e+00> : vector<128xf32>
    %14 = vector.multi_reduction <add>, %13, %cst_11 [0] : vector<32x128xf32> to vector<128xf32>
    %15 = vector.shape_cast %14 : vector<128xf32> to vector<1x128xf32>
    %16 = arith.addf %8, %15 : vector<1x128xf32>
    %c0_12 = arith.constant 0 : index
    %c0_13 = arith.constant 0 : index
    %c0_14 = arith.constant 0 : index
    %17 = vector.load %arg5[%c0_12, %c0_13, %c0_14] : memref<1x2x128xf32, #tpu.memory_space<vmem>>, vector<1x2x128xf32>
    %18 = tpu.concatenate %12, %16 in 0 : vector<1x128xf32>, vector<1x128xf32> -> vector<2x128xf32>
    %19 = vector.shape_cast %18 : vector<2x128xf32> to vector<1x2x128xf32>
    %20 = arith.addf %17, %19 : vector<1x2x128xf32>
    %c0_15 = arith.constant 0 : index
    %c0_16 = arith.constant 0 : index
    %c0_17 = arith.constant 0 : index
    %21 = vector.load %arg5[%c0_15, %c0_16, %c0_17] : memref<1x2x128xf32, #tpu.memory_space<vmem>>, vector<1x2x128xf32>
    tpu.vector_store %arg5[%c0_15, %c0_16, %c0_17], %20 {strides = array<i32>} : memref<1x2x128xf32, #tpu.memory_space<vmem>>, vector<1x2x128xf32>,
    return
  }
  func.func @transform_0(%arg0: i32, %arg1: i32) -> (i32, i32) {
    %c1_i32 = arith.constant 1 : i32
    %0 = arith.muli %arg0, %c1_i32 : i32
    %1 = arith.addi %0, %arg1 : i32
    %c0_i32 = arith.constant 0 : i32
    %c0_i32_0 = arith.constant 0 : i32
    return %1, %c0_i32 : i32, i32
  }
  func.func @transform_1(%arg0: i32, %arg1: i32) -> (i32, i32) {
    %c0_i32 = arith.constant 0 : i32
    %c0_i32_0 = arith.constant 0 : i32
    %c0_i32_1 = arith.constant 0 : i32
    return %c0_i32, %c0_i32_0 : i32, i32
  }
  func.func @transform_2(%arg0: i32, %arg1: i32) -> (i32, i32) {
    %c1_i32 = arith.constant 1 : i32
    %0 = arith.muli %arg0, %c1_i32 : i32
    %1 = arith.addi %0, %arg1 : i32
    %c0_i32 = arith.constant 0 : i32
    %c0_i32_0 = arith.constant 0 : i32
    return %1, %c0_i32 : i32, i32
  }
  func.func @transform_3(%arg0: i32, %arg1: i32) -> (i32, i32, i32) {
    %c0_i32 = arith.constant 0 : i32
    %c0_i32_0 = arith.constant 0 : i32
    %c0_i32_1 = arith.constant 0 : i32
    return %arg0, %c0_i32, %c0_i32_0 : i32, i32, i32
  }
}

module attributes {stable_mosaic.version = 11 : i64} {
  func.func @_linear_kernel(%arg0: memref<8x128xf32, #tpu.memory_space<vmem>>, %arg1: memref<128x128xf32, #tpu.memory_space<vmem>>, %arg2: memref<1x128xf32, #tpu.memory_space<vmem>>, %arg3: memref<8x128xf32, #tpu.memory_space<vmem>>) attributes {dimension_semantics = [], scalar_prefetch = 0 : i64, scratch_operands = 0 : i64, tpu.core_type = #tpu.core_type<tc>} {
    %c0 = arith.constant 0 : index
    %c0_0 = arith.constant 0 : index
    %0 = vector.load %arg0[%c0, %c0_0] : memref<8x128xf32, #tpu.memory_space<vmem>>, vector<8x128xf32>
    %c0_1 = arith.constant 0 : index
    %c0_2 = arith.constant 0 : index
    %1 = vector.load %arg1[%c0_1, %c0_2] : memref<128x128xf32, #tpu.memory_space<vmem>>, vector<128x128xf32>
    %cst = arith.constant dense<0.000000e+00> : vector<8x128xf32>
    %2 = tpu.matmul %0, %1, %cst {dimension_numbers = #tpu.dot_dimension_numbers<[1], [0], [0], [1], [0, 0, 1, 1], [], []>} : vector<8x128xf32>, vector<128x128xf32>, vector<8x128xf32> -> vector<8x128xf32>
    %c0_3 = arith.constant 0 : index
    %c0_4 = arith.constant 0 : index
    %3 = vector.load %arg2[%c0_3, %c0_4] : memref<1x128xf32, #tpu.memory_space<vmem>>, vector<1x128xf32>
    %4 = vector.broadcast %3 : vector<1x128xf32> to vector<8x128xf32>
    %5 = arith.addf %2, %4 : vector<8x128xf32>
    %c0_5 = arith.constant 0 : index
    %c0_6 = arith.constant 0 : index
    %6 = vector.load %arg3[%c0_5, %c0_6] : memref<8x128xf32, #tpu.memory_space<vmem>>, vector<8x128xf32>
    tpu.vector_store %arg3[%c0_5, %c0_6], %5 {strides = array<i32>} : memref<8x128xf32, #tpu.memory_space<vmem>>, vector<8x128xf32>,
    return
  }
}

</mosaic_0001>

<bundles_post_ra>
// kernel: allcnn_forward.26
= control target key start
LH: loop header
LB: loop body
LE: loop exit
PB: predicated region body
PF: predicated region fallthrough
CT: control target
= control target key end

     0   :  { %s1321_s15 = smov 0   ;;  %s1586_s0 = inlined_call_operand.vmem [shape: f32[2048,128], index: 0, kind: input, shape index: {}]   ;;  %s1587_s1 = inlined_call_operand.vmem [shape: f32[2,2,128], index: 1, kind: input, shape index: {}]   ;;  %s1588_s2 = inlined_call_operand.vmem [shape: f32[1,128], index: 2, kind: input, shape index: {}]   ;;  %s1589_s3 = inlined_call_operand.vmem [shape: f32[1,128], index: 3, kind: input, shape index: {}]   ;;  %s1590_s4 = inlined_call_operand.vmem [shape: bf16[2048,128], index: 4, kind: output, shape index: {}]  }
   0x1 LB: > { %s946_s16 = sadd.s32 4294967295, %s1293_s15   ;;  %p950_p0 = scmp.ge.s32.totalorder %s1293_s15, 1  ;;  %s1293_s15 = sphi %s1321_s15, %s14_s15  }
   0x2   : > { %p163_p1 = scmp.lt.s32.totalorder %s1293_s15, 5 }
   0x4   : > { %p164_p2 = pnand %p950_p0, %p163_p1 }
   0x5   : > { %v201_v0 = vld [vmem:[%s1587_s1] sm:$0x3] (!%p164_p2)  ;;  %v202_v1 = vld [vmem:[%s1587_s1 + $0x2] sm:$0x3] (!%p164_p2)  ;;  %vm203_vm0 = vcmask (!%p164_p2), 1041408   ;;  %v221_v13 = vlaneseq (!%p164_p2)  ;;  %s951_s21 = sshll.u32 (!%p164_p2), %s946_s16, 6 }
   0x6   : > { %167 = sbr.rel (%p164_p2) target bundleno = 121 (0x79), region = 36  ;;  %v204_v2 = vsel (!%p164_p2), %vm203_vm0, %v201_v0, 0.0  ;;  %v205_v3 = vsel (!%p164_p2), %vm203_vm0, %v202_v1, 0.0  ;;  %v1295_v11 = vmov (!%p164_p2), 1966171168   ;;  %p190_p3 = scmp.lt.s32.totalorder (!%p164_p2), %s951_s21, 255 }
   0x7   : > { %v206_v4 = vadd.f32 (!%p164_p2), %v205_v3, %v204_v2  ;;  %v219_v12 = vunpack.c.l.s4 (!%p164_p2), %v1295_v11  ;;  %v222_v15 = vshrl.u32 (!%p164_p2), %v221_v13, 7  ;;  %v214_v20 = vld [vmem:[%s1588_s2] sm:$0x1] (!%p164_p2) }
   0x8   : > { %v235_v24 = vld [vmem:[%s1589_s3] sm:$0x1] (!%p164_p2) }
   0x9   : > { %v207_v5 = vmul.f32 (!%p164_p2), 0.00048828125, %v206_v4  ;;  %v220_v14 = vunpack.c.0.s8 (!%p164_p2), %v219_v12  ;;  %v305_v22 = vsub.s32 (!%p164_p2), 0, %v222_v15 }
   0xb   : > { %v208_v6 = vmul.f32 (!%p164_p2), %v207_v5, %v207_v5  ;;  %v223_v16 = vsub.s32 (!%p164_p2), %v220_v14, %v222_v15 }
   0xd   : > { %v210_v7 = vrot.slane %v208_v6, 7  ;;  %s1592_s21 = smov (!%p190_p3, %s951_s21), 255 }
   0xe   : > { %s952_s22 = sshll.u32 %s1592_s21, 3  ;;  %s954_s30 = sshll.u32 %s1592_s21, 2 }
   0xf   : > { %v212_v8 = vsub.f32 %v207_v5, %v210_v7  ;;  %s1341_s25 = scalar_lea.vmem %s1586_s0, %s952_s22  ;;  %s1395_s7 = scalar_lea.vmem %s1590_s4, %s954_s30 }
  0x10   : > { %v238_v25 = vld [vmem:[%s1341_s25] sm:$0xff]  ;;  %v239_v26 = vld [vmem:[%s1341_s25 + $0x8] sm:$0xff]  ;;  %v240_v27 = vld [vmem:[%s1341_s25 + $0x10] sm:$0xff] }
  0x11   : > { %v213_v9 = vmax.f32 %v212_v8, 0.0  ;;  %v241_v28 = vld [vmem:[%s1341_s25 + $0x18] sm:$0xff]  ;;  %v242_v29 = vld [vmem:[%s1341_s25 + $0x20] sm:$0xff]  ;;  %v243_v32 = vld [vmem:[%s1341_s25 + $0x28] sm:$0xff] }
  0x12   : > { %v244_v33 = vld [vmem:[%s1341_s25 + $0x30] sm:$0xff]  ;;  %v245_v34 = vld [vmem:[%s1341_s25 + $0x38] sm:$0xff]  ;;  %v246_v35 = vld [vmem:[%s1341_s25 + $0x40] sm:$0xff] }
  0x13   : > { %v215_v10 = vadd.f32 1e-05, %v213_v9  ;;  %v247_v36 = vld [vmem:[%s1341_s25 + $0x48] sm:$0xff]  ;;  %v248_v37 = vld [vmem:[%s1341_s25 + $0x50] sm:$0xff]  ;;  %v249_v42 = vld [vmem:[%s1341_s25 + $0x58] sm:$0xff] }
  0x14   : > { %v250_v43 = vld [vmem:[%s1341_s25 + $0x60] sm:$0xff]  ;;  %v251_v44 = vld [vmem:[%s1341_s25 + $0x68] sm:$0xff] }
  0x15   : > { %1285 = vrsqrt.f32 %v215_v10 }
  0x1f   : > { %v1286_v17 = vpop.eup %1285 }
  0x20   : > { %v224_v18 = vrot.slane %v1286_v17, %v223_v16 }
  0x22   : > { %v225_v19 = vcombine.high %v224_v18, %v224_v18 }
  0x24   : > { %v232_v21 = vrot.slane %v225_v19, %v223_v16 }
  0x26   : > { %v234_v23 = vmul.f32 %v232_v21, %v214_v20  ;;  %v252_v21 = vld [vmem:[%s1341_s25 + $0x70] sm:$0xff] }
  0x28   : > { %v236_v30 = vmul.f32 %v234_v23, %v207_v5  ;;  %v1354_v31 = vrot.slane %v234_v23, %v305_v22 }
  0x2a   : > { %v237_v38 = vsub.f32 %v235_v24, %v236_v30  ;;  %v308_v39 = vmul.f32 %v1354_v31, %v238_v25  ;;  %v309_v40 = vmul.f32 %v1354_v31, %v239_v26  ;;  %v310_v41 = vmul.f32 %v1354_v31, %v240_v27  ;;  %v253_v26 = vld [vmem:[%s1341_s25 + $0x78] sm:$0xff] }
  0x2b   : > { %v311_v45 = vmul.f32 %v1354_v31, %v241_v28  ;;  %v312_v46 = vmul.f32 %v1354_v31, %v242_v29  ;;  %v313_v47 = vmul.f32 %v1354_v31, %v243_v32  ;;  %v314_v48 = vmul.f32 %v1354_v31, %v244_v33  ;;  %v254_v32 = vld [vmem:[%s1341_s25 + $0x80] sm:$0xff] }
  0x2c   : > { %v1372_v49 = vrot.slane %v237_v38, %v305_v22  ;;  %v315_v50 = vmul.f32 %v1354_v31, %v245_v34  ;;  %v316_v51 = vmul.f32 %v1354_v31, %v246_v35  ;;  %v317_v52 = vmul.f32 %v1354_v31, %v247_v36 }
  0x2d   : > { %v318_v53 = vmul.f32 %v1354_v31, %v248_v37  ;;  %v319_v54 = vmul.f32 %v1354_v31, %v249_v42  ;;  %v320_v55 = vmul.f32 %v1354_v31, %v250_v43  ;;  %v321_v56 = vmul.f32 %v1354_v31, %v251_v44  ;;  %v255_v37 = vld [vmem:[%s1341_s25 + $0x88] sm:$0xff]  ;;  %v256_v42 = vld [vmem:[%s1341_s25 + $0x90] sm:$0xff] }
  0x2e   : > { %v378_v57 = vadd.f32 %v1372_v49, %v308_v39  ;;  %v379_v58 = vadd.f32 %v1372_v49, %v309_v40  ;;  %v380_v59 = vadd.f32 %v1372_v49, %v310_v41  ;;  %v381_v60 = vadd.f32 %v1372_v49, %v311_v45 }
  0x2f   : > { %v382_v61 = vadd.f32 %v1372_v49, %v312_v46  ;;  %v383_v62 = vadd.f32 %v1372_v49, %v313_v47  ;;  %v384_v63 = vadd.f32 %v1372_v49, %v314_v48  ;;  %v385_v0 = vadd.f32 %v1372_v49, %v315_v50  ;;  %v257_v47 = vld [vmem:[%s1341_s25 + $0x98] sm:$0xff] }
  0x30   : > { %v442_v1 = vmul.f32 0.1, %v378_v57  ;;  %v443_v2 = vmul.f32 0.1, %v379_v58  ;;  %v444_v3 = vmul.f32 0.1, %v380_v59  ;;  %v386_v4 = vadd.f32 %v1372_v49, %v316_v51 }
  0x31   : > { %v445_v5 = vmul.f32 0.1, %v381_v60  ;;  %v446_v6 = vmul.f32 0.1, %v382_v61  ;;  %v447_v7 = vmul.f32 0.1, %v383_v62  ;;  %v387_v8 = vadd.f32 %v1372_v49, %v317_v52 }
  0x32   : > { %v506_v9 = vmax.f32 %v378_v57, %v442_v1  ;;  %v507_v10 = vmax.f32 %v379_v58, %v443_v2  ;;  %v508_v11 = vmax.f32 %v380_v59, %v444_v3  ;;  %v448_v12 = vmul.f32 0.1, %v384_v63  ;;  %v258_v57 = vld [vmem:[%s1341_s25 + $0xa0] sm:$0xff] }
  0x33   : > { %v509_v13 = vmax.f32 %v381_v60, %v445_v5  ;;  %v510_v14 = vmax.f32 %v382_v61, %v446_v6  ;;  %v511_v15 = vmax.f32 %v383_v62, %v447_v7  ;;  %v449_v16 = vmul.f32 0.1, %v385_v0  ;;  %v259_v62 = vld [vmem:[%s1341_s25 + $0xa8] sm:$0xff] }
  0x34   : > { %v1088_v17 = vpack.c.bf16 %v507_v10, %v506_v9  ;;  %v512_v18 = vmax.f32 %v384_v63, %v448_v12  ;;  %v450_v19 = vmul.f32 0.1, %v386_v4  ;;  %v451_v20 = vmul.f32 0.1, %v387_v8  ;;  %v260_v63 = vld [vmem:[%s1341_s25 + $0xb0] sm:$0xff] }
  0x35   : > { %v1093_v22 = vpack.c.bf16 %v509_v13, %v508_v11  ;;  %v1098_v23 = vpack.c.bf16 %v511_v15, %v510_v14  ;;  %v513_v24 = vmax.f32 %v385_v0, %v449_v16  ;;  %v388_v25 = vadd.f32 %v1372_v49, %v318_v53  ;;  %v262_v13 = vld [vmem:[%s1341_s25 + $0xc0] sm:$0xff] }
  0x36   : > { %1089 = vst [vmem:[%s1395_s7] sm:$0xff] %v1088_v17   ;;  %v514_v27 = vmax.f32 %v386_v4, %v450_v19  ;;  %v515_v28 = vmax.f32 %v387_v8, %v451_v20  ;;  %v389_v29 = vadd.f32 %v1372_v49, %v319_v54  ;;  %v390_v30 = vadd.f32 %v1372_v49, %v320_v55  ;;  %v261_v8 = vld [vmem:[%s1341_s25 + $0xb8] sm:$0xff] }
  0x37   : > { %1245 = vst [vmem:[%s1395_s7 + $0x8] sm:$0xff] %v1093_v22   ;;  %1246 = vst [vmem:[%s1395_s7 + $0x10] sm:$0xff] %v1098_v23   ;;  %v1103_v33 = vpack.c.bf16 %v513_v24, %v512_v18  ;;  %v452_v34 = vmul.f32 0.1, %v388_v25  ;;  %v391_v35 = vadd.f32 %v1372_v49, %v321_v56  ;;  %v322_v36 = vmul.f32 %v1354_v31, %v252_v21  ;;  %v263_v18 = vld [vmem:[%s1341_s25 + $0xc8] sm:$0xff]  ;;  %v264_v23 = vld [vmem:[%s1341_s25 + $0xd0] sm:$0xff] }
  0x38   : > { %v1108_v38 = vpack.c.bf16 %v515_v28, %v514_v27  ;;  %v453_v39 = vmul.f32 0.1, %v389_v29  ;;  %v454_v40 = vmul.f32 0.1, %v390_v30  ;;  %v323_v41 = vmul.f32 %v1354_v31, %v253_v26 }
  0x39   : > { %1247 = vst [vmem:[%s1395_s7 + $0x18] sm:$0xff] %v1103_v33   ;;  %v516_v43 = vmax.f32 %v388_v25, %v452_v34  ;;  %v455_v44 = vmul.f32 0.1, %v391_v35  ;;  %v392_v45 = vadd.f32 %v1372_v49, %v322_v36  ;;  %v324_v46 = vmul.f32 %v1354_v31, %v254_v32  ;;  %v265_v33 = vld [vmem:[%s1341_s25 + $0xd8] sm:$0xff]  ;;  %v266_v34 = vld [vmem:[%s1341_s25 + $0xe0] sm:$0xff] }
  0x3a   : > { %1248 = vst [vmem:[%s1395_s7 + $0x20] sm:$0xff] %v1108_v38   ;;  %v517_v48 = vmax.f32 %v389_v29, %v453_v39  ;;  %v518_v50 = vmax.f32 %v390_v30, %v454_v40  ;;  %v393_v51 = vadd.f32 %v1372_v49, %v323_v41  ;;  %v325_v52 = vmul.f32 %v1354_v31, %v255_v37  ;;  %v267_v39 = vld [vmem:[%s1341_s25 + $0xe8] sm:$0xff] }
  0x3b   : > { %v519_v53 = vmax.f32 %v391_v35, %v455_v44  ;;  %v456_v54 = vmul.f32 0.1, %v392_v45  ;;  %v394_v55 = vadd.f32 %v1372_v49, %v324_v46  ;;  %v326_v56 = vmul.f32 %v1354_v31, %v256_v42 }
  0x3c   : > { %v1113_v58 = vpack.c.bf16 %v517_v48, %v516_v43  ;;  %v457_v59 = vmul.f32 0.1, %v393_v51  ;;  %v395_v60 = vadd.f32 %v1372_v49, %v325_v52  ;;  %v327_v61 = vmul.f32 %v1354_v31, %v257_v47  ;;  %v268_v48 = vld [vmem:[%s1341_s25 + $0xf0] sm:$0xff] }
  0x3d   : > { %v1118_v0 = vpack.c.bf16 %v519_v53, %v518_v50  ;;  %v520_v1 = vmax.f32 %v392_v45, %v456_v54  ;;  %v458_v2 = vmul.f32 0.1, %v394_v55  ;;  %v396_v3 = vadd.f32 %v1372_v49, %v326_v56  ;;  %v269_v54 = vld [vmem:[%s1341_s25 + $0xf8] sm:$0xff] }
  0x3e   : > { %1249 = vst [vmem:[%s1395_s7 + $0x28] sm:$0xff] %v1113_v58   ;;  %v521_v4 = vmax.f32 %v393_v51, %v457_v59  ;;  %v459_v5 = vmul.f32 0.1, %v395_v60  ;;  %v397_v6 = vadd.f32 %v1372_v49, %v327_v61  ;;  %v328_v7 = vmul.f32 %v1354_v31, %v258_v57  ;;  %v270_v59 = vld [vmem:[%s1341_s25 + $0x100] sm:$0xff] }
  0x3f   : > { %1250 = vst [vmem:[%s1395_s7 + $0x30] sm:$0xff] %v1118_v0   ;;  %v522_v9 = vmax.f32 %v394_v55, %v458_v2  ;;  %v460_v10 = vmul.f32 0.1, %v396_v3  ;;  %v329_v11 = vmul.f32 %v1354_v31, %v259_v62  ;;  %v330_v12 = vmul.f32 %v1354_v31, %v260_v63  ;;  %v271_v0 = vld [vmem:[%s1341_s25 + $0x108] sm:$0xff] }
  0x40   : > { %v1123_v14 = vpack.c.bf16 %v521_v4, %v520_v1  ;;  %v523_v15 = vmax.f32 %v395_v60, %v459_v5  ;;  %v461_v16 = vmul.f32 0.1, %v397_v6  ;;  %v398_v17 = vadd.f32 %v1372_v49, %v328_v7  ;;  %v272_v5 = vld [vmem:[%s1341_s25 + $0x110] sm:$0xff] }
  0x41   : > { %v524_v19 = vmax.f32 %v396_v3, %v460_v10  ;;  %v399_v20 = vadd.f32 %v1372_v49, %v329_v11  ;;  %v331_v21 = vmul.f32 %v1354_v31, %v261_v8  ;;  %v400_v22 = vadd.f32 %v1372_v49, %v330_v12  ;;  %v273_v10 = vld [vmem:[%s1341_s25 + $0x118] sm:$0xff] }
  0x42   : > { %1251 = vst [vmem:[%s1395_s7 + $0x38] sm:$0xff] %v1123_v14   ;;  %v1128_v24 = vpack.c.bf16 %v523_v15, %v522_v9  ;;  %v525_v25 = vmax.f32 %v397_v6, %v461_v16  ;;  %v462_v26 = vmul.f32 0.1, %v398_v17  ;;  %v332_v27 = vmul.f32 %v1354_v31, %v262_v13 }
  0x43   : > { %v463_v28 = vmul.f32 0.1, %v399_v20  ;;  %v401_v29 = vadd.f32 %v1372_v49, %v331_v21  ;;  %v464_v30 = vmul.f32 0.1, %v400_v22  ;;  %v333_v32 = vmul.f32 %v1354_v31, %v263_v18 }
  0x44   : > { %1252 = vst [vmem:[%s1395_s7 + $0x40] sm:$0xff] %v1128_v24   ;;  %v1133_v35 = vpack.c.bf16 %v525_v25, %v524_v19  ;;  %v526_v36 = vmax.f32 %v398_v17, %v462_v26  ;;  %v402_v37 = vadd.f32 %v1372_v49, %v332_v27  ;;  %v334_v38 = vmul.f32 %v1354_v31, %v264_v23  ;;  %v274_v19 = vld [vmem:[%s1341_s25 + $0x120] sm:$0xff]  ;;  %v275_v24 = vld [vmem:[%s1341_s25 + $0x128] sm:$0xff]  ;;  %v276_v25 = vld [vmem:[%s1341_s25 + $0x130] sm:$0xff] }
  0x45   : > { %v527_v40 = vmax.f32 %v399_v20, %v463_v28  ;;  %v465_v41 = vmul.f32 0.1, %v401_v29  ;;  %v528_v42 = vmax.f32 %v400_v22, %v464_v30  ;;  %v403_v43 = vadd.f32 %v1372_v49, %v333_v32 }
  0x46   : > { %1253 = vst [vmem:[%s1395_s7 + $0x48] sm:$0xff] %v1133_v35   ;;  %v466_v44 = vmul.f32 0.1, %v402_v37  ;;  %v335_v45 = vmul.f32 %v1354_v31, %v265_v33  ;;  %v404_v46 = vadd.f32 %v1372_v49, %v334_v38  ;;  %v336_v47 = vmul.f32 %v1354_v31, %v266_v34  ;;  %v277_v35 = vld [vmem:[%s1341_s25 + $0x138] sm:$0xff] }
  0x47   : > { %v1138_v50 = vpack.c.bf16 %v527_v40, %v526_v36  ;;  %v529_v51 = vmax.f32 %v401_v29, %v465_v41  ;;  %v467_v52 = vmul.f32 0.1, %v403_v43  ;;  %v337_v53 = vmul.f32 %v1354_v31, %v267_v39  ;;  %v278_v40 = vld [vmem:[%s1341_s25 + $0x140] sm:$0xff] }
  0x48   : > { %v530_v55 = vmax.f32 %v402_v37, %v466_v44  ;;  %v405_v56 = vadd.f32 %v1372_v49, %v335_v45  ;;  %v468_v57 = vmul.f32 0.1, %v404_v46  ;;  %v406_v58 = vadd.f32 %v1372_v49, %v336_v47  ;;  %v279_v45 = vld [vmem:[%s1341_s25 + $0x148] sm:$0xff] }
  0x49   : > { %1254 = vst [vmem:[%s1395_s7 + $0x50] sm:$0xff] %v1138_v50   ;;  %v1143_v60 = vpack.c.bf16 %v529_v51, %v528_v42  ;;  %v531_v61 = vmax.f32 %v403_v43, %v467_v52  ;;  %v407_v62 = vadd.f32 %v1372_v49, %v337_v53  ;;  %v338_v63 = vmul.f32 %v1354_v31, %v268_v48  ;;  %v280_v51 = vld [vmem:[%s1341_s25 + $0x150] sm:$0xff] }
  0x4a   : > { %v469_v1 = vmul.f32 0.1, %v405_v56  ;;  %v532_v2 = vmax.f32 %v404_v46, %v468_v57  ;;  %v470_v3 = vmul.f32 0.1, %v406_v58  ;;  %v339_v4 = vmul.f32 %v1354_v31, %v269_v54 }
  0x4b   : > { %1255 = vst [vmem:[%s1395_s7 + $0x58] sm:$0xff] %v1143_v60   ;;  %v1148_v6 = vpack.c.bf16 %v531_v61, %v530_v55  ;;  %v471_v7 = vmul.f32 0.1, %v407_v62  ;;  %v408_v8 = vadd.f32 %v1372_v49, %v338_v63  ;;  %v340_v9 = vmul.f32 %v1354_v31, %v270_v59  ;;  %v281_v60 = vld [vmem:[%s1341_s25 + $0x158] sm:$0xff]  ;;  %v282_v61 = vld [vmem:[%s1341_s25 + $0x160] sm:$0xff] }
  0x4c   : > { %v533_v11 = vmax.f32 %v405_v56, %v469_v1  ;;  %v534_v12 = vmax.f32 %v406_v58, %v470_v3  ;;  %v409_v13 = vadd.f32 %v1372_v49, %v339_v4  ;;  %v341_v14 = vmul.f32 %v1354_v31, %v271_v0 }
  0x4d   : > { %1256 = vst [vmem:[%s1395_s7 + $0x60] sm:$0xff] %v1148_v6   ;;  %v535_v15 = vmax.f32 %v407_v62, %v471_v7  ;;  %v472_v16 = vmul.f32 0.1, %v408_v8  ;;  %v410_v17 = vadd.f32 %v1372_v49, %v340_v9  ;;  %v342_v18 = vmul.f32 %v1354_v31, %v272_v5 }
  0x4e   : > { %v1153_v20 = vpack.c.bf16 %v533_v11, %v532_v2  ;;  %v473_v21 = vmul.f32 0.1, %v409_v13  ;;  %v411_v22 = vadd.f32 %v1372_v49, %v341_v14  ;;  %v343_v23 = vmul.f32 %v1354_v31, %v273_v10  ;;  %v283_v2 = vld [vmem:[%s1341_s25 + $0x168] sm:$0xff]  ;;  %v284_v11 = vld [vmem:[%s1341_s25 + $0x170] sm:$0xff] }
  0x4f   : > { %v1158_v26 = vpack.c.bf16 %v535_v15, %v534_v12  ;;  %v536_v27 = vmax.f32 %v408_v8, %v472_v16  ;;  %v474_v28 = vmul.f32 0.1, %v410_v17  ;;  %v412_v29 = vadd.f32 %v1372_v49, %v342_v18  ;;  %v285_v16 = vld [vmem:[%s1341_s25 + $0x178] sm:$0xff] }
  0x50   : > { %1257 = vst [vmem:[%s1395_s7 + $0x68] sm:$0xff] %v1153_v20   ;;  %v537_v30 = vmax.f32 %v409_v13, %v473_v21  ;;  %v475_v32 = vmul.f32 0.1, %v411_v22  ;;  %v413_v33 = vadd.f32 %v1372_v49, %v343_v23  ;;  %v344_v34 = vmul.f32 %v1354_v31, %v274_v19  ;;  %v286_v21 = vld [vmem:[%s1341_s25 + $0x180] sm:$0xff] }
  0x51   : > { %1258 = vst [vmem:[%s1395_s7 + $0x70] sm:$0xff] %v1158_v26   ;;  %v538_v36 = vmax.f32 %v410_v17, %v474_v28  ;;  %v476_v37 = vmul.f32 0.1, %v412_v29  ;;  %v345_v38 = vmul.f32 %v1354_v31, %v275_v24  ;;  %v346_v39 = vmul.f32 %v1354_v31, %v276_v25  ;;  %v287_v26 = vld [vmem:[%s1341_s25 + $0x188] sm:$0xff] }
  0x52   : > { %v1163_v41 = vpack.c.bf16 %v537_v30, %v536_v27  ;;  %v539_v42 = vmax.f32 %v411_v22, %v475_v32  ;;  %v477_v43 = vmul.f32 0.1, %v413_v33  ;;  %v414_v44 = vadd.f32 %v1372_v49, %v344_v34  ;;  %v288_v32 = vld [vmem:[%s1341_s25 + $0x190] sm:$0xff] }
  0x53   : > { %v540_v46 = vmax.f32 %v412_v29, %v476_v37  ;;  %v415_v47 = vadd.f32 %v1372_v49, %v345_v38  ;;  %v347_v48 = vmul.f32 %v1354_v31, %v277_v35  ;;  %v416_v50 = vadd.f32 %v1372_v49, %v346_v39  ;;  %v289_v37 = vld [vmem:[%s1341_s25 + $0x198] sm:$0xff] }
  0x54   : > { %1259 = vst [vmem:[%s1395_s7 + $0x78] sm:$0xff] %v1163_v41   ;;  %v1168_v52 = vpack.c.bf16 %v539_v42, %v538_v36  ;;  %v541_v53 = vmax.f32 %v413_v33, %v477_v43  ;;  %v478_v54 = vmul.f32 0.1, %v414_v44  ;;  %v348_v55 = vmul.f32 %v1354_v31, %v278_v40 }
  0x55   : > { %v479_v56 = vmul.f32 0.1, %v415_v47  ;;  %v417_v57 = vadd.f32 %v1372_v49, %v347_v48  ;;  %v480_v58 = vmul.f32 0.1, %v416_v50  ;;  %v349_v59 = vmul.f32 %v1354_v31, %v279_v45 }
  0x56   : > { %1260 = vst [vmem:[%s1395_s7 + $0x80] sm:$0xff] %v1168_v52   ;;  %v1173_v62 = vpack.c.bf16 %v541_v53, %v540_v46  ;;  %v542_v63 = vmax.f32 %v414_v44, %v478_v54  ;;  %v418_v0 = vadd.f32 %v1372_v49, %v348_v55  ;;  %v350_v1 = vmul.f32 %v1354_v31, %v280_v51  ;;  %v290_v46 = vld [vmem:[%s1341_s25 + $0x1a0] sm:$0xff]  ;;  %v291_v52 = vld [vmem:[%s1341_s25 + $0x1a8] sm:$0xff]  ;;  %v292_v53 = vld [vmem:[%s1341_s25 + $0x1b0] sm:$0xff] }
  0x57   : > { %v543_v3 = vmax.f32 %v415_v47, %v479_v56  ;;  %v481_v4 = vmul.f32 0.1, %v417_v57  ;;  %v544_v5 = vmax.f32 %v416_v50, %v480_v58  ;;  %v419_v6 = vadd.f32 %v1372_v49, %v349_v59 }
  0x58   : > { %1261 = vst [vmem:[%s1395_s7 + $0x88] sm:$0xff] %v1173_v62   ;;  %v482_v7 = vmul.f32 0.1, %v418_v0  ;;  %v351_v8 = vmul.f32 %v1354_v31, %v281_v60  ;;  %v420_v9 = vadd.f32 %v1372_v49, %v350_v1  ;;  %v352_v10 = vmul.f32 %v1354_v31, %v282_v61  ;;  %v293_v62 = vld [vmem:[%s1341_s25 + $0x1b8] sm:$0xff] }
  0x59   : > { %v1178_v12 = vpack.c.bf16 %v543_v3, %v542_v63  ;;  %v545_v13 = vmax.f32 %v417_v57, %v481_v4  ;;  %v483_v14 = vmul.f32 0.1, %v419_v6  ;;  %v353_v15 = vmul.f32 %v1354_v31, %v283_v2  ;;  %v294_v3 = vld [vmem:[%s1341_s25 + $0x1c0] sm:$0xff] }
  0x5a   : > { %v546_v17 = vmax.f32 %v418_v0, %v482_v7  ;;  %v421_v18 = vadd.f32 %v1372_v49, %v351_v8  ;;  %v484_v19 = vmul.f32 0.1, %v420_v9  ;;  %v422_v20 = vadd.f32 %v1372_v49, %v352_v10  ;;  %v295_v8 = vld [vmem:[%s1341_s25 + $0x1c8] sm:$0xff] }
  0x5b   : > { %1262 = vst [vmem:[%s1395_s7 + $0x90] sm:$0xff] %v1178_v12   ;;  %v1183_v22 = vpack.c.bf16 %v545_v13, %v544_v5  ;;  %v547_v23 = vmax.f32 %v419_v6, %v483_v14  ;;  %v423_v24 = vadd.f32 %v1372_v49, %v353_v15  ;;  %v354_v25 = vmul.f32 %v1354_v31, %v284_v11  ;;  %v296_v13 = vld [vmem:[%s1341_s25 + $0x1d0] sm:$0xff] }
  0x5c   : > { %v485_v27 = vmul.f32 0.1, %v421_v18  ;;  %v548_v28 = vmax.f32 %v420_v9, %v484_v19  ;;  %v486_v29 = vmul.f32 0.1, %v422_v20  ;;  %v355_v30 = vmul.f32 %v1354_v31, %v285_v16 }
  0x5d   : > { %1263 = vst [vmem:[%s1395_s7 + $0x98] sm:$0xff] %v1183_v22   ;;  %v1188_v33 = vpack.c.bf16 %v547_v23, %v546_v17  ;;  %v487_v34 = vmul.f32 0.1, %v423_v24  ;;  %v424_v35 = vadd.f32 %v1372_v49, %v354_v25  ;;  %v356_v36 = vmul.f32 %v1354_v31, %v286_v21  ;;  %v297_v22 = vld [vmem:[%s1341_s25 + $0x1d8] sm:$0xff]  ;;  %v298_v23 = vld [vmem:[%s1341_s25 + $0x1e0] sm:$0xff] }
  0x5e   : > { %v549_v38 = vmax.f32 %v421_v18, %v485_v27  ;;  %v550_v39 = vmax.f32 %v422_v20, %v486_v29  ;;  %v425_v40 = vadd.f32 %v1372_v49, %v355_v30  ;;  %v357_v41 = vmul.f32 %v1354_v31, %v287_v26 }
  0x5f   : > { %1264 = vst [vmem:[%s1395_s7 + $0xa0] sm:$0xff] %v1188_v33   ;;  %v551_v42 = vmax.f32 %v423_v24, %v487_v34  ;;  %v488_v43 = vmul.f32 0.1, %v424_v35  ;;  %v426_v44 = vadd.f32 %v1372_v49, %v356_v36  ;;  %v358_v45 = vmul.f32 %v1354_v31, %v288_v32 }
  0x60   : > { %v1193_v47 = vpack.c.bf16 %v549_v38, %v548_v28  ;;  %v489_v48 = vmul.f32 0.1, %v425_v40  ;;  %v427_v50 = vadd.f32 %v1372_v49, %v357_v41  ;;  %v359_v51 = vmul.f32 %v1354_v31, %v289_v37  ;;  %v299_v28 = vld [vmem:[%s1341_s25 + $0x1e8] sm:$0xff]  ;;  %v300_v38 = vld [vmem:[%s1341_s25 + $0x1f0] sm:$0xff] }
  0x61   : > { %v1198_v54 = vpack.c.bf16 %v551_v42, %v550_v39  ;;  %v552_v55 = vmax.f32 %v424_v35, %v488_v43  ;;  %v490_v56 = vmul.f32 0.1, %v426_v44  ;;  %v428_v57 = vadd.f32 %v1372_v49, %v358_v45  ;;  %v301_v43 = vld [vmem:[%s1341_s25 + $0x1f8] sm:$0xff] }
  0x62   : > { %1265 = vst [vmem:[%s1395_s7 + $0xa8] sm:$0xff] %v1193_v47   ;;  %v553_v58 = vmax.f32 %v425_v40, %v489_v48  ;;  %v491_v59 = vmul.f32 0.1, %v427_v50  ;;  %v429_v60 = vadd.f32 %v1372_v49, %v359_v51  ;;  %v360_v61 = vmul.f32 %v1354_v31, %v290_v46 }
  0x63   : > { %1266 = vst [vmem:[%s1395_s7 + $0xb0] sm:$0xff] %v1198_v54   ;;  %v554_v63 = vmax.f32 %v426_v44, %v490_v56  ;;  %v492_v0 = vmul.f32 0.1, %v428_v57  ;;  %v361_v1 = vmul.f32 %v1354_v31, %v291_v52  ;;  %v362_v2 = vmul.f32 %v1354_v31, %v292_v53 }
  0x64   : > { %v1203_v4 = vpack.c.bf16 %v553_v58, %v552_v55  ;;  %v555_v5 = vmax.f32 %v427_v50, %v491_v59  ;;  %v493_v6 = vmul.f32 0.1, %v429_v60  ;;  %v430_v7 = vadd.f32 %v1372_v49, %v360_v61 }
  0x65   : > { %v556_v9 = vmax.f32 %v428_v57, %v492_v0  ;;  %v431_v10 = vadd.f32 %v1372_v49, %v361_v1  ;;  %v363_v11 = vmul.f32 %v1354_v31, %v293_v62  ;;  %v432_v12 = vadd.f32 %v1372_v49, %v362_v2 }
  0x66   : > { %1267 = vst [vmem:[%s1395_s7 + $0xb8] sm:$0xff] %v1203_v4   ;;  %v1208_v14 = vpack.c.bf16 %v555_v5, %v554_v63  ;;  %v557_v15 = vmax.f32 %v429_v60, %v493_v6  ;;  %v494_v16 = vmul.f32 0.1, %v430_v7  ;;  %v364_v17 = vmul.f32 %v1354_v31, %v294_v3 }
  0x67   : > { %v495_v18 = vmul.f32 0.1, %v431_v10  ;;  %v433_v19 = vadd.f32 %v1372_v49, %v363_v11  ;;  %v496_v20 = vmul.f32 0.1, %v432_v12  ;;  %v365_v21 = vmul.f32 %v1354_v31, %v295_v8 }
  0x68   : > { %1268 = vst [vmem:[%s1395_s7 + $0xc0] sm:$0xff] %v1208_v14   ;;  %v1213_v24 = vpack.c.bf16 %v557_v15, %v556_v9  ;;  %v558_v25 = vmax.f32 %v430_v7, %v494_v16  ;;  %v434_v26 = vadd.f32 %v1372_v49, %v364_v17  ;;  %v366_v27 = vmul.f32 %v1354_v31, %v296_v13 }
  0x69   : > { %v559_v29 = vmax.f32 %v431_v10, %v495_v18  ;;  %v497_v30 = vmul.f32 0.1, %v433_v19  ;;  %v560_v32 = vmax.f32 %v432_v12, %v496_v20  ;;  %v435_v33 = vadd.f32 %v1372_v49, %v365_v21 }
  0x6a   : > { %1269 = vst [vmem:[%s1395_s7 + $0xc8] sm:$0xff] %v1213_v24   ;;  %v498_v34 = vmul.f32 0.1, %v434_v26  ;;  %v367_v35 = vmul.f32 %v1354_v31, %v297_v22  ;;  %v436_v36 = vadd.f32 %v1372_v49, %v366_v27  ;;  %v368_v37 = vmul.f32 %v1354_v31, %v298_v23 }
  0x6b   : > { %v1218_v39 = vpack.c.bf16 %v559_v29, %v558_v25  ;;  %v561_v40 = vmax.f32 %v433_v19, %v497_v30  ;;  %v499_v41 = vmul.f32 0.1, %v435_v33  ;;  %v369_v42 = vmul.f32 %v1354_v31, %v299_v28 }
  0x6c   : > { %v562_v44 = vmax.f32 %v434_v26, %v498_v34  ;;  %v437_v45 = vadd.f32 %v1372_v49, %v367_v35  ;;  %v500_v46 = vmul.f32 0.1, %v436_v36  ;;  %v438_v47 = vadd.f32 %v1372_v49, %v368_v37 }
  0x6d   : > { %1270 = vst [vmem:[%s1395_s7 + $0xd0] sm:$0xff] %v1218_v39   ;;  %v1223_v48 = vpack.c.bf16 %v561_v40, %v560_v32  ;;  %v563_v50 = vmax.f32 %v435_v33, %v499_v41  ;;  %v439_v51 = vadd.f32 %v1372_v49, %v369_v42  ;;  %v370_v52 = vmul.f32 %v1354_v31, %v300_v38 }
  0x6e   : > { %v501_v53 = vmul.f32 0.1, %v437_v45  ;;  %v564_v54 = vmax.f32 %v436_v36, %v500_v46  ;;  %v502_v55 = vmul.f32 0.1, %v438_v47  ;;  %v371_v56 = vmul.f32 %v1354_v31, %v301_v43 }
  0x6f   : > { %1271 = vst [vmem:[%s1395_s7 + $0xd8] sm:$0xff] %v1223_v48   ;;  %v1228_v57 = vpack.c.bf16 %v563_v50, %v562_v44  ;;  %v503_v58 = vmul.f32 0.1, %v439_v51  ;;  %v440_v59 = vadd.f32 %v1372_v49, %v370_v52 }
  0x70   : > { %v565_v60 = vmax.f32 %v437_v45, %v501_v53  ;;  %v566_v61 = vmax.f32 %v438_v47, %v502_v55  ;;  %v441_v62 = vadd.f32 %v1372_v49, %v371_v56 }
  0x71   : > { %1272 = vst [vmem:[%s1395_s7 + $0xe0] sm:$0xff] %v1228_v57   ;;  %v567_v63 = vmax.f32 %v439_v51, %v503_v58  ;;  %v504_v0 = vmul.f32 0.1, %v440_v59 }
  0x72   : > { %v1233_v1 = vpack.c.bf16 %v565_v60, %v564_v54  ;;  %v505_v2 = vmul.f32 0.1, %v441_v62 }
  0x73   : > { %v1238_v3 = vpack.c.bf16 %v567_v63, %v566_v61  ;;  %v568_v4 = vmax.f32 %v440_v59, %v504_v0 }
  0x74   : > { %1273 = vst [vmem:[%s1395_s7 + $0xe8] sm:$0xff] %v1233_v1   ;;  %v569_v31 = vmax.f32 %v441_v62, %v505_v2 }
  0x75   : > { %1274 = vst [vmem:[%s1395_s7 + $0xf0] sm:$0xff] %v1238_v3  }
  0x76   : > { %v1243_v5 = vpack.c.bf16 %v569_v31, %v568_v4 }
  0x78   : > { %1275 = vst [vmem:[%s1395_s7 + $0xf8] sm:$0xff] %v1243_v5  }
  0x79 PF: > { %s14_s15 = sadd.s32 1, %s1293_s15  }
  0x7a   : > { %p11_p4 = scmp.ge.s32.totalorder %s14_s15, 6  }
  0x7c   :  { %13 = sbr.rel (!%p11_p4) target bundleno = 1 (0x1), region = 66 }

// kernel: allcnn_forward.25
= control target key start
LH: loop header
LB: loop body
LE: loop exit
PB: predicated region body
PF: predicated region fallthrough
CT: control target
= control target key end

     0   :  { %s1772_s12 = smov 0   ;;  %s1774_s13 = smov 0   ;;  %s1999_s0 = inlined_call_operand.vmem [shape: bf16[2048,128], index: 0, kind: input, shape index: {}]   ;;  %s2000_s1 = inlined_call_operand.vmem [shape: bf16[128,128], index: 1, kind: input, shape index: {}]   ;;  %s2001_s2 = inlined_call_operand.vmem [shape: f32[2048,128], index: 2, kind: output, shape index: {0}]   ;;  %s2002_s3 = inlined_call_operand.vmem [shape: f32[2,2,128], index: 3, kind: output, shape index: {1}]  }
   0x1   :  { %s1776_s14 = smov 0   ;;  %s1778_s15 = smov 0  }
   0x2   :  { %s1780_s16 = smov 0  }
   0x3 LB: > { %s23_s17 = sadd.s32 1, %s1741_s14  ;;  %s26_s18 = sadd.s32 1, %s1745_s15  ;;  %s1749_s16 = sphi %s1780_s16, %s14_s16   ;;  %s1745_s15 = sphi %s1778_s15, %s2006_s15   ;;  %s1741_s14 = sphi %s1776_s14, %s2005_s14   ;;  %s1737_s13 = sphi %s1774_s13, %s2004_s13   ;;  %s1733_s12 = sphi %s1772_s12, %s2003_s12  }
   0x4   : > { %p24_p0 = scmp.ge.s32.totalorder %s23_s17, 2  ;;  %p1419_p1 = scmp.ge.s32.totalorder %s1749_s16, 1 }
   0x5   : > { %p165_p2 = scmp.lt.s32.totalorder %s1749_s16, 5 }
   0x6   : > { %s2008_s17 = smov (%p24_p0, %s23_s17), 0  ;;  %s2010_s18 = smov (!%p24_p0, %s26_s18), %s1745_s15 }
   0x7   : > { %p166_p3 = pnand %p1419_p1, %p165_p2  ;;  %p28_p4 = scmp.ge.s32.totalorder %s2010_s18, 2 }
   0x8   : > { %s1420_s19 = sshll.u32 (!%p166_p3), %s1737_s13, 1  ;;  %p217_p5 = scmp.lt.s32.totalorder (!%p166_p3), %s1737_s13, 1 }
   0x9   : > { %s2012_s18 = smov (%p28_p4, %s2010_s18), 0  ;;  %169 = sbr.rel (%p166_p3) target bundleno = 362 (0x16a), region = 28 }
   0xa   : > { %s198_s20 = sadd.s32 (!%p166_p3), %s1733_s12, %s1420_s19  ;;  %p1427_p7 = scmp.ne.s32.totalorder (!%p166_p3), %s1733_s12, 0 }
   0xb   : > { %s1421_s21 = sshll.u32 (!%p166_p3), %s198_s20, 6 }
   0xc   : > { %p200_p6 = scmp.lt.s32.totalorder (!%p166_p3), %s1421_s21, 255 }
  0x10   : > { %s2014_s13 = smov (!%p217_p5, %s1737_s13), 1  ;;  %s2016_s21 = smov (!%p200_p6, %s1421_s21), 255 }
  0x11   : > { %s1426_s22 = sshll.u32 %s2014_s13, 1  ;;  %s1422_s23 = sshll.u32 %s2016_s21, 2  ;;  %v1751_v0 = vmov (!%p1427_p7), 0.0  }
  0x12   : > { %s1425_s24 = sshll.u32 %s2016_s21, 3  ;;  %s1808_s27 = scalar_lea.vmem %s1999_s0, %s1422_s23 }
  0x13   : > { %s1813_s30 = scalar_lea.vmem %s2001_s2, %s1425_s24  ;;  %s1818_s6 = scalar_lea.vmem %s2002_s3, %s1426_s22 }
  0x14   : > { %225 = sbr.rel (%p1427_p7) target bundleno = 27 (0x1b), region = 32  ;;  %226 = vst [vmem:[%s1818_s6] sm:$0x3] (!%p1427_p7), %v1751_v0 }
  0x1b PF: > { %v1663_v1 = vld [vmem:[%s2000_s1] sm:$0xff]   ;;  %v1665_v3 = vld [vmem:[%s2000_s1 + $0x8] sm:$0xff]   ;;  %v1667_v5 = vld [vmem:[%s2000_s1 + $0x10] sm:$0xff]   ;;  %vm1302_vm0 = vcmask 1040384  }
  0x1c   : > { %v1664_v2 = vld [vmem:[%s2000_s1] sm:$0xff]   ;;  %1526 = vmatprep.subr.bf16.mxu0 %v1663_v1  ;;  %v1666_v4 = vld [vmem:[%s2000_s1 + $0x8] sm:$0xff]   ;;  %v1668_v6 = vld [vmem:[%s2000_s1 + $0x10] sm:$0xff]  }
  0x1d   : > { %1574 = vmatprep.subr.bf16.mxu1 %v1664_v2  ;;  %1527 = vmatpush3.bf16.msra.mxu0 %v1663_v1  ;;  %v1669_v7 = vld [vmem:[%s2000_s1 + $0x18] sm:$0xff]   ;;  %v1671_v9 = vld [vmem:[%s2000_s1 + $0x20] sm:$0xff]   ;;  %v1673_v11 = vld [vmem:[%s2000_s1 + $0x28] sm:$0xff]  }
  0x1e   : > { %1575 = vmatpush3.bf16.msra.mxu1 %v1664_v2  ;;  %1528 = vmatprep.subr.bf16.mxu0 %v1665_v3  ;;  %v1670_v8 = vld [vmem:[%s2000_s1 + $0x18] sm:$0xff]   ;;  %v1672_v10 = vld [vmem:[%s2000_s1 + $0x20] sm:$0xff]   ;;  %v1674_v12 = vld [vmem:[%s2000_s1 + $0x28] sm:$0xff]  }
  0x1f   : > { %1576 = vmatprep.subr.bf16.mxu1 %v1666_v4  ;;  %v1679_v13 = vld [vmem:[%s1808_s27] sm:$0xff]   ;;  %v1675_v15 = vld [vmem:[%s2000_s1 + $0x30] sm:$0xff]   ;;  %v1677_v17 = vld [vmem:[%s2000_s1 + $0x38] sm:$0xff]  }
  0x20   : > { %v1680_v14 = vld [vmem:[%s1808_s27 + $0x80] sm:$0xff]   ;;  %1542 = vmatprep.mubr.bf16.mxu0 %v1679_v13  ;;  %v1676_v16 = vld [vmem:[%s2000_s1 + $0x30] sm:$0xff]   ;;  %v1678_v18 = vld [vmem:[%s2000_s1 + $0x38] sm:$0xff]  }
  0x21   : > { %1529 = vmatpush3.bf16.msra.mxu0 %v1665_v3  ;;  %1590 = vmatprep.mubr.bf16.mxu1 %v1680_v14  ;;  %v1681_v19 = vld [vmem:[%s1808_s27 + $0x8] sm:$0xff]   ;;  %v1683_v21 = vld [vmem:[%s1808_s27 + $0x10] sm:$0xff]   ;;  %v1685_v23 = vld [vmem:[%s1808_s27 + $0x18] sm:$0xff]  }
  0x22   : > { %1577 = vmatpush3.bf16.msra.mxu1 %v1666_v4  ;;  %1530 = vmatprep.subr.bf16.mxu0 %v1667_v5  ;;  %v1682_v20 = vld [vmem:[%s1808_s27 + $0x88] sm:$0xff]   ;;  %v1684_v22 = vld [vmem:[%s1808_s27 + $0x90] sm:$0xff]   ;;  %v1686_v24 = vld [vmem:[%s1808_s27 + $0x98] sm:$0xff]  }
  0x23   : > { %1578 = vmatprep.subr.bf16.mxu1 %v1668_v6  ;;  %v1687_v25 = vld [vmem:[%s1808_s27 + $0x20] sm:$0xff]   ;;  %v1689_v27 = vld [vmem:[%s1808_s27 + $0x28] sm:$0xff]   ;;  %v1691_v29 = vld [vmem:[%s1808_s27 + $0x30] sm:$0xff]  }
  0x24   : > { %v1688_v26 = vld [vmem:[%s1808_s27 + $0xa0] sm:$0xff]   ;;  %v1690_v28 = vld [vmem:[%s1808_s27 + $0xa8] sm:$0xff]   ;;  %v1692_v30 = vld [vmem:[%s1808_s27 + $0xb0] sm:$0xff]  }
  0x25   : > { %1531 = vmatpush3.bf16.msra.mxu0 %v1667_v5  ;;  %v1693_v31 = vld [vmem:[%s1808_s27 + $0x38] sm:$0xff]   ;;  %v1695_v33 = vld [vmem:[%s1808_s27 + $0x40] sm:$0xff]   ;;  %v1697_v35 = vld [vmem:[%s1808_s27 + $0x48] sm:$0xff]  }
  0x26   : > { %1579 = vmatpush3.bf16.msra.mxu1 %v1668_v6  ;;  %1532 = vmatprep.subr.bf16.mxu0 %v1669_v7  ;;  %v1694_v32 = vld [vmem:[%s1808_s27 + $0xb8] sm:$0xff]   ;;  %v1696_v34 = vld [vmem:[%s1808_s27 + $0xc0] sm:$0xff]   ;;  %v1698_v36 = vld [vmem:[%s1808_s27 + $0xc8] sm:$0xff]  }
  0x27   : > { %1580 = vmatprep.subr.bf16.mxu1 %v1670_v8  ;;  %v1699_v37 = vld [vmem:[%s1808_s27 + $0x50] sm:$0xff]   ;;  %v1701_v39 = vld [vmem:[%s1808_s27 + $0x58] sm:$0xff]   ;;  %v1703_v41 = vld [vmem:[%s1808_s27 + $0x60] sm:$0xff]  }
  0x28   : > { %v1700_v38 = vld [vmem:[%s1808_s27 + $0xd0] sm:$0xff]   ;;  %v1702_v40 = vld [vmem:[%s1808_s27 + $0xd8] sm:$0xff]   ;;  %v1704_v42 = vld [vmem:[%s1808_s27 + $0xe0] sm:$0xff]  }
  0x29   : > { %1533 = vmatpush3.bf16.msra.mxu0 %v1669_v7  ;;  %v1705_v43 = vld [vmem:[%s1808_s27 + $0x68] sm:$0xff]   ;;  %v1707_v45 = vld [vmem:[%s1808_s27 + $0x70] sm:$0xff]   ;;  %v1709_v47 = vld [vmem:[%s1808_s27 + $0x78] sm:$0xff]  }
  0x2a   : > { %1581 = vmatpush3.bf16.msra.mxu1 %v1670_v8  ;;  %1534 = vmatprep.subr.bf16.mxu0 %v1671_v9  ;;  %v1706_v44 = vld [vmem:[%s1808_s27 + $0xe8] sm:$0xff]   ;;  %v1708_v46 = vld [vmem:[%s1808_s27 + $0xf0] sm:$0xff]   ;;  %v1710_v48 = vld [vmem:[%s1808_s27 + $0xf8] sm:$0xff]  }
  0x2b   : > { %1582 = vmatprep.subr.bf16.mxu1 %v1672_v10 }
  0x2d   : > { %1535 = vmatpush3.bf16.msra.mxu0 %v1671_v9 }
  0x2e   : > { %1583 = vmatpush3.bf16.msra.mxu1 %v1672_v10  ;;  %1536 = vmatprep.subr.bf16.mxu0 %v1673_v11 }
  0x2f   : > { %1584 = vmatprep.subr.bf16.mxu1 %v1674_v12 }
  0x31   : > { %1537 = vmatpush3.bf16.msra.mxu0 %v1673_v11 }
  0x32   : > { %1585 = vmatpush3.bf16.msra.mxu1 %v1674_v12  ;;  %1538 = vmatprep.subr.bf16.mxu0 %v1675_v15 }
  0x33   : > { %1586 = vmatprep.subr.bf16.mxu1 %v1676_v16 }
  0x35   : > { %1539 = vmatpush3.bf16.msra.mxu0 %v1675_v15 }
  0x36   : > { %1587 = vmatpush3.bf16.msra.mxu1 %v1676_v16  ;;  %1540 = vmatprep.subr.bf16.mxu0 %v1677_v17 }
  0x37   : > { %1588 = vmatprep.subr.bf16.mxu1 %v1678_v18 }
  0x39   : > { %1541 = vmatpush3.bf16.msra.mxu0 %v1677_v17 }
  0x3a   : > { %1589 = vmatpush3.bf16.msra.mxu1 %v1678_v18 }
  0x3c   : > { %1543 = vmatmul.mubr.bf16.vlgmr.msra.gmra.mrb[0].mxu0 %v1681_v19 }
  0x3d   : > { %1591 = vmatmul.mubr.bf16.vlgmr.msra.gmra.mrb[0].mxu1 %v1682_v20  ;;  %1546 = vmatprep.mubr.bf16.mxu0 %v1683_v21 }
  0x3e   : > { %1594 = vmatprep.mubr.bf16.mxu1 %v1684_v22 }
  0x44   : > { %1547 = vmatmul.mubr.bf16.gmra.mrb[4].mxu0 %v1685_v23 }
  0x45   : > { %1595 = vmatmul.mubr.bf16.gmra.mrb[4].mxu1 %v1686_v24  ;;  %1550 = vmatprep.mubr.bf16.mxu0 %v1687_v25 }
  0x46   : > { %1598 = vmatprep.mubr.bf16.mxu1 %v1688_v26 }
  0x4c   : > { %1551 = vmatmul.mubr.bf16.gmra.mrb[8].mxu0 %v1689_v27 }
  0x4d   : > { %1599 = vmatmul.mubr.bf16.gmra.mrb[8].mxu1 %v1690_v28  ;;  %1554 = vmatprep.mubr.bf16.mxu0 %v1691_v29 }
  0x4e   : > { %1602 = vmatprep.mubr.bf16.mxu1 %v1692_v30 }
  0x54   : > { %1555 = vmatmul.mubr.bf16.gmra.mrb[12].mxu0 %v1693_v31 }
  0x55   : > { %1603 = vmatmul.mubr.bf16.gmra.mrb[12].mxu1 %v1694_v32  ;;  %1558 = vmatprep.mubr.bf16.mxu0 %v1695_v33 }
  0x56   : > { %1606 = vmatprep.mubr.bf16.mxu1 %v1696_v34 }
  0x5c   : > { %1559 = vmatmul.mubr.bf16.gmra.mrb[16].mxu0 %v1697_v35 }
  0x5d   : > { %1607 = vmatmul.mubr.bf16.gmra.mrb[16].mxu1 %v1698_v36  ;;  %1562 = vmatprep.mubr.bf16.mxu0 %v1699_v37 }
  0x5e   : > { %1610 = vmatprep.mubr.bf16.mxu1 %v1700_v38 }
  0x64   : > { %1563 = vmatmul.mubr.bf16.gmra.mrb[20].mxu0 %v1701_v39 }
  0x65   : > { %1611 = vmatmul.mubr.bf16.gmra.mrb[20].mxu1 %v1702_v40  ;;  %1566 = vmatprep.mubr.bf16.mxu0 %v1703_v41 }
  0x66   : > { %1614 = vmatprep.mubr.bf16.mxu1 %v1704_v42 }
  0x6c   : > { %1567 = vmatmul.mubr.bf16.gmra.mrb[24].mxu0 %v1705_v43 }
  0x6d   : > { %1615 = vmatmul.mubr.bf16.gmra.mrb[24].mxu1 %v1706_v44  ;;  %1570 = vmatprep.mubr.bf16.mxu0 %v1707_v45 }
  0x6e   : > { %1618 = vmatprep.mubr.bf16.mxu1 %v1708_v46 }
  0x74   : > { %1571 = vmatmul.mubr.bf16.gmra.mrb[28].mxu0 %v1709_v47 }
  0x75   : > { %1619 = vmatmul.mubr.bf16.gmra.mrb[28].mxu1 %v1710_v48 }
 0x10f   : > { %v1544_v49 = vpop.f32.mrb[0].mxu0 }
 0x110   : > { %582 = vst [vmem:[%s1813_s30 + $0x10] sm:$0xff] %v1544_v49  ;;  %v1592_v50 = vpop.f32.mrb[0].mxu1  ;;  %v453_v51 = vpop.f32.mrb[1].mxu0  ;;  %v1037_v0 = vmul.f32 %v1544_v49, %v1544_v49 }
 0x111   : > { %967 = vst [vmem:[%s1813_s30 + $0x110] sm:$0xff] %v1592_v50  ;;  %580 = vst [vmem:[%s1813_s30] sm:$0xff] %v453_v51  ;;  %v838_v52 = vpop.f32.mrb[1].mxu1  ;;  %v1545_v53 = vpop.f32.mrb[2].mxu0  ;;  %v1035_v57 = vmul.f32 %v453_v51, %v453_v51  ;;  %v1189_v61 = vmul.f32 %v1592_v50, %v1592_v50 }
 0x112   : > { %965 = vst [vmem:[%s1813_s30 + $0x100] sm:$0xff] %v838_v52  ;;  %v1187_v54 = vmul.f32 %v838_v52, %v838_v52  ;;  %583 = vst [vmem:[%s1813_s30 + $0x18] sm:$0xff] %v1545_v53  ;;  %v1593_v55 = vpop.f32.mrb[2].mxu1  ;;  %v456_v56 = vpop.f32.mrb[3].mxu0  ;;  %v1038_v5 = vmul.f32 %v1545_v53, %v1545_v53 }
 0x113   : > { %968 = vst [vmem:[%s1813_s30 + $0x118] sm:$0xff] %v1593_v55  ;;  %581 = vst [vmem:[%s1813_s30 + $0x8] sm:$0xff] %v456_v56  ;;  %v1013_v58 = vadd.f32 %v456_v56, %v453_v51  ;;  %v1036_v59 = vmul.f32 %v456_v56, %v456_v56  ;;  %v841_v60 = vpop.f32.mrb[3].mxu1  ;;  %v1190_v9 = vmul.f32 %v1593_v55, %v1593_v55 }
 0x114   : > { %966 = vst [vmem:[%s1813_s30 + $0x108] sm:$0xff] %v841_v60  ;;  %v1165_v62 = vadd.f32 %v841_v60, %v838_v52  ;;  %v1188_v63 = vmul.f32 %v841_v60, %v841_v60 }
 0x115   : > { %v1014_v1 = vadd.f32 %v1544_v49, %v1013_v58  ;;  %v1051_v2 = vadd.f32 %v1036_v59, %v1035_v57 }
 0x116   : > { %v1166_v3 = vadd.f32 %v1592_v50, %v1165_v62  ;;  %v1203_v4 = vadd.f32 %v1188_v63, %v1187_v54 }
 0x117   : > { %v1052_v6 = vadd.f32 %v1051_v2, %v1037_v0  ;;  %v1548_v7 = vpop.f32.mrb[4].mxu0  ;;  %v1015_v8 = vadd.f32 %v1545_v53, %v1014_v1 }
 0x118   : > { %v1204_v10 = vadd.f32 %v1203_v4, %v1189_v61  ;;  %586 = vst [vmem:[%s1813_s30 + $0x30] sm:$0xff] %v1548_v7  ;;  %v1596_v11 = vpop.f32.mrb[4].mxu1  ;;  %v469_v12 = vpop.f32.mrb[5].mxu0  ;;  %v1167_v13 = vadd.f32 %v1593_v55, %v1166_v3  ;;  %v1041_v32 = vmul.f32 %v1548_v7, %v1548_v7 }
 0x119   : > { %971 = vst [vmem:[%s1813_s30 + $0x130] sm:$0xff] %v1596_v11  ;;  %584 = vst [vmem:[%s1813_s30 + $0x20] sm:$0xff] %v469_v12  ;;  %v1016_v14 = vadd.f32 %v1015_v8, %v469_v12  ;;  %v1039_v15 = vmul.f32 %v469_v12, %v469_v12  ;;  %v1053_v16 = vadd.f32 %v1052_v6, %v1038_v5  ;;  %v854_v17 = vpop.f32.mrb[5].mxu1  ;;  %v1549_v18 = vpop.f32.mrb[6].mxu0 }
 0x11a   : > { %969 = vst [vmem:[%s1813_s30 + $0x120] sm:$0xff] %v854_v17  ;;  %v1168_v19 = vadd.f32 %v1167_v13, %v854_v17  ;;  %v1191_v20 = vmul.f32 %v854_v17, %v854_v17  ;;  %v1205_v21 = vadd.f32 %v1204_v10, %v1190_v9  ;;  %587 = vst [vmem:[%s1813_s30 + $0x38] sm:$0xff] %v1549_v18  ;;  %v1597_v22 = vpop.f32.mrb[6].mxu1  ;;  %v472_v23 = vpop.f32.mrb[7].mxu0 }
 0x11b   : > { %v1054_v24 = vadd.f32 %v1053_v16, %v1039_v15  ;;  %972 = vst [vmem:[%s1813_s30 + $0x138] sm:$0xff] %v1597_v22  ;;  %585 = vst [vmem:[%s1813_s30 + $0x28] sm:$0xff] %v472_v23  ;;  %v1017_v25 = vadd.f32 %v1016_v14, %v472_v23  ;;  %v1040_v26 = vmul.f32 %v472_v23, %v472_v23  ;;  %v857_v27 = vpop.f32.mrb[7].mxu1 }
 0x11c   : > { %v1193_v28 = vmul.f32 %v1596_v11, %v1596_v11  ;;  %v1206_v29 = vadd.f32 %v1205_v21, %v1191_v20  ;;  %970 = vst [vmem:[%s1813_s30 + $0x128] sm:$0xff] %v857_v27  ;;  %v1169_v30 = vadd.f32 %v1168_v19, %v857_v27  ;;  %v1192_v31 = vmul.f32 %v857_v27, %v857_v27 }
 0x11d   : > { %v1018_v33 = vadd.f32 %v1548_v7, %v1017_v25  ;;  %v1055_v34 = vadd.f32 %v1054_v24, %v1040_v26  ;;  %v1042_v37 = vmul.f32 %v1549_v18, %v1549_v18  ;;  %v1194_v41 = vmul.f32 %v1597_v22, %v1597_v22 }
 0x11e   : > { %v1170_v35 = vadd.f32 %v1596_v11, %v1169_v30  ;;  %v1207_v36 = vadd.f32 %v1206_v29, %v1192_v31 }
 0x11f   : > { %v1056_v38 = vadd.f32 %v1055_v34, %v1041_v32  ;;  %v1552_v39 = vpop.f32.mrb[8].mxu0  ;;  %v1019_v40 = vadd.f32 %v1549_v18, %v1018_v33 }
 0x120   : > { %v1208_v42 = vadd.f32 %v1207_v36, %v1193_v28  ;;  %590 = vst [vmem:[%s1813_s30 + $0x50] sm:$0xff] %v1552_v39  ;;  %v1600_v43 = vpop.f32.mrb[8].mxu1  ;;  %v485_v44 = vpop.f32.mrb[9].mxu0  ;;  %v1171_v45 = vadd.f32 %v1597_v22, %v1170_v35  ;;  %v1045_v0 = vmul.f32 %v1552_v39, %v1552_v39 }
 0x121   : > { %975 = vst [vmem:[%s1813_s30 + $0x150] sm:$0xff] %v1600_v43  ;;  %588 = vst [vmem:[%s1813_s30 + $0x40] sm:$0xff] %v485_v44  ;;  %v1020_v46 = vadd.f32 %v1019_v40, %v485_v44  ;;  %v1043_v47 = vmul.f32 %v485_v44, %v485_v44  ;;  %v1057_v48 = vadd.f32 %v1056_v38, %v1042_v37  ;;  %v870_v49 = vpop.f32.mrb[9].mxu1  ;;  %v1553_v50 = vpop.f32.mrb[10].mxu0 }
 0x122   : > { %973 = vst [vmem:[%s1813_s30 + $0x140] sm:$0xff] %v870_v49  ;;  %v1172_v51 = vadd.f32 %v1171_v45, %v870_v49  ;;  %v1195_v52 = vmul.f32 %v870_v49, %v870_v49  ;;  %v1209_v53 = vadd.f32 %v1208_v42, %v1194_v41  ;;  %591 = vst [vmem:[%s1813_s30 + $0x58] sm:$0xff] %v1553_v50  ;;  %v1601_v54 = vpop.f32.mrb[10].mxu1  ;;  %v488_v55 = vpop.f32.mrb[11].mxu0 }
 0x123   : > { %v1058_v56 = vadd.f32 %v1057_v48, %v1043_v47  ;;  %976 = vst [vmem:[%s1813_s30 + $0x158] sm:$0xff] %v1601_v54  ;;  %589 = vst [vmem:[%s1813_s30 + $0x48] sm:$0xff] %v488_v55  ;;  %v1021_v57 = vadd.f32 %v1020_v46, %v488_v55  ;;  %v1044_v58 = vmul.f32 %v488_v55, %v488_v55  ;;  %v873_v59 = vpop.f32.mrb[11].mxu1 }
 0x124   : > { %v1197_v60 = vmul.f32 %v1600_v43, %v1600_v43  ;;  %v1210_v61 = vadd.f32 %v1209_v53, %v1195_v52  ;;  %974 = vst [vmem:[%s1813_s30 + $0x148] sm:$0xff] %v873_v59  ;;  %v1173_v62 = vadd.f32 %v1172_v51, %v873_v59  ;;  %v1196_v63 = vmul.f32 %v873_v59, %v873_v59 }
 0x125   : > { %v1022_v1 = vadd.f32 %v1552_v39, %v1021_v57  ;;  %v1059_v2 = vadd.f32 %v1058_v56, %v1044_v58  ;;  %v1046_v5 = vmul.f32 %v1553_v50, %v1553_v50  ;;  %v1198_v9 = vmul.f32 %v1601_v54, %v1601_v54 }
 0x126   : > { %v1174_v3 = vadd.f32 %v1600_v43, %v1173_v62  ;;  %v1211_v4 = vadd.f32 %v1210_v61, %v1196_v63 }
 0x127   : > { %v1060_v6 = vadd.f32 %v1059_v2, %v1045_v0  ;;  %v1556_v7 = vpop.f32.mrb[12].mxu0  ;;  %v1023_v8 = vadd.f32 %v1553_v50, %v1022_v1 }
 0x128   : > { %v1212_v10 = vadd.f32 %v1211_v4, %v1197_v60  ;;  %594 = vst [vmem:[%s1813_s30 + $0x70] sm:$0xff] %v1556_v7  ;;  %v1604_v11 = vpop.f32.mrb[12].mxu1  ;;  %v501_v12 = vpop.f32.mrb[13].mxu0  ;;  %v1175_v13 = vadd.f32 %v1601_v54, %v1174_v3  ;;  %v1049_v32 = vmul.f32 %v1556_v7, %v1556_v7 }
 0x129   : > { %979 = vst [vmem:[%s1813_s30 + $0x170] sm:$0xff] %v1604_v11  ;;  %592 = vst [vmem:[%s1813_s30 + $0x60] sm:$0xff] %v501_v12  ;;  %v1024_v14 = vadd.f32 %v1023_v8, %v501_v12  ;;  %v1047_v15 = vmul.f32 %v501_v12, %v501_v12  ;;  %v1061_v16 = vadd.f32 %v1060_v6, %v1046_v5  ;;  %v886_v17 = vpop.f32.mrb[13].mxu1  ;;  %v1557_v18 = vpop.f32.mrb[14].mxu0 }
 0x12a   : > { %977 = vst [vmem:[%s1813_s30 + $0x160] sm:$0xff] %v886_v17  ;;  %v1176_v19 = vadd.f32 %v1175_v13, %v886_v17  ;;  %v1199_v20 = vmul.f32 %v886_v17, %v886_v17  ;;  %v1213_v21 = vadd.f32 %v1212_v10, %v1198_v9  ;;  %595 = vst [vmem:[%s1813_s30 + $0x78] sm:$0xff] %v1557_v18  ;;  %v1605_v22 = vpop.f32.mrb[14].mxu1  ;;  %v504_v23 = vpop.f32.mrb[15].mxu0 }
 0x12b   : > { %v1062_v24 = vadd.f32 %v1061_v16, %v1047_v15  ;;  %980 = vst [vmem:[%s1813_s30 + $0x178] sm:$0xff] %v1605_v22  ;;  %593 = vst [vmem:[%s1813_s30 + $0x68] sm:$0xff] %v504_v23  ;;  %v1025_v25 = vadd.f32 %v1024_v14, %v504_v23  ;;  %v1048_v26 = vmul.f32 %v504_v23, %v504_v23  ;;  %v889_v27 = vpop.f32.mrb[15].mxu1 }
 0x12c   : > { %v1201_v28 = vmul.f32 %v1604_v11, %v1604_v11  ;;  %v1214_v29 = vadd.f32 %v1213_v21, %v1199_v20  ;;  %978 = vst [vmem:[%s1813_s30 + $0x168] sm:$0xff] %v889_v27  ;;  %v1177_v30 = vadd.f32 %v1176_v19, %v889_v27  ;;  %v1200_v31 = vmul.f32 %v889_v27, %v889_v27 }
 0x12d   : > { %v1026_v33 = vadd.f32 %v1556_v7, %v1025_v25  ;;  %v1063_v34 = vadd.f32 %v1062_v24, %v1048_v26  ;;  %v1050_v37 = vmul.f32 %v1557_v18, %v1557_v18  ;;  %v1202_v41 = vmul.f32 %v1605_v22, %v1605_v22 }
 0x12e   : > { %v1178_v35 = vadd.f32 %v1604_v11, %v1177_v30  ;;  %v1215_v36 = vadd.f32 %v1214_v29, %v1200_v31 }
 0x12f   : > { %v1934_v38 = vadd.f32 %v1557_v18, %v1026_v33  ;;  %v1064_v39 = vadd.f32 %v1063_v34, %v1049_v32  ;;  %v1560_v40 = vpop.f32.mrb[16].mxu0 }
 0x130   : > { %v1936_v42 = vadd.f32 %v1605_v22, %v1178_v35  ;;  %v1216_v43 = vadd.f32 %v1215_v36, %v1201_v28  ;;  %598 = vst [vmem:[%s1813_s30 + $0x90] sm:$0xff] %v1560_v40  ;;  %v1608_v44 = vpop.f32.mrb[16].mxu1  ;;  %v517_v45 = vpop.f32.mrb[17].mxu0  ;;  %v1113_v61 = vmul.f32 %v1560_v40, %v1560_v40 }
 0x131   : > { %v1939_v46 = vadd.f32 %v1064_v39, %v1050_v37  ;;  %983 = vst [vmem:[%s1813_s30 + $0x190] sm:$0xff] %v1608_v44  ;;  %596 = vst [vmem:[%s1813_s30 + $0x80] sm:$0xff] %v517_v45  ;;  %v902_v47 = vpop.f32.mrb[17].mxu1  ;;  %v1561_v48 = vpop.f32.mrb[18].mxu0  ;;  %v1111_v55 = vmul.f32 %v517_v45, %v517_v45  ;;  %v1265_v58 = vmul.f32 %v1608_v44, %v1608_v44 }
 0x132   : > { %v1943_v49 = vadd.f32 %v1216_v43, %v1202_v41  ;;  %981 = vst [vmem:[%s1813_s30 + $0x180] sm:$0xff] %v902_v47  ;;  %599 = vst [vmem:[%s1813_s30 + $0x98] sm:$0xff] %v1561_v48  ;;  %v1609_v50 = vpop.f32.mrb[18].mxu1  ;;  %v520_v51 = vpop.f32.mrb[19].mxu0  ;;  %v1263_v52 = vmul.f32 %v902_v47, %v902_v47  ;;  %v1114_v6 = vmul.f32 %v1561_v48, %v1561_v48 }
 0x133   : > { %984 = vst [vmem:[%s1813_s30 + $0x198] sm:$0xff] %v1609_v50  ;;  %597 = vst [vmem:[%s1813_s30 + $0x88] sm:$0xff] %v520_v51  ;;  %v1089_v53 = vadd.f32 %v520_v51, %v517_v45  ;;  %v905_v54 = vpop.f32.mrb[19].mxu1  ;;  %v1112_v56 = vmul.f32 %v520_v51, %v520_v51  ;;  %v1266_v10 = vmul.f32 %v1609_v50, %v1609_v50 }
 0x134   : > { %982 = vst [vmem:[%s1813_s30 + $0x188] sm:$0xff] %v905_v54  ;;  %v1241_v57 = vadd.f32 %v905_v54, %v902_v47  ;;  %v1264_v60 = vmul.f32 %v905_v54, %v905_v54 }
 0x135   : > { %v1090_v59 = vadd.f32 %v1560_v40, %v1089_v53  ;;  %v1127_v62 = vadd.f32 %v1112_v56, %v1111_v55 }
 0x136   : > { %v1242_v63 = vadd.f32 %v1608_v44, %v1241_v57  ;;  %v1279_v0 = vadd.f32 %v1264_v60, %v1263_v52 }
 0x137   : > { %v1564_v1 = vpop.f32.mrb[20].mxu0  ;;  %v1091_v2 = vadd.f32 %v1561_v48, %v1090_v59  ;;  %v1128_v3 = vadd.f32 %v1127_v62, %v1113_v61 }
 0x138   : > { %602 = vst [vmem:[%s1813_s30 + $0xb0] sm:$0xff] %v1564_v1  ;;  %v1612_v4 = vpop.f32.mrb[20].mxu1  ;;  %v533_v5 = vpop.f32.mrb[21].mxu0  ;;  %v1280_v7 = vadd.f32 %v1279_v0, %v1265_v58  ;;  %v1243_v16 = vadd.f32 %v1609_v50, %v1242_v63  ;;  %v1117_v32 = vmul.f32 %v1564_v1, %v1564_v1 }
 0x139   : > { %987 = vst [vmem:[%s1813_s30 + $0x1b0] sm:$0xff] %v1612_v4  ;;  %600 = vst [vmem:[%s1813_s30 + $0xa0] sm:$0xff] %v533_v5  ;;  %v918_v8 = vpop.f32.mrb[21].mxu1  ;;  %v1565_v9 = vpop.f32.mrb[22].mxu0  ;;  %v1092_v11 = vadd.f32 %v1091_v2, %v533_v5  ;;  %v1115_v12 = vmul.f32 %v533_v5, %v533_v5  ;;  %v1129_v15 = vadd.f32 %v1128_v3, %v1114_v6 }
 0x13a   : > { %985 = vst [vmem:[%s1813_s30 + $0x1a0] sm:$0xff] %v918_v8  ;;  %603 = vst [vmem:[%s1813_s30 + $0xb8] sm:$0xff] %v1565_v9  ;;  %v1613_v13 = vpop.f32.mrb[22].mxu1  ;;  %v536_v14 = vpop.f32.mrb[23].mxu0  ;;  %v1267_v18 = vmul.f32 %v918_v8, %v918_v8  ;;  %v1281_v19 = vadd.f32 %v1280_v7, %v1266_v10  ;;  %v1244_v21 = vadd.f32 %v1243_v16, %v918_v8 }
 0x13b   : > { %988 = vst [vmem:[%s1813_s30 + $0x1b8] sm:$0xff] %v1613_v13  ;;  %601 = vst [vmem:[%s1813_s30 + $0xa8] sm:$0xff] %v536_v14  ;;  %v921_v17 = vpop.f32.mrb[23].mxu1  ;;  %v1130_v20 = vadd.f32 %v1129_v15, %v1115_v12  ;;  %v1093_v23 = vadd.f32 %v1092_v11, %v536_v14  ;;  %v1269_v24 = vmul.f32 %v1612_v4, %v1612_v4 }
 0x13c   : > { %986 = vst [vmem:[%s1813_s30 + $0x1a8] sm:$0xff] %v921_v17  ;;  %v1282_v22 = vadd.f32 %v1281_v19, %v1267_v18  ;;  %v1116_v25 = vmul.f32 %v536_v14, %v536_v14  ;;  %v1245_v26 = vadd.f32 %v1244_v21, %v921_v17  ;;  %v1268_v27 = vmul.f32 %v921_v17, %v921_v17 }
 0x13d   : > { %v1094_v29 = vadd.f32 %v1564_v1, %v1093_v23  ;;  %v1118_v39 = vmul.f32 %v1565_v9, %v1565_v9  ;;  %v1270_v40 = vmul.f32 %v1613_v13, %v1613_v13  ;;  %v1028_v1 = vrot.slane %v1934_v38, 4 }
 0x13e   : > { %v1131_v33 = vadd.f32 %v1130_v20, %v1116_v25  ;;  %v1246_v34 = vadd.f32 %v1612_v4, %v1245_v26  ;;  %v1283_v35 = vadd.f32 %v1282_v22, %v1268_v27  ;;  %v1066_v22 = vrot.slane %v1939_v46, 4 }
 0x13f   : > { %v1568_v28 = vpop.f32.mrb[24].mxu0  ;;  %v1095_v41 = vadd.f32 %v1565_v9, %v1094_v29  ;;  %v1180_v23 = vrot.slane %v1936_v42, 4 }
 0x140   : > { %606 = vst [vmem:[%s1813_s30 + $0xd0] sm:$0xff] %v1568_v28  ;;  %v1616_v30 = vpop.f32.mrb[24].mxu1  ;;  %v549_v31 = vpop.f32.mrb[25].mxu0  ;;  %v1132_v47 = vadd.f32 %v1131_v33, %v1117_v32  ;;  %v1284_v48 = vadd.f32 %v1283_v35, %v1269_v24  ;;  %v1247_v50 = vadd.f32 %v1613_v13, %v1246_v34  ;;  %v1121_v5 = vmul.f32 %v1568_v28, %v1568_v28 }
 0x141   : > { %991 = vst [vmem:[%s1813_s30 + $0x1d0] sm:$0xff] %v1616_v30  ;;  %604 = vst [vmem:[%s1813_s30 + $0xc0] sm:$0xff] %v549_v31  ;;  %v934_v36 = vpop.f32.mrb[25].mxu1  ;;  %v1569_v37 = vpop.f32.mrb[26].mxu0  ;;  %v1119_v43 = vmul.f32 %v549_v31, %v549_v31  ;;  %v1096_v53 = vadd.f32 %v1095_v41, %v549_v31  ;;  %v1273_v60 = vmul.f32 %v1616_v30, %v1616_v30  ;;  %v1218_v31 = vrot.slane %v1943_v49, 4 }
 0x142   : > { %989 = vst [vmem:[%s1813_s30 + $0x1c0] sm:$0xff] %v934_v36  ;;  %607 = vst [vmem:[%s1813_s30 + $0xd8] sm:$0xff] %v1569_v37  ;;  %v1617_v44 = vpop.f32.mrb[26].mxu1  ;;  %v552_v45 = vpop.f32.mrb[27].mxu0  ;;  %v1271_v51 = vmul.f32 %v934_v36, %v934_v36  ;;  %v1133_v55 = vadd.f32 %v1132_v47, %v1118_v39  ;;  %v1248_v56 = vadd.f32 %v1247_v50, %v934_v36 }
 0x143   : > { %992 = vst [vmem:[%s1813_s30 + $0x1d8] sm:$0xff] %v1617_v44  ;;  %605 = vst [vmem:[%s1813_s30 + $0xc8] sm:$0xff] %v552_v45  ;;  %v937_v52 = vpop.f32.mrb[27].mxu1  ;;  %v1120_v54 = vmul.f32 %v552_v45, %v552_v45  ;;  %v1285_v57 = vadd.f32 %v1284_v48, %v1270_v40  ;;  %v1097_v59 = vadd.f32 %v1096_v53, %v552_v45 }
 0x144   : > { %990 = vst [vmem:[%s1813_s30 + $0x1c8] sm:$0xff] %v937_v52  ;;  %v1272_v58 = vmul.f32 %v937_v52, %v937_v52  ;;  %v1134_v61 = vadd.f32 %v1133_v55, %v1119_v43  ;;  %v1249_v63 = vadd.f32 %v1248_v56, %v937_v52  ;;  %v1122_v11 = vmul.f32 %v1569_v37, %v1569_v37 }
 0x145   : > { %v1286_v62 = vadd.f32 %v1285_v57, %v1271_v51  ;;  %v1098_v2 = vadd.f32 %v1568_v28, %v1097_v59  ;;  %v1274_v12 = vmul.f32 %v1617_v44, %v1617_v44  ;;  %v1181_v39 = vadd.f32 %v1180_v23, %v1936_v42 }
 0x146   : > { %v1135_v6 = vadd.f32 %v1134_v61, %v1120_v54  ;;  %v1250_v7 = vadd.f32 %v1616_v30, %v1249_v63  ;;  %v1029_v30 = vadd.f32 %v1028_v1, %v1934_v38  ;;  %v1219_v48 = vadd.f32 %v1218_v31, %v1943_v49 }
 0x147   : > { %v1572_v0 = vpop.f32.mrb[28].mxu0  ;;  %v1287_v8 = vadd.f32 %v1286_v62, %v1272_v58  ;;  %v1099_v13 = vadd.f32 %v1569_v37, %v1098_v2  ;;  %v1067_v37 = vadd.f32 %v1066_v22, %v1939_v46  ;;  %v1182_v55 = vrot.slane %v1181_v39, 2 }
 0x148   : > { %610 = vst [vmem:[%s1813_s30 + $0xf0] sm:$0xff] %v1572_v0  ;;  %v1620_v3 = vpop.f32.mrb[28].mxu1  ;;  %v565_v4 = vpop.f32.mrb[29].mxu0  ;;  %v1136_v17 = vadd.f32 %v1135_v6, %v1121_v5  ;;  %v1251_v19 = vadd.f32 %v1617_v44, %v1250_v7  ;;  %v1125_v41 = vmul.f32 %v1572_v0, %v1572_v0  ;;  %v1030_v47 = vrot.slane %v1029_v30, 2 }
 0x149   : > { %995 = vst [vmem:[%s1813_s30 + $0x1f0] sm:$0xff] %v1620_v3  ;;  %608 = vst [vmem:[%s1813_s30 + $0xe0] sm:$0xff] %v565_v4  ;;  %v950_v9 = vpop.f32.mrb[29].mxu1  ;;  %v1573_v10 = vpop.f32.mrb[30].mxu0  ;;  %v1123_v14 = vmul.f32 %v565_v4, %v565_v4  ;;  %v1288_v18 = vadd.f32 %v1287_v8, %v1273_v60  ;;  %v1100_v24 = vadd.f32 %v1099_v13, %v565_v4  ;;  %v1068_v57 = vrot.slane %v1067_v37, 2 }
 0x14a   : > { %993 = vst [vmem:[%s1813_s30 + $0x1e0] sm:$0xff] %v950_v9  ;;  %611 = vst [vmem:[%s1813_s30 + $0xf8] sm:$0xff] %v1573_v10  ;;  %v1621_v15 = vpop.f32.mrb[30].mxu1  ;;  %v568_v16 = vpop.f32.mrb[31].mxu0  ;;  %v1275_v20 = vmul.f32 %v950_v9, %v950_v9  ;;  %v1137_v26 = vadd.f32 %v1136_v17, %v1122_v11  ;;  %v1252_v27 = vadd.f32 %v1251_v19, %v950_v9  ;;  %v1220_v61 = vrot.slane %v1219_v48, 2 }
 0x14b   : > { %996 = vst [vmem:[%s1813_s30 + $0x1f8] sm:$0xff] %v1621_v15  ;;  %609 = vst [vmem:[%s1813_s30 + $0xe8] sm:$0xff] %v568_v16  ;;  %v953_v21 = vpop.f32.mrb[31].mxu1  ;;  %v1124_v25 = vmul.f32 %v568_v16, %v568_v16  ;;  %v1289_v28 = vadd.f32 %v1288_v18, %v1274_v12  ;;  %v1101_v32 = vadd.f32 %v1100_v24, %v568_v16 }
 0x14c   : > { %994 = vst [vmem:[%s1813_s30 + $0x1e8] sm:$0xff] %v953_v21  ;;  %v1276_v29 = vmul.f32 %v953_v21, %v953_v21  ;;  %v1277_v33 = vmul.f32 %v1620_v3, %v1620_v3  ;;  %v1138_v34 = vadd.f32 %v1137_v26, %v1123_v14  ;;  %v1253_v36 = vadd.f32 %v1252_v27, %v953_v21 }
 0x14d   : > { %v1290_v35 = vadd.f32 %v1289_v28, %v1275_v20  ;;  %v1102_v40 = vadd.f32 %v1572_v0, %v1101_v32  ;;  %v1126_v38 = vmul.f32 %v1573_v10, %v1573_v10  ;;  %v1278_v51 = vmul.f32 %v1621_v15, %v1621_v15 }
 0x14e   : > { %v1139_v43 = vadd.f32 %v1138_v34, %v1124_v25  ;;  %v1254_v44 = vadd.f32 %v1620_v3, %v1253_v36  ;;  %v1031_v59 = vadd.f32 %v1030_v47, %v1029_v30  ;;  %v1183_v1 = vadd.f32 %v1182_v55, %v1181_v39 }
 0x14f   : > { %v1291_v45 = vadd.f32 %v1290_v35, %v1276_v29  ;;  %v1103_v50 = vadd.f32 %v1573_v10, %v1102_v40  ;;  %v1069_v2 = vadd.f32 %v1068_v57, %v1067_v37  ;;  %v1221_v8 = vadd.f32 %v1220_v61, %v1219_v48  ;;  %v1301_v35 = vld [vmem:[%s1818_s6] sm:$0x3] }
 0x150   : > { %v1140_v52 = vadd.f32 %v1139_v43, %v1125_v41  ;;  %v1255_v53 = vadd.f32 %v1621_v15, %v1254_v44  ;;  %v1032_v6 = vrot.slane %v1031_v59, 1  ;;  %v1184_v12 = vrot.slane %v1183_v1, 1 }
 0x151   : > { %v1292_v54 = vadd.f32 %v1291_v45, %v1277_v33  ;;  %v1104_v56 = vrot.slane %v1103_v50, 4  ;;  %v1070_v14 = vrot.slane %v1069_v2, 1  ;;  %v1222_v20 = vrot.slane %v1221_v8, 1 }
 0x152   : > { %v1141_v46 = vadd.f32 %v1140_v52, %v1126_v38  ;;  %v1256_v58 = vrot.slane %v1255_v53, 4  ;;  %v1033_v17 = vadd.f32 %v1032_v6, %v1031_v59  ;;  %v1185_v22 = vadd.f32 %v1184_v12, %v1183_v1 }
 0x153   : > { %v1293_v42 = vadd.f32 %v1292_v54, %v1278_v51  ;;  %v1105_v60 = vadd.f32 %v1104_v56, %v1103_v50  ;;  %v1071_v24 = vadd.f32 %v1070_v14, %v1069_v2  ;;  %v1223_v29 = vadd.f32 %v1222_v20, %v1221_v8 }
 0x154   : > { %v1142_v62 = vrot.slane %v1141_v46, 4  ;;  %v1257_v63 = vadd.f32 %v1256_v58, %v1255_v53 }
 0x155   : > { %v1294_v0 = vrot.slane %v1293_v42, 4  ;;  %v1106_v49 = vrot.slane %v1105_v60, 2 }
 0x156   : > { %v1143_v3 = vadd.f32 %v1142_v62, %v1141_v46  ;;  %v1258_v4 = vrot.slane %v1257_v63, 2 }
 0x157   : > { %v1295_v5 = vadd.f32 %v1294_v0, %v1293_v42  ;;  %v1107_v7 = vadd.f32 %v1106_v49, %v1105_v60 }
 0x158   : > { %v1144_v9 = vrot.slane %v1143_v3, 2  ;;  %v1259_v10 = vadd.f32 %v1258_v4, %v1257_v63 }
 0x159   : > { %v1296_v11 = vrot.slane %v1295_v5, 2  ;;  %v1108_v13 = vrot.slane %v1107_v7, 1 }
 0x15a   : > { %v1145_v15 = vadd.f32 %v1144_v9, %v1143_v3  ;;  %v1260_v19 = vrot.slane %v1259_v10, 1 }
 0x15b   : > { %v1297_v16 = vadd.f32 %v1296_v11, %v1295_v5  ;;  %v1109_v18 = vadd.f32 %v1108_v13, %v1107_v7 }
 0x15c   : > { %v1146_v21 = vrot.slane %v1145_v15, 1  ;;  %v1261_v28 = vadd.f32 %v1260_v19, %v1259_v10 }
 0x15d   : > { %v1110_v23 = vadd.f32 %v1109_v18, %v1033_v17  ;;  %v1298_v26 = vrot.slane %v1297_v16, 1 }
 0x15e   : > { %v1147_v25 = vadd.f32 %v1146_v21, %v1145_v15 }
 0x15f   : > { %v1186_v27 = vadd.f32 %v1185_v22, %v1110_v23  ;;  %v1299_v33 = vadd.f32 %v1298_v26, %v1297_v16 }
 0x160   : > { %v1148_v30 = vadd.f32 %v1147_v25, %v1071_v24 }
 0x161   : > { %v1262_v31 = vadd.f32 %v1261_v28, %v1186_v27 }
 0x162   : > { %v1224_v32 = vadd.f32 %v1223_v29, %v1148_v30 }
 0x164   : > { %v1300_v34 = vadd.f32 %v1299_v33, %v1224_v32 }
 0x166   : > { %v1303_v36 = vsel %vm1302_vm0, %v1262_v31, %v1300_v34 }
 0x167   : > { %v1304_v37 = vadd.f32 %v1303_v36, %v1301_v35 }
 0x169   : > { %1305 = vst [vmem:[%s1818_s6] sm:$0x3] %v1304_v37 }
 0x16a PF: > { %s14_s16 = sadd.s32 1, %s1749_s16   ;;  %s2003_s12 = smov %s1741_s14 }
 0x16b   : > { %p11_p8 = scmp.ge.s32.totalorder %s14_s16, 6   ;;  %s2004_s13 = smov %s1745_s15 }
 0x16c   : > { %s2005_s14 = smov %s2008_s17  ;;  %s2006_s15 = smov %s2012_s18 }
 0x16d   :  { %13 = sbr.rel (!%p11_p8) target bundleno = 3 (0x3), region = 74 }

// kernel: allcnn_forward.27
= control target key start
LH: loop header
LB: loop body
LE: loop exit
PB: predicated region body
PF: predicated region fallthrough
CT: control target
= control target key end

     0   :  { %s2241_s12 = smov 0   ;;  %s2243_s13 = smov 0   ;;  %s2544_s0 = inlined_call_operand.vmem [shape: bf16[2048,256], index: 0, kind: input, shape index: {}]   ;;  %s2545_s1 = inlined_call_operand.vmem [shape: bf16[256,128], index: 1, kind: input, shape index: {}]   ;;  %s2546_s2 = inlined_call_operand.vmem [shape: f32[2048,128], index: 2, kind: output, shape index: {0}]   ;;  %s2547_s3 = inlined_call_operand.vmem [shape: f32[2,2,128], index: 3, kind: output, shape index: {1}]  }
   0x1   :  { %s2245_s14 = smov 0   ;;  %s2247_s15 = smov 0  }
   0x2   :  { %s2249_s16 = smov 0  }
   0x3 LB: > { %s23_s17 = sadd.s32 1, %s2210_s14  ;;  %s26_s18 = sadd.s32 1, %s2214_s15  ;;  %s2218_s16 = sphi %s2249_s16, %s14_s16   ;;  %s2214_s15 = sphi %s2247_s15, %s2551_s15   ;;  %s2210_s14 = sphi %s2245_s14, %s2550_s14   ;;  %s2206_s13 = sphi %s2243_s13, %s2549_s13   ;;  %s2202_s12 = sphi %s2241_s12, %s2548_s12  }
   0x4   : > { %p24_p0 = scmp.ge.s32.totalorder %s23_s17, 2  ;;  %p1678_p1 = scmp.ge.s32.totalorder %s2218_s16, 1 }
   0x5   : > { %p166_p2 = scmp.lt.s32.totalorder %s2218_s16, 5 }
   0x6   : > { %s2553_s17 = smov (%p24_p0, %s23_s17), 0  ;;  %s2555_s18 = smov (!%p24_p0, %s26_s18), %s2214_s15 }
   0x7   : > { %p167_p3 = pnand %p1678_p1, %p166_p2  ;;  %p28_p4 = scmp.ge.s32.totalorder %s2555_s18, 2 }
   0x8   : > { %s1679_s19 = sshll.u32 (!%p167_p3), %s2206_s13, 1  ;;  %p220_p5 = scmp.lt.s32.totalorder (!%p167_p3), %s2206_s13, 1 }
   0x9   : > { %s2557_s18 = smov (%p28_p4, %s2555_s18), 0  ;;  %170 = sbr.rel (%p167_p3) target bundleno = 423 (0x1a7), region = 28 }
   0xa   : > { %s200_s20 = sadd.s32 (!%p167_p3), %s2202_s12, %s1679_s19  ;;  %p1687_p7 = scmp.ne.s32.totalorder (!%p167_p3), %s2202_s12, 0 }
   0xb   : > { %s1680_s21 = sshll.u32 (!%p167_p3), %s200_s20, 6 }
   0xc   : > { %p202_p6 = scmp.lt.s32.totalorder (!%p167_p3), %s1680_s21, 255 }
  0x10   : > { %s2559_s13 = smov (!%p220_p5, %s2206_s13), 1  ;;  %s2561_s21 = smov (!%p202_p6, %s1680_s21), 255 }
  0x11   : > { %s1686_s22 = sshll.u32 %s2559_s13, 1  ;;  %s1786_s23 = sshll.u32 %s2561_s21, 3  ;;  %v2220_v0 = vmov (!%p1687_p7), 0.0  }
  0x12   : > { %s2274_s26 = scalar_lea.vmem %s2547_s3, %s1686_s22  ;;  %s2279_s29 = scalar_lea.vmem %s2544_s0, %s1786_s23 }
  0x13   : > { %s2284_s5 = scalar_lea.vmem %s2546_s2, %s1786_s23  ;;  %228 = sbr.rel (%p1687_p7) target bundleno = 26 (0x1a), region = 32  ;;  %229 = vst [vmem:[%s2274_s26] sm:$0x3] (!%p1687_p7), %v2220_v0 }
  0x1a PF: > { %v2052_v1 = vld [vmem:[%s2545_s1 + $0x40] sm:$0xff]   ;;  %v2056_v5 = vld [vmem:[%s2545_s1 + $0x48] sm:$0xff]   ;;  %v2060_v9 = vld [vmem:[%s2545_s1 + $0x50] sm:$0xff]   ;;  %vm1561_vm0 = vcmask 1040384  }
  0x1b   : > { %v2053_v2 = vld [vmem:[%s2545_s1 + $0x40] sm:$0xff]   ;;  %1787 = vmatprep.subr.bf16.mxu0 %v2052_v1  ;;  %v2057_v6 = vld [vmem:[%s2545_s1 + $0x48] sm:$0xff]   ;;  %v2061_v10 = vld [vmem:[%s2545_s1 + $0x50] sm:$0xff]  }
  0x1c   : > { %v2054_v3 = vld [vmem:[%s2545_s1] sm:$0xff]   ;;  %1899 = vmatprep.subr.bf16.mxu1 %v2053_v2  ;;  %v2058_v7 = vld [vmem:[%s2545_s1 + $0x8] sm:$0xff]   ;;  %v2062_v11 = vld [vmem:[%s2545_s1 + $0x10] sm:$0xff]  }
  0x1d   : > { %v2055_v4 = vld [vmem:[%s2545_s1] sm:$0xff]   ;;  %1788 = vmatpush3.bf16.msra.mxu0 %v2054_v3  ;;  %v2059_v8 = vld [vmem:[%s2545_s1 + $0x8] sm:$0xff]   ;;  %v2063_v12 = vld [vmem:[%s2545_s1 + $0x10] sm:$0xff]  }
  0x1e   : > { %1900 = vmatpush3.bf16.msra.mxu1 %v2055_v4  ;;  %1789 = vmatprep.subr.bf16.mxu0 %v2056_v5  ;;  %v2064_v13 = vld [vmem:[%s2545_s1 + $0x58] sm:$0xff]   ;;  %v2068_v17 = vld [vmem:[%s2545_s1 + $0x60] sm:$0xff]   ;;  %v2072_v21 = vld [vmem:[%s2545_s1 + $0x68] sm:$0xff]  }
  0x1f   : > { %1901 = vmatprep.subr.bf16.mxu1 %v2057_v6  ;;  %v2065_v14 = vld [vmem:[%s2545_s1 + $0x58] sm:$0xff]   ;;  %v2069_v18 = vld [vmem:[%s2545_s1 + $0x60] sm:$0xff]   ;;  %v2073_v22 = vld [vmem:[%s2545_s1 + $0x68] sm:$0xff]  }
  0x20   : > { %v2066_v15 = vld [vmem:[%s2545_s1 + $0x18] sm:$0xff]   ;;  %v2070_v19 = vld [vmem:[%s2545_s1 + $0x20] sm:$0xff]   ;;  %v2074_v23 = vld [vmem:[%s2545_s1 + $0x28] sm:$0xff]  }
  0x21   : > { %1790 = vmatpush3.bf16.msra.mxu0 %v2058_v7  ;;  %v2067_v16 = vld [vmem:[%s2545_s1 + $0x18] sm:$0xff]   ;;  %v2071_v20 = vld [vmem:[%s2545_s1 + $0x20] sm:$0xff]   ;;  %v2075_v24 = vld [vmem:[%s2545_s1 + $0x28] sm:$0xff]  }
  0x22   : > { %1902 = vmatpush3.bf16.msra.mxu1 %v2059_v8  ;;  %1791 = vmatprep.subr.bf16.mxu0 %v2060_v9  ;;  %v2076_v25 = vld [vmem:[%s2545_s1 + $0x70] sm:$0xff]   ;;  %v2080_v29 = vld [vmem:[%s2545_s1 + $0x78] sm:$0xff]   ;;  %v2084_v33 = vld [vmem:[%s2279_s29] ss:$8 sps:$4 sm:$0xff]  }
  0x23   : > { %1903 = vmatprep.subr.bf16.mxu1 %v2061_v10  ;;  %v2077_v26 = vld [vmem:[%s2545_s1 + $0x70] sm:$0xff]   ;;  %v2081_v30 = vld [vmem:[%s2545_s1 + $0x78] sm:$0xff]   ;;  %v2086_v34 = vld [vmem:[%s2279_s29 + $0x4] ss:$8 sps:$4 sm:$0xff]  }
  0x24   : > { %v2078_v27 = vld [vmem:[%s2545_s1 + $0x30] sm:$0xff]   ;;  %v2082_v31 = vld [vmem:[%s2545_s1 + $0x38] sm:$0xff]   ;;  %v2087_v35 = vld [vmem:[%s2279_s29 + $0x100] ss:$8 sps:$4 sm:$0xff]   ;;  %582 = vmatprep.mubr.bf16.mxu0 %v2086_v34 }
  0x25   : > { %1792 = vmatpush3.bf16.msra.mxu0 %v2062_v11  ;;  %v2079_v28 = vld [vmem:[%s2545_s1 + $0x30] sm:$0xff]   ;;  %v2083_v32 = vld [vmem:[%s2545_s1 + $0x38] sm:$0xff]   ;;  %v2089_v36 = vld [vmem:[%s2279_s29 + $0x104] ss:$8 sps:$4 sm:$0xff]  }
  0x26   : > { %1904 = vmatpush3.bf16.msra.mxu1 %v2063_v12  ;;  %1793 = vmatprep.subr.bf16.mxu0 %v2064_v13  ;;  %v2090_v37 = vld [vmem:[%s2279_s29 + $0x14] ss:$8 sps:$4 sm:$0xff]   ;;  %v2094_v39 = vld [vmem:[%s2279_s29 + $0x10] ss:$8 sps:$4 sm:$0xff]   ;;  %v2096_v41 = vld [vmem:[%s2279_s29 + $0x24] ss:$8 sps:$4 sm:$0xff]  }
  0x27   : > { %1905 = vmatprep.subr.bf16.mxu1 %v2065_v14  ;;  %1095 = vmatprep.mubr.bf16.mxu1 %v2089_v36  ;;  %v2092_v38 = vld [vmem:[%s2279_s29 + $0x114] ss:$8 sps:$4 sm:$0xff]   ;;  %v2095_v40 = vld [vmem:[%s2279_s29 + $0x110] ss:$8 sps:$4 sm:$0xff]   ;;  %v2098_v42 = vld [vmem:[%s2279_s29 + $0x124] ss:$8 sps:$4 sm:$0xff]  }
  0x28   : > { %v2100_v43 = vld [vmem:[%s2279_s29 + $0x20] ss:$8 sps:$4 sm:$0xff]   ;;  %v2102_v45 = vld [vmem:[%s2279_s29 + $0x34] ss:$8 sps:$4 sm:$0xff]   ;;  %v2106_v47 = vld [vmem:[%s2279_s29 + $0x30] ss:$8 sps:$4 sm:$0xff]  }
  0x29   : > { %1794 = vmatpush3.bf16.msra.mxu0 %v2066_v15  ;;  %v2101_v44 = vld [vmem:[%s2279_s29 + $0x120] ss:$8 sps:$4 sm:$0xff]   ;;  %v2104_v46 = vld [vmem:[%s2279_s29 + $0x134] ss:$8 sps:$4 sm:$0xff]   ;;  %v2107_v48 = vld [vmem:[%s2279_s29 + $0x130] ss:$8 sps:$4 sm:$0xff]  }
  0x2a   : > { %1906 = vmatpush3.bf16.msra.mxu1 %v2067_v16  ;;  %1795 = vmatprep.subr.bf16.mxu0 %v2068_v17  ;;  %v2108_v49 = vld [vmem:[%s2279_s29 + $0x44] ss:$8 sps:$4 sm:$0xff]   ;;  %v2112_v51 = vld [vmem:[%s2279_s29 + $0x40] ss:$8 sps:$4 sm:$0xff]   ;;  %v2114_v53 = vld [vmem:[%s2279_s29 + $0x54] ss:$8 sps:$4 sm:$0xff]  }
  0x2b   : > { %1907 = vmatprep.subr.bf16.mxu1 %v2069_v18  ;;  %v2110_v50 = vld [vmem:[%s2279_s29 + $0x144] ss:$8 sps:$4 sm:$0xff]   ;;  %v2113_v52 = vld [vmem:[%s2279_s29 + $0x140] ss:$8 sps:$4 sm:$0xff]   ;;  %v2116_v54 = vld [vmem:[%s2279_s29 + $0x154] ss:$8 sps:$4 sm:$0xff]  }
  0x2c   : > { %v2118_v55 = vld [vmem:[%s2279_s29 + $0x50] ss:$8 sps:$4 sm:$0xff]   ;;  %v2120_v57 = vld [vmem:[%s2279_s29 + $0x64] ss:$8 sps:$4 sm:$0xff]   ;;  %v2124_v59 = vld [vmem:[%s2279_s29 + $0x60] ss:$8 sps:$4 sm:$0xff]  }
  0x2d   : > { %1796 = vmatpush3.bf16.msra.mxu0 %v2070_v19  ;;  %v2119_v56 = vld [vmem:[%s2279_s29 + $0x150] ss:$8 sps:$4 sm:$0xff]   ;;  %v2122_v58 = vld [vmem:[%s2279_s29 + $0x164] ss:$8 sps:$4 sm:$0xff]   ;;  %v2125_v60 = vld [vmem:[%s2279_s29 + $0x160] ss:$8 sps:$4 sm:$0xff]  }
  0x2e   : > { %1908 = vmatpush3.bf16.msra.mxu1 %v2071_v20  ;;  %1797 = vmatprep.subr.bf16.mxu0 %v2072_v21  ;;  %v2126_v61 = vld [vmem:[%s2279_s29 + $0x74] ss:$8 sps:$4 sm:$0xff]   ;;  %v2130_v63 = vld [vmem:[%s2279_s29 + $0x70] ss:$8 sps:$4 sm:$0xff]   ;;  %v2132_v1 = vld [vmem:[%s2279_s29 + $0x84] ss:$8 sps:$4 sm:$0xff]  }
  0x2f   : > { %1909 = vmatprep.subr.bf16.mxu1 %v2073_v22  ;;  %v2128_v62 = vld [vmem:[%s2279_s29 + $0x174] ss:$8 sps:$4 sm:$0xff]   ;;  %v2131_v0 = vld [vmem:[%s2279_s29 + $0x170] ss:$8 sps:$4 sm:$0xff]   ;;  %v2134_v2 = vld [vmem:[%s2279_s29 + $0x184] ss:$8 sps:$4 sm:$0xff]  }
  0x30   : > { %v2136_v3 = vld [vmem:[%s2279_s29 + $0x80] ss:$8 sps:$4 sm:$0xff]   ;;  %v2138_v5 = vld [vmem:[%s2279_s29 + $0x94] ss:$8 sps:$4 sm:$0xff]   ;;  %v2142_v7 = vld [vmem:[%s2279_s29 + $0x90] ss:$8 sps:$4 sm:$0xff]  }
  0x31   : > { %1798 = vmatpush3.bf16.msra.mxu0 %v2074_v23  ;;  %v2137_v4 = vld [vmem:[%s2279_s29 + $0x180] ss:$8 sps:$4 sm:$0xff]   ;;  %v2140_v6 = vld [vmem:[%s2279_s29 + $0x194] ss:$8 sps:$4 sm:$0xff]   ;;  %v2143_v8 = vld [vmem:[%s2279_s29 + $0x190] ss:$8 sps:$4 sm:$0xff]  }
  0x32   : > { %1910 = vmatpush3.bf16.msra.mxu1 %v2075_v24  ;;  %1799 = vmatprep.subr.bf16.mxu0 %v2076_v25  ;;  %v2144_v9 = vld [vmem:[%s2279_s29 + $0xa4] ss:$8 sps:$4 sm:$0xff]   ;;  %v2148_v11 = vld [vmem:[%s2279_s29 + $0xa0] ss:$8 sps:$4 sm:$0xff]   ;;  %v2150_v13 = vld [vmem:[%s2279_s29 + $0xb4] ss:$8 sps:$4 sm:$0xff]  }
  0x33   : > { %1911 = vmatprep.subr.bf16.mxu1 %v2077_v26  ;;  %v2146_v10 = vld [vmem:[%s2279_s29 + $0x1a4] ss:$8 sps:$4 sm:$0xff]   ;;  %v2149_v12 = vld [vmem:[%s2279_s29 + $0x1a0] ss:$8 sps:$4 sm:$0xff]   ;;  %v2152_v14 = vld [vmem:[%s2279_s29 + $0x1b4] ss:$8 sps:$4 sm:$0xff]  }
  0x34   : > { %v2154_v15 = vld [vmem:[%s2279_s29 + $0xb0] ss:$8 sps:$4 sm:$0xff]   ;;  %v2156_v17 = vld [vmem:[%s2279_s29 + $0xc4] ss:$8 sps:$4 sm:$0xff]   ;;  %v2160_v19 = vld [vmem:[%s2279_s29 + $0xc0] ss:$8 sps:$4 sm:$0xff]  }
  0x35   : > { %1800 = vmatpush3.bf16.msra.mxu0 %v2078_v27  ;;  %v2155_v16 = vld [vmem:[%s2279_s29 + $0x1b0] ss:$8 sps:$4 sm:$0xff]   ;;  %v2158_v18 = vld [vmem:[%s2279_s29 + $0x1c4] ss:$8 sps:$4 sm:$0xff]   ;;  %v2161_v20 = vld [vmem:[%s2279_s29 + $0x1c0] ss:$8 sps:$4 sm:$0xff]  }
  0x36   : > { %1912 = vmatpush3.bf16.msra.mxu1 %v2079_v28  ;;  %1801 = vmatprep.subr.bf16.mxu0 %v2080_v29  ;;  %v2162_v21 = vld [vmem:[%s2279_s29 + $0xd4] ss:$8 sps:$4 sm:$0xff]   ;;  %v2166_v23 = vld [vmem:[%s2279_s29 + $0xd0] ss:$8 sps:$4 sm:$0xff]   ;;  %v2168_v25 = vld [vmem:[%s2279_s29 + $0xe4] ss:$8 sps:$4 sm:$0xff]  }
  0x37   : > { %1913 = vmatprep.subr.bf16.mxu1 %v2081_v30  ;;  %v2164_v22 = vld [vmem:[%s2279_s29 + $0x1d4] ss:$8 sps:$4 sm:$0xff]   ;;  %v2167_v24 = vld [vmem:[%s2279_s29 + $0x1d0] ss:$8 sps:$4 sm:$0xff]   ;;  %v2170_v26 = vld [vmem:[%s2279_s29 + $0x1e4] ss:$8 sps:$4 sm:$0xff]  }
  0x38   : > { %v2172_v27 = vld [vmem:[%s2279_s29 + $0xe0] ss:$8 sps:$4 sm:$0xff]   ;;  %v2174_v29 = vld [vmem:[%s2279_s29 + $0xf4] ss:$8 sps:$4 sm:$0xff]  }
  0x39   : > { %1802 = vmatpush3.bf16.msra.mxu0 %v2082_v31  ;;  %v2173_v28 = vld [vmem:[%s2279_s29 + $0x1e0] ss:$8 sps:$4 sm:$0xff]   ;;  %v2176_v30 = vld [vmem:[%s2279_s29 + $0x1f4] ss:$8 sps:$4 sm:$0xff]   ;;  %v2178_v31 = vld [vmem:[%s2279_s29 + $0xf0] ss:$8 sps:$4 sm:$0xff]  }
  0x3a   : > { %1914 = vmatpush3.bf16.msra.mxu1 %v2083_v32  ;;  %v2179_v32 = vld [vmem:[%s2279_s29 + $0x1f0] ss:$8 sps:$4 sm:$0xff]  }
  0x3c   : > { %583 = vmatmul.mubr.bf16.vlgmr.msra.gmra.mrb[0].mxu0 %v2084_v33 }
  0x3d   : > { %1096 = vmatmul.mubr.bf16.vlgmr.msra.gmra.mrb[0].mxu1 %v2087_v35  ;;  %590 = vmatprep.mubr.bf16.mxu0 %v2090_v37 }
  0x3e   : > { %1103 = vmatprep.mubr.bf16.mxu1 %v2092_v38 }
  0x44   : > { %591 = vmatmul.mubr.bf16.gmra.mrb[4].mxu0 %v2094_v39 }
  0x45   : > { %1104 = vmatmul.mubr.bf16.gmra.mrb[4].mxu1 %v2095_v40  ;;  %598 = vmatprep.mubr.bf16.mxu0 %v2096_v41 }
  0x46   : > { %1111 = vmatprep.mubr.bf16.mxu1 %v2098_v42 }
  0x4c   : > { %599 = vmatmul.mubr.bf16.gmra.mrb[8].mxu0 %v2100_v43 }
  0x4d   : > { %1112 = vmatmul.mubr.bf16.gmra.mrb[8].mxu1 %v2101_v44  ;;  %606 = vmatprep.mubr.bf16.mxu0 %v2102_v45 }
  0x4e   : > { %1119 = vmatprep.mubr.bf16.mxu1 %v2104_v46 }
  0x54   : > { %607 = vmatmul.mubr.bf16.gmra.mrb[12].mxu0 %v2106_v47 }
  0x55   : > { %1120 = vmatmul.mubr.bf16.gmra.mrb[12].mxu1 %v2107_v48  ;;  %614 = vmatprep.mubr.bf16.mxu0 %v2108_v49 }
  0x56   : > { %1127 = vmatprep.mubr.bf16.mxu1 %v2110_v50 }
  0x5c   : > { %615 = vmatmul.mubr.bf16.gmra.mrb[16].mxu0 %v2112_v51 }
  0x5d   : > { %1128 = vmatmul.mubr.bf16.gmra.mrb[16].mxu1 %v2113_v52  ;;  %622 = vmatprep.mubr.bf16.mxu0 %v2114_v53 }
  0x5e   : > { %1135 = vmatprep.mubr.bf16.mxu1 %v2116_v54 }
  0x64   : > { %623 = vmatmul.mubr.bf16.gmra.mrb[20].mxu0 %v2118_v55 }
  0x65   : > { %1136 = vmatmul.mubr.bf16.gmra.mrb[20].mxu1 %v2119_v56  ;;  %630 = vmatprep.mubr.bf16.mxu0 %v2120_v57 }
  0x66   : > { %1143 = vmatprep.mubr.bf16.mxu1 %v2122_v58 }
  0x6c   : > { %631 = vmatmul.mubr.bf16.gmra.mrb[24].mxu0 %v2124_v59 }
  0x6d   : > { %1144 = vmatmul.mubr.bf16.gmra.mrb[24].mxu1 %v2125_v60  ;;  %638 = vmatprep.mubr.bf16.mxu0 %v2126_v61 }
  0x6e   : > { %1151 = vmatprep.mubr.bf16.mxu1 %v2128_v62 }
  0x74   : > { %639 = vmatmul.mubr.bf16.gmra.mrb[28].mxu0 %v2130_v63 }
  0x75   : > { %1152 = vmatmul.mubr.bf16.gmra.mrb[28].mxu1 %v2131_v0  ;;  %646 = vmatprep.mubr.bf16.mxu0 %v2132_v1 }
  0x76   : > { %1159 = vmatprep.mubr.bf16.mxu1 %v2134_v2 }
  0x7c   : > { %647 = vmatmul.mubr.bf16.gmra.mrb[32].mxu0 %v2136_v3 }
  0x7d   : > { %1160 = vmatmul.mubr.bf16.gmra.mrb[32].mxu1 %v2137_v4  ;;  %654 = vmatprep.mubr.bf16.mxu0 %v2138_v5 }
  0x7e   : > { %1167 = vmatprep.mubr.bf16.mxu1 %v2140_v6 }
  0x84   : > { %655 = vmatmul.mubr.bf16.gmra.mrb[36].mxu0 %v2142_v7 }
  0x85   : > { %1168 = vmatmul.mubr.bf16.gmra.mrb[36].mxu1 %v2143_v8  ;;  %662 = vmatprep.mubr.bf16.mxu0 %v2144_v9 }
  0x86   : > { %1175 = vmatprep.mubr.bf16.mxu1 %v2146_v10 }
  0x8c   : > { %663 = vmatmul.mubr.bf16.gmra.mrb[40].mxu0 %v2148_v11 }
  0x8d   : > { %1176 = vmatmul.mubr.bf16.gmra.mrb[40].mxu1 %v2149_v12  ;;  %670 = vmatprep.mubr.bf16.mxu0 %v2150_v13 }
  0x8e   : > { %1183 = vmatprep.mubr.bf16.mxu1 %v2152_v14 }
  0x94   : > { %671 = vmatmul.mubr.bf16.gmra.mrb[44].mxu0 %v2154_v15 }
  0x95   : > { %1184 = vmatmul.mubr.bf16.gmra.mrb[44].mxu1 %v2155_v16  ;;  %678 = vmatprep.mubr.bf16.mxu0 %v2156_v17 }
  0x96   : > { %1191 = vmatprep.mubr.bf16.mxu1 %v2158_v18 }
  0x9c   : > { %679 = vmatmul.mubr.bf16.gmra.mrb[48].mxu0 %v2160_v19 }
  0x9d   : > { %1192 = vmatmul.mubr.bf16.gmra.mrb[48].mxu1 %v2161_v20  ;;  %686 = vmatprep.mubr.bf16.mxu0 %v2162_v21 }
  0x9e   : > { %1199 = vmatprep.mubr.bf16.mxu1 %v2164_v22 }
  0xa4   : > { %687 = vmatmul.mubr.bf16.gmra.mrb[52].mxu0 %v2166_v23 }
  0xa5   : > { %1200 = vmatmul.mubr.bf16.gmra.mrb[52].mxu1 %v2167_v24  ;;  %694 = vmatprep.mubr.bf16.mxu0 %v2168_v25 }
  0xa6   : > { %1207 = vmatprep.mubr.bf16.mxu1 %v2170_v26 }
  0xac   : > { %695 = vmatmul.mubr.bf16.gmra.mrb[56].mxu0 %v2172_v27 }
  0xad   : > { %1208 = vmatmul.mubr.bf16.gmra.mrb[56].mxu1 %v2173_v28  ;;  %702 = vmatprep.mubr.bf16.mxu0 %v2174_v29 }
  0xae   : > { %1215 = vmatprep.mubr.bf16.mxu1 %v2176_v30 }
  0xb4   : > { %703 = vmatmul.mubr.bf16.gmra.mrb[60].mxu0 %v2178_v31 }
  0xb5   : > { %1216 = vmatmul.mubr.bf16.gmra.mrb[60].mxu1 %v2179_v32 }
 0x10f   : > { %v1803_v33 = vpop.f32.mrb[0].mxu0 }
 0x110   : > { %v1804_v34 = vpop.f32.mrb[1].mxu0  ;;  %v1915_v35 = vpop.f32.mrb[0].mxu1 }
 0x111   : > { %v1805_v36 = vadd.f32 %v1804_v34, %v1803_v33  ;;  %v1806_v37 = vpop.f32.mrb[2].mxu0  ;;  %v1916_v38 = vpop.f32.mrb[1].mxu1 }
 0x112   : > { %v1917_v39 = vadd.f32 %v1916_v38, %v1915_v35  ;;  %v1807_v40 = vpop.f32.mrb[3].mxu0  ;;  %v1918_v41 = vpop.f32.mrb[2].mxu1 }
 0x113   : > { %711 = vst [vmem:[%s2284_s5] sm:$0xff] %v1805_v36  ;;  %v1808_v42 = vadd.f32 %v1807_v40, %v1806_v37  ;;  %v1919_v43 = vpop.f32.mrb[3].mxu1  ;;  %v1294_v46 = vmul.f32 %v1805_v36, %v1805_v36 }
 0x114   : > { %1224 = vst [vmem:[%s2284_s5 + $0x100] sm:$0xff] %v1917_v39  ;;  %v1446_v44 = vmul.f32 %v1917_v39, %v1917_v39  ;;  %v1920_v45 = vadd.f32 %v1919_v43, %v1918_v41 }
 0x115   : > { %712 = vst [vmem:[%s2284_s5 + $0x8] sm:$0xff] %v1808_v42  ;;  %v1272_v47 = vadd.f32 %v1808_v42, %v1805_v36  ;;  %v1295_v48 = vmul.f32 %v1808_v42, %v1808_v42 }
 0x116   : > { %1225 = vst [vmem:[%s2284_s5 + $0x108] sm:$0xff] %v1920_v45  ;;  %v1424_v49 = vadd.f32 %v1920_v45, %v1917_v39  ;;  %v1447_v50 = vmul.f32 %v1920_v45, %v1920_v45 }
 0x117   : > { %v1310_v51 = vadd.f32 %v1295_v48, %v1294_v46  ;;  %v1809_v52 = vpop.f32.mrb[4].mxu0 }
 0x118   : > { %v1462_v53 = vadd.f32 %v1447_v50, %v1446_v44  ;;  %v1921_v54 = vpop.f32.mrb[4].mxu1  ;;  %v1810_v55 = vpop.f32.mrb[5].mxu0 }
 0x119   : > { %v1811_v56 = vadd.f32 %v1810_v55, %v1809_v52  ;;  %v1922_v57 = vpop.f32.mrb[5].mxu1  ;;  %v1812_v58 = vpop.f32.mrb[6].mxu0 }
 0x11a   : > { %v1923_v59 = vadd.f32 %v1922_v57, %v1921_v54  ;;  %v1924_v60 = vpop.f32.mrb[6].mxu1  ;;  %v1813_v61 = vpop.f32.mrb[7].mxu0 }
 0x11b   : > { %713 = vst [vmem:[%s2284_s5 + $0x10] sm:$0xff] %v1811_v56  ;;  %v1273_v62 = vadd.f32 %v1811_v56, %v1272_v47  ;;  %v1296_v63 = vmul.f32 %v1811_v56, %v1811_v56  ;;  %v1814_v0 = vadd.f32 %v1813_v61, %v1812_v58  ;;  %v1925_v1 = vpop.f32.mrb[7].mxu1 }
 0x11c   : > { %1226 = vst [vmem:[%s2284_s5 + $0x110] sm:$0xff] %v1923_v59  ;;  %v1425_v2 = vadd.f32 %v1923_v59, %v1424_v49  ;;  %v1448_v3 = vmul.f32 %v1923_v59, %v1923_v59  ;;  %v1926_v4 = vadd.f32 %v1925_v1, %v1924_v60 }
 0x11d   : > { %v1311_v5 = vadd.f32 %v1310_v51, %v1296_v63  ;;  %714 = vst [vmem:[%s2284_s5 + $0x18] sm:$0xff] %v1814_v0  ;;  %v1274_v6 = vadd.f32 %v1814_v0, %v1273_v62  ;;  %v1297_v7 = vmul.f32 %v1814_v0, %v1814_v0 }
 0x11e   : > { %v1463_v8 = vadd.f32 %v1462_v53, %v1448_v3  ;;  %1227 = vst [vmem:[%s2284_s5 + $0x118] sm:$0xff] %v1926_v4  ;;  %v1426_v9 = vadd.f32 %v1926_v4, %v1425_v2  ;;  %v1449_v10 = vmul.f32 %v1926_v4, %v1926_v4 }
 0x11f   : > { %v1312_v11 = vadd.f32 %v1311_v5, %v1297_v7  ;;  %v1815_v12 = vpop.f32.mrb[8].mxu0 }
 0x120   : > { %v1464_v13 = vadd.f32 %v1463_v8, %v1449_v10  ;;  %v1927_v14 = vpop.f32.mrb[8].mxu1  ;;  %v1816_v15 = vpop.f32.mrb[9].mxu0 }
 0x121   : > { %v1817_v16 = vadd.f32 %v1816_v15, %v1815_v12  ;;  %v1928_v17 = vpop.f32.mrb[9].mxu1  ;;  %v1818_v18 = vpop.f32.mrb[10].mxu0 }
 0x122   : > { %v1929_v19 = vadd.f32 %v1928_v17, %v1927_v14  ;;  %v1930_v20 = vpop.f32.mrb[10].mxu1  ;;  %v1819_v21 = vpop.f32.mrb[11].mxu0 }
 0x123   : > { %715 = vst [vmem:[%s2284_s5 + $0x20] sm:$0xff] %v1817_v16  ;;  %v1275_v22 = vadd.f32 %v1817_v16, %v1274_v6  ;;  %v1298_v23 = vmul.f32 %v1817_v16, %v1817_v16  ;;  %v1820_v24 = vadd.f32 %v1819_v21, %v1818_v18  ;;  %v1931_v25 = vpop.f32.mrb[11].mxu1 }
 0x124   : > { %1228 = vst [vmem:[%s2284_s5 + $0x120] sm:$0xff] %v1929_v19  ;;  %v1427_v26 = vadd.f32 %v1929_v19, %v1426_v9  ;;  %v1450_v27 = vmul.f32 %v1929_v19, %v1929_v19  ;;  %v1932_v28 = vadd.f32 %v1931_v25, %v1930_v20 }
 0x125   : > { %v1313_v29 = vadd.f32 %v1312_v11, %v1298_v23  ;;  %716 = vst [vmem:[%s2284_s5 + $0x28] sm:$0xff] %v1820_v24  ;;  %v1276_v30 = vadd.f32 %v1820_v24, %v1275_v22  ;;  %v1299_v31 = vmul.f32 %v1820_v24, %v1820_v24 }
 0x126   : > { %v1465_v32 = vadd.f32 %v1464_v13, %v1450_v27  ;;  %1229 = vst [vmem:[%s2284_s5 + $0x128] sm:$0xff] %v1932_v28  ;;  %v1428_v33 = vadd.f32 %v1932_v28, %v1427_v26  ;;  %v1451_v34 = vmul.f32 %v1932_v28, %v1932_v28 }
 0x127   : > { %v1314_v35 = vadd.f32 %v1313_v29, %v1299_v31  ;;  %v1821_v36 = vpop.f32.mrb[12].mxu0 }
 0x128   : > { %v1466_v37 = vadd.f32 %v1465_v32, %v1451_v34  ;;  %v1933_v38 = vpop.f32.mrb[12].mxu1  ;;  %v1822_v39 = vpop.f32.mrb[13].mxu0 }
 0x129   : > { %v1823_v40 = vadd.f32 %v1822_v39, %v1821_v36  ;;  %v1934_v41 = vpop.f32.mrb[13].mxu1  ;;  %v1824_v42 = vpop.f32.mrb[14].mxu0 }
 0x12a   : > { %v1935_v43 = vadd.f32 %v1934_v41, %v1933_v38  ;;  %v1936_v44 = vpop.f32.mrb[14].mxu1  ;;  %v1825_v45 = vpop.f32.mrb[15].mxu0 }
 0x12b   : > { %717 = vst [vmem:[%s2284_s5 + $0x30] sm:$0xff] %v1823_v40  ;;  %v1277_v46 = vadd.f32 %v1823_v40, %v1276_v30  ;;  %v1300_v47 = vmul.f32 %v1823_v40, %v1823_v40  ;;  %v1826_v48 = vadd.f32 %v1825_v45, %v1824_v42  ;;  %v1937_v49 = vpop.f32.mrb[15].mxu1 }
 0x12c   : > { %1230 = vst [vmem:[%s2284_s5 + $0x130] sm:$0xff] %v1935_v43  ;;  %v1429_v50 = vadd.f32 %v1935_v43, %v1428_v33  ;;  %v1452_v51 = vmul.f32 %v1935_v43, %v1935_v43  ;;  %v1938_v52 = vadd.f32 %v1937_v49, %v1936_v44 }
 0x12d   : > { %v1315_v53 = vadd.f32 %v1314_v35, %v1300_v47  ;;  %718 = vst [vmem:[%s2284_s5 + $0x38] sm:$0xff] %v1826_v48  ;;  %v1278_v54 = vadd.f32 %v1826_v48, %v1277_v46  ;;  %v1301_v55 = vmul.f32 %v1826_v48, %v1826_v48 }
 0x12e   : > { %v1467_v56 = vadd.f32 %v1466_v37, %v1452_v51  ;;  %1231 = vst [vmem:[%s2284_s5 + $0x138] sm:$0xff] %v1938_v52  ;;  %v1430_v57 = vadd.f32 %v1938_v52, %v1429_v50  ;;  %v1453_v58 = vmul.f32 %v1938_v52, %v1938_v52 }
 0x12f   : > { %v1316_v59 = vadd.f32 %v1315_v53, %v1301_v55  ;;  %v1827_v60 = vpop.f32.mrb[16].mxu0 }
 0x130   : > { %v1468_v61 = vadd.f32 %v1467_v56, %v1453_v58  ;;  %v1939_v62 = vpop.f32.mrb[16].mxu1  ;;  %v1828_v63 = vpop.f32.mrb[17].mxu0 }
 0x131   : > { %v1829_v0 = vadd.f32 %v1828_v63, %v1827_v60  ;;  %v1940_v1 = vpop.f32.mrb[17].mxu1  ;;  %v1830_v2 = vpop.f32.mrb[18].mxu0 }
 0x132   : > { %v1941_v3 = vadd.f32 %v1940_v1, %v1939_v62  ;;  %v1942_v4 = vpop.f32.mrb[18].mxu1  ;;  %v1831_v5 = vpop.f32.mrb[19].mxu0 }
 0x133   : > { %719 = vst [vmem:[%s2284_s5 + $0x40] sm:$0xff] %v1829_v0  ;;  %v1279_v6 = vadd.f32 %v1829_v0, %v1278_v54  ;;  %v1302_v7 = vmul.f32 %v1829_v0, %v1829_v0  ;;  %v1832_v8 = vadd.f32 %v1831_v5, %v1830_v2  ;;  %v1943_v9 = vpop.f32.mrb[19].mxu1 }
 0x134   : > { %1232 = vst [vmem:[%s2284_s5 + $0x140] sm:$0xff] %v1941_v3  ;;  %v1431_v10 = vadd.f32 %v1941_v3, %v1430_v57  ;;  %v1454_v11 = vmul.f32 %v1941_v3, %v1941_v3  ;;  %v1944_v12 = vadd.f32 %v1943_v9, %v1942_v4 }
 0x135   : > { %v1317_v13 = vadd.f32 %v1316_v59, %v1302_v7  ;;  %720 = vst [vmem:[%s2284_s5 + $0x48] sm:$0xff] %v1832_v8  ;;  %v1280_v14 = vadd.f32 %v1832_v8, %v1279_v6  ;;  %v1303_v15 = vmul.f32 %v1832_v8, %v1832_v8 }
 0x136   : > { %v1469_v16 = vadd.f32 %v1468_v61, %v1454_v11  ;;  %1233 = vst [vmem:[%s2284_s5 + $0x148] sm:$0xff] %v1944_v12  ;;  %v1432_v17 = vadd.f32 %v1944_v12, %v1431_v10  ;;  %v1455_v18 = vmul.f32 %v1944_v12, %v1944_v12 }
 0x137   : > { %v1318_v19 = vadd.f32 %v1317_v13, %v1303_v15  ;;  %v1833_v20 = vpop.f32.mrb[20].mxu0 }
 0x138   : > { %v1470_v21 = vadd.f32 %v1469_v16, %v1455_v18  ;;  %v1945_v22 = vpop.f32.mrb[20].mxu1  ;;  %v1834_v23 = vpop.f32.mrb[21].mxu0 }
 0x139   : > { %v1835_v24 = vadd.f32 %v1834_v23, %v1833_v20  ;;  %v1946_v25 = vpop.f32.mrb[21].mxu1  ;;  %v1836_v26 = vpop.f32.mrb[22].mxu0 }
 0x13a   : > { %v1947_v27 = vadd.f32 %v1946_v25, %v1945_v22  ;;  %v1948_v28 = vpop.f32.mrb[22].mxu1  ;;  %v1837_v29 = vpop.f32.mrb[23].mxu0 }
 0x13b   : > { %721 = vst [vmem:[%s2284_s5 + $0x50] sm:$0xff] %v1835_v24  ;;  %v1281_v30 = vadd.f32 %v1835_v24, %v1280_v14  ;;  %v1304_v31 = vmul.f32 %v1835_v24, %v1835_v24  ;;  %v1838_v32 = vadd.f32 %v1837_v29, %v1836_v26  ;;  %v1949_v33 = vpop.f32.mrb[23].mxu1 }
 0x13c   : > { %1234 = vst [vmem:[%s2284_s5 + $0x150] sm:$0xff] %v1947_v27  ;;  %v1433_v34 = vadd.f32 %v1947_v27, %v1432_v17  ;;  %v1456_v35 = vmul.f32 %v1947_v27, %v1947_v27  ;;  %v1950_v36 = vadd.f32 %v1949_v33, %v1948_v28 }
 0x13d   : > { %v1319_v37 = vadd.f32 %v1318_v19, %v1304_v31  ;;  %722 = vst [vmem:[%s2284_s5 + $0x58] sm:$0xff] %v1838_v32  ;;  %v1282_v38 = vadd.f32 %v1838_v32, %v1281_v30  ;;  %v1305_v39 = vmul.f32 %v1838_v32, %v1838_v32 }
 0x13e   : > { %v1471_v40 = vadd.f32 %v1470_v21, %v1456_v35  ;;  %1235 = vst [vmem:[%s2284_s5 + $0x158] sm:$0xff] %v1950_v36  ;;  %v1434_v41 = vadd.f32 %v1950_v36, %v1433_v34  ;;  %v1457_v42 = vmul.f32 %v1950_v36, %v1950_v36 }
 0x13f   : > { %v1320_v43 = vadd.f32 %v1319_v37, %v1305_v39  ;;  %v1839_v44 = vpop.f32.mrb[24].mxu0 }
 0x140   : > { %v1472_v45 = vadd.f32 %v1471_v40, %v1457_v42  ;;  %v1951_v46 = vpop.f32.mrb[24].mxu1  ;;  %v1840_v47 = vpop.f32.mrb[25].mxu0 }
 0x141   : > { %v1841_v48 = vadd.f32 %v1840_v47, %v1839_v44  ;;  %v1952_v49 = vpop.f32.mrb[25].mxu1  ;;  %v1842_v50 = vpop.f32.mrb[26].mxu0 }
 0x142   : > { %v1953_v51 = vadd.f32 %v1952_v49, %v1951_v46  ;;  %v1954_v52 = vpop.f32.mrb[26].mxu1  ;;  %v1843_v53 = vpop.f32.mrb[27].mxu0 }
 0x143   : > { %723 = vst [vmem:[%s2284_s5 + $0x60] sm:$0xff] %v1841_v48  ;;  %v1283_v54 = vadd.f32 %v1841_v48, %v1282_v38  ;;  %v1306_v55 = vmul.f32 %v1841_v48, %v1841_v48  ;;  %v1844_v56 = vadd.f32 %v1843_v53, %v1842_v50  ;;  %v1955_v57 = vpop.f32.mrb[27].mxu1 }
 0x144   : > { %1236 = vst [vmem:[%s2284_s5 + $0x160] sm:$0xff] %v1953_v51  ;;  %v1435_v58 = vadd.f32 %v1953_v51, %v1434_v41  ;;  %v1458_v59 = vmul.f32 %v1953_v51, %v1953_v51  ;;  %v1956_v60 = vadd.f32 %v1955_v57, %v1954_v52 }
 0x145   : > { %v1321_v61 = vadd.f32 %v1320_v43, %v1306_v55  ;;  %724 = vst [vmem:[%s2284_s5 + $0x68] sm:$0xff] %v1844_v56  ;;  %v1284_v62 = vadd.f32 %v1844_v56, %v1283_v54  ;;  %v1307_v63 = vmul.f32 %v1844_v56, %v1844_v56 }
 0x146   : > { %v1473_v0 = vadd.f32 %v1472_v45, %v1458_v59  ;;  %1237 = vst [vmem:[%s2284_s5 + $0x168] sm:$0xff] %v1956_v60  ;;  %v1436_v1 = vadd.f32 %v1956_v60, %v1435_v58  ;;  %v1459_v2 = vmul.f32 %v1956_v60, %v1956_v60 }
 0x147   : > { %v1322_v3 = vadd.f32 %v1321_v61, %v1307_v63  ;;  %v1845_v4 = vpop.f32.mrb[28].mxu0 }
 0x148   : > { %v1474_v5 = vadd.f32 %v1473_v0, %v1459_v2  ;;  %v1957_v6 = vpop.f32.mrb[28].mxu1  ;;  %v1846_v7 = vpop.f32.mrb[29].mxu0 }
 0x149   : > { %v1847_v8 = vadd.f32 %v1846_v7, %v1845_v4  ;;  %v1958_v9 = vpop.f32.mrb[29].mxu1  ;;  %v1848_v10 = vpop.f32.mrb[30].mxu0 }
 0x14a   : > { %v1959_v11 = vadd.f32 %v1958_v9, %v1957_v6  ;;  %v1960_v12 = vpop.f32.mrb[30].mxu1  ;;  %v1849_v13 = vpop.f32.mrb[31].mxu0 }
 0x14b   : > { %725 = vst [vmem:[%s2284_s5 + $0x70] sm:$0xff] %v1847_v8  ;;  %v1285_v14 = vadd.f32 %v1847_v8, %v1284_v62  ;;  %v1308_v15 = vmul.f32 %v1847_v8, %v1847_v8  ;;  %v1850_v16 = vadd.f32 %v1849_v13, %v1848_v10  ;;  %v1961_v17 = vpop.f32.mrb[31].mxu1 }
 0x14c   : > { %1238 = vst [vmem:[%s2284_s5 + $0x170] sm:$0xff] %v1959_v11  ;;  %v1437_v18 = vadd.f32 %v1959_v11, %v1436_v1  ;;  %v1460_v19 = vmul.f32 %v1959_v11, %v1959_v11  ;;  %v1962_v20 = vadd.f32 %v1961_v17, %v1960_v12 }
 0x14d   : > { %v1323_v21 = vadd.f32 %v1322_v3, %v1308_v15  ;;  %726 = vst [vmem:[%s2284_s5 + $0x78] sm:$0xff] %v1850_v16  ;;  %v2478_v22 = vadd.f32 %v1850_v16, %v1285_v14  ;;  %v1309_v23 = vmul.f32 %v1850_v16, %v1850_v16 }
 0x14e   : > { %v1475_v24 = vadd.f32 %v1474_v5, %v1460_v19  ;;  %1239 = vst [vmem:[%s2284_s5 + $0x178] sm:$0xff] %v1962_v20  ;;  %v2481_v25 = vadd.f32 %v1962_v20, %v1437_v18  ;;  %v1461_v26 = vmul.f32 %v1962_v20, %v1962_v20 }
 0x14f   : > { %v2483_v27 = vadd.f32 %v1323_v21, %v1309_v23  ;;  %v1851_v28 = vpop.f32.mrb[32].mxu0 }
 0x150   : > { %v2485_v29 = vadd.f32 %v1475_v24, %v1461_v26  ;;  %v1852_v30 = vpop.f32.mrb[33].mxu0  ;;  %v1963_v31 = vpop.f32.mrb[32].mxu1 }
 0x151   : > { %v1853_v32 = vadd.f32 %v1852_v30, %v1851_v28  ;;  %v1854_v33 = vpop.f32.mrb[34].mxu0  ;;  %v1964_v34 = vpop.f32.mrb[33].mxu1 }
 0x152   : > { %v1965_v35 = vadd.f32 %v1964_v34, %v1963_v31  ;;  %v1855_v36 = vpop.f32.mrb[35].mxu0  ;;  %v1966_v37 = vpop.f32.mrb[34].mxu1 }
 0x153   : > { %727 = vst [vmem:[%s2284_s5 + $0x80] sm:$0xff] %v1853_v32  ;;  %v1856_v38 = vadd.f32 %v1855_v36, %v1854_v33  ;;  %v1967_v39 = vpop.f32.mrb[35].mxu1  ;;  %v1370_v42 = vmul.f32 %v1853_v32, %v1853_v32 }
 0x154   : > { %1240 = vst [vmem:[%s2284_s5 + $0x180] sm:$0xff] %v1965_v35  ;;  %v1522_v40 = vmul.f32 %v1965_v35, %v1965_v35  ;;  %v1968_v41 = vadd.f32 %v1967_v39, %v1966_v37 }
 0x155   : > { %728 = vst [vmem:[%s2284_s5 + $0x88] sm:$0xff] %v1856_v38  ;;  %v1348_v43 = vadd.f32 %v1856_v38, %v1853_v32  ;;  %v1371_v44 = vmul.f32 %v1856_v38, %v1856_v38 }
 0x156   : > { %1241 = vst [vmem:[%s2284_s5 + $0x188] sm:$0xff] %v1968_v41  ;;  %v1500_v45 = vadd.f32 %v1968_v41, %v1965_v35  ;;  %v1523_v46 = vmul.f32 %v1968_v41, %v1968_v41 }
 0x157   : > { %v1386_v47 = vadd.f32 %v1371_v44, %v1370_v42  ;;  %v1857_v48 = vpop.f32.mrb[36].mxu0 }
 0x158   : > { %v1538_v49 = vadd.f32 %v1523_v46, %v1522_v40  ;;  %v1969_v50 = vpop.f32.mrb[36].mxu1  ;;  %v1858_v51 = vpop.f32.mrb[37].mxu0 }
 0x159   : > { %v1859_v52 = vadd.f32 %v1858_v51, %v1857_v48  ;;  %v1970_v53 = vpop.f32.mrb[37].mxu1  ;;  %v1860_v54 = vpop.f32.mrb[38].mxu0 }
 0x15a   : > { %v1971_v55 = vadd.f32 %v1970_v53, %v1969_v50  ;;  %v1972_v56 = vpop.f32.mrb[38].mxu1  ;;  %v1861_v57 = vpop.f32.mrb[39].mxu0 }
 0x15b   : > { %729 = vst [vmem:[%s2284_s5 + $0x90] sm:$0xff] %v1859_v52  ;;  %v1349_v58 = vadd.f32 %v1859_v52, %v1348_v43  ;;  %v1372_v59 = vmul.f32 %v1859_v52, %v1859_v52  ;;  %v1862_v60 = vadd.f32 %v1861_v57, %v1860_v54  ;;  %v1973_v61 = vpop.f32.mrb[39].mxu1 }
 0x15c   : > { %1242 = vst [vmem:[%s2284_s5 + $0x190] sm:$0xff] %v1971_v55  ;;  %v1501_v62 = vadd.f32 %v1971_v55, %v1500_v45  ;;  %v1524_v63 = vmul.f32 %v1971_v55, %v1971_v55  ;;  %v1974_v0 = vadd.f32 %v1973_v61, %v1972_v56 }
 0x15d   : > { %v1387_v1 = vadd.f32 %v1386_v47, %v1372_v59  ;;  %730 = vst [vmem:[%s2284_s5 + $0x98] sm:$0xff] %v1862_v60  ;;  %v1350_v2 = vadd.f32 %v1862_v60, %v1349_v58  ;;  %v1373_v3 = vmul.f32 %v1862_v60, %v1862_v60 }
 0x15e   : > { %v1539_v4 = vadd.f32 %v1538_v49, %v1524_v63  ;;  %1243 = vst [vmem:[%s2284_s5 + $0x198] sm:$0xff] %v1974_v0  ;;  %v1502_v5 = vadd.f32 %v1974_v0, %v1501_v62  ;;  %v1525_v6 = vmul.f32 %v1974_v0, %v1974_v0 }
 0x15f   : > { %v1388_v7 = vadd.f32 %v1387_v1, %v1373_v3  ;;  %v1863_v8 = vpop.f32.mrb[40].mxu0 }
 0x160   : > { %v1540_v9 = vadd.f32 %v1539_v4, %v1525_v6  ;;  %v1975_v10 = vpop.f32.mrb[40].mxu1  ;;  %v1864_v11 = vpop.f32.mrb[41].mxu0 }
 0x161   : > { %v1865_v12 = vadd.f32 %v1864_v11, %v1863_v8  ;;  %v1976_v13 = vpop.f32.mrb[41].mxu1  ;;  %v1866_v14 = vpop.f32.mrb[42].mxu0 }
 0x162   : > { %v1977_v15 = vadd.f32 %v1976_v13, %v1975_v10  ;;  %v1978_v16 = vpop.f32.mrb[42].mxu1  ;;  %v1867_v17 = vpop.f32.mrb[43].mxu0 }
 0x163   : > { %731 = vst [vmem:[%s2284_s5 + $0xa0] sm:$0xff] %v1865_v12  ;;  %v1351_v18 = vadd.f32 %v1865_v12, %v1350_v2  ;;  %v1374_v19 = vmul.f32 %v1865_v12, %v1865_v12  ;;  %v1868_v20 = vadd.f32 %v1867_v17, %v1866_v14  ;;  %v1979_v21 = vpop.f32.mrb[43].mxu1 }
 0x164   : > { %1244 = vst [vmem:[%s2284_s5 + $0x1a0] sm:$0xff] %v1977_v15  ;;  %v1503_v23 = vadd.f32 %v1977_v15, %v1502_v5  ;;  %v1526_v24 = vmul.f32 %v1977_v15, %v1977_v15  ;;  %v1980_v26 = vadd.f32 %v1979_v21, %v1978_v16 }
 0x165   : > { %v1389_v28 = vadd.f32 %v1388_v7, %v1374_v19  ;;  %732 = vst [vmem:[%s2284_s5 + $0xa8] sm:$0xff] %v1868_v20  ;;  %v1352_v30 = vadd.f32 %v1868_v20, %v1351_v18  ;;  %v1375_v31 = vmul.f32 %v1868_v20, %v1868_v20 }
 0x166   : > { %v1541_v32 = vadd.f32 %v1540_v9, %v1526_v24  ;;  %1245 = vst [vmem:[%s2284_s5 + $0x1a8] sm:$0xff] %v1980_v26  ;;  %v1504_v33 = vadd.f32 %v1980_v26, %v1503_v23  ;;  %v1527_v34 = vmul.f32 %v1980_v26, %v1980_v26 }
 0x167   : > { %v1390_v35 = vadd.f32 %v1389_v28, %v1375_v31  ;;  %v1869_v36 = vpop.f32.mrb[44].mxu0 }
 0x168   : > { %v1542_v37 = vadd.f32 %v1541_v32, %v1527_v34  ;;  %v1981_v38 = vpop.f32.mrb[44].mxu1  ;;  %v1870_v39 = vpop.f32.mrb[45].mxu0 }
 0x169   : > { %v1871_v40 = vadd.f32 %v1870_v39, %v1869_v36  ;;  %v1982_v41 = vpop.f32.mrb[45].mxu1  ;;  %v1872_v42 = vpop.f32.mrb[46].mxu0 }
 0x16a   : > { %v1983_v43 = vadd.f32 %v1982_v41, %v1981_v38  ;;  %v1984_v44 = vpop.f32.mrb[46].mxu1  ;;  %v1873_v45 = vpop.f32.mrb[47].mxu0 }
 0x16b   : > { %733 = vst [vmem:[%s2284_s5 + $0xb0] sm:$0xff] %v1871_v40  ;;  %v1353_v46 = vadd.f32 %v1871_v40, %v1352_v30  ;;  %v1376_v47 = vmul.f32 %v1871_v40, %v1871_v40  ;;  %v1874_v48 = vadd.f32 %v1873_v45, %v1872_v42  ;;  %v1985_v49 = vpop.f32.mrb[47].mxu1 }
 0x16c   : > { %1246 = vst [vmem:[%s2284_s5 + $0x1b0] sm:$0xff] %v1983_v43  ;;  %v1505_v50 = vadd.f32 %v1983_v43, %v1504_v33  ;;  %v1528_v51 = vmul.f32 %v1983_v43, %v1983_v43  ;;  %v1986_v52 = vadd.f32 %v1985_v49, %v1984_v44 }
 0x16d   : > { %v1391_v53 = vadd.f32 %v1390_v35, %v1376_v47  ;;  %734 = vst [vmem:[%s2284_s5 + $0xb8] sm:$0xff] %v1874_v48  ;;  %v1354_v54 = vadd.f32 %v1874_v48, %v1353_v46  ;;  %v1377_v55 = vmul.f32 %v1874_v48, %v1874_v48 }
 0x16e   : > { %v1543_v56 = vadd.f32 %v1542_v37, %v1528_v51  ;;  %1247 = vst [vmem:[%s2284_s5 + $0x1b8] sm:$0xff] %v1986_v52  ;;  %v1506_v57 = vadd.f32 %v1986_v52, %v1505_v50  ;;  %v1529_v58 = vmul.f32 %v1986_v52, %v1986_v52 }
 0x16f   : > { %v1392_v59 = vadd.f32 %v1391_v53, %v1377_v55  ;;  %v1875_v60 = vpop.f32.mrb[48].mxu0 }
 0x170   : > { %v1544_v61 = vadd.f32 %v1543_v56, %v1529_v58  ;;  %v1987_v62 = vpop.f32.mrb[48].mxu1  ;;  %v1876_v63 = vpop.f32.mrb[49].mxu0 }
 0x171   : > { %v1877_v0 = vadd.f32 %v1876_v63, %v1875_v60  ;;  %v1988_v1 = vpop.f32.mrb[49].mxu1  ;;  %v1878_v2 = vpop.f32.mrb[50].mxu0 }
 0x172   : > { %v1989_v3 = vadd.f32 %v1988_v1, %v1987_v62  ;;  %v1990_v4 = vpop.f32.mrb[50].mxu1  ;;  %v1879_v5 = vpop.f32.mrb[51].mxu0  ;;  %v1287_v62 = vrot.slane %v2478_v22, 4 }
 0x173   : > { %735 = vst [vmem:[%s2284_s5 + $0xc0] sm:$0xff] %v1877_v0  ;;  %v1355_v6 = vadd.f32 %v1877_v0, %v1354_v54  ;;  %v1378_v7 = vmul.f32 %v1877_v0, %v1877_v0  ;;  %v1880_v8 = vadd.f32 %v1879_v5, %v1878_v2  ;;  %v1991_v9 = vpop.f32.mrb[51].mxu1  ;;  %v1439_v5 = vrot.slane %v2481_v25, 4 }
 0x174   : > { %1248 = vst [vmem:[%s2284_s5 + $0x1c0] sm:$0xff] %v1989_v3  ;;  %v1507_v10 = vadd.f32 %v1989_v3, %v1506_v57  ;;  %v1530_v11 = vmul.f32 %v1989_v3, %v1989_v3  ;;  %v1992_v12 = vadd.f32 %v1991_v9, %v1990_v4  ;;  %v1325_v9 = vrot.slane %v2483_v27, 4 }
 0x175   : > { %v1393_v13 = vadd.f32 %v1392_v59, %v1378_v7  ;;  %736 = vst [vmem:[%s2284_s5 + $0xc8] sm:$0xff] %v1880_v8  ;;  %v1356_v14 = vadd.f32 %v1880_v8, %v1355_v6  ;;  %v1379_v15 = vmul.f32 %v1880_v8, %v1880_v8 }
 0x176   : > { %v1545_v16 = vadd.f32 %v1544_v61, %v1530_v11  ;;  %1249 = vst [vmem:[%s2284_s5 + $0x1c8] sm:$0xff] %v1992_v12  ;;  %v1508_v17 = vadd.f32 %v1992_v12, %v1507_v10  ;;  %v1531_v18 = vmul.f32 %v1992_v12, %v1992_v12  ;;  %v1288_v12 = vadd.f32 %v1287_v62, %v2478_v22 }
 0x177   : > { %v1394_v19 = vadd.f32 %v1393_v13, %v1379_v15  ;;  %v1881_v20 = vpop.f32.mrb[52].mxu0 }
 0x178   : > { %v1546_v21 = vadd.f32 %v1545_v16, %v1531_v18  ;;  %v1993_v23 = vpop.f32.mrb[52].mxu1  ;;  %v1882_v24 = vpop.f32.mrb[53].mxu0  ;;  %v1477_v16 = vrot.slane %v2485_v29, 4 }
 0x179   : > { %v1883_v26 = vadd.f32 %v1882_v24, %v1881_v20  ;;  %v1994_v28 = vpop.f32.mrb[53].mxu1  ;;  %v1884_v30 = vpop.f32.mrb[54].mxu0  ;;  %v1440_v20 = vadd.f32 %v1439_v5, %v2481_v25 }
 0x17a   : > { %v1995_v31 = vadd.f32 %v1994_v28, %v1993_v23  ;;  %v1996_v32 = vpop.f32.mrb[54].mxu1  ;;  %v1885_v33 = vpop.f32.mrb[55].mxu0 }
 0x17b   : > { %737 = vst [vmem:[%s2284_s5 + $0xd0] sm:$0xff] %v1883_v26  ;;  %v1357_v34 = vadd.f32 %v1883_v26, %v1356_v14  ;;  %v1380_v35 = vmul.f32 %v1883_v26, %v1883_v26  ;;  %v1886_v36 = vadd.f32 %v1885_v33, %v1884_v30  ;;  %v1997_v37 = vpop.f32.mrb[55].mxu1  ;;  %v1326_v26 = vadd.f32 %v1325_v9, %v2483_v27 }
 0x17c   : > { %1250 = vst [vmem:[%s2284_s5 + $0x1d0] sm:$0xff] %v1995_v31  ;;  %v1509_v38 = vadd.f32 %v1995_v31, %v1508_v17  ;;  %v1532_v39 = vmul.f32 %v1995_v31, %v1995_v31  ;;  %v1998_v40 = vadd.f32 %v1997_v37, %v1996_v32  ;;  %v1289_v32 = vrot.slane %v1288_v12, 2 }
 0x17d   : > { %v1395_v41 = vadd.f32 %v1394_v19, %v1380_v35  ;;  %738 = vst [vmem:[%s2284_s5 + $0xd8] sm:$0xff] %v1886_v36  ;;  %v1358_v42 = vadd.f32 %v1886_v36, %v1357_v34  ;;  %v1381_v43 = vmul.f32 %v1886_v36, %v1886_v36  ;;  %v1478_v36 = vadd.f32 %v1477_v16, %v2485_v29 }
 0x17e   : > { %v1547_v44 = vadd.f32 %v1546_v21, %v1532_v39  ;;  %1251 = vst [vmem:[%s2284_s5 + $0x1d8] sm:$0xff] %v1998_v40  ;;  %v1510_v45 = vadd.f32 %v1998_v40, %v1509_v38  ;;  %v1533_v46 = vmul.f32 %v1998_v40, %v1998_v40  ;;  %v1441_v39 = vrot.slane %v1440_v20, 2 }
 0x17f   : > { %v1396_v47 = vadd.f32 %v1395_v41, %v1381_v43  ;;  %v1887_v48 = vpop.f32.mrb[56].mxu0 }
 0x180   : > { %v1548_v49 = vadd.f32 %v1547_v44, %v1533_v46  ;;  %v1999_v50 = vpop.f32.mrb[56].mxu1  ;;  %v1888_v51 = vpop.f32.mrb[57].mxu0 }
 0x181   : > { %v1889_v52 = vadd.f32 %v1888_v51, %v1887_v48  ;;  %v2000_v53 = vpop.f32.mrb[57].mxu1  ;;  %v1890_v54 = vpop.f32.mrb[58].mxu0  ;;  %v1479_v48 = vrot.slane %v1478_v36, 2  ;;  %v1442_v51 = vadd.f32 %v1441_v39, %v1440_v20 }
 0x182   : > { %v2001_v55 = vadd.f32 %v2000_v53, %v1999_v50  ;;  %v2002_v56 = vpop.f32.mrb[58].mxu1  ;;  %v1891_v57 = vpop.f32.mrb[59].mxu0 }
 0x183   : > { %739 = vst [vmem:[%s2284_s5 + $0xe0] sm:$0xff] %v1889_v52  ;;  %v1359_v58 = vadd.f32 %v1889_v52, %v1358_v42  ;;  %v1382_v59 = vmul.f32 %v1889_v52, %v1889_v52  ;;  %v1892_v60 = vadd.f32 %v1891_v57, %v1890_v54  ;;  %v2003_v61 = vpop.f32.mrb[59].mxu1  ;;  %v1327_v42 = vrot.slane %v1326_v26, 2 }
 0x184   : > { %1252 = vst [vmem:[%s2284_s5 + $0x1e0] sm:$0xff] %v2001_v55  ;;  %v1511_v63 = vadd.f32 %v2001_v55, %v1510_v45  ;;  %v1534_v0 = vmul.f32 %v2001_v55, %v2001_v55  ;;  %v2004_v1 = vadd.f32 %v2003_v61, %v2002_v56  ;;  %v1290_v45 = vadd.f32 %v1289_v32, %v1288_v12 }
 0x185   : > { %v1397_v2 = vadd.f32 %v1396_v47, %v1382_v59  ;;  %740 = vst [vmem:[%s2284_s5 + $0xe8] sm:$0xff] %v1892_v60  ;;  %v1360_v3 = vadd.f32 %v1892_v60, %v1359_v58  ;;  %v1383_v4 = vmul.f32 %v1892_v60, %v1892_v60  ;;  %v1328_v53 = vadd.f32 %v1327_v42, %v1326_v26 }
 0x186   : > { %v1549_v6 = vadd.f32 %v1548_v49, %v1534_v0  ;;  %1253 = vst [vmem:[%s2284_s5 + $0x1e8] sm:$0xff] %v2004_v1  ;;  %v1512_v7 = vadd.f32 %v2004_v1, %v1511_v63  ;;  %v1535_v8 = vmul.f32 %v2004_v1, %v2004_v1  ;;  %v1291_v56 = vrot.slane %v1290_v45, 1 }
 0x187   : > { %v1398_v10 = vadd.f32 %v1397_v2, %v1383_v4  ;;  %v1893_v11 = vpop.f32.mrb[60].mxu0  ;;  %v1480_v59 = vadd.f32 %v1479_v48, %v1478_v36  ;;  %v1443_v62 = vrot.slane %v1442_v51, 1  ;;  %v1329_v1 = vrot.slane %v1328_v53, 1 }
 0x188   : > { %v1550_v13 = vadd.f32 %v1549_v6, %v1535_v8  ;;  %v2005_v14 = vpop.f32.mrb[60].mxu1  ;;  %v1894_v15 = vpop.f32.mrb[61].mxu0  ;;  %v1292_v4 = vadd.f32 %v1291_v56, %v1290_v45 }
 0x189   : > { %v1895_v17 = vadd.f32 %v1894_v15, %v1893_v11  ;;  %v2006_v18 = vpop.f32.mrb[61].mxu1  ;;  %v1896_v19 = vpop.f32.mrb[62].mxu0  ;;  %v1481_v6 = vrot.slane %v1480_v59, 1  ;;  %v1330_v11 = vadd.f32 %v1329_v1, %v1328_v53 }
 0x18a   : > { %v2007_v21 = vadd.f32 %v2006_v18, %v2005_v14  ;;  %v2008_v23 = vpop.f32.mrb[62].mxu1  ;;  %v1897_v24 = vpop.f32.mrb[63].mxu0 }
 0x18b   : > { %741 = vst [vmem:[%s2284_s5 + $0xf0] sm:$0xff] %v1895_v17  ;;  %v1361_v28 = vadd.f32 %v1895_v17, %v1360_v3  ;;  %v1384_v22 = vmul.f32 %v1895_v17, %v1895_v17  ;;  %v1898_v30 = vadd.f32 %v1897_v24, %v1896_v19  ;;  %v2009_v31 = vpop.f32.mrb[63].mxu1  ;;  %v1482_v15 = vadd.f32 %v1481_v6, %v1480_v59  ;;  %v1560_v24 = vld [vmem:[%s2274_s26] sm:$0x3] }
 0x18c   : > { %1254 = vst [vmem:[%s2284_s5 + $0x1f0] sm:$0xff] %v2007_v21  ;;  %v1513_v33 = vadd.f32 %v2007_v21, %v1512_v7  ;;  %v1536_v34 = vmul.f32 %v2007_v21, %v2007_v21  ;;  %v2010_v35 = vadd.f32 %v2009_v31, %v2008_v23 }
 0x18d   : > { %v1399_v25 = vadd.f32 %v1398_v10, %v1384_v22  ;;  %742 = vst [vmem:[%s2284_s5 + $0xf8] sm:$0xff] %v1898_v30  ;;  %v1362_v37 = vadd.f32 %v1898_v30, %v1361_v28  ;;  %v1385_v38 = vmul.f32 %v1898_v30, %v1898_v30  ;;  %v1444_v10 = vadd.f32 %v1443_v62, %v1442_v51 }
 0x18e   : > { %v1551_v40 = vadd.f32 %v1550_v13, %v1536_v34  ;;  %1255 = vst [vmem:[%s2284_s5 + $0x1f8] sm:$0xff] %v2010_v35  ;;  %v1514_v27 = vadd.f32 %v2010_v35, %v1513_v33  ;;  %v1537_v41 = vmul.f32 %v2010_v35, %v2010_v35 }
 0x18f   : > { %v1363_v43 = vrot.slane %v1362_v37, 4  ;;  %v1400_v44 = vadd.f32 %v1399_v25, %v1385_v38 }
 0x190   : > { %v1515_v46 = vrot.slane %v1514_v27, 4  ;;  %v1552_v47 = vadd.f32 %v1551_v40, %v1537_v41 }
 0x191   : > { %v1364_v49 = vadd.f32 %v1363_v43, %v1362_v37  ;;  %v1401_v50 = vrot.slane %v1400_v44, 4 }
 0x192   : > { %v1516_v29 = vadd.f32 %v1515_v46, %v1514_v27  ;;  %v1553_v52 = vrot.slane %v1552_v47, 4 }
 0x193   : > { %v1365_v54 = vrot.slane %v1364_v49, 2  ;;  %v1402_v55 = vadd.f32 %v1401_v50, %v1400_v44 }
 0x194   : > { %v1517_v57 = vrot.slane %v1516_v29, 2  ;;  %v1554_v58 = vadd.f32 %v1553_v52, %v1552_v47 }
 0x195   : > { %v1366_v60 = vadd.f32 %v1365_v54, %v1364_v49  ;;  %v1403_v61 = vrot.slane %v1402_v55, 2 }
 0x196   : > { %v1518_v63 = vadd.f32 %v1517_v57, %v1516_v29  ;;  %v1555_v0 = vrot.slane %v1554_v58, 2 }
 0x197   : > { %v1367_v2 = vrot.slane %v1366_v60, 1  ;;  %v1404_v3 = vadd.f32 %v1403_v61, %v1402_v55 }
 0x198   : > { %v1556_v5 = vadd.f32 %v1555_v0, %v1554_v58  ;;  %v1519_v9 = vrot.slane %v1518_v63, 1 }
 0x199   : > { %v1368_v7 = vadd.f32 %v1367_v2, %v1366_v60  ;;  %v1405_v8 = vrot.slane %v1404_v3, 1 }
 0x19a   : > { %v1557_v14 = vrot.slane %v1556_v5, 1  ;;  %v1520_v18 = vadd.f32 %v1519_v9, %v1518_v63 }
 0x19b   : > { %v1369_v12 = vadd.f32 %v1368_v7, %v1292_v4  ;;  %v1406_v13 = vadd.f32 %v1405_v8, %v1404_v3 }
 0x19c   : > { %v1558_v21 = vadd.f32 %v1557_v14, %v1556_v5 }
 0x19d   : > { %v1407_v16 = vadd.f32 %v1406_v13, %v1330_v11  ;;  %v1445_v17 = vadd.f32 %v1444_v10, %v1369_v12 }
 0x19f   : > { %v1483_v19 = vadd.f32 %v1482_v15, %v1407_v16  ;;  %v1521_v20 = vadd.f32 %v1520_v18, %v1445_v17 }
 0x1a1   : > { %v1559_v23 = vadd.f32 %v1558_v21, %v1483_v19 }
 0x1a3   : > { %v1562_v26 = vsel %vm1561_vm0, %v1521_v20, %v1559_v23 }
 0x1a4   : > { %v1563_v28 = vadd.f32 %v1562_v26, %v1560_v24 }
 0x1a6   : > { %1564 = vst [vmem:[%s2274_s26] sm:$0x3] %v1563_v28 }
 0x1a7 PF: > { %s14_s16 = sadd.s32 1, %s2218_s16   ;;  %s2548_s12 = smov %s2210_s14 }
 0x1a8   : > { %p11_p8 = scmp.ge.s32.totalorder %s14_s16, 6   ;;  %s2549_s13 = smov %s2214_s15 }
 0x1a9   : > { %s2550_s14 = smov %s2553_s17  ;;  %s2551_s15 = smov %s2557_s18 }
 0x1aa   :  { %13 = sbr.rel (!%p11_p8) target bundleno = 3 (0x3), region = 74 }

// kernel: allcnn_forward.29
= control target key start
LH: loop header
LB: loop body
LE: loop exit
PB: predicated region body
PF: predicated region fallthrough
CT: control target
= control target key end

     0   :  { %vm1389_vm0 = vcmask 1040384   ;;  %s2404_s1 = inlined_call_operand.vmem [shape: bf16[256,128], index: 1, kind: input, shape index: {}]   ;;  %s2405_s0 = inlined_call_operand.vmem [shape: bf16[512,256], index: 0, kind: input, shape index: {}]   ;;  %s2406_s2 = inlined_call_operand.vmem [shape: f32[512,128], index: 2, kind: output, shape index: {0}]   ;;  %s2407_s3 = inlined_call_operand.vmem [shape: f32[1,2,128], index: 3, kind: output, shape index: {1}]  }
   0x1   :  { %v1750_v0 = vld [vmem:[%s2404_s1 + $0x40] sm:$0xff]   ;;  %v1754_v4 = vld [vmem:[%s2404_s1 + $0x48] sm:$0xff]   ;;  %v1758_v8 = vld [vmem:[%s2404_s1 + $0x50] sm:$0xff]  }
   0x2   :  { %v1751_v1 = vld [vmem:[%s2404_s1 + $0x40] sm:$0xff]   ;;  %1525 = vmatprep.subr.bf16.mxu0 %v1750_v0  ;;  %v1755_v5 = vld [vmem:[%s2404_s1 + $0x48] sm:$0xff]   ;;  %v1759_v9 = vld [vmem:[%s2404_s1 + $0x50] sm:$0xff]  }
   0x3   :  { %v1752_v2 = vld [vmem:[%s2404_s1] sm:$0xff]   ;;  %1637 = vmatprep.subr.bf16.mxu1 %v1751_v1  ;;  %v1756_v6 = vld [vmem:[%s2404_s1 + $0x8] sm:$0xff]   ;;  %v1760_v10 = vld [vmem:[%s2404_s1 + $0x10] sm:$0xff]  }
   0x4   :  { %v1753_v3 = vld [vmem:[%s2404_s1] sm:$0xff]   ;;  %1526 = vmatpush3.bf16.msra.mxu0 %v1752_v2  ;;  %v1757_v7 = vld [vmem:[%s2404_s1 + $0x8] sm:$0xff]   ;;  %v1761_v11 = vld [vmem:[%s2404_s1 + $0x10] sm:$0xff]  }
   0x5   :  { %1638 = vmatpush3.bf16.msra.mxu1 %v1753_v3  ;;  %1527 = vmatprep.subr.bf16.mxu0 %v1754_v4  ;;  %v1762_v12 = vld [vmem:[%s2404_s1 + $0x58] sm:$0xff]   ;;  %v1766_v16 = vld [vmem:[%s2404_s1 + $0x60] sm:$0xff]   ;;  %v1770_v20 = vld [vmem:[%s2404_s1 + $0x68] sm:$0xff]  }
   0x6   :  { %1639 = vmatprep.subr.bf16.mxu1 %v1755_v5  ;;  %v1763_v13 = vld [vmem:[%s2404_s1 + $0x58] sm:$0xff]   ;;  %v1767_v17 = vld [vmem:[%s2404_s1 + $0x60] sm:$0xff]   ;;  %v1771_v21 = vld [vmem:[%s2404_s1 + $0x68] sm:$0xff]  }
   0x7   :  { %v1764_v14 = vld [vmem:[%s2404_s1 + $0x18] sm:$0xff]   ;;  %v1768_v18 = vld [vmem:[%s2404_s1 + $0x20] sm:$0xff]   ;;  %v1772_v22 = vld [vmem:[%s2404_s1 + $0x28] sm:$0xff]  }
   0x8   :  { %1528 = vmatpush3.bf16.msra.mxu0 %v1756_v6  ;;  %v1765_v15 = vld [vmem:[%s2404_s1 + $0x18] sm:$0xff]   ;;  %v1769_v19 = vld [vmem:[%s2404_s1 + $0x20] sm:$0xff]   ;;  %v1773_v23 = vld [vmem:[%s2404_s1 + $0x28] sm:$0xff]  }
   0x9   :  { %1640 = vmatpush3.bf16.msra.mxu1 %v1757_v7  ;;  %1529 = vmatprep.subr.bf16.mxu0 %v1758_v8  ;;  %v1774_v24 = vld [vmem:[%s2404_s1 + $0x70] sm:$0xff]   ;;  %v1778_v28 = vld [vmem:[%s2404_s1 + $0x78] sm:$0xff]   ;;  %v1782_v32 = vld [vmem:[%s2405_s0] ss:$8 sps:$4 sm:$0xff]  }
   0xa   :  { %1641 = vmatprep.subr.bf16.mxu1 %v1759_v9  ;;  %v1775_v25 = vld [vmem:[%s2404_s1 + $0x70] sm:$0xff]   ;;  %v1779_v29 = vld [vmem:[%s2404_s1 + $0x78] sm:$0xff]   ;;  %v1784_v33 = vld [vmem:[%s2405_s0 + $0x4] ss:$8 sps:$4 sm:$0xff]  }
   0xb   :  { %v1776_v26 = vld [vmem:[%s2404_s1 + $0x30] sm:$0xff]   ;;  %v1780_v30 = vld [vmem:[%s2404_s1 + $0x38] sm:$0xff]   ;;  %v1785_v34 = vld [vmem:[%s2405_s0 + $0x100] ss:$8 sps:$4 sm:$0xff]   ;;  %410 = vmatprep.mubr.bf16.mxu0 %v1784_v33 }
   0xc   :  { %1530 = vmatpush3.bf16.msra.mxu0 %v1760_v10  ;;  %v1777_v27 = vld [vmem:[%s2404_s1 + $0x30] sm:$0xff]   ;;  %v1781_v31 = vld [vmem:[%s2404_s1 + $0x38] sm:$0xff]   ;;  %v1787_v35 = vld [vmem:[%s2405_s0 + $0x104] ss:$8 sps:$4 sm:$0xff]  }
   0xd   :  { %1642 = vmatpush3.bf16.msra.mxu1 %v1761_v11  ;;  %1531 = vmatprep.subr.bf16.mxu0 %v1762_v12  ;;  %v1788_v36 = vld [vmem:[%s2405_s0 + $0x14] ss:$8 sps:$4 sm:$0xff]   ;;  %v1792_v38 = vld [vmem:[%s2405_s0 + $0x10] ss:$8 sps:$4 sm:$0xff]   ;;  %v1794_v40 = vld [vmem:[%s2405_s0 + $0x24] ss:$8 sps:$4 sm:$0xff]  }
   0xe   :  { %1643 = vmatprep.subr.bf16.mxu1 %v1763_v13  ;;  %923 = vmatprep.mubr.bf16.mxu1 %v1787_v35  ;;  %v1790_v37 = vld [vmem:[%s2405_s0 + $0x114] ss:$8 sps:$4 sm:$0xff]   ;;  %v1793_v39 = vld [vmem:[%s2405_s0 + $0x110] ss:$8 sps:$4 sm:$0xff]   ;;  %v1796_v41 = vld [vmem:[%s2405_s0 + $0x124] ss:$8 sps:$4 sm:$0xff]  }
   0xf   :  { %v1798_v42 = vld [vmem:[%s2405_s0 + $0x20] ss:$8 sps:$4 sm:$0xff]   ;;  %v1800_v44 = vld [vmem:[%s2405_s0 + $0x34] ss:$8 sps:$4 sm:$0xff]   ;;  %v1804_v46 = vld [vmem:[%s2405_s0 + $0x30] ss:$8 sps:$4 sm:$0xff]  }
  0x10   :  { %1532 = vmatpush3.bf16.msra.mxu0 %v1764_v14  ;;  %v1799_v43 = vld [vmem:[%s2405_s0 + $0x120] ss:$8 sps:$4 sm:$0xff]   ;;  %v1802_v45 = vld [vmem:[%s2405_s0 + $0x134] ss:$8 sps:$4 sm:$0xff]   ;;  %v1805_v47 = vld [vmem:[%s2405_s0 + $0x130] ss:$8 sps:$4 sm:$0xff]  }
  0x11   :  { %1644 = vmatpush3.bf16.msra.mxu1 %v1765_v15  ;;  %1533 = vmatprep.subr.bf16.mxu0 %v1766_v16  ;;  %v1806_v48 = vld [vmem:[%s2405_s0 + $0x44] ss:$8 sps:$4 sm:$0xff]   ;;  %v1810_v50 = vld [vmem:[%s2405_s0 + $0x40] ss:$8 sps:$4 sm:$0xff]   ;;  %v1812_v52 = vld [vmem:[%s2405_s0 + $0x54] ss:$8 sps:$4 sm:$0xff]  }
  0x12   :  { %1645 = vmatprep.subr.bf16.mxu1 %v1767_v17  ;;  %v1808_v49 = vld [vmem:[%s2405_s0 + $0x144] ss:$8 sps:$4 sm:$0xff]   ;;  %v1811_v51 = vld [vmem:[%s2405_s0 + $0x140] ss:$8 sps:$4 sm:$0xff]   ;;  %v1814_v53 = vld [vmem:[%s2405_s0 + $0x154] ss:$8 sps:$4 sm:$0xff]  }
  0x13   :  { %v1816_v54 = vld [vmem:[%s2405_s0 + $0x50] ss:$8 sps:$4 sm:$0xff]   ;;  %v1818_v56 = vld [vmem:[%s2405_s0 + $0x64] ss:$8 sps:$4 sm:$0xff]   ;;  %v1822_v58 = vld [vmem:[%s2405_s0 + $0x60] ss:$8 sps:$4 sm:$0xff]  }
  0x14   :  { %1534 = vmatpush3.bf16.msra.mxu0 %v1768_v18  ;;  %v1817_v55 = vld [vmem:[%s2405_s0 + $0x150] ss:$8 sps:$4 sm:$0xff]   ;;  %v1820_v57 = vld [vmem:[%s2405_s0 + $0x164] ss:$8 sps:$4 sm:$0xff]   ;;  %v1823_v59 = vld [vmem:[%s2405_s0 + $0x160] ss:$8 sps:$4 sm:$0xff]  }
  0x15   :  { %1646 = vmatpush3.bf16.msra.mxu1 %v1769_v19  ;;  %1535 = vmatprep.subr.bf16.mxu0 %v1770_v20  ;;  %v1824_v60 = vld [vmem:[%s2405_s0 + $0x74] ss:$8 sps:$4 sm:$0xff]   ;;  %v1828_v62 = vld [vmem:[%s2405_s0 + $0x70] ss:$8 sps:$4 sm:$0xff]   ;;  %v1830_v0 = vld [vmem:[%s2405_s0 + $0x84] ss:$8 sps:$4 sm:$0xff]  }
  0x16   :  { %1647 = vmatprep.subr.bf16.mxu1 %v1771_v21  ;;  %v1826_v61 = vld [vmem:[%s2405_s0 + $0x174] ss:$8 sps:$4 sm:$0xff]   ;;  %v1829_v63 = vld [vmem:[%s2405_s0 + $0x170] ss:$8 sps:$4 sm:$0xff]   ;;  %v1832_v1 = vld [vmem:[%s2405_s0 + $0x184] ss:$8 sps:$4 sm:$0xff]  }
  0x17   :  { %v1834_v2 = vld [vmem:[%s2405_s0 + $0x80] ss:$8 sps:$4 sm:$0xff]   ;;  %v1836_v4 = vld [vmem:[%s2405_s0 + $0x94] ss:$8 sps:$4 sm:$0xff]   ;;  %v1840_v6 = vld [vmem:[%s2405_s0 + $0x90] ss:$8 sps:$4 sm:$0xff]  }
  0x18   :  { %1536 = vmatpush3.bf16.msra.mxu0 %v1772_v22  ;;  %v1835_v3 = vld [vmem:[%s2405_s0 + $0x180] ss:$8 sps:$4 sm:$0xff]   ;;  %v1838_v5 = vld [vmem:[%s2405_s0 + $0x194] ss:$8 sps:$4 sm:$0xff]   ;;  %v1841_v7 = vld [vmem:[%s2405_s0 + $0x190] ss:$8 sps:$4 sm:$0xff]  }
  0x19   :  { %1648 = vmatpush3.bf16.msra.mxu1 %v1773_v23  ;;  %1537 = vmatprep.subr.bf16.mxu0 %v1774_v24  ;;  %v1842_v8 = vld [vmem:[%s2405_s0 + $0xa4] ss:$8 sps:$4 sm:$0xff]   ;;  %v1846_v10 = vld [vmem:[%s2405_s0 + $0xa0] ss:$8 sps:$4 sm:$0xff]   ;;  %v1848_v12 = vld [vmem:[%s2405_s0 + $0xb4] ss:$8 sps:$4 sm:$0xff]  }
  0x1a   :  { %1649 = vmatprep.subr.bf16.mxu1 %v1775_v25  ;;  %v1844_v9 = vld [vmem:[%s2405_s0 + $0x1a4] ss:$8 sps:$4 sm:$0xff]   ;;  %v1847_v11 = vld [vmem:[%s2405_s0 + $0x1a0] ss:$8 sps:$4 sm:$0xff]   ;;  %v1850_v13 = vld [vmem:[%s2405_s0 + $0x1b4] ss:$8 sps:$4 sm:$0xff]  }
  0x1b   :  { %v1852_v14 = vld [vmem:[%s2405_s0 + $0xb0] ss:$8 sps:$4 sm:$0xff]   ;;  %v1854_v16 = vld [vmem:[%s2405_s0 + $0xc4] ss:$8 sps:$4 sm:$0xff]   ;;  %v1858_v18 = vld [vmem:[%s2405_s0 + $0xc0] ss:$8 sps:$4 sm:$0xff]  }
  0x1c   :  { %1538 = vmatpush3.bf16.msra.mxu0 %v1776_v26  ;;  %v1853_v15 = vld [vmem:[%s2405_s0 + $0x1b0] ss:$8 sps:$4 sm:$0xff]   ;;  %v1856_v17 = vld [vmem:[%s2405_s0 + $0x1c4] ss:$8 sps:$4 sm:$0xff]   ;;  %v1859_v19 = vld [vmem:[%s2405_s0 + $0x1c0] ss:$8 sps:$4 sm:$0xff]  }
  0x1d   :  { %1650 = vmatpush3.bf16.msra.mxu1 %v1777_v27  ;;  %1539 = vmatprep.subr.bf16.mxu0 %v1778_v28  ;;  %v1860_v20 = vld [vmem:[%s2405_s0 + $0xd4] ss:$8 sps:$4 sm:$0xff]   ;;  %v1864_v22 = vld [vmem:[%s2405_s0 + $0xd0] ss:$8 sps:$4 sm:$0xff]   ;;  %v1866_v24 = vld [vmem:[%s2405_s0 + $0xe4] ss:$8 sps:$4 sm:$0xff]  }
  0x1e   :  { %1651 = vmatprep.subr.bf16.mxu1 %v1779_v29  ;;  %v1862_v21 = vld [vmem:[%s2405_s0 + $0x1d4] ss:$8 sps:$4 sm:$0xff]   ;;  %v1865_v23 = vld [vmem:[%s2405_s0 + $0x1d0] ss:$8 sps:$4 sm:$0xff]   ;;  %v1868_v25 = vld [vmem:[%s2405_s0 + $0x1e4] ss:$8 sps:$4 sm:$0xff]  }
  0x1f   :  { %v1870_v26 = vld [vmem:[%s2405_s0 + $0xe0] ss:$8 sps:$4 sm:$0xff]   ;;  %v1872_v28 = vld [vmem:[%s2405_s0 + $0xf4] ss:$8 sps:$4 sm:$0xff]  }
  0x20   :  { %1540 = vmatpush3.bf16.msra.mxu0 %v1780_v30  ;;  %v1871_v27 = vld [vmem:[%s2405_s0 + $0x1e0] ss:$8 sps:$4 sm:$0xff]   ;;  %v1874_v29 = vld [vmem:[%s2405_s0 + $0x1f4] ss:$8 sps:$4 sm:$0xff]   ;;  %v1876_v30 = vld [vmem:[%s2405_s0 + $0xf0] ss:$8 sps:$4 sm:$0xff]  }
  0x21   :  { %1652 = vmatpush3.bf16.msra.mxu1 %v1781_v31  ;;  %v1877_v31 = vld [vmem:[%s2405_s0 + $0x1f0] ss:$8 sps:$4 sm:$0xff]  }
  0x23   :  { %411 = vmatmul.mubr.bf16.vlgmr.msra.gmra.mrb[0].mxu0 %v1782_v32 }
  0x24   :  { %924 = vmatmul.mubr.bf16.vlgmr.msra.gmra.mrb[0].mxu1 %v1785_v34  ;;  %418 = vmatprep.mubr.bf16.mxu0 %v1788_v36 }
  0x25   :  { %931 = vmatprep.mubr.bf16.mxu1 %v1790_v37 }
  0x2b   :  { %419 = vmatmul.mubr.bf16.gmra.mrb[4].mxu0 %v1792_v38 }
  0x2c   :  { %932 = vmatmul.mubr.bf16.gmra.mrb[4].mxu1 %v1793_v39  ;;  %426 = vmatprep.mubr.bf16.mxu0 %v1794_v40 }
  0x2d   :  { %939 = vmatprep.mubr.bf16.mxu1 %v1796_v41 }
  0x33   :  { %427 = vmatmul.mubr.bf16.gmra.mrb[8].mxu0 %v1798_v42 }
  0x34   :  { %940 = vmatmul.mubr.bf16.gmra.mrb[8].mxu1 %v1799_v43  ;;  %434 = vmatprep.mubr.bf16.mxu0 %v1800_v44 }
  0x35   :  { %947 = vmatprep.mubr.bf16.mxu1 %v1802_v45 }
  0x3b   :  { %435 = vmatmul.mubr.bf16.gmra.mrb[12].mxu0 %v1804_v46 }
  0x3c   :  { %948 = vmatmul.mubr.bf16.gmra.mrb[12].mxu1 %v1805_v47  ;;  %442 = vmatprep.mubr.bf16.mxu0 %v1806_v48 }
  0x3d   :  { %955 = vmatprep.mubr.bf16.mxu1 %v1808_v49 }
  0x43   :  { %443 = vmatmul.mubr.bf16.gmra.mrb[16].mxu0 %v1810_v50 }
  0x44   :  { %956 = vmatmul.mubr.bf16.gmra.mrb[16].mxu1 %v1811_v51  ;;  %450 = vmatprep.mubr.bf16.mxu0 %v1812_v52 }
  0x45   :  { %963 = vmatprep.mubr.bf16.mxu1 %v1814_v53 }
  0x4b   :  { %451 = vmatmul.mubr.bf16.gmra.mrb[20].mxu0 %v1816_v54 }
  0x4c   :  { %964 = vmatmul.mubr.bf16.gmra.mrb[20].mxu1 %v1817_v55  ;;  %458 = vmatprep.mubr.bf16.mxu0 %v1818_v56 }
  0x4d   :  { %971 = vmatprep.mubr.bf16.mxu1 %v1820_v57 }
  0x53   :  { %459 = vmatmul.mubr.bf16.gmra.mrb[24].mxu0 %v1822_v58 }
  0x54   :  { %972 = vmatmul.mubr.bf16.gmra.mrb[24].mxu1 %v1823_v59  ;;  %466 = vmatprep.mubr.bf16.mxu0 %v1824_v60 }
  0x55   :  { %979 = vmatprep.mubr.bf16.mxu1 %v1826_v61 }
  0x5b   :  { %467 = vmatmul.mubr.bf16.gmra.mrb[28].mxu0 %v1828_v62 }
  0x5c   :  { %980 = vmatmul.mubr.bf16.gmra.mrb[28].mxu1 %v1829_v63  ;;  %474 = vmatprep.mubr.bf16.mxu0 %v1830_v0 }
  0x5d   :  { %987 = vmatprep.mubr.bf16.mxu1 %v1832_v1 }
  0x63   :  { %475 = vmatmul.mubr.bf16.gmra.mrb[32].mxu0 %v1834_v2 }
  0x64   :  { %988 = vmatmul.mubr.bf16.gmra.mrb[32].mxu1 %v1835_v3  ;;  %482 = vmatprep.mubr.bf16.mxu0 %v1836_v4 }
  0x65   :  { %995 = vmatprep.mubr.bf16.mxu1 %v1838_v5 }
  0x6b   :  { %483 = vmatmul.mubr.bf16.gmra.mrb[36].mxu0 %v1840_v6 }
  0x6c   :  { %996 = vmatmul.mubr.bf16.gmra.mrb[36].mxu1 %v1841_v7  ;;  %490 = vmatprep.mubr.bf16.mxu0 %v1842_v8  ;;  %v1878_v7 = vmov 0.0  }
  0x6d   :  { %1003 = vmatprep.mubr.bf16.mxu1 %v1844_v9  ;;  %57 = vst [vmem:[%s2407_s3] sm:$0x3] %v1878_v7 }
  0x73   :  { %491 = vmatmul.mubr.bf16.gmra.mrb[40].mxu0 %v1846_v10 }
  0x74   :  { %1004 = vmatmul.mubr.bf16.gmra.mrb[40].mxu1 %v1847_v11  ;;  %498 = vmatprep.mubr.bf16.mxu0 %v1848_v12 }
  0x75   :  { %1011 = vmatprep.mubr.bf16.mxu1 %v1850_v13 }
  0x7b   :  { %499 = vmatmul.mubr.bf16.gmra.mrb[44].mxu0 %v1852_v14 }
  0x7c   :  { %1012 = vmatmul.mubr.bf16.gmra.mrb[44].mxu1 %v1853_v15  ;;  %506 = vmatprep.mubr.bf16.mxu0 %v1854_v16 }
  0x7d   :  { %1019 = vmatprep.mubr.bf16.mxu1 %v1856_v17 }
  0x83   :  { %507 = vmatmul.mubr.bf16.gmra.mrb[48].mxu0 %v1858_v18 }
  0x84   :  { %1020 = vmatmul.mubr.bf16.gmra.mrb[48].mxu1 %v1859_v19  ;;  %514 = vmatprep.mubr.bf16.mxu0 %v1860_v20 }
  0x85   :  { %1027 = vmatprep.mubr.bf16.mxu1 %v1862_v21 }
  0x8b   :  { %515 = vmatmul.mubr.bf16.gmra.mrb[52].mxu0 %v1864_v22 }
  0x8c   :  { %1028 = vmatmul.mubr.bf16.gmra.mrb[52].mxu1 %v1865_v23  ;;  %522 = vmatprep.mubr.bf16.mxu0 %v1866_v24 }
  0x8d   :  { %1035 = vmatprep.mubr.bf16.mxu1 %v1868_v25 }
  0x93   :  { %523 = vmatmul.mubr.bf16.gmra.mrb[56].mxu0 %v1870_v26 }
  0x94   :  { %1036 = vmatmul.mubr.bf16.gmra.mrb[56].mxu1 %v1871_v27  ;;  %530 = vmatprep.mubr.bf16.mxu0 %v1872_v28 }
  0x95   :  { %1043 = vmatprep.mubr.bf16.mxu1 %v1874_v29 }
  0x9b   :  { %531 = vmatmul.mubr.bf16.gmra.mrb[60].mxu0 %v1876_v30 }
  0x9c   :  { %1044 = vmatmul.mubr.bf16.gmra.mrb[60].mxu1 %v1877_v31 }
  0xf6   :  { %v1541_v32 = vpop.f32.mrb[0].mxu0 }
  0xf7   :  { %v1542_v33 = vpop.f32.mrb[1].mxu0  ;;  %v1653_v34 = vpop.f32.mrb[0].mxu1 }
  0xf8   :  { %v1543_v35 = vadd.f32 %v1542_v33, %v1541_v32  ;;  %v1544_v36 = vpop.f32.mrb[2].mxu0  ;;  %v1654_v37 = vpop.f32.mrb[1].mxu1 }
  0xf9   :  { %v1655_v38 = vadd.f32 %v1654_v37, %v1653_v34  ;;  %v1545_v39 = vpop.f32.mrb[3].mxu0  ;;  %v1656_v40 = vpop.f32.mrb[2].mxu1 }
  0xfa   :  { %539 = vst [vmem:[%s2406_s2] sm:$0xff] %v1543_v35  ;;  %v1546_v41 = vadd.f32 %v1545_v39, %v1544_v36  ;;  %v1657_v42 = vpop.f32.mrb[3].mxu1  ;;  %v1122_v45 = vmul.f32 %v1543_v35, %v1543_v35 }
  0xfb   :  { %1052 = vst [vmem:[%s2406_s2 + $0x100] sm:$0xff] %v1655_v38  ;;  %v1274_v43 = vmul.f32 %v1655_v38, %v1655_v38  ;;  %v1658_v44 = vadd.f32 %v1657_v42, %v1656_v40 }
  0xfc   :  { %540 = vst [vmem:[%s2406_s2 + $0x8] sm:$0xff] %v1546_v41  ;;  %v1100_v46 = vadd.f32 %v1546_v41, %v1543_v35  ;;  %v1123_v47 = vmul.f32 %v1546_v41, %v1546_v41 }
  0xfd   :  { %1053 = vst [vmem:[%s2406_s2 + $0x108] sm:$0xff] %v1658_v44  ;;  %v1252_v48 = vadd.f32 %v1658_v44, %v1655_v38  ;;  %v1275_v49 = vmul.f32 %v1658_v44, %v1658_v44 }
  0xfe   :  { %v1138_v50 = vadd.f32 %v1123_v47, %v1122_v45  ;;  %v1547_v51 = vpop.f32.mrb[4].mxu0 }
  0xff   :  { %v1290_v52 = vadd.f32 %v1275_v49, %v1274_v43  ;;  %v1659_v53 = vpop.f32.mrb[4].mxu1  ;;  %v1548_v54 = vpop.f32.mrb[5].mxu0 }
 0x100   :  { %v1549_v55 = vadd.f32 %v1548_v54, %v1547_v51  ;;  %v1660_v56 = vpop.f32.mrb[5].mxu1  ;;  %v1550_v57 = vpop.f32.mrb[6].mxu0 }
 0x101   :  { %v1661_v58 = vadd.f32 %v1660_v56, %v1659_v53  ;;  %v1662_v59 = vpop.f32.mrb[6].mxu1  ;;  %v1551_v60 = vpop.f32.mrb[7].mxu0 }
 0x102   :  { %541 = vst [vmem:[%s2406_s2 + $0x10] sm:$0xff] %v1549_v55  ;;  %v1101_v61 = vadd.f32 %v1549_v55, %v1100_v46  ;;  %v1124_v62 = vmul.f32 %v1549_v55, %v1549_v55  ;;  %v1552_v63 = vadd.f32 %v1551_v60, %v1550_v57  ;;  %v1663_v0 = vpop.f32.mrb[7].mxu1 }
 0x103   :  { %1054 = vst [vmem:[%s2406_s2 + $0x110] sm:$0xff] %v1661_v58  ;;  %v1253_v1 = vadd.f32 %v1661_v58, %v1252_v48  ;;  %v1276_v2 = vmul.f32 %v1661_v58, %v1661_v58  ;;  %v1664_v3 = vadd.f32 %v1663_v0, %v1662_v59 }
 0x104   :  { %v1139_v4 = vadd.f32 %v1138_v50, %v1124_v62  ;;  %542 = vst [vmem:[%s2406_s2 + $0x18] sm:$0xff] %v1552_v63  ;;  %v1102_v5 = vadd.f32 %v1552_v63, %v1101_v61  ;;  %v1125_v6 = vmul.f32 %v1552_v63, %v1552_v63 }
 0x105   :  { %v1291_v8 = vadd.f32 %v1290_v52, %v1276_v2  ;;  %1055 = vst [vmem:[%s2406_s2 + $0x118] sm:$0xff] %v1664_v3  ;;  %v1254_v9 = vadd.f32 %v1664_v3, %v1253_v1  ;;  %v1277_v10 = vmul.f32 %v1664_v3, %v1664_v3 }
 0x106   :  { %v1140_v11 = vadd.f32 %v1139_v4, %v1125_v6  ;;  %v1553_v12 = vpop.f32.mrb[8].mxu0 }
 0x107   :  { %v1292_v13 = vadd.f32 %v1291_v8, %v1277_v10  ;;  %v1665_v14 = vpop.f32.mrb[8].mxu1  ;;  %v1554_v15 = vpop.f32.mrb[9].mxu0 }
 0x108   :  { %v1555_v16 = vadd.f32 %v1554_v15, %v1553_v12  ;;  %v1666_v17 = vpop.f32.mrb[9].mxu1  ;;  %v1556_v18 = vpop.f32.mrb[10].mxu0 }
 0x109   :  { %v1667_v19 = vadd.f32 %v1666_v17, %v1665_v14  ;;  %v1668_v20 = vpop.f32.mrb[10].mxu1  ;;  %v1557_v21 = vpop.f32.mrb[11].mxu0 }
 0x10a   :  { %543 = vst [vmem:[%s2406_s2 + $0x20] sm:$0xff] %v1555_v16  ;;  %v1103_v22 = vadd.f32 %v1555_v16, %v1102_v5  ;;  %v1126_v23 = vmul.f32 %v1555_v16, %v1555_v16  ;;  %v1558_v24 = vadd.f32 %v1557_v21, %v1556_v18  ;;  %v1669_v25 = vpop.f32.mrb[11].mxu1 }
 0x10b   :  { %1056 = vst [vmem:[%s2406_s2 + $0x120] sm:$0xff] %v1667_v19  ;;  %v1255_v26 = vadd.f32 %v1667_v19, %v1254_v9  ;;  %v1278_v27 = vmul.f32 %v1667_v19, %v1667_v19  ;;  %v1670_v28 = vadd.f32 %v1669_v25, %v1668_v20 }
 0x10c   :  { %v1141_v29 = vadd.f32 %v1140_v11, %v1126_v23  ;;  %544 = vst [vmem:[%s2406_s2 + $0x28] sm:$0xff] %v1558_v24  ;;  %v1104_v30 = vadd.f32 %v1558_v24, %v1103_v22  ;;  %v1127_v31 = vmul.f32 %v1558_v24, %v1558_v24 }
 0x10d   :  { %v1293_v32 = vadd.f32 %v1292_v13, %v1278_v27  ;;  %1057 = vst [vmem:[%s2406_s2 + $0x128] sm:$0xff] %v1670_v28  ;;  %v1256_v33 = vadd.f32 %v1670_v28, %v1255_v26  ;;  %v1279_v34 = vmul.f32 %v1670_v28, %v1670_v28 }
 0x10e   :  { %v1142_v35 = vadd.f32 %v1141_v29, %v1127_v31  ;;  %v1559_v36 = vpop.f32.mrb[12].mxu0 }
 0x10f   :  { %v1294_v37 = vadd.f32 %v1293_v32, %v1279_v34  ;;  %v1671_v38 = vpop.f32.mrb[12].mxu1  ;;  %v1560_v39 = vpop.f32.mrb[13].mxu0 }
 0x110   :  { %v1561_v40 = vadd.f32 %v1560_v39, %v1559_v36  ;;  %v1672_v41 = vpop.f32.mrb[13].mxu1  ;;  %v1562_v42 = vpop.f32.mrb[14].mxu0 }
 0x111   :  { %v1673_v43 = vadd.f32 %v1672_v41, %v1671_v38  ;;  %v1674_v44 = vpop.f32.mrb[14].mxu1  ;;  %v1563_v45 = vpop.f32.mrb[15].mxu0 }
 0x112   :  { %545 = vst [vmem:[%s2406_s2 + $0x30] sm:$0xff] %v1561_v40  ;;  %v1105_v46 = vadd.f32 %v1561_v40, %v1104_v30  ;;  %v1128_v47 = vmul.f32 %v1561_v40, %v1561_v40  ;;  %v1564_v48 = vadd.f32 %v1563_v45, %v1562_v42  ;;  %v1675_v49 = vpop.f32.mrb[15].mxu1 }
 0x113   :  { %1058 = vst [vmem:[%s2406_s2 + $0x130] sm:$0xff] %v1673_v43  ;;  %v1257_v50 = vadd.f32 %v1673_v43, %v1256_v33  ;;  %v1280_v51 = vmul.f32 %v1673_v43, %v1673_v43  ;;  %v1676_v52 = vadd.f32 %v1675_v49, %v1674_v44 }
 0x114   :  { %v1143_v53 = vadd.f32 %v1142_v35, %v1128_v47  ;;  %546 = vst [vmem:[%s2406_s2 + $0x38] sm:$0xff] %v1564_v48  ;;  %v1106_v54 = vadd.f32 %v1564_v48, %v1105_v46  ;;  %v1129_v55 = vmul.f32 %v1564_v48, %v1564_v48 }
 0x115   :  { %v1295_v56 = vadd.f32 %v1294_v37, %v1280_v51  ;;  %1059 = vst [vmem:[%s2406_s2 + $0x138] sm:$0xff] %v1676_v52  ;;  %v1258_v57 = vadd.f32 %v1676_v52, %v1257_v50  ;;  %v1281_v58 = vmul.f32 %v1676_v52, %v1676_v52 }
 0x116   :  { %v1144_v59 = vadd.f32 %v1143_v53, %v1129_v55  ;;  %v1565_v60 = vpop.f32.mrb[16].mxu0 }
 0x117   :  { %v1296_v61 = vadd.f32 %v1295_v56, %v1281_v58  ;;  %v1677_v62 = vpop.f32.mrb[16].mxu1  ;;  %v1566_v63 = vpop.f32.mrb[17].mxu0 }
 0x118   :  { %v1567_v0 = vadd.f32 %v1566_v63, %v1565_v60  ;;  %v1678_v1 = vpop.f32.mrb[17].mxu1  ;;  %v1568_v2 = vpop.f32.mrb[18].mxu0 }
 0x119   :  { %v1679_v3 = vadd.f32 %v1678_v1, %v1677_v62  ;;  %v1680_v4 = vpop.f32.mrb[18].mxu1  ;;  %v1569_v5 = vpop.f32.mrb[19].mxu0 }
 0x11a   :  { %547 = vst [vmem:[%s2406_s2 + $0x40] sm:$0xff] %v1567_v0  ;;  %v1107_v6 = vadd.f32 %v1567_v0, %v1106_v54  ;;  %v1130_v7 = vmul.f32 %v1567_v0, %v1567_v0  ;;  %v1570_v8 = vadd.f32 %v1569_v5, %v1568_v2  ;;  %v1681_v9 = vpop.f32.mrb[19].mxu1 }
 0x11b   :  { %1060 = vst [vmem:[%s2406_s2 + $0x140] sm:$0xff] %v1679_v3  ;;  %v1259_v10 = vadd.f32 %v1679_v3, %v1258_v57  ;;  %v1282_v11 = vmul.f32 %v1679_v3, %v1679_v3  ;;  %v1682_v12 = vadd.f32 %v1681_v9, %v1680_v4 }
 0x11c   :  { %v1145_v13 = vadd.f32 %v1144_v59, %v1130_v7  ;;  %548 = vst [vmem:[%s2406_s2 + $0x48] sm:$0xff] %v1570_v8  ;;  %v1108_v14 = vadd.f32 %v1570_v8, %v1107_v6  ;;  %v1131_v15 = vmul.f32 %v1570_v8, %v1570_v8 }
 0x11d   :  { %v1297_v16 = vadd.f32 %v1296_v61, %v1282_v11  ;;  %1061 = vst [vmem:[%s2406_s2 + $0x148] sm:$0xff] %v1682_v12  ;;  %v1260_v17 = vadd.f32 %v1682_v12, %v1259_v10  ;;  %v1283_v18 = vmul.f32 %v1682_v12, %v1682_v12 }
 0x11e   :  { %v1146_v19 = vadd.f32 %v1145_v13, %v1131_v15  ;;  %v1571_v20 = vpop.f32.mrb[20].mxu0 }
 0x11f   :  { %v1298_v21 = vadd.f32 %v1297_v16, %v1283_v18  ;;  %v1683_v22 = vpop.f32.mrb[20].mxu1  ;;  %v1572_v23 = vpop.f32.mrb[21].mxu0 }
 0x120   :  { %v1573_v24 = vadd.f32 %v1572_v23, %v1571_v20  ;;  %v1684_v25 = vpop.f32.mrb[21].mxu1  ;;  %v1574_v26 = vpop.f32.mrb[22].mxu0 }
 0x121   :  { %v1685_v27 = vadd.f32 %v1684_v25, %v1683_v22  ;;  %v1686_v28 = vpop.f32.mrb[22].mxu1  ;;  %v1575_v29 = vpop.f32.mrb[23].mxu0 }
 0x122   :  { %549 = vst [vmem:[%s2406_s2 + $0x50] sm:$0xff] %v1573_v24  ;;  %v1109_v30 = vadd.f32 %v1573_v24, %v1108_v14  ;;  %v1132_v31 = vmul.f32 %v1573_v24, %v1573_v24  ;;  %v1576_v32 = vadd.f32 %v1575_v29, %v1574_v26  ;;  %v1687_v33 = vpop.f32.mrb[23].mxu1 }
 0x123   :  { %1062 = vst [vmem:[%s2406_s2 + $0x150] sm:$0xff] %v1685_v27  ;;  %v1261_v34 = vadd.f32 %v1685_v27, %v1260_v17  ;;  %v1284_v35 = vmul.f32 %v1685_v27, %v1685_v27  ;;  %v1688_v36 = vadd.f32 %v1687_v33, %v1686_v28 }
 0x124   :  { %v1147_v37 = vadd.f32 %v1146_v19, %v1132_v31  ;;  %550 = vst [vmem:[%s2406_s2 + $0x58] sm:$0xff] %v1576_v32  ;;  %v1110_v38 = vadd.f32 %v1576_v32, %v1109_v30  ;;  %v1133_v39 = vmul.f32 %v1576_v32, %v1576_v32 }
 0x125   :  { %v1299_v40 = vadd.f32 %v1298_v21, %v1284_v35  ;;  %1063 = vst [vmem:[%s2406_s2 + $0x158] sm:$0xff] %v1688_v36  ;;  %v1262_v41 = vadd.f32 %v1688_v36, %v1261_v34  ;;  %v1285_v42 = vmul.f32 %v1688_v36, %v1688_v36 }
 0x126   :  { %v1148_v43 = vadd.f32 %v1147_v37, %v1133_v39  ;;  %v1577_v44 = vpop.f32.mrb[24].mxu0 }
 0x127   :  { %v1300_v45 = vadd.f32 %v1299_v40, %v1285_v42  ;;  %v1689_v46 = vpop.f32.mrb[24].mxu1  ;;  %v1578_v47 = vpop.f32.mrb[25].mxu0 }
 0x128   :  { %v1579_v48 = vadd.f32 %v1578_v47, %v1577_v44  ;;  %v1690_v49 = vpop.f32.mrb[25].mxu1  ;;  %v1580_v50 = vpop.f32.mrb[26].mxu0 }
 0x129   :  { %v1691_v51 = vadd.f32 %v1690_v49, %v1689_v46  ;;  %v1692_v52 = vpop.f32.mrb[26].mxu1  ;;  %v1581_v53 = vpop.f32.mrb[27].mxu0 }
 0x12a   :  { %551 = vst [vmem:[%s2406_s2 + $0x60] sm:$0xff] %v1579_v48  ;;  %v1111_v54 = vadd.f32 %v1579_v48, %v1110_v38  ;;  %v1134_v55 = vmul.f32 %v1579_v48, %v1579_v48  ;;  %v1582_v56 = vadd.f32 %v1581_v53, %v1580_v50  ;;  %v1693_v57 = vpop.f32.mrb[27].mxu1 }
 0x12b   :  { %1064 = vst [vmem:[%s2406_s2 + $0x160] sm:$0xff] %v1691_v51  ;;  %v1263_v58 = vadd.f32 %v1691_v51, %v1262_v41  ;;  %v1286_v59 = vmul.f32 %v1691_v51, %v1691_v51  ;;  %v1694_v60 = vadd.f32 %v1693_v57, %v1692_v52 }
 0x12c   :  { %v1149_v61 = vadd.f32 %v1148_v43, %v1134_v55  ;;  %552 = vst [vmem:[%s2406_s2 + $0x68] sm:$0xff] %v1582_v56  ;;  %v1112_v62 = vadd.f32 %v1582_v56, %v1111_v54  ;;  %v1135_v63 = vmul.f32 %v1582_v56, %v1582_v56 }
 0x12d   :  { %v1301_v0 = vadd.f32 %v1300_v45, %v1286_v59  ;;  %1065 = vst [vmem:[%s2406_s2 + $0x168] sm:$0xff] %v1694_v60  ;;  %v1264_v1 = vadd.f32 %v1694_v60, %v1263_v58  ;;  %v1287_v2 = vmul.f32 %v1694_v60, %v1694_v60 }
 0x12e   :  { %v1150_v3 = vadd.f32 %v1149_v61, %v1135_v63  ;;  %v1583_v4 = vpop.f32.mrb[28].mxu0 }
 0x12f   :  { %v1302_v5 = vadd.f32 %v1301_v0, %v1287_v2  ;;  %v1695_v6 = vpop.f32.mrb[28].mxu1  ;;  %v1584_v7 = vpop.f32.mrb[29].mxu0 }
 0x130   :  { %v1585_v8 = vadd.f32 %v1584_v7, %v1583_v4  ;;  %v1696_v9 = vpop.f32.mrb[29].mxu1  ;;  %v1586_v10 = vpop.f32.mrb[30].mxu0 }
 0x131   :  { %v1697_v11 = vadd.f32 %v1696_v9, %v1695_v6  ;;  %v1698_v12 = vpop.f32.mrb[30].mxu1  ;;  %v1587_v13 = vpop.f32.mrb[31].mxu0 }
 0x132   :  { %553 = vst [vmem:[%s2406_s2 + $0x70] sm:$0xff] %v1585_v8  ;;  %v1113_v14 = vadd.f32 %v1585_v8, %v1112_v62  ;;  %v1136_v15 = vmul.f32 %v1585_v8, %v1585_v8  ;;  %v1588_v16 = vadd.f32 %v1587_v13, %v1586_v10  ;;  %v1699_v17 = vpop.f32.mrb[31].mxu1 }
 0x133   :  { %1066 = vst [vmem:[%s2406_s2 + $0x170] sm:$0xff] %v1697_v11  ;;  %v1265_v18 = vadd.f32 %v1697_v11, %v1264_v1  ;;  %v1288_v19 = vmul.f32 %v1697_v11, %v1697_v11  ;;  %v1700_v20 = vadd.f32 %v1699_v17, %v1698_v12 }
 0x134   :  { %v1151_v21 = vadd.f32 %v1150_v3, %v1136_v15  ;;  %554 = vst [vmem:[%s2406_s2 + $0x78] sm:$0xff] %v1588_v16  ;;  %v2283_v22 = vadd.f32 %v1588_v16, %v1113_v14  ;;  %v1137_v23 = vmul.f32 %v1588_v16, %v1588_v16 }
 0x135   :  { %v1303_v24 = vadd.f32 %v1302_v5, %v1288_v19  ;;  %1067 = vst [vmem:[%s2406_s2 + $0x178] sm:$0xff] %v1700_v20  ;;  %v2288_v25 = vadd.f32 %v1700_v20, %v1265_v18  ;;  %v1289_v26 = vmul.f32 %v1700_v20, %v1700_v20 }
 0x136   :  { %v2290_v27 = vadd.f32 %v1151_v21, %v1137_v23  ;;  %v1589_v28 = vpop.f32.mrb[32].mxu0 }
 0x137   :  { %v2292_v29 = vadd.f32 %v1303_v24, %v1289_v26  ;;  %v1590_v30 = vpop.f32.mrb[33].mxu0  ;;  %v1701_v31 = vpop.f32.mrb[32].mxu1 }
 0x138   :  { %v1591_v32 = vadd.f32 %v1590_v30, %v1589_v28  ;;  %v1592_v33 = vpop.f32.mrb[34].mxu0  ;;  %v1702_v34 = vpop.f32.mrb[33].mxu1 }
 0x139   :  { %v1703_v35 = vadd.f32 %v1702_v34, %v1701_v31  ;;  %v1593_v36 = vpop.f32.mrb[35].mxu0  ;;  %v1704_v37 = vpop.f32.mrb[34].mxu1 }
 0x13a   :  { %555 = vst [vmem:[%s2406_s2 + $0x80] sm:$0xff] %v1591_v32  ;;  %v1594_v38 = vadd.f32 %v1593_v36, %v1592_v33  ;;  %v1705_v39 = vpop.f32.mrb[35].mxu1  ;;  %v1198_v42 = vmul.f32 %v1591_v32, %v1591_v32 }
 0x13b   :  { %1068 = vst [vmem:[%s2406_s2 + $0x180] sm:$0xff] %v1703_v35  ;;  %v1350_v40 = vmul.f32 %v1703_v35, %v1703_v35  ;;  %v1706_v41 = vadd.f32 %v1705_v39, %v1704_v37 }
 0x13c   :  { %556 = vst [vmem:[%s2406_s2 + $0x88] sm:$0xff] %v1594_v38  ;;  %v1176_v43 = vadd.f32 %v1594_v38, %v1591_v32  ;;  %v1199_v44 = vmul.f32 %v1594_v38, %v1594_v38 }
 0x13d   :  { %1069 = vst [vmem:[%s2406_s2 + $0x188] sm:$0xff] %v1706_v41  ;;  %v1328_v45 = vadd.f32 %v1706_v41, %v1703_v35  ;;  %v1351_v46 = vmul.f32 %v1706_v41, %v1706_v41 }
 0x13e   :  { %v1214_v47 = vadd.f32 %v1199_v44, %v1198_v42  ;;  %v1595_v48 = vpop.f32.mrb[36].mxu0 }
 0x13f   :  { %v1366_v49 = vadd.f32 %v1351_v46, %v1350_v40  ;;  %v1707_v50 = vpop.f32.mrb[36].mxu1  ;;  %v1596_v51 = vpop.f32.mrb[37].mxu0 }
 0x140   :  { %v1597_v52 = vadd.f32 %v1596_v51, %v1595_v48  ;;  %v1708_v53 = vpop.f32.mrb[37].mxu1  ;;  %v1598_v54 = vpop.f32.mrb[38].mxu0 }
 0x141   :  { %v1709_v55 = vadd.f32 %v1708_v53, %v1707_v50  ;;  %v1710_v56 = vpop.f32.mrb[38].mxu1  ;;  %v1599_v57 = vpop.f32.mrb[39].mxu0 }
 0x142   :  { %557 = vst [vmem:[%s2406_s2 + $0x90] sm:$0xff] %v1597_v52  ;;  %v1177_v58 = vadd.f32 %v1597_v52, %v1176_v43  ;;  %v1200_v59 = vmul.f32 %v1597_v52, %v1597_v52  ;;  %v1600_v60 = vadd.f32 %v1599_v57, %v1598_v54  ;;  %v1711_v61 = vpop.f32.mrb[39].mxu1 }
 0x143   :  { %1070 = vst [vmem:[%s2406_s2 + $0x190] sm:$0xff] %v1709_v55  ;;  %v1329_v62 = vadd.f32 %v1709_v55, %v1328_v45  ;;  %v1352_v63 = vmul.f32 %v1709_v55, %v1709_v55  ;;  %v1712_v0 = vadd.f32 %v1711_v61, %v1710_v56 }
 0x144   :  { %v1215_v1 = vadd.f32 %v1214_v47, %v1200_v59  ;;  %558 = vst [vmem:[%s2406_s2 + $0x98] sm:$0xff] %v1600_v60  ;;  %v1178_v2 = vadd.f32 %v1600_v60, %v1177_v58  ;;  %v1201_v3 = vmul.f32 %v1600_v60, %v1600_v60 }
 0x145   :  { %v1367_v4 = vadd.f32 %v1366_v49, %v1352_v63  ;;  %1071 = vst [vmem:[%s2406_s2 + $0x198] sm:$0xff] %v1712_v0  ;;  %v1330_v5 = vadd.f32 %v1712_v0, %v1329_v62  ;;  %v1353_v6 = vmul.f32 %v1712_v0, %v1712_v0 }
 0x146   :  { %v1216_v7 = vadd.f32 %v1215_v1, %v1201_v3  ;;  %v1601_v8 = vpop.f32.mrb[40].mxu0 }
 0x147   :  { %v1368_v9 = vadd.f32 %v1367_v4, %v1353_v6  ;;  %v1713_v10 = vpop.f32.mrb[40].mxu1  ;;  %v1602_v11 = vpop.f32.mrb[41].mxu0 }
 0x148   :  { %v1603_v12 = vadd.f32 %v1602_v11, %v1601_v8  ;;  %v1714_v13 = vpop.f32.mrb[41].mxu1  ;;  %v1604_v14 = vpop.f32.mrb[42].mxu0 }
 0x149   :  { %v1715_v15 = vadd.f32 %v1714_v13, %v1713_v10  ;;  %v1716_v16 = vpop.f32.mrb[42].mxu1  ;;  %v1605_v17 = vpop.f32.mrb[43].mxu0 }
 0x14a   :  { %559 = vst [vmem:[%s2406_s2 + $0xa0] sm:$0xff] %v1603_v12  ;;  %v1179_v18 = vadd.f32 %v1603_v12, %v1178_v2  ;;  %v1202_v19 = vmul.f32 %v1603_v12, %v1603_v12  ;;  %v1606_v20 = vadd.f32 %v1605_v17, %v1604_v14  ;;  %v1717_v21 = vpop.f32.mrb[43].mxu1 }
 0x14b   :  { %1072 = vst [vmem:[%s2406_s2 + $0x1a0] sm:$0xff] %v1715_v15  ;;  %v1331_v23 = vadd.f32 %v1715_v15, %v1330_v5  ;;  %v1354_v24 = vmul.f32 %v1715_v15, %v1715_v15  ;;  %v1718_v26 = vadd.f32 %v1717_v21, %v1716_v16 }
 0x14c   :  { %v1217_v28 = vadd.f32 %v1216_v7, %v1202_v19  ;;  %560 = vst [vmem:[%s2406_s2 + $0xa8] sm:$0xff] %v1606_v20  ;;  %v1180_v30 = vadd.f32 %v1606_v20, %v1179_v18  ;;  %v1203_v31 = vmul.f32 %v1606_v20, %v1606_v20 }
 0x14d   :  { %v1369_v32 = vadd.f32 %v1368_v9, %v1354_v24  ;;  %1073 = vst [vmem:[%s2406_s2 + $0x1a8] sm:$0xff] %v1718_v26  ;;  %v1332_v33 = vadd.f32 %v1718_v26, %v1331_v23  ;;  %v1355_v34 = vmul.f32 %v1718_v26, %v1718_v26 }
 0x14e   :  { %v1218_v35 = vadd.f32 %v1217_v28, %v1203_v31  ;;  %v1607_v36 = vpop.f32.mrb[44].mxu0 }
 0x14f   :  { %v1370_v37 = vadd.f32 %v1369_v32, %v1355_v34  ;;  %v1719_v38 = vpop.f32.mrb[44].mxu1  ;;  %v1608_v39 = vpop.f32.mrb[45].mxu0 }
 0x150   :  { %v1609_v40 = vadd.f32 %v1608_v39, %v1607_v36  ;;  %v1720_v41 = vpop.f32.mrb[45].mxu1  ;;  %v1610_v42 = vpop.f32.mrb[46].mxu0 }
 0x151   :  { %v1721_v43 = vadd.f32 %v1720_v41, %v1719_v38  ;;  %v1722_v44 = vpop.f32.mrb[46].mxu1  ;;  %v1611_v45 = vpop.f32.mrb[47].mxu0 }
 0x152   :  { %561 = vst [vmem:[%s2406_s2 + $0xb0] sm:$0xff] %v1609_v40  ;;  %v1181_v46 = vadd.f32 %v1609_v40, %v1180_v30  ;;  %v1204_v47 = vmul.f32 %v1609_v40, %v1609_v40  ;;  %v1612_v48 = vadd.f32 %v1611_v45, %v1610_v42  ;;  %v1723_v49 = vpop.f32.mrb[47].mxu1 }
 0x153   :  { %1074 = vst [vmem:[%s2406_s2 + $0x1b0] sm:$0xff] %v1721_v43  ;;  %v1333_v50 = vadd.f32 %v1721_v43, %v1332_v33  ;;  %v1356_v51 = vmul.f32 %v1721_v43, %v1721_v43  ;;  %v1724_v52 = vadd.f32 %v1723_v49, %v1722_v44 }
 0x154   :  { %v1219_v53 = vadd.f32 %v1218_v35, %v1204_v47  ;;  %562 = vst [vmem:[%s2406_s2 + $0xb8] sm:$0xff] %v1612_v48  ;;  %v1182_v54 = vadd.f32 %v1612_v48, %v1181_v46  ;;  %v1205_v55 = vmul.f32 %v1612_v48, %v1612_v48 }
 0x155   :  { %v1371_v56 = vadd.f32 %v1370_v37, %v1356_v51  ;;  %1075 = vst [vmem:[%s2406_s2 + $0x1b8] sm:$0xff] %v1724_v52  ;;  %v1334_v57 = vadd.f32 %v1724_v52, %v1333_v50  ;;  %v1357_v58 = vmul.f32 %v1724_v52, %v1724_v52 }
 0x156   :  { %v1220_v59 = vadd.f32 %v1219_v53, %v1205_v55  ;;  %v1613_v60 = vpop.f32.mrb[48].mxu0 }
 0x157   :  { %v1372_v61 = vadd.f32 %v1371_v56, %v1357_v58  ;;  %v1725_v62 = vpop.f32.mrb[48].mxu1  ;;  %v1614_v63 = vpop.f32.mrb[49].mxu0 }
 0x158   :  { %v1615_v0 = vadd.f32 %v1614_v63, %v1613_v60  ;;  %v1726_v1 = vpop.f32.mrb[49].mxu1  ;;  %v1616_v2 = vpop.f32.mrb[50].mxu0 }
 0x159   :  { %v1727_v3 = vadd.f32 %v1726_v1, %v1725_v62  ;;  %v1728_v4 = vpop.f32.mrb[50].mxu1  ;;  %v1617_v5 = vpop.f32.mrb[51].mxu0  ;;  %v1115_v62 = vrot.slane %v2283_v22, 4 }
 0x15a   :  { %563 = vst [vmem:[%s2406_s2 + $0xc0] sm:$0xff] %v1615_v0  ;;  %v1183_v6 = vadd.f32 %v1615_v0, %v1182_v54  ;;  %v1206_v7 = vmul.f32 %v1615_v0, %v1615_v0  ;;  %v1618_v8 = vadd.f32 %v1617_v5, %v1616_v2  ;;  %v1729_v9 = vpop.f32.mrb[51].mxu1  ;;  %v1267_v5 = vrot.slane %v2288_v25, 4 }
 0x15b   :  { %1076 = vst [vmem:[%s2406_s2 + $0x1c0] sm:$0xff] %v1727_v3  ;;  %v1335_v10 = vadd.f32 %v1727_v3, %v1334_v57  ;;  %v1358_v11 = vmul.f32 %v1727_v3, %v1727_v3  ;;  %v1730_v12 = vadd.f32 %v1729_v9, %v1728_v4  ;;  %v1153_v9 = vrot.slane %v2290_v27, 4 }
 0x15c   :  { %v1221_v13 = vadd.f32 %v1220_v59, %v1206_v7  ;;  %564 = vst [vmem:[%s2406_s2 + $0xc8] sm:$0xff] %v1618_v8  ;;  %v1184_v14 = vadd.f32 %v1618_v8, %v1183_v6  ;;  %v1207_v15 = vmul.f32 %v1618_v8, %v1618_v8 }
 0x15d   :  { %v1373_v16 = vadd.f32 %v1372_v61, %v1358_v11  ;;  %1077 = vst [vmem:[%s2406_s2 + $0x1c8] sm:$0xff] %v1730_v12  ;;  %v1336_v17 = vadd.f32 %v1730_v12, %v1335_v10  ;;  %v1359_v18 = vmul.f32 %v1730_v12, %v1730_v12  ;;  %v1116_v12 = vadd.f32 %v1115_v62, %v2283_v22 }
 0x15e   :  { %v1222_v19 = vadd.f32 %v1221_v13, %v1207_v15  ;;  %v1619_v20 = vpop.f32.mrb[52].mxu0 }
 0x15f   :  { %v1374_v21 = vadd.f32 %v1373_v16, %v1359_v18  ;;  %v1731_v23 = vpop.f32.mrb[52].mxu1  ;;  %v1620_v24 = vpop.f32.mrb[53].mxu0  ;;  %v1305_v16 = vrot.slane %v2292_v29, 4 }
 0x160   :  { %v1621_v26 = vadd.f32 %v1620_v24, %v1619_v20  ;;  %v1732_v28 = vpop.f32.mrb[53].mxu1  ;;  %v1622_v30 = vpop.f32.mrb[54].mxu0  ;;  %v1268_v20 = vadd.f32 %v1267_v5, %v2288_v25 }
 0x161   :  { %v1733_v31 = vadd.f32 %v1732_v28, %v1731_v23  ;;  %v1734_v32 = vpop.f32.mrb[54].mxu1  ;;  %v1623_v33 = vpop.f32.mrb[55].mxu0 }
 0x162   :  { %565 = vst [vmem:[%s2406_s2 + $0xd0] sm:$0xff] %v1621_v26  ;;  %v1185_v34 = vadd.f32 %v1621_v26, %v1184_v14  ;;  %v1208_v35 = vmul.f32 %v1621_v26, %v1621_v26  ;;  %v1624_v36 = vadd.f32 %v1623_v33, %v1622_v30  ;;  %v1735_v37 = vpop.f32.mrb[55].mxu1  ;;  %v1154_v26 = vadd.f32 %v1153_v9, %v2290_v27 }
 0x163   :  { %1078 = vst [vmem:[%s2406_s2 + $0x1d0] sm:$0xff] %v1733_v31  ;;  %v1337_v38 = vadd.f32 %v1733_v31, %v1336_v17  ;;  %v1360_v39 = vmul.f32 %v1733_v31, %v1733_v31  ;;  %v1736_v40 = vadd.f32 %v1735_v37, %v1734_v32  ;;  %v1117_v32 = vrot.slane %v1116_v12, 2 }
 0x164   :  { %v1223_v41 = vadd.f32 %v1222_v19, %v1208_v35  ;;  %566 = vst [vmem:[%s2406_s2 + $0xd8] sm:$0xff] %v1624_v36  ;;  %v1186_v42 = vadd.f32 %v1624_v36, %v1185_v34  ;;  %v1209_v43 = vmul.f32 %v1624_v36, %v1624_v36  ;;  %v1306_v35 = vadd.f32 %v1305_v16, %v2292_v29 }
 0x165   :  { %v1375_v44 = vadd.f32 %v1374_v21, %v1360_v39  ;;  %1079 = vst [vmem:[%s2406_s2 + $0x1d8] sm:$0xff] %v1736_v40  ;;  %v1338_v45 = vadd.f32 %v1736_v40, %v1337_v38  ;;  %v1361_v46 = vmul.f32 %v1736_v40, %v1736_v40  ;;  %v1269_v38 = vrot.slane %v1268_v20, 2 }
 0x166   :  { %v1224_v47 = vadd.f32 %v1223_v41, %v1209_v43  ;;  %v1625_v48 = vpop.f32.mrb[56].mxu0 }
 0x167   :  { %v1376_v49 = vadd.f32 %v1375_v44, %v1361_v46  ;;  %v1737_v50 = vpop.f32.mrb[56].mxu1  ;;  %v1626_v51 = vpop.f32.mrb[57].mxu0 }
 0x168   :  { %v1627_v52 = vadd.f32 %v1626_v51, %v1625_v48  ;;  %v1738_v53 = vpop.f32.mrb[57].mxu1  ;;  %v1628_v54 = vpop.f32.mrb[58].mxu0 }
 0x169   :  { %v1739_v55 = vadd.f32 %v1738_v53, %v1737_v50  ;;  %v1740_v56 = vpop.f32.mrb[58].mxu1  ;;  %v1629_v57 = vpop.f32.mrb[59].mxu0  ;;  %v1270_v50 = vadd.f32 %v1269_v38, %v1268_v20 }
 0x16a   :  { %567 = vst [vmem:[%s2406_s2 + $0xe0] sm:$0xff] %v1627_v52  ;;  %v1187_v58 = vadd.f32 %v1627_v52, %v1186_v42  ;;  %v1210_v59 = vmul.f32 %v1627_v52, %v1627_v52  ;;  %v1630_v60 = vadd.f32 %v1629_v57, %v1628_v54  ;;  %v1741_v61 = vpop.f32.mrb[59].mxu1  ;;  %v1155_v42 = vrot.slane %v1154_v26, 2 }
 0x16b   :  { %1080 = vst [vmem:[%s2406_s2 + $0x1e0] sm:$0xff] %v1739_v55  ;;  %v1339_v63 = vadd.f32 %v1739_v55, %v1338_v45  ;;  %v1362_v0 = vmul.f32 %v1739_v55, %v1739_v55  ;;  %v1742_v1 = vadd.f32 %v1741_v61, %v1740_v56  ;;  %v1118_v45 = vadd.f32 %v1117_v32, %v1116_v12 }
 0x16c   :  { %v1225_v2 = vadd.f32 %v1224_v47, %v1210_v59  ;;  %568 = vst [vmem:[%s2406_s2 + $0xe8] sm:$0xff] %v1630_v60  ;;  %v1188_v3 = vadd.f32 %v1630_v60, %v1187_v58  ;;  %v1211_v4 = vmul.f32 %v1630_v60, %v1630_v60  ;;  %v1307_v47 = vrot.slane %v1306_v35, 2 }
 0x16d   :  { %v1377_v6 = vadd.f32 %v1376_v49, %v1362_v0  ;;  %1081 = vst [vmem:[%s2406_s2 + $0x1e8] sm:$0xff] %v1742_v1  ;;  %v1340_v7 = vadd.f32 %v1742_v1, %v1339_v63  ;;  %v1363_v8 = vmul.f32 %v1742_v1, %v1742_v1  ;;  %v1156_v53 = vadd.f32 %v1155_v42, %v1154_v26 }
 0x16e   :  { %v1226_v10 = vadd.f32 %v1225_v2, %v1211_v4  ;;  %v1631_v11 = vpop.f32.mrb[60].mxu0  ;;  %v1119_v56 = vrot.slane %v1118_v45, 1  ;;  %v1308_v59 = vadd.f32 %v1307_v47, %v1306_v35  ;;  %v1271_v62 = vrot.slane %v1270_v50, 1 }
 0x16f   :  { %v1378_v13 = vadd.f32 %v1377_v6, %v1363_v8  ;;  %v1743_v14 = vpop.f32.mrb[60].mxu1  ;;  %v1632_v15 = vpop.f32.mrb[61].mxu0  ;;  %v1157_v1 = vrot.slane %v1156_v53, 1 }
 0x170   :  { %v1633_v17 = vadd.f32 %v1632_v15, %v1631_v11  ;;  %v1744_v18 = vpop.f32.mrb[61].mxu1  ;;  %v1634_v19 = vpop.f32.mrb[62].mxu0  ;;  %v1120_v4 = vadd.f32 %v1119_v56, %v1118_v45  ;;  %v1309_v6 = vrot.slane %v1308_v59, 1 }
 0x171   :  { %v1745_v21 = vadd.f32 %v1744_v18, %v1743_v14  ;;  %v1746_v23 = vpop.f32.mrb[62].mxu1  ;;  %v1635_v24 = vpop.f32.mrb[63].mxu0  ;;  %v1158_v11 = vadd.f32 %v1157_v1, %v1156_v53 }
 0x172   :  { %569 = vst [vmem:[%s2406_s2 + $0xf0] sm:$0xff] %v1633_v17  ;;  %v1189_v22 = vadd.f32 %v1633_v17, %v1188_v3  ;;  %v1212_v28 = vmul.f32 %v1633_v17, %v1633_v17  ;;  %v1636_v30 = vadd.f32 %v1635_v24, %v1634_v19  ;;  %v1747_v31 = vpop.f32.mrb[63].mxu1  ;;  %v1310_v15 = vadd.f32 %v1309_v6, %v1308_v59  ;;  %v1388_v24 = vld [vmem:[%s2407_s3] sm:$0x3] }
 0x173   :  { %1082 = vst [vmem:[%s2406_s2 + $0x1f0] sm:$0xff] %v1745_v21  ;;  %v1341_v33 = vadd.f32 %v1745_v21, %v1340_v7  ;;  %v1364_v25 = vmul.f32 %v1745_v21, %v1745_v21  ;;  %v1748_v34 = vadd.f32 %v1747_v31, %v1746_v23 }
 0x174   :  { %v1227_v36 = vadd.f32 %v1226_v10, %v1212_v28  ;;  %570 = vst [vmem:[%s2406_s2 + $0xf8] sm:$0xff] %v1636_v30  ;;  %v1190_v27 = vadd.f32 %v1636_v30, %v1189_v22  ;;  %v1213_v37 = vmul.f32 %v1636_v30, %v1636_v30  ;;  %v1272_v10 = vadd.f32 %v1271_v62, %v1270_v50 }
 0x175   :  { %v1379_v39 = vadd.f32 %v1378_v13, %v1364_v25  ;;  %1083 = vst [vmem:[%s2406_s2 + $0x1f8] sm:$0xff] %v1748_v34  ;;  %v1342_v40 = vadd.f32 %v1748_v34, %v1341_v33  ;;  %v1365_v41 = vmul.f32 %v1748_v34, %v1748_v34 }
 0x176   :  { %v1191_v43 = vrot.slane %v1190_v27, 4  ;;  %v1228_v44 = vadd.f32 %v1227_v36, %v1213_v37 }
 0x177   :  { %v1343_v29 = vrot.slane %v1342_v40, 4  ;;  %v1380_v46 = vadd.f32 %v1379_v39, %v1365_v41 }
 0x178   :  { %v1192_v48 = vadd.f32 %v1191_v43, %v1190_v27  ;;  %v1229_v49 = vrot.slane %v1228_v44, 4 }
 0x179   :  { %v1344_v51 = vadd.f32 %v1343_v29, %v1342_v40  ;;  %v1381_v52 = vrot.slane %v1380_v46, 4 }
 0x17a   :  { %v1193_v54 = vrot.slane %v1192_v48, 2  ;;  %v1230_v55 = vadd.f32 %v1229_v49, %v1228_v44 }
 0x17b   :  { %v1345_v57 = vrot.slane %v1344_v51, 2  ;;  %v1382_v58 = vadd.f32 %v1381_v52, %v1380_v46 }
 0x17c   :  { %v1194_v60 = vadd.f32 %v1193_v54, %v1192_v48  ;;  %v1231_v61 = vrot.slane %v1230_v55, 2 }
 0x17d   :  { %v1346_v63 = vadd.f32 %v1345_v57, %v1344_v51  ;;  %v1383_v0 = vrot.slane %v1382_v58, 2 }
 0x17e   :  { %v1195_v2 = vrot.slane %v1194_v60, 1  ;;  %v1232_v3 = vadd.f32 %v1231_v61, %v1230_v55 }
 0x17f   :  { %v1384_v5 = vadd.f32 %v1383_v0, %v1382_v58  ;;  %v1347_v9 = vrot.slane %v1346_v63, 1 }
 0x180   :  { %v1196_v7 = vadd.f32 %v1195_v2, %v1194_v60  ;;  %v1233_v8 = vrot.slane %v1232_v3, 1 }
 0x181   :  { %v1385_v14 = vrot.slane %v1384_v5, 1  ;;  %v1348_v18 = vadd.f32 %v1347_v9, %v1346_v63 }
 0x182   :  { %v1197_v12 = vadd.f32 %v1196_v7, %v1120_v4  ;;  %v1234_v13 = vadd.f32 %v1233_v8, %v1232_v3 }
 0x183   :  { %v1386_v21 = vadd.f32 %v1385_v14, %v1384_v5 }
 0x184   :  { %v1235_v16 = vadd.f32 %v1234_v13, %v1158_v11  ;;  %v1273_v17 = vadd.f32 %v1272_v10, %v1197_v12 }
 0x186   :  { %v1311_v19 = vadd.f32 %v1310_v15, %v1235_v16  ;;  %v1349_v20 = vadd.f32 %v1348_v18, %v1273_v17 }
 0x188   :  { %v1387_v23 = vadd.f32 %v1386_v21, %v1311_v19 }
 0x18a   :  { %v1390_v26 = vsel %vm1389_vm0, %v1349_v20, %v1387_v23 }
 0x18b   :  { %v1391_v22 = vadd.f32 %v1390_v26, %v1388_v24 }
 0x18d   :  { %1392 = vst [vmem:[%s2407_s3] sm:$0x3] %v1391_v22 }

// kernel: allcnn_forward.30
= control target key start
LH: loop header
LB: loop body
LE: loop exit
PB: predicated region body
PF: predicated region fallthrough
CT: control target
= control target key end

     0   :  { %v1028_v7 = vmov 1966171168   ;;  %v33_v9 = vlaneseq  ;;  %s1483_s1 = inlined_call_operand.vmem [shape: f32[1,2,128], index: 1, kind: input, shape index: {}]   ;;  %s1484_s2 = inlined_call_operand.vmem [shape: f32[1,128], index: 2, kind: input, shape index: {}]   ;;  %s1485_s0 = inlined_call_operand.vmem [shape: f32[512,128], index: 0, kind: input, shape index: {}]   ;;  %s1486_s3 = inlined_call_operand.vmem [shape: f32[1,128], index: 3, kind: input, shape index: {}]   ;;  %s1487_s4 = inlined_call_operand.vmem [shape: bf16[512,128], index: 4, kind: output, shape index: {}]  }
   0x1   :  { %v17_v0 = vld [vmem:[%s1483_s1] sm:$0x3]  ;;  %v31_v8 = vunpack.c.l.s4 %v1028_v7  ;;  %v51_v22 = vld [vmem:[%s1485_s0 + $0x8] sm:$0xff]  ;;  %v52_v23 = vld [vmem:[%s1485_s0 + $0x10] sm:$0xff] }
   0x2   :  { %v19_v1 = vmul.f32 0.001953125, %v17_v0  ;;  %v34_v11 = vshrl.u32 %v33_v9, 7  ;;  %v26_v16 = vld [vmem:[%s1484_s2] sm:$0x1]  ;;  %v53_v24 = vld [vmem:[%s1485_s0 + $0x18] sm:$0xff]  ;;  %v55_v28 = vld [vmem:[%s1485_s0 + $0x28] sm:$0xff] }
   0x3   :  { %v32_v10 = vunpack.c.0.s8 %v31_v8  ;;  %v47_v20 = vld [vmem:[%s1486_s3] sm:$0x1]  ;;  %v56_v29 = vld [vmem:[%s1485_s0 + $0x30] sm:$0xff]  ;;  %v57_v30 = vld [vmem:[%s1485_s0 + $0x38] sm:$0xff] }
   0x4   :  { %v20_v2 = vmul.f32 %v19_v1, %v19_v1  ;;  %v117_v18 = vsub.s32 0, %v34_v11  ;;  %v50_v21 = vld [vmem:[%s1485_s0] sm:$0xff]  ;;  %v59_v32 = vld [vmem:[%s1485_s0 + $0x48] sm:$0xff]  ;;  %v60_v33 = vld [vmem:[%s1485_s0 + $0x50] sm:$0xff] }
   0x5   :  { %v35_v12 = vsub.s32 %v32_v10, %v34_v11  ;;  %v54_v25 = vld [vmem:[%s1485_s0 + $0x20] sm:$0xff]  ;;  %v61_v38 = vld [vmem:[%s1485_s0 + $0x58] sm:$0xff]  ;;  %v63_v40 = vld [vmem:[%s1485_s0 + $0x68] sm:$0xff] }
   0x6   :  { %v22_v3 = vrot.slane %v20_v2, 7  ;;  %v58_v31 = vld [vmem:[%s1485_s0 + $0x40] sm:$0xff] }
   0x7   :  { %v62_v39 = vld [vmem:[%s1485_s0 + $0x60] sm:$0xff] }
   0x8   :  { %v24_v4 = vsub.f32 %v19_v1, %v22_v3 }
   0xa   :  { %v25_v5 = vmax.f32 %v24_v4, 0.0 }
   0xc   :  { %v27_v6 = vadd.f32 1e-05, %v25_v5 }
   0xe   :  { %1026 = vrsqrt.f32 %v27_v6 }
  0x18   :  { %v1027_v13 = vpop.eup %1026 }
  0x19   :  { %v36_v14 = vrot.slane %v1027_v13, %v35_v12 }
  0x1b   :  { %v37_v15 = vcombine.high %v36_v14, %v36_v14 }
  0x1d   :  { %v44_v17 = vrot.slane %v37_v15, %v35_v12 }
  0x1f   :  { %v46_v19 = vmul.f32 %v44_v17, %v26_v16  ;;  %v64_v17 = vld [vmem:[%s1485_s0 + $0x70] sm:$0xff] }
  0x21   :  { %v48_v26 = vmul.f32 %v46_v19, %v19_v1  ;;  %v1078_v27 = vrot.slane %v46_v19, %v117_v18 }
  0x23   :  { %v49_v34 = vsub.f32 %v47_v20, %v48_v26  ;;  %v120_v35 = vmul.f32 %v1078_v27, %v50_v21  ;;  %v121_v36 = vmul.f32 %v1078_v27, %v51_v22  ;;  %v122_v37 = vmul.f32 %v1078_v27, %v52_v23  ;;  %v65_v22 = vld [vmem:[%s1485_s0 + $0x78] sm:$0xff] }
  0x24   :  { %v123_v41 = vmul.f32 %v1078_v27, %v53_v24  ;;  %v124_v42 = vmul.f32 %v1078_v27, %v54_v25  ;;  %v125_v43 = vmul.f32 %v1078_v27, %v55_v28  ;;  %v126_v44 = vmul.f32 %v1078_v27, %v56_v29  ;;  %v66_v28 = vld [vmem:[%s1485_s0 + $0x80] sm:$0xff] }
  0x25   :  { %v1114_v45 = vrot.slane %v49_v34, %v117_v18  ;;  %v127_v46 = vmul.f32 %v1078_v27, %v57_v30  ;;  %v128_v47 = vmul.f32 %v1078_v27, %v58_v31  ;;  %v129_v48 = vmul.f32 %v1078_v27, %v59_v32 }
  0x26   :  { %v130_v49 = vmul.f32 %v1078_v27, %v60_v33  ;;  %v131_v50 = vmul.f32 %v1078_v27, %v61_v38  ;;  %v132_v51 = vmul.f32 %v1078_v27, %v62_v39  ;;  %v133_v52 = vmul.f32 %v1078_v27, %v63_v40  ;;  %v67_v33 = vld [vmem:[%s1485_s0 + $0x88] sm:$0xff]  ;;  %v68_v38 = vld [vmem:[%s1485_s0 + $0x90] sm:$0xff] }
  0x27   :  { %v190_v53 = vadd.f32 %v1114_v45, %v120_v35  ;;  %v191_v54 = vadd.f32 %v1114_v45, %v121_v36  ;;  %v192_v55 = vadd.f32 %v1114_v45, %v122_v37  ;;  %v193_v56 = vadd.f32 %v1114_v45, %v123_v41 }
  0x28   :  { %v194_v57 = vadd.f32 %v1114_v45, %v124_v42  ;;  %v195_v58 = vadd.f32 %v1114_v45, %v125_v43  ;;  %v196_v59 = vadd.f32 %v1114_v45, %v126_v44  ;;  %v197_v60 = vadd.f32 %v1114_v45, %v127_v46  ;;  %v69_v43 = vld [vmem:[%s1485_s0 + $0x98] sm:$0xff] }
  0x29   :  { %v254_v61 = vmul.f32 0.1, %v190_v53  ;;  %v255_v62 = vmul.f32 0.1, %v191_v54  ;;  %v256_v63 = vmul.f32 0.1, %v192_v55  ;;  %v198_v0 = vadd.f32 %v1114_v45, %v128_v47 }
  0x2a   :  { %v257_v1 = vmul.f32 0.1, %v193_v56  ;;  %v258_v2 = vmul.f32 0.1, %v194_v57  ;;  %v259_v3 = vmul.f32 0.1, %v195_v58  ;;  %v199_v4 = vadd.f32 %v1114_v45, %v129_v48 }
  0x2b   :  { %v318_v5 = vmax.f32 %v190_v53, %v254_v61  ;;  %v319_v6 = vmax.f32 %v191_v54, %v255_v62  ;;  %v320_v7 = vmax.f32 %v192_v55, %v256_v63  ;;  %v260_v8 = vmul.f32 0.1, %v196_v59  ;;  %v70_v53 = vld [vmem:[%s1485_s0 + $0xa0] sm:$0xff] }
  0x2c   :  { %v321_v9 = vmax.f32 %v193_v56, %v257_v1  ;;  %v322_v10 = vmax.f32 %v194_v57, %v258_v2  ;;  %v323_v11 = vmax.f32 %v195_v58, %v259_v3  ;;  %v261_v12 = vmul.f32 0.1, %v197_v60  ;;  %v71_v58 = vld [vmem:[%s1485_s0 + $0xa8] sm:$0xff] }
  0x2d   :  { %v837_v13 = vpack.c.bf16 %v319_v6, %v318_v5  ;;  %v324_v14 = vmax.f32 %v196_v59, %v260_v8  ;;  %v262_v15 = vmul.f32 0.1, %v198_v0  ;;  %v263_v16 = vmul.f32 0.1, %v199_v4  ;;  %v72_v59 = vld [vmem:[%s1485_s0 + $0xb0] sm:$0xff] }
  0x2e   :  { %v842_v18 = vpack.c.bf16 %v321_v9, %v320_v7  ;;  %v847_v19 = vpack.c.bf16 %v323_v11, %v322_v10  ;;  %v325_v20 = vmax.f32 %v197_v60, %v261_v12  ;;  %v200_v21 = vadd.f32 %v1114_v45, %v130_v49  ;;  %v74_v9 = vld [vmem:[%s1485_s0 + $0xc0] sm:$0xff] }
  0x2f   :  { %838 = vst [vmem:[%s1487_s4] sm:$0xff] %v837_v13   ;;  %v326_v23 = vmax.f32 %v198_v0, %v262_v15  ;;  %v327_v24 = vmax.f32 %v199_v4, %v263_v16  ;;  %v201_v25 = vadd.f32 %v1114_v45, %v131_v50  ;;  %v202_v26 = vadd.f32 %v1114_v45, %v132_v51  ;;  %v73_v4 = vld [vmem:[%s1485_s0 + $0xb8] sm:$0xff] }
  0x30   :  { %994 = vst [vmem:[%s1487_s4 + $0x8] sm:$0xff] %v842_v18   ;;  %995 = vst [vmem:[%s1487_s4 + $0x10] sm:$0xff] %v847_v19   ;;  %v852_v29 = vpack.c.bf16 %v325_v20, %v324_v14  ;;  %v264_v30 = vmul.f32 0.1, %v200_v21  ;;  %v203_v31 = vadd.f32 %v1114_v45, %v133_v52  ;;  %v134_v32 = vmul.f32 %v1078_v27, %v64_v17  ;;  %v75_v14 = vld [vmem:[%s1485_s0 + $0xc8] sm:$0xff]  ;;  %v76_v19 = vld [vmem:[%s1485_s0 + $0xd0] sm:$0xff] }
  0x31   :  { %v857_v34 = vpack.c.bf16 %v327_v24, %v326_v23  ;;  %v265_v35 = vmul.f32 0.1, %v201_v25  ;;  %v266_v36 = vmul.f32 0.1, %v202_v26  ;;  %v135_v37 = vmul.f32 %v1078_v27, %v65_v22 }
  0x32   :  { %996 = vst [vmem:[%s1487_s4 + $0x18] sm:$0xff] %v852_v29   ;;  %v328_v39 = vmax.f32 %v200_v21, %v264_v30  ;;  %v267_v40 = vmul.f32 0.1, %v203_v31  ;;  %v204_v41 = vadd.f32 %v1114_v45, %v134_v32  ;;  %v136_v42 = vmul.f32 %v1078_v27, %v66_v28  ;;  %v77_v29 = vld [vmem:[%s1485_s0 + $0xd8] sm:$0xff]  ;;  %v78_v30 = vld [vmem:[%s1485_s0 + $0xe0] sm:$0xff] }
  0x33   :  { %997 = vst [vmem:[%s1487_s4 + $0x20] sm:$0xff] %v857_v34   ;;  %v329_v44 = vmax.f32 %v201_v25, %v265_v35  ;;  %v330_v46 = vmax.f32 %v202_v26, %v266_v36  ;;  %v205_v47 = vadd.f32 %v1114_v45, %v135_v37  ;;  %v137_v48 = vmul.f32 %v1078_v27, %v67_v33  ;;  %v79_v35 = vld [vmem:[%s1485_s0 + $0xe8] sm:$0xff] }
  0x34   :  { %v331_v49 = vmax.f32 %v203_v31, %v267_v40  ;;  %v268_v50 = vmul.f32 0.1, %v204_v41  ;;  %v206_v51 = vadd.f32 %v1114_v45, %v136_v42  ;;  %v138_v52 = vmul.f32 %v1078_v27, %v68_v38 }
  0x35   :  { %v862_v54 = vpack.c.bf16 %v329_v44, %v328_v39  ;;  %v269_v55 = vmul.f32 0.1, %v205_v47  ;;  %v207_v56 = vadd.f32 %v1114_v45, %v137_v48  ;;  %v139_v57 = vmul.f32 %v1078_v27, %v69_v43  ;;  %v80_v44 = vld [vmem:[%s1485_s0 + $0xf0] sm:$0xff] }
  0x36   :  { %v867_v60 = vpack.c.bf16 %v331_v49, %v330_v46  ;;  %v332_v61 = vmax.f32 %v204_v41, %v268_v50  ;;  %v270_v62 = vmul.f32 0.1, %v206_v51  ;;  %v208_v63 = vadd.f32 %v1114_v45, %v138_v52  ;;  %v81_v50 = vld [vmem:[%s1485_s0 + $0xf8] sm:$0xff] }
  0x37   :  { %998 = vst [vmem:[%s1487_s4 + $0x28] sm:$0xff] %v862_v54   ;;  %v333_v0 = vmax.f32 %v205_v47, %v269_v55  ;;  %v271_v1 = vmul.f32 0.1, %v207_v56  ;;  %v209_v2 = vadd.f32 %v1114_v45, %v139_v57  ;;  %v140_v3 = vmul.f32 %v1078_v27, %v70_v53  ;;  %v82_v55 = vld [vmem:[%s1485_s0 + $0x100] sm:$0xff] }
  0x38   :  { %999 = vst [vmem:[%s1487_s4 + $0x30] sm:$0xff] %v867_v60   ;;  %v334_v5 = vmax.f32 %v206_v51, %v270_v62  ;;  %v272_v6 = vmul.f32 0.1, %v208_v63  ;;  %v141_v7 = vmul.f32 %v1078_v27, %v71_v58  ;;  %v142_v8 = vmul.f32 %v1078_v27, %v72_v59  ;;  %v83_v60 = vld [vmem:[%s1485_s0 + $0x108] sm:$0xff] }
  0x39   :  { %v872_v10 = vpack.c.bf16 %v333_v0, %v332_v61  ;;  %v335_v11 = vmax.f32 %v207_v56, %v271_v1  ;;  %v273_v12 = vmul.f32 0.1, %v209_v2  ;;  %v210_v13 = vadd.f32 %v1114_v45, %v140_v3  ;;  %v84_v1 = vld [vmem:[%s1485_s0 + $0x110] sm:$0xff] }
  0x3a   :  { %v336_v15 = vmax.f32 %v208_v63, %v272_v6  ;;  %v211_v16 = vadd.f32 %v1114_v45, %v141_v7  ;;  %v143_v17 = vmul.f32 %v1078_v27, %v73_v4  ;;  %v212_v18 = vadd.f32 %v1114_v45, %v142_v8  ;;  %v85_v6 = vld [vmem:[%s1485_s0 + $0x118] sm:$0xff] }
  0x3b   :  { %1000 = vst [vmem:[%s1487_s4 + $0x38] sm:$0xff] %v872_v10   ;;  %v877_v20 = vpack.c.bf16 %v335_v11, %v334_v5  ;;  %v337_v21 = vmax.f32 %v209_v2, %v273_v12  ;;  %v274_v22 = vmul.f32 0.1, %v210_v13  ;;  %v144_v23 = vmul.f32 %v1078_v27, %v74_v9 }
  0x3c   :  { %v275_v24 = vmul.f32 0.1, %v211_v16  ;;  %v213_v25 = vadd.f32 %v1114_v45, %v143_v17  ;;  %v276_v26 = vmul.f32 0.1, %v212_v18  ;;  %v145_v28 = vmul.f32 %v1078_v27, %v75_v14 }
  0x3d   :  { %1001 = vst [vmem:[%s1487_s4 + $0x40] sm:$0xff] %v877_v20   ;;  %v882_v31 = vpack.c.bf16 %v337_v21, %v336_v15  ;;  %v338_v32 = vmax.f32 %v210_v13, %v274_v22  ;;  %v214_v33 = vadd.f32 %v1114_v45, %v144_v23  ;;  %v146_v34 = vmul.f32 %v1078_v27, %v76_v19  ;;  %v86_v15 = vld [vmem:[%s1485_s0 + $0x120] sm:$0xff]  ;;  %v87_v20 = vld [vmem:[%s1485_s0 + $0x128] sm:$0xff]  ;;  %v88_v21 = vld [vmem:[%s1485_s0 + $0x130] sm:$0xff] }
  0x3e   :  { %v339_v36 = vmax.f32 %v211_v16, %v275_v24  ;;  %v277_v37 = vmul.f32 0.1, %v213_v25  ;;  %v340_v38 = vmax.f32 %v212_v18, %v276_v26  ;;  %v215_v39 = vadd.f32 %v1114_v45, %v145_v28 }
  0x3f   :  { %1002 = vst [vmem:[%s1487_s4 + $0x48] sm:$0xff] %v882_v31   ;;  %v278_v40 = vmul.f32 0.1, %v214_v33  ;;  %v147_v41 = vmul.f32 %v1078_v27, %v77_v29  ;;  %v216_v42 = vadd.f32 %v1114_v45, %v146_v34  ;;  %v148_v43 = vmul.f32 %v1078_v27, %v78_v30  ;;  %v89_v31 = vld [vmem:[%s1485_s0 + $0x138] sm:$0xff] }
  0x40   :  { %v887_v46 = vpack.c.bf16 %v339_v36, %v338_v32  ;;  %v341_v47 = vmax.f32 %v213_v25, %v277_v37  ;;  %v279_v48 = vmul.f32 0.1, %v215_v39  ;;  %v149_v49 = vmul.f32 %v1078_v27, %v79_v35  ;;  %v90_v36 = vld [vmem:[%s1485_s0 + $0x140] sm:$0xff] }
  0x41   :  { %v342_v51 = vmax.f32 %v214_v33, %v278_v40  ;;  %v217_v52 = vadd.f32 %v1114_v45, %v147_v41  ;;  %v280_v53 = vmul.f32 0.1, %v216_v42  ;;  %v218_v54 = vadd.f32 %v1114_v45, %v148_v43  ;;  %v91_v41 = vld [vmem:[%s1485_s0 + $0x148] sm:$0xff] }
  0x42   :  { %1003 = vst [vmem:[%s1487_s4 + $0x50] sm:$0xff] %v887_v46   ;;  %v892_v56 = vpack.c.bf16 %v341_v47, %v340_v38  ;;  %v343_v57 = vmax.f32 %v215_v39, %v279_v48  ;;  %v219_v58 = vadd.f32 %v1114_v45, %v149_v49  ;;  %v150_v59 = vmul.f32 %v1078_v27, %v80_v44  ;;  %v92_v47 = vld [vmem:[%s1485_s0 + $0x150] sm:$0xff] }
  0x43   :  { %v281_v61 = vmul.f32 0.1, %v217_v52  ;;  %v344_v62 = vmax.f32 %v216_v42, %v280_v53  ;;  %v282_v63 = vmul.f32 0.1, %v218_v54  ;;  %v151_v0 = vmul.f32 %v1078_v27, %v81_v50 }
  0x44   :  { %1004 = vst [vmem:[%s1487_s4 + $0x58] sm:$0xff] %v892_v56   ;;  %v897_v2 = vpack.c.bf16 %v343_v57, %v342_v51  ;;  %v283_v3 = vmul.f32 0.1, %v219_v58  ;;  %v220_v4 = vadd.f32 %v1114_v45, %v150_v59  ;;  %v152_v5 = vmul.f32 %v1078_v27, %v82_v55  ;;  %v93_v56 = vld [vmem:[%s1485_s0 + $0x158] sm:$0xff]  ;;  %v94_v57 = vld [vmem:[%s1485_s0 + $0x160] sm:$0xff] }
  0x45   :  { %v345_v7 = vmax.f32 %v217_v52, %v281_v61  ;;  %v346_v8 = vmax.f32 %v218_v54, %v282_v63  ;;  %v221_v9 = vadd.f32 %v1114_v45, %v151_v0  ;;  %v153_v10 = vmul.f32 %v1078_v27, %v83_v60 }
  0x46   :  { %1005 = vst [vmem:[%s1487_s4 + $0x60] sm:$0xff] %v897_v2   ;;  %v347_v11 = vmax.f32 %v219_v58, %v283_v3  ;;  %v284_v12 = vmul.f32 0.1, %v220_v4  ;;  %v222_v13 = vadd.f32 %v1114_v45, %v152_v5  ;;  %v154_v14 = vmul.f32 %v1078_v27, %v84_v1 }
  0x47   :  { %v902_v16 = vpack.c.bf16 %v345_v7, %v344_v62  ;;  %v285_v17 = vmul.f32 0.1, %v221_v9  ;;  %v223_v18 = vadd.f32 %v1114_v45, %v153_v10  ;;  %v155_v19 = vmul.f32 %v1078_v27, %v85_v6  ;;  %v95_v62 = vld [vmem:[%s1485_s0 + $0x168] sm:$0xff]  ;;  %v96_v7 = vld [vmem:[%s1485_s0 + $0x170] sm:$0xff] }
  0x48   :  { %v907_v22 = vpack.c.bf16 %v347_v11, %v346_v8  ;;  %v348_v23 = vmax.f32 %v220_v4, %v284_v12  ;;  %v286_v24 = vmul.f32 0.1, %v222_v13  ;;  %v224_v25 = vadd.f32 %v1114_v45, %v154_v14  ;;  %v97_v12 = vld [vmem:[%s1485_s0 + $0x178] sm:$0xff] }
  0x49   :  { %1006 = vst [vmem:[%s1487_s4 + $0x68] sm:$0xff] %v902_v16   ;;  %v349_v26 = vmax.f32 %v221_v9, %v285_v17  ;;  %v287_v28 = vmul.f32 0.1, %v223_v18  ;;  %v225_v29 = vadd.f32 %v1114_v45, %v155_v19  ;;  %v156_v30 = vmul.f32 %v1078_v27, %v86_v15  ;;  %v98_v17 = vld [vmem:[%s1485_s0 + $0x180] sm:$0xff] }
  0x4a   :  { %1007 = vst [vmem:[%s1487_s4 + $0x70] sm:$0xff] %v907_v22   ;;  %v350_v32 = vmax.f32 %v222_v13, %v286_v24  ;;  %v288_v33 = vmul.f32 0.1, %v224_v25  ;;  %v157_v34 = vmul.f32 %v1078_v27, %v87_v20  ;;  %v158_v35 = vmul.f32 %v1078_v27, %v88_v21  ;;  %v99_v22 = vld [vmem:[%s1485_s0 + $0x188] sm:$0xff] }
  0x4b   :  { %v912_v37 = vpack.c.bf16 %v349_v26, %v348_v23  ;;  %v351_v38 = vmax.f32 %v223_v18, %v287_v28  ;;  %v289_v39 = vmul.f32 0.1, %v225_v29  ;;  %v226_v40 = vadd.f32 %v1114_v45, %v156_v30  ;;  %v100_v28 = vld [vmem:[%s1485_s0 + $0x190] sm:$0xff] }
  0x4c   :  { %v352_v42 = vmax.f32 %v224_v25, %v288_v33  ;;  %v227_v43 = vadd.f32 %v1114_v45, %v157_v34  ;;  %v159_v44 = vmul.f32 %v1078_v27, %v89_v31  ;;  %v228_v46 = vadd.f32 %v1114_v45, %v158_v35  ;;  %v101_v33 = vld [vmem:[%s1485_s0 + $0x198] sm:$0xff] }
  0x4d   :  { %1008 = vst [vmem:[%s1487_s4 + $0x78] sm:$0xff] %v912_v37   ;;  %v917_v48 = vpack.c.bf16 %v351_v38, %v350_v32  ;;  %v353_v49 = vmax.f32 %v225_v29, %v289_v39  ;;  %v290_v50 = vmul.f32 0.1, %v226_v40  ;;  %v160_v51 = vmul.f32 %v1078_v27, %v90_v36 }
  0x4e   :  { %v291_v52 = vmul.f32 0.1, %v227_v43  ;;  %v229_v53 = vadd.f32 %v1114_v45, %v159_v44  ;;  %v292_v54 = vmul.f32 0.1, %v228_v46  ;;  %v161_v55 = vmul.f32 %v1078_v27, %v91_v41 }
  0x4f   :  { %1009 = vst [vmem:[%s1487_s4 + $0x80] sm:$0xff] %v917_v48   ;;  %v922_v58 = vpack.c.bf16 %v353_v49, %v352_v42  ;;  %v354_v59 = vmax.f32 %v226_v40, %v290_v50  ;;  %v230_v60 = vadd.f32 %v1114_v45, %v160_v51  ;;  %v162_v61 = vmul.f32 %v1078_v27, %v92_v47  ;;  %v102_v42 = vld [vmem:[%s1485_s0 + $0x1a0] sm:$0xff]  ;;  %v103_v48 = vld [vmem:[%s1485_s0 + $0x1a8] sm:$0xff]  ;;  %v104_v49 = vld [vmem:[%s1485_s0 + $0x1b0] sm:$0xff] }
  0x50   :  { %v355_v63 = vmax.f32 %v227_v43, %v291_v52  ;;  %v293_v0 = vmul.f32 0.1, %v229_v53  ;;  %v356_v1 = vmax.f32 %v228_v46, %v292_v54  ;;  %v231_v2 = vadd.f32 %v1114_v45, %v161_v55 }
  0x51   :  { %1010 = vst [vmem:[%s1487_s4 + $0x88] sm:$0xff] %v922_v58   ;;  %v294_v3 = vmul.f32 0.1, %v230_v60  ;;  %v163_v4 = vmul.f32 %v1078_v27, %v93_v56  ;;  %v232_v5 = vadd.f32 %v1114_v45, %v162_v61  ;;  %v164_v6 = vmul.f32 %v1078_v27, %v94_v57  ;;  %v105_v58 = vld [vmem:[%s1485_s0 + $0x1b8] sm:$0xff] }
  0x52   :  { %v927_v8 = vpack.c.bf16 %v355_v63, %v354_v59  ;;  %v357_v9 = vmax.f32 %v229_v53, %v293_v0  ;;  %v295_v10 = vmul.f32 0.1, %v231_v2  ;;  %v165_v11 = vmul.f32 %v1078_v27, %v95_v62  ;;  %v106_v63 = vld [vmem:[%s1485_s0 + $0x1c0] sm:$0xff] }
  0x53   :  { %v358_v13 = vmax.f32 %v230_v60, %v294_v3  ;;  %v233_v14 = vadd.f32 %v1114_v45, %v163_v4  ;;  %v296_v15 = vmul.f32 0.1, %v232_v5  ;;  %v234_v16 = vadd.f32 %v1114_v45, %v164_v6  ;;  %v107_v4 = vld [vmem:[%s1485_s0 + $0x1c8] sm:$0xff] }
  0x54   :  { %1011 = vst [vmem:[%s1487_s4 + $0x90] sm:$0xff] %v927_v8   ;;  %v932_v18 = vpack.c.bf16 %v357_v9, %v356_v1  ;;  %v359_v19 = vmax.f32 %v231_v2, %v295_v10  ;;  %v235_v20 = vadd.f32 %v1114_v45, %v165_v11  ;;  %v166_v21 = vmul.f32 %v1078_v27, %v96_v7  ;;  %v108_v9 = vld [vmem:[%s1485_s0 + $0x1d0] sm:$0xff] }
  0x55   :  { %v297_v23 = vmul.f32 0.1, %v233_v14  ;;  %v360_v24 = vmax.f32 %v232_v5, %v296_v15  ;;  %v298_v25 = vmul.f32 0.1, %v234_v16  ;;  %v167_v26 = vmul.f32 %v1078_v27, %v97_v12 }
  0x56   :  { %1012 = vst [vmem:[%s1487_s4 + $0x98] sm:$0xff] %v932_v18   ;;  %v937_v29 = vpack.c.bf16 %v359_v19, %v358_v13  ;;  %v299_v30 = vmul.f32 0.1, %v235_v20  ;;  %v236_v31 = vadd.f32 %v1114_v45, %v166_v21  ;;  %v168_v32 = vmul.f32 %v1078_v27, %v98_v17  ;;  %v109_v18 = vld [vmem:[%s1485_s0 + $0x1d8] sm:$0xff]  ;;  %v110_v19 = vld [vmem:[%s1485_s0 + $0x1e0] sm:$0xff] }
  0x57   :  { %v361_v34 = vmax.f32 %v233_v14, %v297_v23  ;;  %v362_v35 = vmax.f32 %v234_v16, %v298_v25  ;;  %v237_v36 = vadd.f32 %v1114_v45, %v167_v26  ;;  %v169_v37 = vmul.f32 %v1078_v27, %v99_v22 }
  0x58   :  { %1013 = vst [vmem:[%s1487_s4 + $0xa0] sm:$0xff] %v937_v29   ;;  %v363_v38 = vmax.f32 %v235_v20, %v299_v30  ;;  %v300_v39 = vmul.f32 0.1, %v236_v31  ;;  %v238_v40 = vadd.f32 %v1114_v45, %v168_v32  ;;  %v170_v41 = vmul.f32 %v1078_v27, %v100_v28 }
  0x59   :  { %v942_v43 = vpack.c.bf16 %v361_v34, %v360_v24  ;;  %v301_v44 = vmul.f32 0.1, %v237_v36  ;;  %v239_v46 = vadd.f32 %v1114_v45, %v169_v37  ;;  %v171_v47 = vmul.f32 %v1078_v27, %v101_v33  ;;  %v111_v24 = vld [vmem:[%s1485_s0 + $0x1e8] sm:$0xff]  ;;  %v112_v34 = vld [vmem:[%s1485_s0 + $0x1f0] sm:$0xff] }
  0x5a   :  { %v947_v50 = vpack.c.bf16 %v363_v38, %v362_v35  ;;  %v364_v51 = vmax.f32 %v236_v31, %v300_v39  ;;  %v302_v52 = vmul.f32 0.1, %v238_v40  ;;  %v240_v53 = vadd.f32 %v1114_v45, %v170_v41  ;;  %v113_v39 = vld [vmem:[%s1485_s0 + $0x1f8] sm:$0xff] }
  0x5b   :  { %1014 = vst [vmem:[%s1487_s4 + $0xa8] sm:$0xff] %v942_v43   ;;  %v365_v54 = vmax.f32 %v237_v36, %v301_v44  ;;  %v303_v55 = vmul.f32 0.1, %v239_v46  ;;  %v241_v56 = vadd.f32 %v1114_v45, %v171_v47  ;;  %v172_v57 = vmul.f32 %v1078_v27, %v102_v42 }
  0x5c   :  { %1015 = vst [vmem:[%s1487_s4 + $0xb0] sm:$0xff] %v947_v50   ;;  %v366_v59 = vmax.f32 %v238_v40, %v302_v52  ;;  %v304_v60 = vmul.f32 0.1, %v240_v53  ;;  %v173_v61 = vmul.f32 %v1078_v27, %v103_v48  ;;  %v174_v62 = vmul.f32 %v1078_v27, %v104_v49 }
  0x5d   :  { %v952_v0 = vpack.c.bf16 %v365_v54, %v364_v51  ;;  %v367_v1 = vmax.f32 %v239_v46, %v303_v55  ;;  %v305_v2 = vmul.f32 0.1, %v241_v56  ;;  %v242_v3 = vadd.f32 %v1114_v45, %v172_v57 }
  0x5e   :  { %v368_v5 = vmax.f32 %v240_v53, %v304_v60  ;;  %v243_v6 = vadd.f32 %v1114_v45, %v173_v61  ;;  %v175_v7 = vmul.f32 %v1078_v27, %v105_v58  ;;  %v244_v8 = vadd.f32 %v1114_v45, %v174_v62 }
  0x5f   :  { %1016 = vst [vmem:[%s1487_s4 + $0xb8] sm:$0xff] %v952_v0   ;;  %v957_v10 = vpack.c.bf16 %v367_v1, %v366_v59  ;;  %v369_v11 = vmax.f32 %v241_v56, %v305_v2  ;;  %v306_v12 = vmul.f32 0.1, %v242_v3  ;;  %v176_v13 = vmul.f32 %v1078_v27, %v106_v63 }
  0x60   :  { %v307_v14 = vmul.f32 0.1, %v243_v6  ;;  %v245_v15 = vadd.f32 %v1114_v45, %v175_v7  ;;  %v308_v16 = vmul.f32 0.1, %v244_v8  ;;  %v177_v17 = vmul.f32 %v1078_v27, %v107_v4 }
  0x61   :  { %1017 = vst [vmem:[%s1487_s4 + $0xc0] sm:$0xff] %v957_v10   ;;  %v962_v20 = vpack.c.bf16 %v369_v11, %v368_v5  ;;  %v370_v21 = vmax.f32 %v242_v3, %v306_v12  ;;  %v246_v22 = vadd.f32 %v1114_v45, %v176_v13  ;;  %v178_v23 = vmul.f32 %v1078_v27, %v108_v9 }
  0x62   :  { %v371_v25 = vmax.f32 %v243_v6, %v307_v14  ;;  %v309_v26 = vmul.f32 0.1, %v245_v15  ;;  %v372_v28 = vmax.f32 %v244_v8, %v308_v16  ;;  %v247_v29 = vadd.f32 %v1114_v45, %v177_v17 }
  0x63   :  { %1018 = vst [vmem:[%s1487_s4 + $0xc8] sm:$0xff] %v962_v20   ;;  %v310_v30 = vmul.f32 0.1, %v246_v22  ;;  %v179_v31 = vmul.f32 %v1078_v27, %v109_v18  ;;  %v248_v32 = vadd.f32 %v1114_v45, %v178_v23  ;;  %v180_v33 = vmul.f32 %v1078_v27, %v110_v19 }
  0x64   :  { %v967_v35 = vpack.c.bf16 %v371_v25, %v370_v21  ;;  %v373_v36 = vmax.f32 %v245_v15, %v309_v26  ;;  %v311_v37 = vmul.f32 0.1, %v247_v29  ;;  %v181_v38 = vmul.f32 %v1078_v27, %v111_v24 }
  0x65   :  { %v374_v40 = vmax.f32 %v246_v22, %v310_v30  ;;  %v249_v41 = vadd.f32 %v1114_v45, %v179_v31  ;;  %v312_v42 = vmul.f32 0.1, %v248_v32  ;;  %v250_v43 = vadd.f32 %v1114_v45, %v180_v33 }
  0x66   :  { %1019 = vst [vmem:[%s1487_s4 + $0xd0] sm:$0xff] %v967_v35   ;;  %v972_v44 = vpack.c.bf16 %v373_v36, %v372_v28  ;;  %v375_v46 = vmax.f32 %v247_v29, %v311_v37  ;;  %v251_v47 = vadd.f32 %v1114_v45, %v181_v38  ;;  %v182_v48 = vmul.f32 %v1078_v27, %v112_v34 }
  0x67   :  { %v313_v49 = vmul.f32 0.1, %v249_v41  ;;  %v376_v50 = vmax.f32 %v248_v32, %v312_v42  ;;  %v314_v51 = vmul.f32 0.1, %v250_v43  ;;  %v183_v52 = vmul.f32 %v1078_v27, %v113_v39 }
  0x68   :  { %1020 = vst [vmem:[%s1487_s4 + $0xd8] sm:$0xff] %v972_v44   ;;  %v977_v53 = vpack.c.bf16 %v375_v46, %v374_v40  ;;  %v315_v54 = vmul.f32 0.1, %v251_v47  ;;  %v252_v55 = vadd.f32 %v1114_v45, %v182_v48 }
  0x69   :  { %v377_v56 = vmax.f32 %v249_v41, %v313_v49  ;;  %v378_v57 = vmax.f32 %v250_v43, %v314_v51  ;;  %v253_v58 = vadd.f32 %v1114_v45, %v183_v52 }
  0x6a   :  { %1021 = vst [vmem:[%s1487_s4 + $0xe0] sm:$0xff] %v977_v53   ;;  %v379_v59 = vmax.f32 %v251_v47, %v315_v54  ;;  %v316_v60 = vmul.f32 0.1, %v252_v55 }
  0x6b   :  { %v982_v61 = vpack.c.bf16 %v377_v56, %v376_v50  ;;  %v317_v27 = vmul.f32 0.1, %v253_v58 }
  0x6c   :  { %v987_v62 = vpack.c.bf16 %v379_v59, %v378_v57  ;;  %v380_v63 = vmax.f32 %v252_v55, %v316_v60 }
  0x6d   :  { %1022 = vst [vmem:[%s1487_s4 + $0xe8] sm:$0xff] %v982_v61   ;;  %v381_v0 = vmax.f32 %v253_v58, %v317_v27 }
  0x6e   :  { %1023 = vst [vmem:[%s1487_s4 + $0xf0] sm:$0xff] %v987_v62  }
  0x6f   :  { %v992_v45 = vpack.c.bf16 %v381_v0, %v380_v63 }
  0x71   :  { %1024 = vst [vmem:[%s1487_s4 + $0xf8] sm:$0xff] %v992_v45  }

// kernel: allcnn_forward.33
= control target key start
LH: loop header
LB: loop body
LE: loop exit
PB: predicated region body
PF: predicated region fallthrough
CT: control target
= control target key end

     0   :  { %vm2351_vm0 = vcmask 1040384   ;;  %s4106_s1 = inlined_call_operand.vmem [shape: bf16[512,128], index: 1, kind: input, shape index: {}]   ;;  %s4107_s0 = inlined_call_operand.vmem [shape: bf16[512,512], index: 0, kind: input, shape index: {}]   ;;  %s4108_s2 = inlined_call_operand.vmem [shape: f32[512,128], index: 2, kind: output, shape index: {0}]   ;;  %s4109_s3 = inlined_call_operand.vmem [shape: f32[1,2,128], index: 3, kind: output, shape index: {1}]  }
   0x1   :  { %v3032_v0 = vld [vmem:[%s4106_s1 + $0x40] sm:$0xff]   ;;  %v3036_v4 = vld [vmem:[%s4106_s1 + $0x48] sm:$0xff]   ;;  %v3040_v8 = vld [vmem:[%s4106_s1 + $0x50] sm:$0xff]  }
   0x2   :  { %v3033_v1 = vld [vmem:[%s4106_s1 + $0xc0] sm:$0xff]   ;;  %2583 = vmatprep.subr.bf16.mxu0 %v3032_v0  ;;  %v3037_v5 = vld [vmem:[%s4106_s1 + $0xc8] sm:$0xff]   ;;  %v3041_v9 = vld [vmem:[%s4106_s1 + $0xd0] sm:$0xff]  }
   0x3   :  { %v3034_v2 = vld [vmem:[%s4106_s1] sm:$0xff]   ;;  %2695 = vmatprep.subr.bf16.mxu1 %v3033_v1  ;;  %v3038_v6 = vld [vmem:[%s4106_s1 + $0x8] sm:$0xff]   ;;  %v3042_v10 = vld [vmem:[%s4106_s1 + $0x10] sm:$0xff]  }
   0x4   :  { %v3035_v3 = vld [vmem:[%s4106_s1 + $0x80] sm:$0xff]   ;;  %2584 = vmatpush3.bf16.msra.mxu0 %v3034_v2  ;;  %v3039_v7 = vld [vmem:[%s4106_s1 + $0x88] sm:$0xff]   ;;  %v3043_v11 = vld [vmem:[%s4106_s1 + $0x90] sm:$0xff]  }
   0x5   :  { %2696 = vmatpush3.bf16.msra.mxu1 %v3035_v3  ;;  %2585 = vmatprep.subr.bf16.mxu0 %v3036_v4  ;;  %v3044_v12 = vld [vmem:[%s4106_s1 + $0x58] sm:$0xff]   ;;  %v3048_v16 = vld [vmem:[%s4106_s1 + $0x60] sm:$0xff]   ;;  %v3052_v20 = vld [vmem:[%s4106_s1 + $0x68] sm:$0xff]  }
   0x6   :  { %2697 = vmatprep.subr.bf16.mxu1 %v3037_v5  ;;  %v3045_v13 = vld [vmem:[%s4106_s1 + $0xd8] sm:$0xff]   ;;  %v3049_v17 = vld [vmem:[%s4106_s1 + $0xe0] sm:$0xff]   ;;  %v3053_v21 = vld [vmem:[%s4106_s1 + $0xe8] sm:$0xff]  }
   0x7   :  { %v3046_v14 = vld [vmem:[%s4106_s1 + $0x18] sm:$0xff]   ;;  %v3050_v18 = vld [vmem:[%s4106_s1 + $0x20] sm:$0xff]   ;;  %v3054_v22 = vld [vmem:[%s4106_s1 + $0x28] sm:$0xff]  }
   0x8   :  { %2586 = vmatpush3.bf16.msra.mxu0 %v3038_v6  ;;  %v3047_v15 = vld [vmem:[%s4106_s1 + $0x98] sm:$0xff]   ;;  %v3051_v19 = vld [vmem:[%s4106_s1 + $0xa0] sm:$0xff]   ;;  %v3055_v23 = vld [vmem:[%s4106_s1 + $0xa8] sm:$0xff]  }
   0x9   :  { %2698 = vmatpush3.bf16.msra.mxu1 %v3039_v7  ;;  %2587 = vmatprep.subr.bf16.mxu0 %v3040_v8  ;;  %v3056_v24 = vld [vmem:[%s4106_s1 + $0x70] sm:$0xff]   ;;  %v3060_v28 = vld [vmem:[%s4106_s1 + $0x78] sm:$0xff]   ;;  %v3070_v36 = vld [vmem:[%s4106_s1 + $0x40] sm:$0xff]  }
   0xa   :  { %2699 = vmatprep.subr.bf16.mxu1 %v3041_v9  ;;  %v3057_v25 = vld [vmem:[%s4106_s1 + $0xf0] sm:$0xff]   ;;  %v3061_v29 = vld [vmem:[%s4106_s1 + $0xf8] sm:$0xff]   ;;  %v3071_v37 = vld [vmem:[%s4106_s1 + $0xc0] sm:$0xff]  }
   0xb   :  { %v3058_v26 = vld [vmem:[%s4106_s1 + $0x30] sm:$0xff]   ;;  %v3062_v30 = vld [vmem:[%s4106_s1 + $0x38] sm:$0xff]   ;;  %v3072_v38 = vld [vmem:[%s4106_s1] sm:$0xff]  }
   0xc   :  { %2588 = vmatpush3.bf16.msra.mxu0 %v3042_v10  ;;  %v3059_v27 = vld [vmem:[%s4106_s1 + $0xb0] sm:$0xff]   ;;  %v3063_v31 = vld [vmem:[%s4106_s1 + $0xb8] sm:$0xff]   ;;  %v3073_v39 = vld [vmem:[%s4106_s1 + $0x80] sm:$0xff]  }
   0xd   :  { %2700 = vmatpush3.bf16.msra.mxu1 %v3043_v11  ;;  %2589 = vmatprep.subr.bf16.mxu0 %v3044_v12  ;;  %v3064_v32 = vld [vmem:[%s4107_s0] ss:$16 sps:$4 sm:$0xff]   ;;  %v3066_v33 = vld [vmem:[%s4107_s0 + $0x4] ss:$16 sps:$4 sm:$0xff]   ;;  %v3067_v34 = vld [vmem:[%s4107_s0 + $0x8] ss:$16 sps:$4 sm:$0xff]  }
   0xe   :  { %2701 = vmatprep.subr.bf16.mxu1 %v3045_v13  ;;  %v3069_v35 = vld [vmem:[%s4107_s0 + $0xc] ss:$16 sps:$4 sm:$0xff]   ;;  %730 = vmatprep.mubr.bf16.mxu0 %v3066_v33  ;;  %v3074_v40 = vld [vmem:[%s4107_s0 + $0x24] ss:$16 sps:$4 sm:$0xff]   ;;  %v3078_v42 = vld [vmem:[%s4107_s0 + $0x20] ss:$16 sps:$4 sm:$0xff]  }
   0xf   :  { %891 = vmatprep.mubr.bf16.mxu1 %v3069_v35  ;;  %v3076_v41 = vld [vmem:[%s4107_s0 + $0x2c] ss:$16 sps:$4 sm:$0xff]   ;;  %v3079_v43 = vld [vmem:[%s4107_s0 + $0x28] ss:$16 sps:$4 sm:$0xff]   ;;  %v3080_v44 = vld [vmem:[%s4107_s0 + $0x44] ss:$16 sps:$4 sm:$0xff]  }
  0x10   :  { %2590 = vmatpush3.bf16.msra.mxu0 %v3046_v14  ;;  %v3082_v45 = vld [vmem:[%s4107_s0 + $0x4c] ss:$16 sps:$4 sm:$0xff]   ;;  %v3084_v48 = vld [vmem:[%s4107_s0 + $0x40] ss:$16 sps:$4 sm:$0xff]   ;;  %v3085_v51 = vld [vmem:[%s4107_s0 + $0x48] ss:$16 sps:$4 sm:$0xff]  }
  0x11   :  { %2702 = vmatpush3.bf16.msra.mxu1 %v3047_v15  ;;  %2591 = vmatprep.subr.bf16.mxu0 %v3048_v16  ;;  %v3086_v46 = vld [vmem:[%s4106_s1 + $0x48] sm:$0xff]   ;;  %v3090_v52 = vld [vmem:[%s4107_s0 + $0x64] ss:$16 sps:$4 sm:$0xff]   ;;  %v3094_v54 = vld [vmem:[%s4107_s0 + $0x60] ss:$16 sps:$4 sm:$0xff]  }
  0x12   :  { %2703 = vmatprep.subr.bf16.mxu1 %v3049_v17  ;;  %v3087_v47 = vld [vmem:[%s4106_s1 + $0xc8] sm:$0xff]   ;;  %v3102_v55 = vld [vmem:[%s4106_s1 + $0x50] sm:$0xff]   ;;  %v3118_v1 = vld [vmem:[%s4106_s1 + $0x58] sm:$0xff]  }
  0x13   :  { %v3088_v49 = vld [vmem:[%s4106_s1 + $0x8] sm:$0xff]   ;;  %v3096_v57 = vld [vmem:[%s4107_s0 + $0x84] ss:$16 sps:$4 sm:$0xff]   ;;  %v3100_v62 = vld [vmem:[%s4107_s0 + $0x80] ss:$16 sps:$4 sm:$0xff]  }
  0x14   :  { %2592 = vmatpush3.bf16.msra.mxu0 %v3050_v18  ;;  %v3089_v50 = vld [vmem:[%s4106_s1 + $0x88] sm:$0xff]   ;;  %v3103_v58 = vld [vmem:[%s4106_s1 + $0xd0] sm:$0xff]   ;;  %v3119_v3 = vld [vmem:[%s4106_s1 + $0xd8] sm:$0xff]  }
  0x15   :  { %2704 = vmatpush3.bf16.msra.mxu1 %v3051_v19  ;;  %2593 = vmatprep.subr.bf16.mxu0 %v3052_v20  ;;  %v3092_v53 = vld [vmem:[%s4107_s0 + $0x6c] ss:$16 sps:$4 sm:$0xff]   ;;  %v3095_v56 = vld [vmem:[%s4107_s0 + $0x68] ss:$16 sps:$4 sm:$0xff]   ;;  %v3104_v59 = vld [vmem:[%s4106_s1 + $0x10] sm:$0xff]  }
  0x16   :  { %2705 = vmatprep.subr.bf16.mxu1 %v3053_v21  ;;  %v3105_v60 = vld [vmem:[%s4106_s1 + $0x90] sm:$0xff]   ;;  %v3098_v61 = vld [vmem:[%s4107_s0 + $0x8c] ss:$16 sps:$4 sm:$0xff]   ;;  %v3101_v63 = vld [vmem:[%s4107_s0 + $0x88] ss:$16 sps:$4 sm:$0xff]  }
  0x17   :  { %v3106_v0 = vld [vmem:[%s4107_s0 + $0xa4] ss:$16 sps:$4 sm:$0xff]   ;;  %v3108_v2 = vld [vmem:[%s4107_s0 + $0xac] ss:$16 sps:$4 sm:$0xff]   ;;  %v3110_v6 = vld [vmem:[%s4107_s0 + $0xa0] ss:$16 sps:$4 sm:$0xff]  }
  0x18   :  { %2594 = vmatpush3.bf16.msra.mxu0 %v3054_v22  ;;  %v3120_v4 = vld [vmem:[%s4106_s1 + $0x18] sm:$0xff]   ;;  %v3112_v8 = vld [vmem:[%s4107_s0 + $0xc4] ss:$16 sps:$4 sm:$0xff]   ;;  %v3116_v14 = vld [vmem:[%s4107_s0 + $0xc0] ss:$16 sps:$4 sm:$0xff]  }
  0x19   :  { %2706 = vmatpush3.bf16.msra.mxu1 %v3055_v23  ;;  %2595 = vmatprep.subr.bf16.mxu0 %v3056_v24  ;;  %v3121_v5 = vld [vmem:[%s4106_s1 + $0x98] sm:$0xff]   ;;  %v3134_v10 = vld [vmem:[%s4106_s1 + $0x60] sm:$0xff]   ;;  %v3150_v18 = vld [vmem:[%s4106_s1 + $0x68] sm:$0xff]  }
  0x1a   :  { %2707 = vmatprep.subr.bf16.mxu1 %v3057_v25  ;;  %v3111_v7 = vld [vmem:[%s4107_s0 + $0xa8] ss:$16 sps:$4 sm:$0xff]   ;;  %v3114_v9 = vld [vmem:[%s4107_s0 + $0xcc] ss:$16 sps:$4 sm:$0xff]   ;;  %v3135_v11 = vld [vmem:[%s4106_s1 + $0xe0] sm:$0xff]  }
  0x1b   :  { %v3136_v12 = vld [vmem:[%s4106_s1 + $0x20] sm:$0xff]   ;;  %v3117_v15 = vld [vmem:[%s4107_s0 + $0xc8] ss:$16 sps:$4 sm:$0xff]   ;;  %v3124_v17 = vld [vmem:[%s4107_s0 + $0xec] ss:$16 sps:$4 sm:$0xff]  }
  0x1c   :  { %2596 = vmatpush3.bf16.msra.mxu0 %v3058_v26  ;;  %v3137_v13 = vld [vmem:[%s4106_s1 + $0xa0] sm:$0xff]   ;;  %v3151_v19 = vld [vmem:[%s4106_s1 + $0xe8] sm:$0xff]   ;;  %v3166_v26 = vld [vmem:[%s4106_s1 + $0x70] sm:$0xff]  }
  0x1d   :  { %2708 = vmatpush3.bf16.msra.mxu1 %v3059_v27  ;;  %2597 = vmatprep.subr.bf16.mxu0 %v3060_v28  ;;  %v3122_v16 = vld [vmem:[%s4107_s0 + $0xe4] ss:$16 sps:$4 sm:$0xff]   ;;  %v3152_v20 = vld [vmem:[%s4106_s1 + $0x28] sm:$0xff]   ;;  %v3126_v22 = vld [vmem:[%s4107_s0 + $0xe0] ss:$16 sps:$4 sm:$0xff]  }
  0x1e   :  { %2709 = vmatprep.subr.bf16.mxu1 %v3061_v29  ;;  %v3153_v21 = vld [vmem:[%s4106_s1 + $0xa8] sm:$0xff]   ;;  %v3128_v24 = vld [vmem:[%s4107_s0 + $0x104] ss:$16 sps:$4 sm:$0xff]   ;;  %v3183_v35 = vld [vmem:[%s4106_s1 + $0xf8] sm:$0xff]  }
  0x1f   :  { %v3127_v23 = vld [vmem:[%s4107_s0 + $0xe8] ss:$16 sps:$4 sm:$0xff]   ;;  %v3130_v25 = vld [vmem:[%s4107_s0 + $0x10c] ss:$16 sps:$4 sm:$0xff]   ;;  %v3167_v27 = vld [vmem:[%s4106_s1 + $0xf0] sm:$0xff]  }
  0x20   :  { %2598 = vmatpush3.bf16.msra.mxu0 %v3062_v30  ;;  %v3168_v28 = vld [vmem:[%s4106_s1 + $0x30] sm:$0xff]   ;;  %v3140_v33 = vld [vmem:[%s4107_s0 + $0x12c] ss:$16 sps:$4 sm:$0xff]  }
  0x21   :  { %2710 = vmatpush3.bf16.msra.mxu1 %v3063_v31  ;;  %2807 = vmatprep.subr.bf16.mxu0 %v3070_v36  ;;  %v3169_v29 = vld [vmem:[%s4106_s1 + $0xb0] sm:$0xff]   ;;  %v3133_v31 = vld [vmem:[%s4107_s0 + $0x108] ss:$16 sps:$4 sm:$0xff]  }
  0x22   :  { %2919 = vmatprep.subr.bf16.mxu1 %v3071_v37  ;;  %v3132_v30 = vld [vmem:[%s4107_s0 + $0x100] ss:$16 sps:$4 sm:$0xff]   ;;  %v3184_v37 = vld [vmem:[%s4106_s1 + $0x38] sm:$0xff]  }
  0x23   :  { %731 = vmatmul.mubr.bf16.vlgmr.msra.gmra.mrb[0].mxu0 %v3064_v32  ;;  %v3138_v32 = vld [vmem:[%s4107_s0 + $0x124] ss:$16 sps:$4 sm:$0xff]   ;;  %v3142_v36 = vld [vmem:[%s4107_s0 + $0x120] ss:$16 sps:$4 sm:$0xff]  }
  0x24   :  { %892 = vmatmul.mubr.bf16.vlgmr.msra.gmra.mrb[0].mxu1 %v3067_v34  ;;  %2808 = vmatpush3.bf16.msra.mxu0 %v3072_v38  ;;  %v3182_v34 = vld [vmem:[%s4106_s1 + $0x78] sm:$0xff]  }
  0x25   :  { %2920 = vmatpush3.bf16.msra.mxu1 %v3073_v39  ;;  %738 = vmatprep.mubr.bf16.mxu0 %v3074_v40  ;;  %v3185_v38 = vld [vmem:[%s4106_s1 + $0xb8] sm:$0xff]   ;;  %v3144_v40 = vld [vmem:[%s4107_s0 + $0x144] ss:$16 sps:$4 sm:$0xff]  }
  0x26   :  { %899 = vmatprep.mubr.bf16.mxu1 %v3076_v41  ;;  %2809 = vmatprep.subr.bf16.mxu0 %v3086_v46  ;;  %v3143_v39 = vld [vmem:[%s4107_s0 + $0x128] ss:$16 sps:$4 sm:$0xff]   ;;  %v3146_v41 = vld [vmem:[%s4107_s0 + $0x14c] ss:$16 sps:$4 sm:$0xff]   ;;  %v3158_v46 = vld [vmem:[%s4107_s0 + $0x160] ss:$16 sps:$4 sm:$0xff]  }
  0x27   :  { %2921 = vmatprep.subr.bf16.mxu1 %v3087_v47  ;;  %v3159_v47 = vld [vmem:[%s4107_s0 + $0x168] ss:$16 sps:$4 sm:$0xff]  }
  0x28   :  { %2810 = vmatpush3.bf16.msra.mxu0 %v3088_v49  ;;  %v3162_v49 = vld [vmem:[%s4107_s0 + $0x18c] ss:$16 sps:$4 sm:$0xff]  }
  0x29   :  { %2922 = vmatpush3.bf16.msra.mxu1 %v3089_v50  ;;  %2811 = vmatprep.subr.bf16.mxu0 %v3102_v55  ;;  %v3164_v50 = vld [vmem:[%s4107_s0 + $0x180] ss:$16 sps:$4 sm:$0xff]   ;;  %v3175_v55 = vld [vmem:[%s4107_s0 + $0x1a8] ss:$16 sps:$4 sm:$0xff]  }
  0x2a   :  { %2923 = vmatprep.subr.bf16.mxu1 %v3103_v58  ;;  %v3180_v58 = vld [vmem:[%s4107_s0 + $0x1c0] ss:$16 sps:$4 sm:$0xff]  }
  0x2b   :  { %739 = vmatmul.mubr.bf16.gmra.mrb[4].mxu0 %v3078_v42  ;;  %v3148_v42 = vld [vmem:[%s4107_s0 + $0x140] ss:$16 sps:$4 sm:$0xff]  }
  0x2c   :  { %900 = vmatmul.mubr.bf16.gmra.mrb[4].mxu1 %v3079_v43  ;;  %746 = vmatprep.mubr.bf16.mxu0 %v3080_v44  ;;  %v3149_v43 = vld [vmem:[%s4107_s0 + $0x148] ss:$16 sps:$4 sm:$0xff]   ;;  %v3154_v44 = vld [vmem:[%s4107_s0 + $0x164] ss:$16 sps:$4 sm:$0xff]  }
  0x2d   :  { %907 = vmatprep.mubr.bf16.mxu1 %v3082_v45  ;;  %2812 = vmatpush3.bf16.msra.mxu0 %v3104_v59  ;;  %v3156_v45 = vld [vmem:[%s4107_s0 + $0x16c] ss:$16 sps:$4 sm:$0xff]   ;;  %v3181_v59 = vld [vmem:[%s4107_s0 + $0x1c8] ss:$16 sps:$4 sm:$0xff]  }
  0x2e   :  { %2924 = vmatpush3.bf16.msra.mxu1 %v3105_v60  ;;  %2813 = vmatprep.subr.bf16.mxu0 %v3118_v1  ;;  %v3186_v60 = vld [vmem:[%s4107_s0 + $0x1e4] ss:$16 sps:$4 sm:$0xff]   ;;  %v3197_v1 = vld [vmem:[%s4107_s0 + $0x20c] ss:$16 sps:$4 sm:$0xff]  }
  0x2f   :  { %2925 = vmatprep.subr.bf16.mxu1 %v3119_v3  ;;  %v3195_v3 = vld [vmem:[%s4107_s0 + $0x208] ss:$16 sps:$4 sm:$0xff]  }
  0x31   :  { %2814 = vmatpush3.bf16.msra.mxu0 %v3120_v4  ;;  %v3198_v4 = vld [vmem:[%s4107_s0 + $0x224] ss:$16 sps:$4 sm:$0xff]  }
  0x32   :  { %2926 = vmatpush3.bf16.msra.mxu1 %v3121_v5  ;;  %2815 = vmatprep.subr.bf16.mxu0 %v3134_v10  ;;  %v3200_v5 = vld [vmem:[%s4107_s0 + $0x22c] ss:$16 sps:$4 sm:$0xff]   ;;  %v3208_v10 = vld [vmem:[%s4107_s0 + $0x240] ss:$16 sps:$4 sm:$0xff]  }
  0x33   :  { %747 = vmatmul.mubr.bf16.gmra.mrb[8].mxu0 %v3084_v48  ;;  %2927 = vmatprep.subr.bf16.mxu1 %v3135_v11  ;;  %v3160_v48 = vld [vmem:[%s4107_s0 + $0x184] ss:$16 sps:$4 sm:$0xff]   ;;  %v3209_v11 = vld [vmem:[%s4107_s0 + $0x248] ss:$16 sps:$4 sm:$0xff]  }
  0x34   :  { %908 = vmatmul.mubr.bf16.gmra.mrb[8].mxu1 %v3085_v51  ;;  %754 = vmatprep.mubr.bf16.mxu0 %v3090_v52  ;;  %v3165_v51 = vld [vmem:[%s4107_s0 + $0x188] ss:$16 sps:$4 sm:$0xff]   ;;  %v3170_v52 = vld [vmem:[%s4107_s0 + $0x1a4] ss:$16 sps:$4 sm:$0xff]  }
  0x35   :  { %915 = vmatprep.mubr.bf16.mxu1 %v3092_v53  ;;  %2816 = vmatpush3.bf16.msra.mxu0 %v3136_v12  ;;  %v3172_v53 = vld [vmem:[%s4107_s0 + $0x1ac] ss:$16 sps:$4 sm:$0xff]   ;;  %v3210_v12 = vld [vmem:[%s4107_s0 + $0x264] ss:$16 sps:$4 sm:$0xff]  }
  0x36   :  { %2928 = vmatpush3.bf16.msra.mxu1 %v3137_v13  ;;  %2817 = vmatprep.subr.bf16.mxu0 %v3150_v18  ;;  %v3212_v13 = vld [vmem:[%s4107_s0 + $0x26c] ss:$16 sps:$4 sm:$0xff]   ;;  %v3220_v18 = vld [vmem:[%s4107_s0 + $0x280] ss:$16 sps:$4 sm:$0xff]  }
  0x37   :  { %2929 = vmatprep.subr.bf16.mxu1 %v3151_v19  ;;  %v3221_v19 = vld [vmem:[%s4107_s0 + $0x288] ss:$16 sps:$4 sm:$0xff]  }
  0x39   :  { %2818 = vmatpush3.bf16.msra.mxu0 %v3152_v20  ;;  %v3222_v20 = vld [vmem:[%s4107_s0 + $0x2a4] ss:$16 sps:$4 sm:$0xff]  }
  0x3a   :  { %2930 = vmatpush3.bf16.msra.mxu1 %v3153_v21  ;;  %2819 = vmatprep.subr.bf16.mxu0 %v3166_v26  ;;  %v3224_v21 = vld [vmem:[%s4107_s0 + $0x2ac] ss:$16 sps:$4 sm:$0xff]   ;;  %v3232_v26 = vld [vmem:[%s4107_s0 + $0x2c0] ss:$16 sps:$4 sm:$0xff]  }
  0x3b   :  { %755 = vmatmul.mubr.bf16.gmra.mrb[12].mxu0 %v3094_v54  ;;  %2931 = vmatprep.subr.bf16.mxu1 %v3167_v27  ;;  %v3174_v54 = vld [vmem:[%s4107_s0 + $0x1a0] ss:$16 sps:$4 sm:$0xff]   ;;  %v3233_v27 = vld [vmem:[%s4107_s0 + $0x2c8] ss:$16 sps:$4 sm:$0xff]  }
  0x3c   :  { %916 = vmatmul.mubr.bf16.gmra.mrb[12].mxu1 %v3095_v56  ;;  %762 = vmatprep.mubr.bf16.mxu0 %v3096_v57  ;;  %v3176_v56 = vld [vmem:[%s4107_s0 + $0x1c4] ss:$16 sps:$4 sm:$0xff]   ;;  %v3178_v57 = vld [vmem:[%s4107_s0 + $0x1cc] ss:$16 sps:$4 sm:$0xff]  }
  0x3d   :  { %923 = vmatprep.mubr.bf16.mxu1 %v3098_v61  ;;  %2820 = vmatpush3.bf16.msra.mxu0 %v3168_v28  ;;  %v3188_v61 = vld [vmem:[%s4107_s0 + $0x1ec] ss:$16 sps:$4 sm:$0xff]   ;;  %v3234_v28 = vld [vmem:[%s4107_s0 + $0x2e4] ss:$16 sps:$4 sm:$0xff]  }
  0x3e   :  { %2932 = vmatpush3.bf16.msra.mxu1 %v3169_v29  ;;  %2821 = vmatprep.subr.bf16.mxu0 %v3182_v34  ;;  %v3236_v29 = vld [vmem:[%s4107_s0 + $0x2ec] ss:$16 sps:$4 sm:$0xff]   ;;  %v3244_v34 = vld [vmem:[%s4107_s0 + $0x300] ss:$16 sps:$4 sm:$0xff]  }
  0x3f   :  { %2933 = vmatprep.subr.bf16.mxu1 %v3183_v35  ;;  %v3245_v35 = vld [vmem:[%s4107_s0 + $0x308] ss:$16 sps:$4 sm:$0xff]  }
  0x41   :  { %2822 = vmatpush3.bf16.msra.mxu0 %v3184_v37  ;;  %v3248_v37 = vld [vmem:[%s4107_s0 + $0x32c] ss:$16 sps:$4 sm:$0xff]  }
  0x42   :  { %2934 = vmatpush3.bf16.msra.mxu1 %v3185_v38  ;;  %v3250_v38 = vld [vmem:[%s4107_s0 + $0x320] ss:$16 sps:$4 sm:$0xff]  }
  0x43   :  { %763 = vmatmul.mubr.bf16.gmra.mrb[16].mxu0 %v3100_v62  ;;  %v3190_v62 = vld [vmem:[%s4107_s0 + $0x1e0] ss:$16 sps:$4 sm:$0xff]  }
  0x44   :  { %924 = vmatmul.mubr.bf16.gmra.mrb[16].mxu1 %v3101_v63  ;;  %770 = vmatprep.mubr.bf16.mxu0 %v3106_v0  ;;  %v3191_v63 = vld [vmem:[%s4107_s0 + $0x1e8] ss:$16 sps:$4 sm:$0xff]   ;;  %v3194_v0 = vld [vmem:[%s4107_s0 + $0x204] ss:$16 sps:$4 sm:$0xff]  }
  0x45   :  { %931 = vmatprep.mubr.bf16.mxu1 %v3108_v2  ;;  %v3192_v2 = vld [vmem:[%s4107_s0 + $0x200] ss:$16 sps:$4 sm:$0xff]  }
  0x4b   :  { %771 = vmatmul.mubr.bf16.gmra.mrb[20].mxu0 %v3110_v6  ;;  %v3202_v6 = vld [vmem:[%s4107_s0 + $0x220] ss:$16 sps:$4 sm:$0xff]  }
  0x4c   :  { %932 = vmatmul.mubr.bf16.gmra.mrb[20].mxu1 %v3111_v7  ;;  %778 = vmatprep.mubr.bf16.mxu0 %v3112_v8  ;;  %v3203_v7 = vld [vmem:[%s4107_s0 + $0x228] ss:$16 sps:$4 sm:$0xff]   ;;  %v3204_v8 = vld [vmem:[%s4107_s0 + $0x244] ss:$16 sps:$4 sm:$0xff]  }
  0x4d   :  { %939 = vmatprep.mubr.bf16.mxu1 %v3114_v9  ;;  %v3206_v9 = vld [vmem:[%s4107_s0 + $0x24c] ss:$16 sps:$4 sm:$0xff]  }
  0x53   :  { %779 = vmatmul.mubr.bf16.gmra.mrb[24].mxu0 %v3116_v14  ;;  %v3214_v14 = vld [vmem:[%s4107_s0 + $0x260] ss:$16 sps:$4 sm:$0xff]  }
  0x54   :  { %940 = vmatmul.mubr.bf16.gmra.mrb[24].mxu1 %v3117_v15  ;;  %786 = vmatprep.mubr.bf16.mxu0 %v3122_v16  ;;  %v3215_v15 = vld [vmem:[%s4107_s0 + $0x268] ss:$16 sps:$4 sm:$0xff]   ;;  %v3216_v16 = vld [vmem:[%s4107_s0 + $0x284] ss:$16 sps:$4 sm:$0xff]  }
  0x55   :  { %947 = vmatprep.mubr.bf16.mxu1 %v3124_v17  ;;  %v3218_v17 = vld [vmem:[%s4107_s0 + $0x28c] ss:$16 sps:$4 sm:$0xff]  }
  0x5b   :  { %787 = vmatmul.mubr.bf16.gmra.mrb[28].mxu0 %v3126_v22  ;;  %v3226_v22 = vld [vmem:[%s4107_s0 + $0x2a0] ss:$16 sps:$4 sm:$0xff]  }
  0x5c   :  { %948 = vmatmul.mubr.bf16.gmra.mrb[28].mxu1 %v3127_v23  ;;  %794 = vmatprep.mubr.bf16.mxu0 %v3128_v24  ;;  %v3227_v23 = vld [vmem:[%s4107_s0 + $0x2a8] ss:$16 sps:$4 sm:$0xff]   ;;  %v3228_v24 = vld [vmem:[%s4107_s0 + $0x2c4] ss:$16 sps:$4 sm:$0xff]  }
  0x5d   :  { %955 = vmatprep.mubr.bf16.mxu1 %v3130_v25  ;;  %v3230_v25 = vld [vmem:[%s4107_s0 + $0x2cc] ss:$16 sps:$4 sm:$0xff]  }
  0x63   :  { %795 = vmatmul.mubr.bf16.gmra.mrb[32].mxu0 %v3132_v30  ;;  %v3238_v30 = vld [vmem:[%s4107_s0 + $0x2e0] ss:$16 sps:$4 sm:$0xff]  }
  0x64   :  { %956 = vmatmul.mubr.bf16.gmra.mrb[32].mxu1 %v3133_v31  ;;  %802 = vmatprep.mubr.bf16.mxu0 %v3138_v32  ;;  %v3239_v31 = vld [vmem:[%s4107_s0 + $0x2e8] ss:$16 sps:$4 sm:$0xff]   ;;  %v3240_v32 = vld [vmem:[%s4107_s0 + $0x304] ss:$16 sps:$4 sm:$0xff]  }
  0x65   :  { %963 = vmatprep.mubr.bf16.mxu1 %v3140_v33  ;;  %v3242_v33 = vld [vmem:[%s4107_s0 + $0x30c] ss:$16 sps:$4 sm:$0xff]  }
  0x6b   :  { %803 = vmatmul.mubr.bf16.gmra.mrb[36].mxu0 %v3142_v36  ;;  %v3246_v36 = vld [vmem:[%s4107_s0 + $0x324] ss:$16 sps:$4 sm:$0xff]  }
  0x6c   :  { %964 = vmatmul.mubr.bf16.gmra.mrb[36].mxu1 %v3143_v39  ;;  %810 = vmatprep.mubr.bf16.mxu0 %v3144_v40  ;;  %v3251_v39 = vld [vmem:[%s4107_s0 + $0x328] ss:$16 sps:$4 sm:$0xff]   ;;  %v3252_v40 = vld [vmem:[%s4107_s0 + $0x344] ss:$16 sps:$4 sm:$0xff]  }
  0x6d   :  { %971 = vmatprep.mubr.bf16.mxu1 %v3146_v41  ;;  %v3254_v41 = vld [vmem:[%s4107_s0 + $0x34c] ss:$16 sps:$4 sm:$0xff]  }
  0x73   :  { %811 = vmatmul.mubr.bf16.gmra.mrb[40].mxu0 %v3148_v42  ;;  %v3256_v42 = vld [vmem:[%s4107_s0 + $0x340] ss:$16 sps:$4 sm:$0xff]  }
  0x74   :  { %972 = vmatmul.mubr.bf16.gmra.mrb[40].mxu1 %v3149_v43  ;;  %818 = vmatprep.mubr.bf16.mxu0 %v3154_v44  ;;  %v3257_v43 = vld [vmem:[%s4107_s0 + $0x348] ss:$16 sps:$4 sm:$0xff]   ;;  %v3258_v44 = vld [vmem:[%s4107_s0 + $0x364] ss:$16 sps:$4 sm:$0xff]  }
  0x75   :  { %979 = vmatprep.mubr.bf16.mxu1 %v3156_v45  ;;  %v3260_v45 = vld [vmem:[%s4107_s0 + $0x36c] ss:$16 sps:$4 sm:$0xff]  }
  0x7b   :  { %819 = vmatmul.mubr.bf16.gmra.mrb[44].mxu0 %v3158_v46 }
  0x7c   :  { %980 = vmatmul.mubr.bf16.gmra.mrb[44].mxu1 %v3159_v47  ;;  %826 = vmatprep.mubr.bf16.mxu0 %v3160_v48 }
  0x7d   :  { %987 = vmatprep.mubr.bf16.mxu1 %v3162_v49  ;;  %v3262_v49 = vld [vmem:[%s4107_s0 + $0x360] ss:$16 sps:$4 sm:$0xff]  }
  0x83   :  { %827 = vmatmul.mubr.bf16.gmra.mrb[48].mxu0 %v3164_v50 }
  0x84   :  { %988 = vmatmul.mubr.bf16.gmra.mrb[48].mxu1 %v3165_v51  ;;  %834 = vmatprep.mubr.bf16.mxu0 %v3170_v52 }
  0x85   :  { %995 = vmatprep.mubr.bf16.mxu1 %v3172_v53  ;;  %v3263_v53 = vld [vmem:[%s4107_s0 + $0x368] ss:$16 sps:$4 sm:$0xff]  }
  0x8b   :  { %835 = vmatmul.mubr.bf16.gmra.mrb[52].mxu0 %v3174_v54  ;;  %v3264_v54 = vld [vmem:[%s4107_s0 + $0x384] ss:$16 sps:$4 sm:$0xff]  }
  0x8c   :  { %996 = vmatmul.mubr.bf16.gmra.mrb[52].mxu1 %v3175_v55  ;;  %842 = vmatprep.mubr.bf16.mxu0 %v3176_v56 }
  0x8d   :  { %1003 = vmatprep.mubr.bf16.mxu1 %v3178_v57 }
  0x93   :  { %843 = vmatmul.mubr.bf16.gmra.mrb[56].mxu0 %v3180_v58  ;;  %v3266_v58 = vld [vmem:[%s4107_s0 + $0x38c] ss:$16 sps:$4 sm:$0xff]  }
  0x94   :  { %1004 = vmatmul.mubr.bf16.gmra.mrb[56].mxu1 %v3181_v59  ;;  %850 = vmatprep.mubr.bf16.mxu0 %v3186_v60 }
  0x95   :  { %1011 = vmatprep.mubr.bf16.mxu1 %v3188_v61 }
  0x9b   :  { %851 = vmatmul.mubr.bf16.gmra.mrb[60].mxu0 %v3190_v62 }
  0x9c   :  { %1012 = vmatmul.mubr.bf16.gmra.mrb[60].mxu1 %v3191_v63  ;;  %1724 = vmatprep.mubr.bf16.mxu0 %v3194_v0 }
  0x9d   :  { %1885 = vmatprep.mubr.bf16.mxu1 %v3197_v1 }
  0xa3   :  { %1725 = vmatmul.mubr.bf16.vlgmr.msra.gmra.mrb[64].mxu0 %v3192_v2 }
  0xa4   :  { %1886 = vmatmul.mubr.bf16.vlgmr.msra.gmra.mrb[64].mxu1 %v3195_v3  ;;  %1732 = vmatprep.mubr.bf16.mxu0 %v3198_v4 }
  0xa5   :  { %1893 = vmatprep.mubr.bf16.mxu1 %v3200_v5 }
  0xab   :  { %1733 = vmatmul.mubr.bf16.gmra.mrb[68].mxu0 %v3202_v6  ;;  %v3268_v6 = vld [vmem:[%s4107_s0 + $0x380] ss:$16 sps:$4 sm:$0xff]  }
  0xac   :  { %1894 = vmatmul.mubr.bf16.gmra.mrb[68].mxu1 %v3203_v7  ;;  %1740 = vmatprep.mubr.bf16.mxu0 %v3204_v8 }
  0xad   :  { %1901 = vmatprep.mubr.bf16.mxu1 %v3206_v9 }
  0xb3   :  { %1741 = vmatmul.mubr.bf16.gmra.mrb[72].mxu0 %v3208_v10  ;;  %v3269_v10 = vld [vmem:[%s4107_s0 + $0x388] ss:$16 sps:$4 sm:$0xff]  }
  0xb4   :  { %1902 = vmatmul.mubr.bf16.gmra.mrb[72].mxu1 %v3209_v11  ;;  %1748 = vmatprep.mubr.bf16.mxu0 %v3210_v12  ;;  %v3270_v11 = vld [vmem:[%s4107_s0 + $0x3a4] ss:$16 sps:$4 sm:$0xff]  }
  0xb5   :  { %1909 = vmatprep.mubr.bf16.mxu1 %v3212_v13 }
  0xbb   :  { %1749 = vmatmul.mubr.bf16.gmra.mrb[76].mxu0 %v3214_v14 }
  0xbc   :  { %1910 = vmatmul.mubr.bf16.gmra.mrb[76].mxu1 %v3215_v15  ;;  %1756 = vmatprep.mubr.bf16.mxu0 %v3216_v16  ;;  %v3272_v16 = vld [vmem:[%s4107_s0 + $0x3ac] ss:$16 sps:$4 sm:$0xff]  }
  0xbd   :  { %1917 = vmatprep.mubr.bf16.mxu1 %v3218_v17 }
  0xc3   :  { %1757 = vmatmul.mubr.bf16.gmra.mrb[80].mxu0 %v3220_v18 }
  0xc4   :  { %1918 = vmatmul.mubr.bf16.gmra.mrb[80].mxu1 %v3221_v19  ;;  %1764 = vmatprep.mubr.bf16.mxu0 %v3222_v20 }
  0xc5   :  { %1925 = vmatprep.mubr.bf16.mxu1 %v3224_v21 }
  0xcb   :  { %1765 = vmatmul.mubr.bf16.gmra.mrb[84].mxu0 %v3226_v22 }
  0xcc   :  { %1926 = vmatmul.mubr.bf16.gmra.mrb[84].mxu1 %v3227_v23  ;;  %1772 = vmatprep.mubr.bf16.mxu0 %v3228_v24 }
  0xcd   :  { %1933 = vmatprep.mubr.bf16.mxu1 %v3230_v25 }
  0xd3   :  { %1773 = vmatmul.mubr.bf16.gmra.mrb[88].mxu0 %v3232_v26 }
  0xd4   :  { %1934 = vmatmul.mubr.bf16.gmra.mrb[88].mxu1 %v3233_v27  ;;  %1780 = vmatprep.mubr.bf16.mxu0 %v3234_v28 }
  0xd5   :  { %1941 = vmatprep.mubr.bf16.mxu1 %v3236_v29 }
  0xdb   :  { %1781 = vmatmul.mubr.bf16.gmra.mrb[92].mxu0 %v3238_v30  ;;  %v3274_v30 = vld [vmem:[%s4107_s0 + $0x3a0] ss:$16 sps:$4 sm:$0xff]  }
  0xdc   :  { %1942 = vmatmul.mubr.bf16.gmra.mrb[92].mxu1 %v3239_v31  ;;  %1788 = vmatprep.mubr.bf16.mxu0 %v3240_v32 }
  0xdd   :  { %1949 = vmatprep.mubr.bf16.mxu1 %v3242_v33 }
  0xe3   :  { %1789 = vmatmul.mubr.bf16.gmra.mrb[96].mxu0 %v3244_v34  ;;  %v3275_v34 = vld [vmem:[%s4107_s0 + $0x3a8] ss:$16 sps:$4 sm:$0xff]  }
  0xe4   :  { %1950 = vmatmul.mubr.bf16.gmra.mrb[96].mxu1 %v3245_v35  ;;  %1796 = vmatprep.mubr.bf16.mxu0 %v3246_v36  ;;  %v3276_v35 = vld [vmem:[%s4107_s0 + $0x3c4] ss:$16 sps:$4 sm:$0xff]  }
  0xe5   :  { %1957 = vmatprep.mubr.bf16.mxu1 %v3248_v37 }
  0xeb   :  { %1797 = vmatmul.mubr.bf16.gmra.mrb[100].mxu0 %v3250_v38 }
  0xec   :  { %1958 = vmatmul.mubr.bf16.gmra.mrb[100].mxu1 %v3251_v39  ;;  %1804 = vmatprep.mubr.bf16.mxu0 %v3252_v40  ;;  %v3278_v40 = vld [vmem:[%s4107_s0 + $0x3cc] ss:$16 sps:$4 sm:$0xff]  }
  0xed   :  { %1965 = vmatprep.mubr.bf16.mxu1 %v3254_v41 }
  0xf3   :  { %1805 = vmatmul.mubr.bf16.gmra.mrb[104].mxu0 %v3256_v42 }
  0xf4   :  { %1966 = vmatmul.mubr.bf16.gmra.mrb[104].mxu1 %v3257_v43  ;;  %1812 = vmatprep.mubr.bf16.mxu0 %v3258_v44 }
  0xf5   :  { %1973 = vmatprep.mubr.bf16.mxu1 %v3260_v45 }
  0xf6   :  { %v2599_v46 = vpop.f32.mrb[0].mxu0 }
  0xf7   :  { %v2711_v47 = vpop.f32.mrb[0].mxu1  ;;  %v2600_v48 = vpop.f32.mrb[1].mxu0 }
  0xf8   :  { %v2601_v50 = vadd.f32 %v2600_v48, %v2599_v46  ;;  %v2712_v51 = vpop.f32.mrb[1].mxu1  ;;  %v2602_v52 = vpop.f32.mrb[2].mxu0 }
  0xf9   :  { %v2713_v55 = vadd.f32 %v2712_v51, %v2711_v47  ;;  %v2714_v56 = vpop.f32.mrb[2].mxu1  ;;  %v2603_v57 = vpop.f32.mrb[3].mxu0 }
  0xfa   :  { %v2604_v59 = vadd.f32 %v2603_v57, %v2602_v52  ;;  %v2715_v60 = vpop.f32.mrb[3].mxu1 }
  0xfb   :  { %v894_v61 = vadd.f32 %v2713_v55, %v2601_v50  ;;  %v2716_v62 = vadd.f32 %v2715_v60, %v2714_v56  ;;  %1813 = vmatmul.mubr.bf16.gmra.mrb[108].mxu0 %v3262_v49 }
  0xfc   :  { %1974 = vmatmul.mubr.bf16.gmra.mrb[108].mxu1 %v3263_v53  ;;  %1820 = vmatprep.mubr.bf16.mxu0 %v3264_v54  ;;  %v3280_v54 = vld [vmem:[%s4107_s0 + $0x3c0] ss:$16 sps:$4 sm:$0xff]  }
  0xfd   :  { %1020 = vst [vmem:[%s4108_s2] sm:$0xff] %v894_v61  ;;  %v897_v63 = vadd.f32 %v2716_v62, %v2604_v59  ;;  %1981 = vmatprep.mubr.bf16.mxu1 %v3266_v58  ;;  %v2084_v1 = vmul.f32 %v894_v61, %v894_v61  ;;  %v3281_v58 = vld [vmem:[%s4107_s0 + $0x3c8] ss:$16 sps:$4 sm:$0xff]   ;;  %v3282_v59 = vld [vmem:[%s4107_s0 + $0x3e4] ss:$16 sps:$4 sm:$0xff]  }
  0xfe   :  { %v2605_v0 = vpop.f32.mrb[4].mxu0 }
  0xff   :  { %1021 = vst [vmem:[%s4108_s2 + $0x8] sm:$0xff] %v897_v63  ;;  %v2062_v2 = vadd.f32 %v897_v63, %v894_v61  ;;  %v2085_v3 = vmul.f32 %v897_v63, %v897_v63  ;;  %v2717_v4 = vpop.f32.mrb[4].mxu1  ;;  %v2606_v5 = vpop.f32.mrb[5].mxu0 }
 0x100   :  { %v2607_v7 = vadd.f32 %v2606_v5, %v2605_v0  ;;  %v2718_v8 = vpop.f32.mrb[5].mxu1  ;;  %v2608_v9 = vpop.f32.mrb[6].mxu0  ;;  %v3284_v0 = vld [vmem:[%s4107_s0 + $0x3ec] ss:$16 sps:$4 sm:$0xff]  }
 0x101   :  { %v2100_v12 = vadd.f32 %v2085_v3, %v2084_v1  ;;  %v2719_v13 = vadd.f32 %v2718_v8, %v2717_v4  ;;  %v2720_v14 = vpop.f32.mrb[6].mxu1  ;;  %v2609_v15 = vpop.f32.mrb[7].mxu0 }
 0x102   :  { %v2610_v17 = vadd.f32 %v2609_v15, %v2608_v9  ;;  %v2721_v18 = vpop.f32.mrb[7].mxu1 }
 0x103   :  { %v902_v19 = vadd.f32 %v2719_v13, %v2607_v7  ;;  %v2722_v20 = vadd.f32 %v2721_v18, %v2720_v14  ;;  %1821 = vmatmul.mubr.bf16.gmra.mrb[112].mxu0 %v3268_v6  ;;  %v3286_v14 = vld [vmem:[%s4107_s0 + $0x3e0] ss:$16 sps:$4 sm:$0xff]   ;;  %v3287_v18 = vld [vmem:[%s4107_s0 + $0x3e8] ss:$16 sps:$4 sm:$0xff]  }
 0x104   :  { %1982 = vmatmul.mubr.bf16.gmra.mrb[112].mxu1 %v3269_v10  ;;  %1828 = vmatprep.mubr.bf16.mxu0 %v3270_v11 }
 0x105   :  { %1022 = vst [vmem:[%s4108_s2 + $0x10] sm:$0xff] %v902_v19  ;;  %v2063_v21 = vadd.f32 %v2062_v2, %v902_v19  ;;  %v2086_v22 = vmul.f32 %v902_v19, %v902_v19  ;;  %v905_v23 = vadd.f32 %v2722_v20, %v2610_v17  ;;  %1989 = vmatprep.mubr.bf16.mxu1 %v3272_v16 }
 0x106   :  { %v2611_v24 = vpop.f32.mrb[8].mxu0 }
 0x107   :  { %v2101_v25 = vadd.f32 %v2100_v12, %v2086_v22  ;;  %1023 = vst [vmem:[%s4108_s2 + $0x18] sm:$0xff] %v905_v23  ;;  %v2064_v26 = vadd.f32 %v2063_v21, %v905_v23  ;;  %v2087_v27 = vmul.f32 %v905_v23, %v905_v23  ;;  %v2723_v28 = vpop.f32.mrb[8].mxu1  ;;  %v2612_v29 = vpop.f32.mrb[9].mxu0 }
 0x108   :  { %v2613_v31 = vadd.f32 %v2612_v29, %v2611_v24  ;;  %v2724_v32 = vpop.f32.mrb[9].mxu1  ;;  %v2614_v33 = vpop.f32.mrb[10].mxu0 }
 0x109   :  { %v2102_v36 = vadd.f32 %v2101_v25, %v2087_v27  ;;  %v2725_v37 = vadd.f32 %v2724_v32, %v2723_v28  ;;  %v2726_v38 = vpop.f32.mrb[10].mxu1  ;;  %v2615_v39 = vpop.f32.mrb[11].mxu0 }
 0x10a   :  { %v2616_v41 = vadd.f32 %v2615_v39, %v2614_v33  ;;  %v2727_v42 = vpop.f32.mrb[11].mxu1 }
 0x10b   :  { %v910_v43 = vadd.f32 %v2725_v37, %v2613_v31  ;;  %v2728_v44 = vadd.f32 %v2727_v42, %v2726_v38  ;;  %1829 = vmatmul.mubr.bf16.gmra.mrb[116].mxu0 %v3274_v30 }
 0x10c   :  { %1990 = vmatmul.mubr.bf16.gmra.mrb[116].mxu1 %v3275_v34  ;;  %1836 = vmatprep.mubr.bf16.mxu0 %v3276_v35 }
 0x10d   :  { %1024 = vst [vmem:[%s4108_s2 + $0x20] sm:$0xff] %v910_v43  ;;  %v2065_v45 = vadd.f32 %v2064_v26, %v910_v43  ;;  %v2088_v46 = vmul.f32 %v910_v43, %v910_v43  ;;  %v913_v47 = vadd.f32 %v2728_v44, %v2616_v41  ;;  %1997 = vmatprep.mubr.bf16.mxu1 %v3278_v40 }
 0x10e   :  { %v2617_v48 = vpop.f32.mrb[12].mxu0 }
 0x10f   :  { %v2103_v49 = vadd.f32 %v2102_v36, %v2088_v46  ;;  %1025 = vst [vmem:[%s4108_s2 + $0x28] sm:$0xff] %v913_v47  ;;  %v2066_v50 = vadd.f32 %v2065_v45, %v913_v47  ;;  %v2089_v51 = vmul.f32 %v913_v47, %v913_v47  ;;  %v2729_v52 = vpop.f32.mrb[12].mxu1  ;;  %v2618_v53 = vpop.f32.mrb[13].mxu0 }
 0x110   :  { %v2619_v55 = vadd.f32 %v2618_v53, %v2617_v48  ;;  %v2730_v56 = vpop.f32.mrb[13].mxu1  ;;  %v2620_v57 = vpop.f32.mrb[14].mxu0 }
 0x111   :  { %v2104_v60 = vadd.f32 %v2103_v49, %v2089_v51  ;;  %v2731_v61 = vadd.f32 %v2730_v56, %v2729_v52  ;;  %v2732_v62 = vpop.f32.mrb[14].mxu1  ;;  %v2621_v63 = vpop.f32.mrb[15].mxu0 }
 0x112   :  { %v2622_v1 = vadd.f32 %v2621_v63, %v2620_v57  ;;  %v2733_v2 = vpop.f32.mrb[15].mxu1 }
 0x113   :  { %v918_v3 = vadd.f32 %v2731_v61, %v2619_v55  ;;  %v2734_v4 = vadd.f32 %v2733_v2, %v2732_v62  ;;  %1837 = vmatmul.mubr.bf16.gmra.mrb[120].mxu0 %v3280_v54 }
 0x114   :  { %1998 = vmatmul.mubr.bf16.gmra.mrb[120].mxu1 %v3281_v58  ;;  %1844 = vmatprep.mubr.bf16.mxu0 %v3282_v59 }
 0x115   :  { %1026 = vst [vmem:[%s4108_s2 + $0x30] sm:$0xff] %v918_v3  ;;  %v2067_v5 = vadd.f32 %v2066_v50, %v918_v3  ;;  %v2090_v6 = vmul.f32 %v918_v3, %v918_v3  ;;  %v921_v7 = vadd.f32 %v2734_v4, %v2622_v1  ;;  %2005 = vmatprep.mubr.bf16.mxu1 %v3284_v0 }
 0x116   :  { %v2623_v8 = vpop.f32.mrb[16].mxu0 }
 0x117   :  { %v2105_v9 = vadd.f32 %v2104_v60, %v2090_v6  ;;  %1027 = vst [vmem:[%s4108_s2 + $0x38] sm:$0xff] %v921_v7  ;;  %v2068_v10 = vadd.f32 %v2067_v5, %v921_v7  ;;  %v2091_v11 = vmul.f32 %v921_v7, %v921_v7  ;;  %v2735_v12 = vpop.f32.mrb[16].mxu1  ;;  %v2624_v13 = vpop.f32.mrb[17].mxu0 }
 0x118   :  { %v2625_v15 = vadd.f32 %v2624_v13, %v2623_v8  ;;  %v2736_v16 = vpop.f32.mrb[17].mxu1  ;;  %v2626_v17 = vpop.f32.mrb[18].mxu0 }
 0x119   :  { %v2106_v19 = vadd.f32 %v2105_v9, %v2091_v11  ;;  %v2737_v20 = vadd.f32 %v2736_v16, %v2735_v12  ;;  %v2738_v21 = vpop.f32.mrb[18].mxu1  ;;  %v2627_v22 = vpop.f32.mrb[19].mxu0 }
 0x11a   :  { %v2628_v23 = vadd.f32 %v2627_v22, %v2626_v17  ;;  %v2739_v24 = vpop.f32.mrb[19].mxu1 }
 0x11b   :  { %v926_v25 = vadd.f32 %v2737_v20, %v2625_v15  ;;  %v2740_v26 = vadd.f32 %v2739_v24, %v2738_v21  ;;  %1845 = vmatmul.mubr.bf16.gmra.mrb[124].mxu0 %v3286_v14 }
 0x11c   :  { %2006 = vmatmul.mubr.bf16.gmra.mrb[124].mxu1 %v3287_v18 }
 0x11d   :  { %1028 = vst [vmem:[%s4108_s2 + $0x40] sm:$0xff] %v926_v25  ;;  %v2069_v27 = vadd.f32 %v2068_v10, %v926_v25  ;;  %v2092_v28 = vmul.f32 %v926_v25, %v926_v25  ;;  %v929_v29 = vadd.f32 %v2740_v26, %v2628_v23 }
 0x11e   :  { %v2629_v30 = vpop.f32.mrb[20].mxu0 }
 0x11f   :  { %v2107_v31 = vadd.f32 %v2106_v19, %v2092_v28  ;;  %1029 = vst [vmem:[%s4108_s2 + $0x48] sm:$0xff] %v929_v29  ;;  %v2070_v32 = vadd.f32 %v2069_v27, %v929_v29  ;;  %v2093_v33 = vmul.f32 %v929_v29, %v929_v29  ;;  %v2741_v34 = vpop.f32.mrb[20].mxu1  ;;  %v2630_v35 = vpop.f32.mrb[21].mxu0 }
 0x120   :  { %v2631_v36 = vadd.f32 %v2630_v35, %v2629_v30  ;;  %v2742_v37 = vpop.f32.mrb[21].mxu1  ;;  %v2632_v38 = vpop.f32.mrb[22].mxu0 }
 0x121   :  { %v2108_v39 = vadd.f32 %v2107_v31, %v2093_v33  ;;  %v2743_v40 = vadd.f32 %v2742_v37, %v2741_v34  ;;  %v2744_v41 = vpop.f32.mrb[22].mxu1  ;;  %v2633_v42 = vpop.f32.mrb[23].mxu0 }
 0x122   :  { %v2634_v43 = vadd.f32 %v2633_v42, %v2632_v38  ;;  %v2745_v44 = vpop.f32.mrb[23].mxu1 }
 0x123   :  { %v934_v45 = vadd.f32 %v2743_v40, %v2631_v36  ;;  %v2746_v46 = vadd.f32 %v2745_v44, %v2744_v41 }
 0x125   :  { %1030 = vst [vmem:[%s4108_s2 + $0x50] sm:$0xff] %v934_v45  ;;  %v2071_v47 = vadd.f32 %v2070_v32, %v934_v45  ;;  %v2094_v48 = vmul.f32 %v934_v45, %v934_v45  ;;  %v937_v49 = vadd.f32 %v2746_v46, %v2634_v43 }
 0x126   :  { %v2635_v50 = vpop.f32.mrb[24].mxu0 }
 0x127   :  { %v2109_v51 = vadd.f32 %v2108_v39, %v2094_v48  ;;  %1031 = vst [vmem:[%s4108_s2 + $0x58] sm:$0xff] %v937_v49  ;;  %v2072_v52 = vadd.f32 %v2071_v47, %v937_v49  ;;  %v2095_v53 = vmul.f32 %v937_v49, %v937_v49  ;;  %v2747_v54 = vpop.f32.mrb[24].mxu1  ;;  %v2636_v55 = vpop.f32.mrb[25].mxu0 }
 0x128   :  { %v2637_v56 = vadd.f32 %v2636_v55, %v2635_v50  ;;  %v2748_v57 = vpop.f32.mrb[25].mxu1  ;;  %v2638_v58 = vpop.f32.mrb[26].mxu0 }
 0x129   :  { %v2110_v59 = vadd.f32 %v2109_v51, %v2095_v53  ;;  %v2749_v60 = vadd.f32 %v2748_v57, %v2747_v54  ;;  %v2750_v61 = vpop.f32.mrb[26].mxu1  ;;  %v2639_v62 = vpop.f32.mrb[27].mxu0 }
 0x12a   :  { %v2640_v63 = vadd.f32 %v2639_v62, %v2638_v58  ;;  %v2751_v0 = vpop.f32.mrb[27].mxu1 }
 0x12b   :  { %v942_v1 = vadd.f32 %v2749_v60, %v2637_v56  ;;  %v2752_v2 = vadd.f32 %v2751_v0, %v2750_v61 }
 0x12d   :  { %1032 = vst [vmem:[%s4108_s2 + $0x60] sm:$0xff] %v942_v1  ;;  %v2073_v3 = vadd.f32 %v2072_v52, %v942_v1  ;;  %v2096_v4 = vmul.f32 %v942_v1, %v942_v1  ;;  %v945_v5 = vadd.f32 %v2752_v2, %v2640_v63 }
 0x12e   :  { %v2641_v6 = vpop.f32.mrb[28].mxu0 }
 0x12f   :  { %v2111_v7 = vadd.f32 %v2110_v59, %v2096_v4  ;;  %1033 = vst [vmem:[%s4108_s2 + $0x68] sm:$0xff] %v945_v5  ;;  %v2074_v8 = vadd.f32 %v2073_v3, %v945_v5  ;;  %v2097_v9 = vmul.f32 %v945_v5, %v945_v5  ;;  %v2753_v10 = vpop.f32.mrb[28].mxu1  ;;  %v2642_v11 = vpop.f32.mrb[29].mxu0 }
 0x130   :  { %v2643_v12 = vadd.f32 %v2642_v11, %v2641_v6  ;;  %v2754_v13 = vpop.f32.mrb[29].mxu1  ;;  %v2644_v14 = vpop.f32.mrb[30].mxu0 }
 0x131   :  { %v2112_v15 = vadd.f32 %v2111_v7, %v2097_v9  ;;  %v2755_v16 = vadd.f32 %v2754_v13, %v2753_v10  ;;  %v2756_v17 = vpop.f32.mrb[30].mxu1  ;;  %v2645_v18 = vpop.f32.mrb[31].mxu0 }
 0x132   :  { %v2646_v19 = vadd.f32 %v2645_v18, %v2644_v14  ;;  %v2757_v20 = vpop.f32.mrb[31].mxu1 }
 0x133   :  { %v950_v21 = vadd.f32 %v2755_v16, %v2643_v12  ;;  %v2758_v22 = vadd.f32 %v2757_v20, %v2756_v17 }
 0x135   :  { %1034 = vst [vmem:[%s4108_s2 + $0x70] sm:$0xff] %v950_v21  ;;  %v2075_v23 = vadd.f32 %v2074_v8, %v950_v21  ;;  %v2098_v24 = vmul.f32 %v950_v21, %v950_v21  ;;  %v953_v25 = vadd.f32 %v2758_v22, %v2646_v19 }
 0x136   :  { %v2647_v26 = vpop.f32.mrb[32].mxu0 }
 0x137   :  { %v2113_v27 = vadd.f32 %v2112_v15, %v2098_v24  ;;  %1035 = vst [vmem:[%s4108_s2 + $0x78] sm:$0xff] %v953_v25  ;;  %v3933_v28 = vadd.f32 %v2075_v23, %v953_v25  ;;  %v2099_v29 = vmul.f32 %v953_v25, %v953_v25  ;;  %v2759_v30 = vpop.f32.mrb[32].mxu1  ;;  %v2648_v31 = vpop.f32.mrb[33].mxu0 }
 0x138   :  { %v2649_v32 = vadd.f32 %v2648_v31, %v2647_v26  ;;  %v2760_v33 = vpop.f32.mrb[33].mxu1  ;;  %v2650_v34 = vpop.f32.mrb[34].mxu0 }
 0x139   :  { %v3935_v35 = vadd.f32 %v2113_v27, %v2099_v29  ;;  %v2761_v36 = vadd.f32 %v2760_v33, %v2759_v30  ;;  %v2762_v37 = vpop.f32.mrb[34].mxu1  ;;  %v2651_v38 = vpop.f32.mrb[35].mxu0 }
 0x13a   :  { %v2652_v39 = vadd.f32 %v2651_v38, %v2650_v34  ;;  %v2763_v40 = vpop.f32.mrb[35].mxu1 }
 0x13b   :  { %v958_v41 = vadd.f32 %v2761_v36, %v2649_v32  ;;  %v2764_v42 = vadd.f32 %v2763_v40, %v2762_v37 }
 0x13d   :  { %1036 = vst [vmem:[%s4108_s2 + $0x80] sm:$0xff] %v958_v41  ;;  %v961_v43 = vadd.f32 %v2764_v42, %v2652_v39  ;;  %v2160_v45 = vmul.f32 %v958_v41, %v958_v41 }
 0x13e   :  { %v2653_v44 = vpop.f32.mrb[36].mxu0 }
 0x13f   :  { %1037 = vst [vmem:[%s4108_s2 + $0x88] sm:$0xff] %v961_v43  ;;  %v2138_v46 = vadd.f32 %v961_v43, %v958_v41  ;;  %v2161_v47 = vmul.f32 %v961_v43, %v961_v43  ;;  %v2765_v48 = vpop.f32.mrb[36].mxu1  ;;  %v2654_v49 = vpop.f32.mrb[37].mxu0 }
 0x140   :  { %v2655_v50 = vadd.f32 %v2654_v49, %v2653_v44  ;;  %v2766_v51 = vpop.f32.mrb[37].mxu1  ;;  %v2656_v52 = vpop.f32.mrb[38].mxu0 }
 0x141   :  { %v2176_v53 = vadd.f32 %v2161_v47, %v2160_v45  ;;  %v2767_v54 = vadd.f32 %v2766_v51, %v2765_v48  ;;  %v2768_v55 = vpop.f32.mrb[38].mxu1  ;;  %v2657_v56 = vpop.f32.mrb[39].mxu0 }
 0x142   :  { %v2658_v57 = vadd.f32 %v2657_v56, %v2656_v52  ;;  %v2769_v58 = vpop.f32.mrb[39].mxu1 }
 0x143   :  { %v966_v59 = vadd.f32 %v2767_v54, %v2655_v50  ;;  %v2770_v60 = vadd.f32 %v2769_v58, %v2768_v55 }
 0x145   :  { %1038 = vst [vmem:[%s4108_s2 + $0x90] sm:$0xff] %v966_v59  ;;  %v2139_v61 = vadd.f32 %v2138_v46, %v966_v59  ;;  %v2162_v62 = vmul.f32 %v966_v59, %v966_v59  ;;  %v969_v63 = vadd.f32 %v2770_v60, %v2658_v57 }
 0x146   :  { %v2659_v0 = vpop.f32.mrb[40].mxu0 }
 0x147   :  { %v2177_v1 = vadd.f32 %v2176_v53, %v2162_v62  ;;  %1039 = vst [vmem:[%s4108_s2 + $0x98] sm:$0xff] %v969_v63  ;;  %v2140_v2 = vadd.f32 %v2139_v61, %v969_v63  ;;  %v2163_v3 = vmul.f32 %v969_v63, %v969_v63  ;;  %v2771_v4 = vpop.f32.mrb[40].mxu1  ;;  %v2660_v5 = vpop.f32.mrb[41].mxu0 }
 0x148   :  { %v2661_v6 = vadd.f32 %v2660_v5, %v2659_v0  ;;  %v2772_v7 = vpop.f32.mrb[41].mxu1  ;;  %v2662_v8 = vpop.f32.mrb[42].mxu0 }
 0x149   :  { %v2178_v9 = vadd.f32 %v2177_v1, %v2163_v3  ;;  %v2773_v10 = vadd.f32 %v2772_v7, %v2771_v4  ;;  %v2774_v11 = vpop.f32.mrb[42].mxu1  ;;  %v2663_v12 = vpop.f32.mrb[43].mxu0 }
 0x14a   :  { %v2664_v13 = vadd.f32 %v2663_v12, %v2662_v8  ;;  %v2775_v14 = vpop.f32.mrb[43].mxu1 }
 0x14b   :  { %v974_v15 = vadd.f32 %v2773_v10, %v2661_v6  ;;  %v2776_v16 = vadd.f32 %v2775_v14, %v2774_v11 }
 0x14d   :  { %1040 = vst [vmem:[%s4108_s2 + $0xa0] sm:$0xff] %v974_v15  ;;  %v2141_v17 = vadd.f32 %v2140_v2, %v974_v15  ;;  %v2164_v18 = vmul.f32 %v974_v15, %v974_v15  ;;  %v977_v19 = vadd.f32 %v2776_v16, %v2664_v13 }
 0x14e   :  { %v2665_v20 = vpop.f32.mrb[44].mxu0 }
 0x14f   :  { %v2179_v21 = vadd.f32 %v2178_v9, %v2164_v18  ;;  %1041 = vst [vmem:[%s4108_s2 + $0xa8] sm:$0xff] %v977_v19  ;;  %v2142_v22 = vadd.f32 %v2141_v17, %v977_v19  ;;  %v2165_v23 = vmul.f32 %v977_v19, %v977_v19  ;;  %v2777_v24 = vpop.f32.mrb[44].mxu1  ;;  %v2666_v25 = vpop.f32.mrb[45].mxu0 }
 0x150   :  { %v2667_v26 = vadd.f32 %v2666_v25, %v2665_v20  ;;  %v2778_v27 = vpop.f32.mrb[45].mxu1  ;;  %v2668_v29 = vpop.f32.mrb[46].mxu0 }
 0x151   :  { %v2180_v30 = vadd.f32 %v2179_v21, %v2165_v23  ;;  %v2779_v31 = vadd.f32 %v2778_v27, %v2777_v24  ;;  %v2780_v32 = vpop.f32.mrb[46].mxu1  ;;  %v2669_v33 = vpop.f32.mrb[47].mxu0 }
 0x152   :  { %v2670_v34 = vadd.f32 %v2669_v33, %v2668_v29  ;;  %v2781_v36 = vpop.f32.mrb[47].mxu1 }
 0x153   :  { %v982_v37 = vadd.f32 %v2779_v31, %v2667_v26  ;;  %v2782_v38 = vadd.f32 %v2781_v36, %v2780_v32 }
 0x155   :  { %1042 = vst [vmem:[%s4108_s2 + $0xb0] sm:$0xff] %v982_v37  ;;  %v2143_v39 = vadd.f32 %v2142_v22, %v982_v37  ;;  %v2166_v40 = vmul.f32 %v982_v37, %v982_v37  ;;  %v985_v41 = vadd.f32 %v2782_v38, %v2670_v34 }
 0x156   :  { %v2671_v42 = vpop.f32.mrb[48].mxu0 }
 0x157   :  { %v2181_v43 = vadd.f32 %v2180_v30, %v2166_v40  ;;  %1043 = vst [vmem:[%s4108_s2 + $0xb8] sm:$0xff] %v985_v41  ;;  %v2144_v44 = vadd.f32 %v2143_v39, %v985_v41  ;;  %v2167_v45 = vmul.f32 %v985_v41, %v985_v41  ;;  %v2783_v46 = vpop.f32.mrb[48].mxu1  ;;  %v2672_v47 = vpop.f32.mrb[49].mxu0  ;;  %v2077_v40 = vrot.slane %v3933_v28, 4 }
 0x158   :  { %v2673_v48 = vadd.f32 %v2672_v47, %v2671_v42  ;;  %v2784_v49 = vpop.f32.mrb[49].mxu1  ;;  %v2674_v50 = vpop.f32.mrb[50].mxu0  ;;  %v2115_v47 = vrot.slane %v3935_v35, 4 }
 0x159   :  { %v2182_v51 = vadd.f32 %v2181_v43, %v2167_v45  ;;  %v2785_v52 = vadd.f32 %v2784_v49, %v2783_v46  ;;  %v2786_v53 = vpop.f32.mrb[50].mxu1  ;;  %v2675_v54 = vpop.f32.mrb[51].mxu0 }
 0x15a   :  { %v2676_v55 = vadd.f32 %v2675_v54, %v2674_v50  ;;  %v2787_v56 = vpop.f32.mrb[51].mxu1 }
 0x15b   :  { %v990_v57 = vadd.f32 %v2785_v52, %v2673_v48  ;;  %v2788_v58 = vadd.f32 %v2787_v56, %v2786_v53 }
 0x15d   :  { %1044 = vst [vmem:[%s4108_s2 + $0xc0] sm:$0xff] %v990_v57  ;;  %v2145_v59 = vadd.f32 %v2144_v44, %v990_v57  ;;  %v2168_v60 = vmul.f32 %v990_v57, %v990_v57  ;;  %v993_v61 = vadd.f32 %v2788_v58, %v2676_v55  ;;  %v2078_v55 = vadd.f32 %v2077_v40, %v3933_v28 }
 0x15e   :  { %v2677_v62 = vpop.f32.mrb[52].mxu0 }
 0x15f   :  { %v2183_v63 = vadd.f32 %v2182_v51, %v2168_v60  ;;  %1045 = vst [vmem:[%s4108_s2 + $0xc8] sm:$0xff] %v993_v61  ;;  %v2146_v0 = vadd.f32 %v2145_v59, %v993_v61  ;;  %v2169_v1 = vmul.f32 %v993_v61, %v993_v61  ;;  %v2789_v2 = vpop.f32.mrb[52].mxu1  ;;  %v2678_v3 = vpop.f32.mrb[53].mxu0  ;;  %v2116_v60 = vadd.f32 %v2115_v47, %v3935_v35 }
 0x160   :  { %v2679_v4 = vadd.f32 %v2678_v3, %v2677_v62  ;;  %v2790_v5 = vpop.f32.mrb[53].mxu1  ;;  %v2680_v6 = vpop.f32.mrb[54].mxu0 }
 0x161   :  { %v2184_v7 = vadd.f32 %v2183_v63, %v2169_v1  ;;  %v2791_v8 = vadd.f32 %v2790_v5, %v2789_v2  ;;  %v2792_v9 = vpop.f32.mrb[54].mxu1  ;;  %v2681_v10 = vpop.f32.mrb[55].mxu0 }
 0x162   :  { %v2682_v11 = vadd.f32 %v2681_v10, %v2680_v6  ;;  %v2793_v12 = vpop.f32.mrb[55].mxu1  ;;  %v2117_v6 = vrot.slane %v2116_v60, 2 }
 0x163   :  { %v998_v13 = vadd.f32 %v2791_v8, %v2679_v4  ;;  %v2794_v14 = vadd.f32 %v2793_v12, %v2792_v9  ;;  %v3288_v9 = vmov 0.0  }
 0x164   :  { %57 = vst [vmem:[%s4109_s3] sm:$0x3] %v3288_v9 }
 0x165   :  { %1046 = vst [vmem:[%s4108_s2 + $0xd0] sm:$0xff] %v998_v13  ;;  %v2147_v15 = vadd.f32 %v2146_v0, %v998_v13  ;;  %v2170_v16 = vmul.f32 %v998_v13, %v998_v13  ;;  %v1001_v17 = vadd.f32 %v2794_v14, %v2682_v11  ;;  %v2079_v0 = vrot.slane %v2078_v55, 2 }
 0x166   :  { %v2683_v18 = vpop.f32.mrb[56].mxu0 }
 0x167   :  { %v2185_v19 = vadd.f32 %v2184_v7, %v2170_v16  ;;  %1047 = vst [vmem:[%s4108_s2 + $0xd8] sm:$0xff] %v1001_v17  ;;  %v2148_v20 = vadd.f32 %v2147_v15, %v1001_v17  ;;  %v2171_v21 = vmul.f32 %v1001_v17, %v1001_v17  ;;  %v2795_v22 = vpop.f32.mrb[56].mxu1  ;;  %v2684_v23 = vpop.f32.mrb[57].mxu0  ;;  %v2080_v15 = vadd.f32 %v2079_v0, %v2078_v55 }
 0x168   :  { %v2685_v24 = vadd.f32 %v2684_v23, %v2683_v18  ;;  %v2796_v25 = vpop.f32.mrb[57].mxu1  ;;  %v2686_v26 = vpop.f32.mrb[58].mxu0 }
 0x169   :  { %v2186_v27 = vadd.f32 %v2185_v19, %v2171_v21  ;;  %v2797_v29 = vadd.f32 %v2796_v25, %v2795_v22  ;;  %v2798_v30 = vpop.f32.mrb[58].mxu1  ;;  %v2687_v31 = vpop.f32.mrb[59].mxu0  ;;  %v2118_v22 = vadd.f32 %v2117_v6, %v2116_v60 }
 0x16a   :  { %v2688_v32 = vadd.f32 %v2687_v31, %v2686_v26  ;;  %v2799_v33 = vpop.f32.mrb[59].mxu1  ;;  %v2081_v26 = vrot.slane %v2080_v15, 1 }
 0x16b   :  { %v1006_v34 = vadd.f32 %v2797_v29, %v2685_v24  ;;  %v2800_v36 = vadd.f32 %v2799_v33, %v2798_v30 }
 0x16c   :  { %v2082_v47 = vadd.f32 %v2081_v26, %v2080_v15 }
 0x16d   :  { %1048 = vst [vmem:[%s4108_s2 + $0xe0] sm:$0xff] %v1006_v34  ;;  %v2149_v37 = vadd.f32 %v2148_v20, %v1006_v34  ;;  %v2172_v38 = vmul.f32 %v1006_v34, %v1006_v34  ;;  %v1009_v39 = vadd.f32 %v2800_v36, %v2688_v32 }
 0x16e   :  { %v2689_v41 = vpop.f32.mrb[60].mxu0 }
 0x16f   :  { %v2187_v42 = vadd.f32 %v2186_v27, %v2172_v38  ;;  %1049 = vst [vmem:[%s4108_s2 + $0xe8] sm:$0xff] %v1009_v39  ;;  %v2150_v43 = vadd.f32 %v2149_v37, %v1009_v39  ;;  %v2173_v44 = vmul.f32 %v1009_v39, %v1009_v39  ;;  %v2801_v45 = vpop.f32.mrb[60].mxu1  ;;  %v2690_v46 = vpop.f32.mrb[61].mxu0  ;;  %v2119_v37 = vrot.slane %v2118_v22, 1 }
 0x170   :  { %v2691_v48 = vadd.f32 %v2690_v46, %v2689_v41  ;;  %v2802_v49 = vpop.f32.mrb[61].mxu1  ;;  %v2692_v50 = vpop.f32.mrb[62].mxu0 }
 0x171   :  { %v2188_v51 = vadd.f32 %v2187_v42, %v2173_v44  ;;  %v2803_v52 = vadd.f32 %v2802_v49, %v2801_v45  ;;  %v2804_v53 = vpop.f32.mrb[62].mxu1  ;;  %v2693_v54 = vpop.f32.mrb[63].mxu0 }
 0x172   :  { %v2694_v56 = vadd.f32 %v2693_v54, %v2692_v50  ;;  %v2805_v57 = vpop.f32.mrb[63].mxu1  ;;  %v2120_v54 = vadd.f32 %v2119_v37, %v2118_v22 }
 0x173   :  { %v1014_v58 = vadd.f32 %v2803_v52, %v2691_v48  ;;  %v2806_v59 = vadd.f32 %v2805_v57, %v2804_v53 }
 0x175   :  { %1050 = vst [vmem:[%s4108_s2 + $0xf0] sm:$0xff] %v1014_v58  ;;  %v2151_v61 = vadd.f32 %v2150_v43, %v1014_v58  ;;  %v2174_v62 = vmul.f32 %v1014_v58, %v1014_v58  ;;  %v1017_v63 = vadd.f32 %v2806_v59, %v2694_v56 }
 0x176   :  { %v2823_v1 = vpop.f32.mrb[64].mxu0 }
 0x177   :  { %v2189_v2 = vadd.f32 %v2188_v51, %v2174_v62  ;;  %1051 = vst [vmem:[%s4108_s2 + $0xf8] sm:$0xff] %v1017_v63  ;;  %v2152_v28 = vadd.f32 %v2151_v61, %v1017_v63  ;;  %v2175_v3 = vmul.f32 %v1017_v63, %v1017_v63  ;;  %v2935_v4 = vpop.f32.mrb[64].mxu1  ;;  %v2824_v5 = vpop.f32.mrb[65].mxu0 }
 0x178   :  { %v2825_v35 = vadd.f32 %v2824_v5, %v2823_v1  ;;  %v2936_v7 = vpop.f32.mrb[65].mxu1  ;;  %v2826_v8 = vpop.f32.mrb[66].mxu0 }
 0x179   :  { %v2153_v10 = vrot.slane %v2152_v28, 4  ;;  %v2190_v11 = vadd.f32 %v2189_v2, %v2175_v3  ;;  %v2937_v12 = vadd.f32 %v2936_v7, %v2935_v4  ;;  %v2938_v13 = vpop.f32.mrb[66].mxu1  ;;  %v2827_v14 = vpop.f32.mrb[67].mxu0 }
 0x17a   :  { %v2828_v16 = vadd.f32 %v2827_v14, %v2826_v8  ;;  %v2939_v17 = vpop.f32.mrb[67].mxu1 }
 0x17b   :  { %v2154_v18 = vadd.f32 %v2153_v10, %v2152_v28  ;;  %v2191_v19 = vrot.slane %v2190_v11, 4  ;;  %v1888_v20 = vadd.f32 %v2937_v12, %v2825_v35  ;;  %v2940_v21 = vadd.f32 %v2939_v17, %v2938_v13 }
 0x17d   :  { %v2155_v23 = vrot.slane %v2154_v18, 2  ;;  %v2192_v24 = vadd.f32 %v2191_v19, %v2190_v11  ;;  %2014 = vst [vmem:[%s4108_s2 + $0x100] sm:$0xff] %v1888_v20  ;;  %v1891_v25 = vadd.f32 %v2940_v21, %v2828_v16  ;;  %v2236_v27 = vmul.f32 %v1888_v20, %v1888_v20 }
 0x17e   :  { %v2829_v29 = vpop.f32.mrb[68].mxu0 }
 0x17f   :  { %v2156_v30 = vadd.f32 %v2155_v23, %v2154_v18  ;;  %v2193_v31 = vrot.slane %v2192_v24, 2  ;;  %2015 = vst [vmem:[%s4108_s2 + $0x108] sm:$0xff] %v1891_v25  ;;  %v2214_v32 = vadd.f32 %v1891_v25, %v1888_v20  ;;  %v2237_v33 = vmul.f32 %v1891_v25, %v1891_v25  ;;  %v2941_v34 = vpop.f32.mrb[68].mxu1  ;;  %v2830_v36 = vpop.f32.mrb[69].mxu0 }
 0x180   :  { %v2831_v38 = vadd.f32 %v2830_v36, %v2829_v29  ;;  %v2942_v39 = vpop.f32.mrb[69].mxu1  ;;  %v2832_v40 = vpop.f32.mrb[70].mxu0 }
 0x181   :  { %v2157_v41 = vrot.slane %v2156_v30, 1  ;;  %v2194_v42 = vadd.f32 %v2193_v31, %v2192_v24  ;;  %v2252_v43 = vadd.f32 %v2237_v33, %v2236_v27  ;;  %v2943_v44 = vadd.f32 %v2942_v39, %v2941_v34  ;;  %v2944_v45 = vpop.f32.mrb[70].mxu1  ;;  %v2833_v46 = vpop.f32.mrb[71].mxu0 }
 0x182   :  { %v2834_v48 = vadd.f32 %v2833_v46, %v2832_v40  ;;  %v2945_v49 = vpop.f32.mrb[71].mxu1 }
 0x183   :  { %v2158_v50 = vadd.f32 %v2157_v41, %v2156_v30  ;;  %v2195_v51 = vrot.slane %v2194_v42, 1  ;;  %v1896_v52 = vadd.f32 %v2943_v44, %v2831_v38  ;;  %v2946_v53 = vadd.f32 %v2945_v49, %v2944_v45 }
 0x185   :  { %v3998_v55 = vadd.f32 %v2158_v50, %v2082_v47  ;;  %v2196_v56 = vadd.f32 %v2195_v51, %v2194_v42  ;;  %2016 = vst [vmem:[%s4108_s2 + $0x110] sm:$0xff] %v1896_v52  ;;  %v2215_v57 = vadd.f32 %v2214_v32, %v1896_v52  ;;  %v2238_v58 = vmul.f32 %v1896_v52, %v1896_v52 }
 0x186   :  { %v1899_v59 = vadd.f32 %v2946_v53, %v2834_v48  ;;  %v2835_v60 = vpop.f32.mrb[72].mxu0 }
 0x187   :  { %v4003_v61 = vadd.f32 %v2196_v56, %v2120_v54  ;;  %v2253_v62 = vadd.f32 %v2252_v43, %v2238_v58  ;;  %v2947_v63 = vpop.f32.mrb[72].mxu1  ;;  %v2836_v0 = vpop.f32.mrb[73].mxu0 }
 0x188   :  { %2017 = vst [vmem:[%s4108_s2 + $0x118] sm:$0xff] %v1899_v59  ;;  %v2216_v1 = vadd.f32 %v2215_v57, %v1899_v59  ;;  %v2239_v2 = vmul.f32 %v1899_v59, %v1899_v59  ;;  %v2837_v28 = vadd.f32 %v2836_v0, %v2835_v60  ;;  %v2948_v3 = vpop.f32.mrb[73].mxu1  ;;  %v2838_v4 = vpop.f32.mrb[74].mxu0 }
 0x189   :  { %v2949_v5 = vadd.f32 %v2948_v3, %v2947_v63  ;;  %v2950_v6 = vpop.f32.mrb[74].mxu1  ;;  %v2839_v35 = vpop.f32.mrb[75].mxu0 }
 0x18a   :  { %v2254_v7 = vadd.f32 %v2253_v62, %v2239_v2  ;;  %v2840_v8 = vadd.f32 %v2839_v35, %v2838_v4  ;;  %v2951_v9 = vpop.f32.mrb[75].mxu1 }
 0x18b   :  { %v1904_v10 = vadd.f32 %v2949_v5, %v2837_v28  ;;  %v2952_v11 = vadd.f32 %v2951_v9, %v2950_v6 }
 0x18d   :  { %2018 = vst [vmem:[%s4108_s2 + $0x120] sm:$0xff] %v1904_v10  ;;  %v2217_v12 = vadd.f32 %v2216_v1, %v1904_v10  ;;  %v2240_v13 = vmul.f32 %v1904_v10, %v1904_v10  ;;  %v1907_v14 = vadd.f32 %v2952_v11, %v2840_v8 }
 0x18e   :  { %v2841_v15 = vpop.f32.mrb[76].mxu0 }
 0x18f   :  { %v2255_v16 = vadd.f32 %v2254_v7, %v2240_v13  ;;  %2019 = vst [vmem:[%s4108_s2 + $0x128] sm:$0xff] %v1907_v14  ;;  %v2218_v17 = vadd.f32 %v2217_v12, %v1907_v14  ;;  %v2241_v18 = vmul.f32 %v1907_v14, %v1907_v14  ;;  %v2953_v19 = vpop.f32.mrb[76].mxu1  ;;  %v2842_v20 = vpop.f32.mrb[77].mxu0 }
 0x190   :  { %v2843_v21 = vadd.f32 %v2842_v20, %v2841_v15  ;;  %v2954_v22 = vpop.f32.mrb[77].mxu1  ;;  %v2844_v23 = vpop.f32.mrb[78].mxu0 }
 0x191   :  { %v2256_v24 = vadd.f32 %v2255_v16, %v2241_v18  ;;  %v2955_v25 = vadd.f32 %v2954_v22, %v2953_v19  ;;  %v2956_v26 = vpop.f32.mrb[78].mxu1  ;;  %v2845_v27 = vpop.f32.mrb[79].mxu0 }
 0x192   :  { %v2846_v29 = vadd.f32 %v2845_v27, %v2844_v23  ;;  %v2957_v30 = vpop.f32.mrb[79].mxu1 }
 0x193   :  { %v1912_v31 = vadd.f32 %v2955_v25, %v2843_v21  ;;  %v2958_v32 = vadd.f32 %v2957_v30, %v2956_v26 }
 0x195   :  { %2020 = vst [vmem:[%s4108_s2 + $0x130] sm:$0xff] %v1912_v31  ;;  %v2219_v33 = vadd.f32 %v2218_v17, %v1912_v31  ;;  %v2242_v34 = vmul.f32 %v1912_v31, %v1912_v31  ;;  %v1915_v36 = vadd.f32 %v2958_v32, %v2846_v29 }
 0x196   :  { %v2847_v37 = vpop.f32.mrb[80].mxu0 }
 0x197   :  { %v2257_v38 = vadd.f32 %v2256_v24, %v2242_v34  ;;  %2021 = vst [vmem:[%s4108_s2 + $0x138] sm:$0xff] %v1915_v36  ;;  %v2220_v39 = vadd.f32 %v2219_v33, %v1915_v36  ;;  %v2243_v40 = vmul.f32 %v1915_v36, %v1915_v36  ;;  %v2959_v41 = vpop.f32.mrb[80].mxu1  ;;  %v2848_v42 = vpop.f32.mrb[81].mxu0 }
 0x198   :  { %v2849_v43 = vadd.f32 %v2848_v42, %v2847_v37  ;;  %v2960_v44 = vpop.f32.mrb[81].mxu1  ;;  %v2850_v45 = vpop.f32.mrb[82].mxu0 }
 0x199   :  { %v2258_v46 = vadd.f32 %v2257_v38, %v2243_v40  ;;  %v2961_v47 = vadd.f32 %v2960_v44, %v2959_v41  ;;  %v2962_v48 = vpop.f32.mrb[82].mxu1  ;;  %v2851_v49 = vpop.f32.mrb[83].mxu0 }
 0x19a   :  { %v2852_v50 = vadd.f32 %v2851_v49, %v2850_v45  ;;  %v2963_v51 = vpop.f32.mrb[83].mxu1 }
 0x19b   :  { %v1920_v52 = vadd.f32 %v2961_v47, %v2849_v43  ;;  %v2964_v53 = vadd.f32 %v2963_v51, %v2962_v48 }
 0x19d   :  { %2022 = vst [vmem:[%s4108_s2 + $0x140] sm:$0xff] %v1920_v52  ;;  %v2221_v54 = vadd.f32 %v2220_v39, %v1920_v52  ;;  %v2244_v56 = vmul.f32 %v1920_v52, %v1920_v52  ;;  %v1923_v57 = vadd.f32 %v2964_v53, %v2852_v50 }
 0x19e   :  { %v2853_v58 = vpop.f32.mrb[84].mxu0 }
 0x19f   :  { %v2259_v59 = vadd.f32 %v2258_v46, %v2244_v56  ;;  %2023 = vst [vmem:[%s4108_s2 + $0x148] sm:$0xff] %v1923_v57  ;;  %v2222_v60 = vadd.f32 %v2221_v54, %v1923_v57  ;;  %v2245_v62 = vmul.f32 %v1923_v57, %v1923_v57  ;;  %v2965_v63 = vpop.f32.mrb[84].mxu1  ;;  %v2854_v0 = vpop.f32.mrb[85].mxu0 }
 0x1a0   :  { %v2855_v1 = vadd.f32 %v2854_v0, %v2853_v58  ;;  %v2966_v2 = vpop.f32.mrb[85].mxu1  ;;  %v2856_v28 = vpop.f32.mrb[86].mxu0 }
 0x1a1   :  { %v2260_v3 = vadd.f32 %v2259_v59, %v2245_v62  ;;  %v2967_v4 = vadd.f32 %v2966_v2, %v2965_v63  ;;  %v2968_v5 = vpop.f32.mrb[86].mxu1  ;;  %v2857_v6 = vpop.f32.mrb[87].mxu0 }
 0x1a2   :  { %v2858_v35 = vadd.f32 %v2857_v6, %v2856_v28  ;;  %v2969_v7 = vpop.f32.mrb[87].mxu1 }
 0x1a3   :  { %v1928_v8 = vadd.f32 %v2967_v4, %v2855_v1  ;;  %v2970_v9 = vadd.f32 %v2969_v7, %v2968_v5 }
 0x1a5   :  { %2024 = vst [vmem:[%s4108_s2 + $0x150] sm:$0xff] %v1928_v8  ;;  %v2223_v10 = vadd.f32 %v2222_v60, %v1928_v8  ;;  %v2246_v11 = vmul.f32 %v1928_v8, %v1928_v8  ;;  %v1931_v12 = vadd.f32 %v2970_v9, %v2858_v35 }
 0x1a6   :  { %v2859_v13 = vpop.f32.mrb[88].mxu0 }
 0x1a7   :  { %v2261_v14 = vadd.f32 %v2260_v3, %v2246_v11  ;;  %2025 = vst [vmem:[%s4108_s2 + $0x158] sm:$0xff] %v1931_v12  ;;  %v2224_v15 = vadd.f32 %v2223_v10, %v1931_v12  ;;  %v2247_v16 = vmul.f32 %v1931_v12, %v1931_v12  ;;  %v2971_v17 = vpop.f32.mrb[88].mxu1  ;;  %v2860_v18 = vpop.f32.mrb[89].mxu0 }
 0x1a8   :  { %v2861_v19 = vadd.f32 %v2860_v18, %v2859_v13  ;;  %v2972_v20 = vpop.f32.mrb[89].mxu1  ;;  %v2862_v21 = vpop.f32.mrb[90].mxu0 }
 0x1a9   :  { %v2262_v22 = vadd.f32 %v2261_v14, %v2247_v16  ;;  %v2973_v23 = vadd.f32 %v2972_v20, %v2971_v17  ;;  %v2974_v24 = vpop.f32.mrb[90].mxu1  ;;  %v2863_v25 = vpop.f32.mrb[91].mxu0 }
 0x1aa   :  { %v2864_v26 = vadd.f32 %v2863_v25, %v2862_v21  ;;  %v2975_v27 = vpop.f32.mrb[91].mxu1 }
 0x1ab   :  { %v1936_v29 = vadd.f32 %v2973_v23, %v2861_v19  ;;  %v2976_v30 = vadd.f32 %v2975_v27, %v2974_v24 }
 0x1ad   :  { %2026 = vst [vmem:[%s4108_s2 + $0x160] sm:$0xff] %v1936_v29  ;;  %v2225_v31 = vadd.f32 %v2224_v15, %v1936_v29  ;;  %v2248_v32 = vmul.f32 %v1936_v29, %v1936_v29  ;;  %v1939_v33 = vadd.f32 %v2976_v30, %v2864_v26 }
 0x1ae   :  { %v2865_v34 = vpop.f32.mrb[92].mxu0 }
 0x1af   :  { %v2263_v36 = vadd.f32 %v2262_v22, %v2248_v32  ;;  %2027 = vst [vmem:[%s4108_s2 + $0x168] sm:$0xff] %v1939_v33  ;;  %v2226_v37 = vadd.f32 %v2225_v31, %v1939_v33  ;;  %v2249_v38 = vmul.f32 %v1939_v33, %v1939_v33  ;;  %v2977_v39 = vpop.f32.mrb[92].mxu1  ;;  %v2866_v40 = vpop.f32.mrb[93].mxu0 }
 0x1b0   :  { %v2867_v41 = vadd.f32 %v2866_v40, %v2865_v34  ;;  %v2978_v42 = vpop.f32.mrb[93].mxu1  ;;  %v2868_v43 = vpop.f32.mrb[94].mxu0 }
 0x1b1   :  { %v2264_v44 = vadd.f32 %v2263_v36, %v2249_v38  ;;  %v2979_v45 = vadd.f32 %v2978_v42, %v2977_v39  ;;  %v2980_v46 = vpop.f32.mrb[94].mxu1  ;;  %v2869_v47 = vpop.f32.mrb[95].mxu0 }
 0x1b2   :  { %v2870_v48 = vadd.f32 %v2869_v47, %v2868_v43  ;;  %v2981_v49 = vpop.f32.mrb[95].mxu1 }
 0x1b3   :  { %v1944_v50 = vadd.f32 %v2979_v45, %v2867_v41  ;;  %v2982_v51 = vadd.f32 %v2981_v49, %v2980_v46 }
 0x1b5   :  { %2028 = vst [vmem:[%s4108_s2 + $0x170] sm:$0xff] %v1944_v50  ;;  %v2227_v52 = vadd.f32 %v2226_v37, %v1944_v50  ;;  %v2250_v53 = vmul.f32 %v1944_v50, %v1944_v50  ;;  %v1947_v54 = vadd.f32 %v2982_v51, %v2870_v48 }
 0x1b6   :  { %v2871_v56 = vpop.f32.mrb[96].mxu0 }
 0x1b7   :  { %v2265_v57 = vadd.f32 %v2264_v44, %v2250_v53  ;;  %2029 = vst [vmem:[%s4108_s2 + $0x178] sm:$0xff] %v1947_v54  ;;  %v2228_v58 = vadd.f32 %v2227_v52, %v1947_v54  ;;  %v2251_v59 = vmul.f32 %v1947_v54, %v1947_v54  ;;  %v2983_v60 = vpop.f32.mrb[96].mxu1  ;;  %v2872_v62 = vpop.f32.mrb[97].mxu0 }
 0x1b8   :  { %v2873_v63 = vadd.f32 %v2872_v62, %v2871_v56  ;;  %v2984_v0 = vpop.f32.mrb[97].mxu1  ;;  %v2874_v1 = vpop.f32.mrb[98].mxu0 }
 0x1b9   :  { %v2229_v2 = vrot.slane %v2228_v58, 4  ;;  %v2266_v28 = vadd.f32 %v2265_v57, %v2251_v59  ;;  %v2985_v3 = vadd.f32 %v2984_v0, %v2983_v60  ;;  %v2986_v4 = vpop.f32.mrb[98].mxu1  ;;  %v2875_v5 = vpop.f32.mrb[99].mxu0 }
 0x1ba   :  { %v2876_v6 = vadd.f32 %v2875_v5, %v2874_v1  ;;  %v2987_v35 = vpop.f32.mrb[99].mxu1 }
 0x1bb   :  { %v2230_v7 = vadd.f32 %v2229_v2, %v2228_v58  ;;  %v2267_v8 = vrot.slane %v2266_v28, 4  ;;  %v1952_v9 = vadd.f32 %v2985_v3, %v2873_v63  ;;  %v2988_v10 = vadd.f32 %v2987_v35, %v2986_v4 }
 0x1bd   :  { %v2231_v11 = vrot.slane %v2230_v7, 2  ;;  %v2268_v12 = vadd.f32 %v2267_v8, %v2266_v28  ;;  %2030 = vst [vmem:[%s4108_s2 + $0x180] sm:$0xff] %v1952_v9  ;;  %v1955_v13 = vadd.f32 %v2988_v10, %v2876_v6  ;;  %v2312_v14 = vmul.f32 %v1952_v9, %v1952_v9 }
 0x1be   :  { %v2877_v15 = vpop.f32.mrb[100].mxu0 }
 0x1bf   :  { %v2232_v16 = vadd.f32 %v2231_v11, %v2230_v7  ;;  %v2269_v17 = vrot.slane %v2268_v12, 2  ;;  %2031 = vst [vmem:[%s4108_s2 + $0x188] sm:$0xff] %v1955_v13  ;;  %v2290_v18 = vadd.f32 %v1955_v13, %v1952_v9  ;;  %v2313_v19 = vmul.f32 %v1955_v13, %v1955_v13  ;;  %v2989_v20 = vpop.f32.mrb[100].mxu1  ;;  %v2878_v21 = vpop.f32.mrb[101].mxu0 }
 0x1c0   :  { %v2879_v22 = vadd.f32 %v2878_v21, %v2877_v15  ;;  %v2990_v23 = vpop.f32.mrb[101].mxu1  ;;  %v2880_v24 = vpop.f32.mrb[102].mxu0 }
 0x1c1   :  { %v2233_v25 = vrot.slane %v2232_v16, 1  ;;  %v2270_v26 = vadd.f32 %v2269_v17, %v2268_v12  ;;  %v2328_v27 = vadd.f32 %v2313_v19, %v2312_v14  ;;  %v2991_v29 = vadd.f32 %v2990_v23, %v2989_v20  ;;  %v2992_v30 = vpop.f32.mrb[102].mxu1  ;;  %v2881_v31 = vpop.f32.mrb[103].mxu0 }
 0x1c2   :  { %v2882_v32 = vadd.f32 %v2881_v31, %v2880_v24  ;;  %v2993_v33 = vpop.f32.mrb[103].mxu1 }
 0x1c3   :  { %v2234_v34 = vadd.f32 %v2233_v25, %v2232_v16  ;;  %v2271_v36 = vrot.slane %v2270_v26, 1  ;;  %v1960_v37 = vadd.f32 %v2991_v29, %v2879_v22  ;;  %v2994_v38 = vadd.f32 %v2993_v33, %v2992_v30 }
 0x1c5   :  { %v4051_v39 = vadd.f32 %v2234_v34, %v3998_v55  ;;  %v2272_v40 = vadd.f32 %v2271_v36, %v2270_v26  ;;  %2032 = vst [vmem:[%s4108_s2 + $0x190] sm:$0xff] %v1960_v37  ;;  %v2291_v41 = vadd.f32 %v2290_v18, %v1960_v37  ;;  %v2314_v42 = vmul.f32 %v1960_v37, %v1960_v37 }
 0x1c6   :  { %v1963_v43 = vadd.f32 %v2994_v38, %v2882_v32  ;;  %v2883_v44 = vpop.f32.mrb[104].mxu0 }
 0x1c7   :  { %v4057_v45 = vadd.f32 %v2272_v40, %v4003_v61  ;;  %v2329_v46 = vadd.f32 %v2328_v27, %v2314_v42  ;;  %v2995_v47 = vpop.f32.mrb[104].mxu1  ;;  %v2884_v48 = vpop.f32.mrb[105].mxu0 }
 0x1c8   :  { %2033 = vst [vmem:[%s4108_s2 + $0x198] sm:$0xff] %v1963_v43  ;;  %v2292_v55 = vadd.f32 %v2291_v41, %v1963_v43  ;;  %v2315_v49 = vmul.f32 %v1963_v43, %v1963_v43  ;;  %v2885_v50 = vadd.f32 %v2884_v48, %v2883_v44  ;;  %v2996_v51 = vpop.f32.mrb[105].mxu1  ;;  %v2886_v52 = vpop.f32.mrb[106].mxu0 }
 0x1c9   :  { %v2997_v53 = vadd.f32 %v2996_v51, %v2995_v47  ;;  %v2998_v54 = vpop.f32.mrb[106].mxu1  ;;  %v2887_v56 = vpop.f32.mrb[107].mxu0 }
 0x1ca   :  { %v2330_v57 = vadd.f32 %v2329_v46, %v2315_v49  ;;  %v2888_v58 = vadd.f32 %v2887_v56, %v2886_v52  ;;  %v2999_v59 = vpop.f32.mrb[107].mxu1 }
 0x1cb   :  { %v1968_v61 = vadd.f32 %v2997_v53, %v2885_v50  ;;  %v3000_v60 = vadd.f32 %v2999_v59, %v2998_v54 }
 0x1cd   :  { %2034 = vst [vmem:[%s4108_s2 + $0x1a0] sm:$0xff] %v1968_v61  ;;  %v2293_v62 = vadd.f32 %v2292_v55, %v1968_v61  ;;  %v2316_v63 = vmul.f32 %v1968_v61, %v1968_v61  ;;  %v1971_v0 = vadd.f32 %v3000_v60, %v2888_v58 }
 0x1ce   :  { %v2889_v1 = vpop.f32.mrb[108].mxu0 }
 0x1cf   :  { %v2331_v2 = vadd.f32 %v2330_v57, %v2316_v63  ;;  %2035 = vst [vmem:[%s4108_s2 + $0x1a8] sm:$0xff] %v1971_v0  ;;  %v2294_v28 = vadd.f32 %v2293_v62, %v1971_v0  ;;  %v2317_v3 = vmul.f32 %v1971_v0, %v1971_v0  ;;  %v3001_v4 = vpop.f32.mrb[108].mxu1  ;;  %v2890_v5 = vpop.f32.mrb[109].mxu0 }
 0x1d0   :  { %v2891_v6 = vadd.f32 %v2890_v5, %v2889_v1  ;;  %v3002_v35 = vpop.f32.mrb[109].mxu1  ;;  %v2892_v7 = vpop.f32.mrb[110].mxu0 }
 0x1d1   :  { %v2332_v8 = vadd.f32 %v2331_v2, %v2317_v3  ;;  %v3003_v9 = vadd.f32 %v3002_v35, %v3001_v4  ;;  %v3004_v10 = vpop.f32.mrb[110].mxu1  ;;  %v2893_v11 = vpop.f32.mrb[111].mxu0 }
 0x1d2   :  { %v2894_v12 = vadd.f32 %v2893_v11, %v2892_v7  ;;  %v3005_v13 = vpop.f32.mrb[111].mxu1 }
 0x1d3   :  { %v1976_v14 = vadd.f32 %v3003_v9, %v2891_v6  ;;  %v3006_v15 = vadd.f32 %v3005_v13, %v3004_v10 }
 0x1d5   :  { %2036 = vst [vmem:[%s4108_s2 + $0x1b0] sm:$0xff] %v1976_v14  ;;  %v2295_v16 = vadd.f32 %v2294_v28, %v1976_v14  ;;  %v2318_v17 = vmul.f32 %v1976_v14, %v1976_v14  ;;  %v1979_v18 = vadd.f32 %v3006_v15, %v2894_v12 }
 0x1d6   :  { %v2895_v19 = vpop.f32.mrb[112].mxu0 }
 0x1d7   :  { %v2333_v20 = vadd.f32 %v2332_v8, %v2318_v17  ;;  %2037 = vst [vmem:[%s4108_s2 + $0x1b8] sm:$0xff] %v1979_v18  ;;  %v2296_v21 = vadd.f32 %v2295_v16, %v1979_v18  ;;  %v2319_v22 = vmul.f32 %v1979_v18, %v1979_v18  ;;  %v3007_v23 = vpop.f32.mrb[112].mxu1  ;;  %v2896_v24 = vpop.f32.mrb[113].mxu0 }
 0x1d8   :  { %v2897_v25 = vadd.f32 %v2896_v24, %v2895_v19  ;;  %v3008_v26 = vpop.f32.mrb[113].mxu1  ;;  %v2898_v27 = vpop.f32.mrb[114].mxu0 }
 0x1d9   :  { %v2334_v29 = vadd.f32 %v2333_v20, %v2319_v22  ;;  %v3009_v30 = vadd.f32 %v3008_v26, %v3007_v23  ;;  %v3010_v31 = vpop.f32.mrb[114].mxu1  ;;  %v2899_v32 = vpop.f32.mrb[115].mxu0 }
 0x1da   :  { %v2900_v33 = vadd.f32 %v2899_v32, %v2898_v27  ;;  %v3011_v34 = vpop.f32.mrb[115].mxu1 }
 0x1db   :  { %v1984_v36 = vadd.f32 %v3009_v30, %v2897_v25  ;;  %v3012_v37 = vadd.f32 %v3011_v34, %v3010_v31 }
 0x1dd   :  { %2038 = vst [vmem:[%s4108_s2 + $0x1c0] sm:$0xff] %v1984_v36  ;;  %v2297_v38 = vadd.f32 %v2296_v21, %v1984_v36  ;;  %v2320_v40 = vmul.f32 %v1984_v36, %v1984_v36  ;;  %v1987_v41 = vadd.f32 %v3012_v37, %v2900_v33 }
 0x1de   :  { %v2901_v42 = vpop.f32.mrb[116].mxu0 }
 0x1df   :  { %v2335_v43 = vadd.f32 %v2334_v29, %v2320_v40  ;;  %2039 = vst [vmem:[%s4108_s2 + $0x1c8] sm:$0xff] %v1987_v41  ;;  %v2298_v44 = vadd.f32 %v2297_v38, %v1987_v41  ;;  %v2321_v46 = vmul.f32 %v1987_v41, %v1987_v41  ;;  %v3013_v47 = vpop.f32.mrb[116].mxu1  ;;  %v2902_v48 = vpop.f32.mrb[117].mxu0 }
 0x1e0   :  { %v2903_v55 = vadd.f32 %v2902_v48, %v2901_v42  ;;  %v3014_v49 = vpop.f32.mrb[117].mxu1  ;;  %v2904_v50 = vpop.f32.mrb[118].mxu0 }
 0x1e1   :  { %v2336_v51 = vadd.f32 %v2335_v43, %v2321_v46  ;;  %v3015_v52 = vadd.f32 %v3014_v49, %v3013_v47  ;;  %v3016_v53 = vpop.f32.mrb[118].mxu1  ;;  %v2905_v54 = vpop.f32.mrb[119].mxu0 }
 0x1e2   :  { %v2906_v56 = vadd.f32 %v2905_v54, %v2904_v50  ;;  %v3017_v57 = vpop.f32.mrb[119].mxu1 }
 0x1e3   :  { %v1992_v58 = vadd.f32 %v3015_v52, %v2903_v55  ;;  %v3018_v59 = vadd.f32 %v3017_v57, %v3016_v53 }
 0x1e5   :  { %2040 = vst [vmem:[%s4108_s2 + $0x1d0] sm:$0xff] %v1992_v58  ;;  %v2299_v61 = vadd.f32 %v2298_v44, %v1992_v58  ;;  %v2322_v60 = vmul.f32 %v1992_v58, %v1992_v58  ;;  %v1995_v62 = vadd.f32 %v3018_v59, %v2906_v56  ;;  %v2350_v59 = vld [vmem:[%s4109_s3] sm:$0x3] }
 0x1e6   :  { %v2907_v63 = vpop.f32.mrb[120].mxu0 }
 0x1e7   :  { %v2337_v0 = vadd.f32 %v2336_v51, %v2322_v60  ;;  %2041 = vst [vmem:[%s4108_s2 + $0x1d8] sm:$0xff] %v1995_v62  ;;  %v2300_v1 = vadd.f32 %v2299_v61, %v1995_v62  ;;  %v2323_v2 = vmul.f32 %v1995_v62, %v1995_v62  ;;  %v3019_v28 = vpop.f32.mrb[120].mxu1  ;;  %v2908_v3 = vpop.f32.mrb[121].mxu0 }
 0x1e8   :  { %v2909_v4 = vadd.f32 %v2908_v3, %v2907_v63  ;;  %v3020_v5 = vpop.f32.mrb[121].mxu1  ;;  %v2910_v6 = vpop.f32.mrb[122].mxu0 }
 0x1e9   :  { %v2338_v35 = vadd.f32 %v2337_v0, %v2323_v2  ;;  %v3021_v7 = vadd.f32 %v3020_v5, %v3019_v28  ;;  %v3022_v8 = vpop.f32.mrb[122].mxu1  ;;  %v2911_v9 = vpop.f32.mrb[123].mxu0 }
 0x1ea   :  { %v2912_v10 = vadd.f32 %v2911_v9, %v2910_v6  ;;  %v3023_v11 = vpop.f32.mrb[123].mxu1 }
 0x1eb   :  { %v2000_v12 = vadd.f32 %v3021_v7, %v2909_v4  ;;  %v3024_v13 = vadd.f32 %v3023_v11, %v3022_v8 }
 0x1ed   :  { %2042 = vst [vmem:[%s4108_s2 + $0x1e0] sm:$0xff] %v2000_v12  ;;  %v2301_v14 = vadd.f32 %v2300_v1, %v2000_v12  ;;  %v2324_v15 = vmul.f32 %v2000_v12, %v2000_v12  ;;  %v2003_v16 = vadd.f32 %v3024_v13, %v2912_v10 }
 0x1ee   :  { %v2913_v17 = vpop.f32.mrb[124].mxu0 }
 0x1ef   :  { %v2339_v18 = vadd.f32 %v2338_v35, %v2324_v15  ;;  %2043 = vst [vmem:[%s4108_s2 + $0x1e8] sm:$0xff] %v2003_v16  ;;  %v2302_v19 = vadd.f32 %v2301_v14, %v2003_v16  ;;  %v2325_v20 = vmul.f32 %v2003_v16, %v2003_v16  ;;  %v3025_v21 = vpop.f32.mrb[124].mxu1  ;;  %v2914_v22 = vpop.f32.mrb[125].mxu0 }
 0x1f0   :  { %v2915_v23 = vadd.f32 %v2914_v22, %v2913_v17  ;;  %v3026_v24 = vpop.f32.mrb[125].mxu1  ;;  %v2916_v25 = vpop.f32.mrb[126].mxu0 }
 0x1f1   :  { %v2340_v26 = vadd.f32 %v2339_v18, %v2325_v20  ;;  %v3027_v27 = vadd.f32 %v3026_v24, %v3025_v21  ;;  %v3028_v29 = vpop.f32.mrb[126].mxu1  ;;  %v2917_v30 = vpop.f32.mrb[127].mxu0 }
 0x1f2   :  { %v2918_v31 = vadd.f32 %v2917_v30, %v2916_v25  ;;  %v3029_v32 = vpop.f32.mrb[127].mxu1 }
 0x1f3   :  { %v2008_v33 = vadd.f32 %v3027_v27, %v2915_v23  ;;  %v3030_v34 = vadd.f32 %v3029_v32, %v3028_v29 }
 0x1f5   :  { %2044 = vst [vmem:[%s4108_s2 + $0x1f0] sm:$0xff] %v2008_v33  ;;  %v2303_v36 = vadd.f32 %v2302_v19, %v2008_v33  ;;  %v2326_v37 = vmul.f32 %v2008_v33, %v2008_v33  ;;  %v2011_v38 = vadd.f32 %v3030_v34, %v2918_v31 }
 0x1f7   :  { %v2341_v40 = vadd.f32 %v2340_v26, %v2326_v37  ;;  %2045 = vst [vmem:[%s4108_s2 + $0x1f8] sm:$0xff] %v2011_v38  ;;  %v2304_v41 = vadd.f32 %v2303_v36, %v2011_v38  ;;  %v2327_v42 = vmul.f32 %v2011_v38, %v2011_v38 }
 0x1f9   :  { %v2305_v43 = vrot.slane %v2304_v41, 4  ;;  %v2342_v44 = vadd.f32 %v2341_v40, %v2327_v42 }
 0x1fb   :  { %v2306_v46 = vadd.f32 %v2305_v43, %v2304_v41  ;;  %v2343_v47 = vrot.slane %v2342_v44, 4 }
 0x1fd   :  { %v2307_v48 = vrot.slane %v2306_v46, 2  ;;  %v2344_v55 = vadd.f32 %v2343_v47, %v2342_v44 }
 0x1ff   :  { %v2308_v49 = vadd.f32 %v2307_v48, %v2306_v46  ;;  %v2345_v50 = vrot.slane %v2344_v55, 2 }
 0x201   :  { %v2309_v51 = vrot.slane %v2308_v49, 1  ;;  %v2346_v52 = vadd.f32 %v2345_v50, %v2344_v55 }
 0x203   :  { %v2310_v53 = vadd.f32 %v2309_v51, %v2308_v49  ;;  %v2347_v54 = vrot.slane %v2346_v52, 1 }
 0x205   :  { %v2311_v56 = vadd.f32 %v2310_v53, %v4051_v39  ;;  %v2348_v57 = vadd.f32 %v2347_v54, %v2346_v52 }
 0x207   :  { %v2349_v58 = vadd.f32 %v2348_v57, %v4057_v45 }
 0x209   :  { %v2352_v61 = vsel %vm2351_vm0, %v2311_v56, %v2349_v58 }
 0x20a   :  { %v2353_v60 = vadd.f32 %v2352_v61, %v2350_v59 }
 0x20c   :  { %2354 = vst [vmem:[%s4109_s3] sm:$0x3] %v2353_v60 }

// kernel: allcnn_forward.35
= control target key start
LH: loop header
LB: loop body
LE: loop exit
PB: predicated region body
PF: predicated region fallthrough
CT: control target
= control target key end

     0   :  { %vm793_vm0 = vcmask 1040384   ;;  %s1376_s1 = inlined_call_operand.vmem [shape: bf16[512,128], index: 1, kind: input, shape index: {}]   ;;  %s1377_s0 = inlined_call_operand.vmem [shape: bf16[128,512], index: 0, kind: input, shape index: {}]   ;;  %s1378_s3 = inlined_call_operand.vmem [shape: f32[1,2,128], index: 3, kind: output, shape index: {1}]   ;;  %s1379_s2 = inlined_call_operand.vmem [shape: f32[128,128], index: 2, kind: output, shape index: {0}]  }
   0x1   :  { %v1026_v0 = vld [vmem:[%s1376_s1 + $0x40] sm:$0xff]   ;;  %v1030_v4 = vld [vmem:[%s1376_s1 + $0x48] sm:$0xff]   ;;  %v1034_v8 = vld [vmem:[%s1376_s1 + $0x50] sm:$0xff]  }
   0x2   :  { %v1027_v1 = vld [vmem:[%s1376_s1 + $0xc0] sm:$0xff]   ;;  %897 = vmatprep.subr.bf16.mxu0 %v1026_v0  ;;  %v1031_v5 = vld [vmem:[%s1376_s1 + $0xc8] sm:$0xff]   ;;  %v1035_v9 = vld [vmem:[%s1376_s1 + $0xd0] sm:$0xff]   ;;  %v1106_v0 = vmov 0.0  }
   0x3   :  { %v1028_v2 = vld [vmem:[%s1376_s1] sm:$0xff]   ;;  %961 = vmatprep.subr.bf16.mxu1 %v1027_v1  ;;  %v1032_v6 = vld [vmem:[%s1376_s1 + $0x8] sm:$0xff]   ;;  %v1036_v10 = vld [vmem:[%s1376_s1 + $0x10] sm:$0xff]   ;;  %57 = vst [vmem:[%s1378_s3] sm:$0x3] %v1106_v0 }
   0x4   :  { %v1029_v3 = vld [vmem:[%s1376_s1 + $0x80] sm:$0xff]   ;;  %898 = vmatpush3.bf16.msra.mxu0 %v1028_v2  ;;  %v1033_v7 = vld [vmem:[%s1376_s1 + $0x88] sm:$0xff]   ;;  %v1037_v11 = vld [vmem:[%s1376_s1 + $0x90] sm:$0xff]  }
   0x5   :  { %962 = vmatpush3.bf16.msra.mxu1 %v1029_v3  ;;  %899 = vmatprep.subr.bf16.mxu0 %v1030_v4  ;;  %v1038_v12 = vld [vmem:[%s1376_s1 + $0x58] sm:$0xff]   ;;  %v1042_v16 = vld [vmem:[%s1376_s1 + $0x60] sm:$0xff]   ;;  %v1046_v20 = vld [vmem:[%s1376_s1 + $0x68] sm:$0xff]  }
   0x6   :  { %963 = vmatprep.subr.bf16.mxu1 %v1031_v5  ;;  %v1039_v13 = vld [vmem:[%s1376_s1 + $0xd8] sm:$0xff]   ;;  %v1043_v17 = vld [vmem:[%s1376_s1 + $0xe0] sm:$0xff]   ;;  %v1047_v21 = vld [vmem:[%s1376_s1 + $0xe8] sm:$0xff]  }
   0x7   :  { %v1040_v14 = vld [vmem:[%s1376_s1 + $0x18] sm:$0xff]   ;;  %v1044_v18 = vld [vmem:[%s1376_s1 + $0x20] sm:$0xff]   ;;  %v1048_v22 = vld [vmem:[%s1376_s1 + $0x28] sm:$0xff]  }
   0x8   :  { %900 = vmatpush3.bf16.msra.mxu0 %v1032_v6  ;;  %v1041_v15 = vld [vmem:[%s1376_s1 + $0x98] sm:$0xff]   ;;  %v1045_v19 = vld [vmem:[%s1376_s1 + $0xa0] sm:$0xff]   ;;  %v1049_v23 = vld [vmem:[%s1376_s1 + $0xa8] sm:$0xff]  }
   0x9   :  { %964 = vmatpush3.bf16.msra.mxu1 %v1033_v7  ;;  %901 = vmatprep.subr.bf16.mxu0 %v1034_v8  ;;  %v1050_v24 = vld [vmem:[%s1376_s1 + $0x70] sm:$0xff]   ;;  %v1054_v28 = vld [vmem:[%s1376_s1 + $0x78] sm:$0xff]  }
   0xa   :  { %965 = vmatprep.subr.bf16.mxu1 %v1035_v9  ;;  %v1051_v25 = vld [vmem:[%s1376_s1 + $0xf0] sm:$0xff]   ;;  %v1055_v29 = vld [vmem:[%s1376_s1 + $0xf8] sm:$0xff]  }
   0xb   :  { %v1052_v26 = vld [vmem:[%s1376_s1 + $0x30] sm:$0xff]   ;;  %v1056_v30 = vld [vmem:[%s1376_s1 + $0x38] sm:$0xff]  }
   0xc   :  { %902 = vmatpush3.bf16.msra.mxu0 %v1036_v10  ;;  %v1053_v27 = vld [vmem:[%s1376_s1 + $0xb0] sm:$0xff]   ;;  %v1057_v31 = vld [vmem:[%s1376_s1 + $0xb8] sm:$0xff]  }
   0xd   :  { %966 = vmatpush3.bf16.msra.mxu1 %v1037_v11  ;;  %903 = vmatprep.subr.bf16.mxu0 %v1038_v12  ;;  %v1058_v32 = vld [vmem:[%s1377_s0] ss:$16 sps:$4 sm:$0xff]   ;;  %v1060_v33 = vld [vmem:[%s1377_s0 + $0x4] ss:$16 sps:$4 sm:$0xff]   ;;  %v1061_v34 = vld [vmem:[%s1377_s0 + $0x8] ss:$16 sps:$4 sm:$0xff]  }
   0xe   :  { %967 = vmatprep.subr.bf16.mxu1 %v1039_v13  ;;  %v1063_v35 = vld [vmem:[%s1377_s0 + $0xc] ss:$16 sps:$4 sm:$0xff]   ;;  %538 = vmatprep.mubr.bf16.mxu0 %v1060_v33  ;;  %v1064_v36 = vld [vmem:[%s1377_s0 + $0x24] ss:$16 sps:$4 sm:$0xff]   ;;  %v1068_v38 = vld [vmem:[%s1377_s0 + $0x20] ss:$16 sps:$4 sm:$0xff]  }
   0xf   :  { %635 = vmatprep.mubr.bf16.mxu1 %v1063_v35  ;;  %v1066_v37 = vld [vmem:[%s1377_s0 + $0x2c] ss:$16 sps:$4 sm:$0xff]   ;;  %v1069_v39 = vld [vmem:[%s1377_s0 + $0x28] ss:$16 sps:$4 sm:$0xff]   ;;  %v1070_v40 = vld [vmem:[%s1377_s0 + $0x44] ss:$16 sps:$4 sm:$0xff]  }
  0x10   :  { %904 = vmatpush3.bf16.msra.mxu0 %v1040_v14  ;;  %v1072_v41 = vld [vmem:[%s1377_s0 + $0x4c] ss:$16 sps:$4 sm:$0xff]   ;;  %v1074_v42 = vld [vmem:[%s1377_s0 + $0x40] ss:$16 sps:$4 sm:$0xff]   ;;  %v1075_v43 = vld [vmem:[%s1377_s0 + $0x48] ss:$16 sps:$4 sm:$0xff]  }
  0x11   :  { %968 = vmatpush3.bf16.msra.mxu1 %v1041_v15  ;;  %905 = vmatprep.subr.bf16.mxu0 %v1042_v16  ;;  %v1076_v44 = vld [vmem:[%s1377_s0 + $0x64] ss:$16 sps:$4 sm:$0xff]   ;;  %v1078_v45 = vld [vmem:[%s1377_s0 + $0x6c] ss:$16 sps:$4 sm:$0xff]   ;;  %v1080_v46 = vld [vmem:[%s1377_s0 + $0x60] ss:$16 sps:$4 sm:$0xff]  }
  0x12   :  { %969 = vmatprep.subr.bf16.mxu1 %v1043_v17  ;;  %v1081_v47 = vld [vmem:[%s1377_s0 + $0x68] ss:$16 sps:$4 sm:$0xff]   ;;  %v1082_v48 = vld [vmem:[%s1377_s0 + $0x84] ss:$16 sps:$4 sm:$0xff]   ;;  %v1084_v49 = vld [vmem:[%s1377_s0 + $0x8c] ss:$16 sps:$4 sm:$0xff]  }
  0x13   :  { %v1086_v50 = vld [vmem:[%s1377_s0 + $0x80] ss:$16 sps:$4 sm:$0xff]   ;;  %v1087_v51 = vld [vmem:[%s1377_s0 + $0x88] ss:$16 sps:$4 sm:$0xff]   ;;  %v1088_v52 = vld [vmem:[%s1377_s0 + $0xa4] ss:$16 sps:$4 sm:$0xff]  }
  0x14   :  { %906 = vmatpush3.bf16.msra.mxu0 %v1044_v18  ;;  %v1090_v53 = vld [vmem:[%s1377_s0 + $0xac] ss:$16 sps:$4 sm:$0xff]   ;;  %v1092_v54 = vld [vmem:[%s1377_s0 + $0xa0] ss:$16 sps:$4 sm:$0xff]   ;;  %v1093_v55 = vld [vmem:[%s1377_s0 + $0xa8] ss:$16 sps:$4 sm:$0xff]  }
  0x15   :  { %970 = vmatpush3.bf16.msra.mxu1 %v1045_v19  ;;  %907 = vmatprep.subr.bf16.mxu0 %v1046_v20  ;;  %v1094_v56 = vld [vmem:[%s1377_s0 + $0xc4] ss:$16 sps:$4 sm:$0xff]   ;;  %v1096_v57 = vld [vmem:[%s1377_s0 + $0xcc] ss:$16 sps:$4 sm:$0xff]   ;;  %v1098_v58 = vld [vmem:[%s1377_s0 + $0xc0] ss:$16 sps:$4 sm:$0xff]  }
  0x16   :  { %971 = vmatprep.subr.bf16.mxu1 %v1047_v21  ;;  %v1099_v59 = vld [vmem:[%s1377_s0 + $0xc8] ss:$16 sps:$4 sm:$0xff]   ;;  %v1100_v60 = vld [vmem:[%s1377_s0 + $0xe4] ss:$16 sps:$4 sm:$0xff]   ;;  %v1102_v61 = vld [vmem:[%s1377_s0 + $0xec] ss:$16 sps:$4 sm:$0xff]  }
  0x17   :  { %v1104_v62 = vld [vmem:[%s1377_s0 + $0xe0] ss:$16 sps:$4 sm:$0xff]   ;;  %v1105_v63 = vld [vmem:[%s1377_s0 + $0xe8] ss:$16 sps:$4 sm:$0xff]  }
  0x18   :  { %908 = vmatpush3.bf16.msra.mxu0 %v1048_v22 }
  0x19   :  { %972 = vmatpush3.bf16.msra.mxu1 %v1049_v23  ;;  %909 = vmatprep.subr.bf16.mxu0 %v1050_v24 }
  0x1a   :  { %973 = vmatprep.subr.bf16.mxu1 %v1051_v25 }
  0x1c   :  { %910 = vmatpush3.bf16.msra.mxu0 %v1052_v26 }
  0x1d   :  { %974 = vmatpush3.bf16.msra.mxu1 %v1053_v27  ;;  %911 = vmatprep.subr.bf16.mxu0 %v1054_v28 }
  0x1e   :  { %975 = vmatprep.subr.bf16.mxu1 %v1055_v29 }
  0x20   :  { %912 = vmatpush3.bf16.msra.mxu0 %v1056_v30 }
  0x21   :  { %976 = vmatpush3.bf16.msra.mxu1 %v1057_v31 }
  0x23   :  { %539 = vmatmul.mubr.bf16.vlgmr.msra.gmra.mrb[0].mxu0 %v1058_v32 }
  0x24   :  { %636 = vmatmul.mubr.bf16.vlgmr.msra.gmra.mrb[0].mxu1 %v1061_v34  ;;  %546 = vmatprep.mubr.bf16.mxu0 %v1064_v36 }
  0x25   :  { %643 = vmatprep.mubr.bf16.mxu1 %v1066_v37 }
  0x2b   :  { %547 = vmatmul.mubr.bf16.gmra.mrb[4].mxu0 %v1068_v38 }
  0x2c   :  { %644 = vmatmul.mubr.bf16.gmra.mrb[4].mxu1 %v1069_v39  ;;  %554 = vmatprep.mubr.bf16.mxu0 %v1070_v40 }
  0x2d   :  { %651 = vmatprep.mubr.bf16.mxu1 %v1072_v41 }
  0x33   :  { %555 = vmatmul.mubr.bf16.gmra.mrb[8].mxu0 %v1074_v42 }
  0x34   :  { %652 = vmatmul.mubr.bf16.gmra.mrb[8].mxu1 %v1075_v43  ;;  %562 = vmatprep.mubr.bf16.mxu0 %v1076_v44 }
  0x35   :  { %659 = vmatprep.mubr.bf16.mxu1 %v1078_v45 }
  0x3b   :  { %563 = vmatmul.mubr.bf16.gmra.mrb[12].mxu0 %v1080_v46 }
  0x3c   :  { %660 = vmatmul.mubr.bf16.gmra.mrb[12].mxu1 %v1081_v47  ;;  %570 = vmatprep.mubr.bf16.mxu0 %v1082_v48 }
  0x3d   :  { %667 = vmatprep.mubr.bf16.mxu1 %v1084_v49 }
  0x43   :  { %571 = vmatmul.mubr.bf16.gmra.mrb[16].mxu0 %v1086_v50 }
  0x44   :  { %668 = vmatmul.mubr.bf16.gmra.mrb[16].mxu1 %v1087_v51  ;;  %578 = vmatprep.mubr.bf16.mxu0 %v1088_v52 }
  0x45   :  { %675 = vmatprep.mubr.bf16.mxu1 %v1090_v53 }
  0x4b   :  { %579 = vmatmul.mubr.bf16.gmra.mrb[20].mxu0 %v1092_v54 }
  0x4c   :  { %676 = vmatmul.mubr.bf16.gmra.mrb[20].mxu1 %v1093_v55  ;;  %586 = vmatprep.mubr.bf16.mxu0 %v1094_v56 }
  0x4d   :  { %683 = vmatprep.mubr.bf16.mxu1 %v1096_v57 }
  0x53   :  { %587 = vmatmul.mubr.bf16.gmra.mrb[24].mxu0 %v1098_v58 }
  0x54   :  { %684 = vmatmul.mubr.bf16.gmra.mrb[24].mxu1 %v1099_v59  ;;  %594 = vmatprep.mubr.bf16.mxu0 %v1100_v60 }
  0x55   :  { %691 = vmatprep.mubr.bf16.mxu1 %v1102_v61 }
  0x5b   :  { %595 = vmatmul.mubr.bf16.gmra.mrb[28].mxu0 %v1104_v62 }
  0x5c   :  { %692 = vmatmul.mubr.bf16.gmra.mrb[28].mxu1 %v1105_v63 }
  0xf6   :  { %v913_v1 = vpop.f32.mrb[0].mxu0 }
  0xf7   :  { %v977_v2 = vpop.f32.mrb[0].mxu1  ;;  %v914_v3 = vpop.f32.mrb[1].mxu0 }
  0xf8   :  { %v915_v4 = vadd.f32 %v914_v3, %v913_v1  ;;  %v978_v5 = vpop.f32.mrb[1].mxu1  ;;  %v916_v6 = vpop.f32.mrb[2].mxu0 }
  0xf9   :  { %v979_v7 = vadd.f32 %v978_v5, %v977_v2  ;;  %v980_v8 = vpop.f32.mrb[2].mxu1  ;;  %v917_v9 = vpop.f32.mrb[3].mxu0 }
  0xfa   :  { %v918_v10 = vadd.f32 %v917_v9, %v916_v6  ;;  %v981_v11 = vpop.f32.mrb[3].mxu1 }
  0xfb   :  { %v638_v12 = vadd.f32 %v979_v7, %v915_v4  ;;  %v982_v13 = vadd.f32 %v981_v11, %v980_v8 }
  0xfd   :  { %700 = vst [vmem:[%s1379_s2] sm:$0xff] %v638_v12  ;;  %v641_v14 = vadd.f32 %v982_v13, %v918_v10  ;;  %v754_v16 = vmul.f32 %v638_v12, %v638_v12 }
  0xfe   :  { %v919_v15 = vpop.f32.mrb[4].mxu0 }
  0xff   :  { %701 = vst [vmem:[%s1379_s2 + $0x8] sm:$0xff] %v641_v14  ;;  %v732_v17 = vadd.f32 %v641_v14, %v638_v12  ;;  %v755_v18 = vmul.f32 %v641_v14, %v641_v14  ;;  %v983_v19 = vpop.f32.mrb[4].mxu1  ;;  %v920_v20 = vpop.f32.mrb[5].mxu0 }
 0x100   :  { %v921_v21 = vadd.f32 %v920_v20, %v919_v15  ;;  %v984_v22 = vpop.f32.mrb[5].mxu1  ;;  %v922_v23 = vpop.f32.mrb[6].mxu0 }
 0x101   :  { %v770_v24 = vadd.f32 %v755_v18, %v754_v16  ;;  %v985_v25 = vadd.f32 %v984_v22, %v983_v19  ;;  %v986_v26 = vpop.f32.mrb[6].mxu1  ;;  %v923_v27 = vpop.f32.mrb[7].mxu0 }
 0x102   :  { %v924_v28 = vadd.f32 %v923_v27, %v922_v23  ;;  %v987_v29 = vpop.f32.mrb[7].mxu1 }
 0x103   :  { %v646_v30 = vadd.f32 %v985_v25, %v921_v21  ;;  %v988_v31 = vadd.f32 %v987_v29, %v986_v26 }
 0x105   :  { %702 = vst [vmem:[%s1379_s2 + $0x10] sm:$0xff] %v646_v30  ;;  %v733_v32 = vadd.f32 %v732_v17, %v646_v30  ;;  %v756_v33 = vmul.f32 %v646_v30, %v646_v30  ;;  %v649_v34 = vadd.f32 %v988_v31, %v924_v28 }
 0x106   :  { %v925_v35 = vpop.f32.mrb[8].mxu0 }
 0x107   :  { %v771_v36 = vadd.f32 %v770_v24, %v756_v33  ;;  %703 = vst [vmem:[%s1379_s2 + $0x18] sm:$0xff] %v649_v34  ;;  %v734_v37 = vadd.f32 %v733_v32, %v649_v34  ;;  %v757_v38 = vmul.f32 %v649_v34, %v649_v34  ;;  %v989_v39 = vpop.f32.mrb[8].mxu1  ;;  %v926_v40 = vpop.f32.mrb[9].mxu0 }
 0x108   :  { %v927_v41 = vadd.f32 %v926_v40, %v925_v35  ;;  %v990_v42 = vpop.f32.mrb[9].mxu1  ;;  %v928_v43 = vpop.f32.mrb[10].mxu0 }
 0x109   :  { %v772_v44 = vadd.f32 %v771_v36, %v757_v38  ;;  %v991_v45 = vadd.f32 %v990_v42, %v989_v39  ;;  %v992_v46 = vpop.f32.mrb[10].mxu1  ;;  %v929_v47 = vpop.f32.mrb[11].mxu0 }
 0x10a   :  { %v930_v48 = vadd.f32 %v929_v47, %v928_v43  ;;  %v993_v49 = vpop.f32.mrb[11].mxu1 }
 0x10b   :  { %v654_v50 = vadd.f32 %v991_v45, %v927_v41  ;;  %v994_v51 = vadd.f32 %v993_v49, %v992_v46 }
 0x10d   :  { %704 = vst [vmem:[%s1379_s2 + $0x20] sm:$0xff] %v654_v50  ;;  %v735_v52 = vadd.f32 %v734_v37, %v654_v50  ;;  %v758_v53 = vmul.f32 %v654_v50, %v654_v50  ;;  %v657_v54 = vadd.f32 %v994_v51, %v930_v48 }
 0x10e   :  { %v931_v55 = vpop.f32.mrb[12].mxu0 }
 0x10f   :  { %v773_v56 = vadd.f32 %v772_v44, %v758_v53  ;;  %705 = vst [vmem:[%s1379_s2 + $0x28] sm:$0xff] %v657_v54  ;;  %v736_v57 = vadd.f32 %v735_v52, %v657_v54  ;;  %v759_v58 = vmul.f32 %v657_v54, %v657_v54  ;;  %v995_v59 = vpop.f32.mrb[12].mxu1  ;;  %v932_v60 = vpop.f32.mrb[13].mxu0 }
 0x110   :  { %v933_v61 = vadd.f32 %v932_v60, %v931_v55  ;;  %v996_v62 = vpop.f32.mrb[13].mxu1  ;;  %v934_v63 = vpop.f32.mrb[14].mxu0 }
 0x111   :  { %v774_v0 = vadd.f32 %v773_v56, %v759_v58  ;;  %v997_v1 = vadd.f32 %v996_v62, %v995_v59  ;;  %v998_v2 = vpop.f32.mrb[14].mxu1  ;;  %v935_v3 = vpop.f32.mrb[15].mxu0 }
 0x112   :  { %v936_v4 = vadd.f32 %v935_v3, %v934_v63  ;;  %v999_v5 = vpop.f32.mrb[15].mxu1 }
 0x113   :  { %v662_v6 = vadd.f32 %v997_v1, %v933_v61  ;;  %v1000_v7 = vadd.f32 %v999_v5, %v998_v2 }
 0x115   :  { %706 = vst [vmem:[%s1379_s2 + $0x30] sm:$0xff] %v662_v6  ;;  %v737_v8 = vadd.f32 %v736_v57, %v662_v6  ;;  %v760_v9 = vmul.f32 %v662_v6, %v662_v6  ;;  %v665_v10 = vadd.f32 %v1000_v7, %v936_v4 }
 0x116   :  { %v937_v11 = vpop.f32.mrb[16].mxu0 }
 0x117   :  { %v775_v12 = vadd.f32 %v774_v0, %v760_v9  ;;  %707 = vst [vmem:[%s1379_s2 + $0x38] sm:$0xff] %v665_v10  ;;  %v738_v13 = vadd.f32 %v737_v8, %v665_v10  ;;  %v761_v14 = vmul.f32 %v665_v10, %v665_v10  ;;  %v1001_v15 = vpop.f32.mrb[16].mxu1  ;;  %v938_v16 = vpop.f32.mrb[17].mxu0 }
 0x118   :  { %v939_v17 = vadd.f32 %v938_v16, %v937_v11  ;;  %v1002_v18 = vpop.f32.mrb[17].mxu1  ;;  %v940_v19 = vpop.f32.mrb[18].mxu0 }
 0x119   :  { %v776_v20 = vadd.f32 %v775_v12, %v761_v14  ;;  %v1003_v21 = vadd.f32 %v1002_v18, %v1001_v15  ;;  %v1004_v22 = vpop.f32.mrb[18].mxu1  ;;  %v941_v23 = vpop.f32.mrb[19].mxu0 }
 0x11a   :  { %v942_v24 = vadd.f32 %v941_v23, %v940_v19  ;;  %v1005_v25 = vpop.f32.mrb[19].mxu1 }
 0x11b   :  { %v670_v26 = vadd.f32 %v1003_v21, %v939_v17  ;;  %v1006_v27 = vadd.f32 %v1005_v25, %v1004_v22 }
 0x11d   :  { %708 = vst [vmem:[%s1379_s2 + $0x40] sm:$0xff] %v670_v26  ;;  %v739_v28 = vadd.f32 %v738_v13, %v670_v26  ;;  %v762_v29 = vmul.f32 %v670_v26, %v670_v26  ;;  %v673_v30 = vadd.f32 %v1006_v27, %v942_v24 }
 0x11e   :  { %v943_v31 = vpop.f32.mrb[20].mxu0 }
 0x11f   :  { %v777_v32 = vadd.f32 %v776_v20, %v762_v29  ;;  %709 = vst [vmem:[%s1379_s2 + $0x48] sm:$0xff] %v673_v30  ;;  %v740_v33 = vadd.f32 %v739_v28, %v673_v30  ;;  %v763_v34 = vmul.f32 %v673_v30, %v673_v30  ;;  %v1007_v35 = vpop.f32.mrb[20].mxu1  ;;  %v944_v36 = vpop.f32.mrb[21].mxu0 }
 0x120   :  { %v945_v37 = vadd.f32 %v944_v36, %v943_v31  ;;  %v1008_v38 = vpop.f32.mrb[21].mxu1  ;;  %v946_v39 = vpop.f32.mrb[22].mxu0 }
 0x121   :  { %v778_v40 = vadd.f32 %v777_v32, %v763_v34  ;;  %v1009_v41 = vadd.f32 %v1008_v38, %v1007_v35  ;;  %v1010_v42 = vpop.f32.mrb[22].mxu1  ;;  %v947_v43 = vpop.f32.mrb[23].mxu0 }
 0x122   :  { %v948_v44 = vadd.f32 %v947_v43, %v946_v39  ;;  %v1011_v45 = vpop.f32.mrb[23].mxu1  ;;  %v792_v43 = vld [vmem:[%s1378_s3] sm:$0x3] }
 0x123   :  { %v678_v46 = vadd.f32 %v1009_v41, %v945_v37  ;;  %v1012_v47 = vadd.f32 %v1011_v45, %v1010_v42 }
 0x125   :  { %710 = vst [vmem:[%s1379_s2 + $0x50] sm:$0xff] %v678_v46  ;;  %v741_v48 = vadd.f32 %v740_v33, %v678_v46  ;;  %v764_v49 = vmul.f32 %v678_v46, %v678_v46  ;;  %v681_v50 = vadd.f32 %v1012_v47, %v948_v44 }
 0x126   :  { %v949_v51 = vpop.f32.mrb[24].mxu0 }
 0x127   :  { %v779_v52 = vadd.f32 %v778_v40, %v764_v49  ;;  %711 = vst [vmem:[%s1379_s2 + $0x58] sm:$0xff] %v681_v50  ;;  %v742_v53 = vadd.f32 %v741_v48, %v681_v50  ;;  %v765_v54 = vmul.f32 %v681_v50, %v681_v50  ;;  %v1013_v55 = vpop.f32.mrb[24].mxu1  ;;  %v950_v56 = vpop.f32.mrb[25].mxu0 }
 0x128   :  { %v951_v57 = vadd.f32 %v950_v56, %v949_v51  ;;  %v1014_v58 = vpop.f32.mrb[25].mxu1  ;;  %v952_v59 = vpop.f32.mrb[26].mxu0 }
 0x129   :  { %v780_v60 = vadd.f32 %v779_v52, %v765_v54  ;;  %v1015_v61 = vadd.f32 %v1014_v58, %v1013_v55  ;;  %v1016_v62 = vpop.f32.mrb[26].mxu1  ;;  %v953_v63 = vpop.f32.mrb[27].mxu0 }
 0x12a   :  { %v954_v0 = vadd.f32 %v953_v63, %v952_v59  ;;  %v1017_v1 = vpop.f32.mrb[27].mxu1 }
 0x12b   :  { %v686_v2 = vadd.f32 %v1015_v61, %v951_v57  ;;  %v1018_v3 = vadd.f32 %v1017_v1, %v1016_v62 }
 0x12d   :  { %712 = vst [vmem:[%s1379_s2 + $0x60] sm:$0xff] %v686_v2  ;;  %v743_v4 = vadd.f32 %v742_v53, %v686_v2  ;;  %v766_v5 = vmul.f32 %v686_v2, %v686_v2  ;;  %v689_v6 = vadd.f32 %v1018_v3, %v954_v0 }
 0x12e   :  { %v955_v7 = vpop.f32.mrb[28].mxu0 }
 0x12f   :  { %v781_v8 = vadd.f32 %v780_v60, %v766_v5  ;;  %713 = vst [vmem:[%s1379_s2 + $0x68] sm:$0xff] %v689_v6  ;;  %v744_v9 = vadd.f32 %v743_v4, %v689_v6  ;;  %v767_v10 = vmul.f32 %v689_v6, %v689_v6  ;;  %v1019_v11 = vpop.f32.mrb[28].mxu1  ;;  %v956_v12 = vpop.f32.mrb[29].mxu0 }
 0x130   :  { %v957_v13 = vadd.f32 %v956_v12, %v955_v7  ;;  %v1020_v14 = vpop.f32.mrb[29].mxu1  ;;  %v958_v15 = vpop.f32.mrb[30].mxu0 }
 0x131   :  { %v782_v16 = vadd.f32 %v781_v8, %v767_v10  ;;  %v1021_v17 = vadd.f32 %v1020_v14, %v1019_v11  ;;  %v1022_v18 = vpop.f32.mrb[30].mxu1  ;;  %v959_v19 = vpop.f32.mrb[31].mxu0 }
 0x132   :  { %v960_v20 = vadd.f32 %v959_v19, %v958_v15  ;;  %v1023_v21 = vpop.f32.mrb[31].mxu1 }
 0x133   :  { %v694_v22 = vadd.f32 %v1021_v17, %v957_v13  ;;  %v1024_v23 = vadd.f32 %v1023_v21, %v1022_v18 }
 0x135   :  { %714 = vst [vmem:[%s1379_s2 + $0x70] sm:$0xff] %v694_v22  ;;  %v745_v24 = vadd.f32 %v744_v9, %v694_v22  ;;  %v768_v25 = vmul.f32 %v694_v22, %v694_v22  ;;  %v697_v26 = vadd.f32 %v1024_v23, %v960_v20 }
 0x137   :  { %v783_v27 = vadd.f32 %v782_v16, %v768_v25  ;;  %715 = vst [vmem:[%s1379_s2 + $0x78] sm:$0xff] %v697_v26  ;;  %v746_v28 = vadd.f32 %v745_v24, %v697_v26  ;;  %v769_v29 = vmul.f32 %v697_v26, %v697_v26 }
 0x139   :  { %v747_v30 = vrot.slane %v746_v28, 4  ;;  %v784_v31 = vadd.f32 %v783_v27, %v769_v29 }
 0x13b   :  { %v748_v32 = vadd.f32 %v747_v30, %v746_v28  ;;  %v785_v33 = vrot.slane %v784_v31, 4 }
 0x13d   :  { %v749_v34 = vrot.slane %v748_v32, 2  ;;  %v786_v35 = vadd.f32 %v785_v33, %v784_v31 }
 0x13f   :  { %v750_v36 = vadd.f32 %v749_v34, %v748_v32  ;;  %v787_v37 = vrot.slane %v786_v35, 2 }
 0x141   :  { %v751_v38 = vrot.slane %v750_v36, 1  ;;  %v788_v39 = vadd.f32 %v787_v37, %v786_v35 }
 0x143   :  { %v789_v40 = vrot.slane %v788_v39, 1  ;;  %v752_v41 = vadd.f32 %v751_v38, %v750_v36 }
 0x145   :  { %v790_v42 = vadd.f32 %v789_v40, %v788_v39 }
 0x147   :  { %v794_v44 = vsel %vm793_vm0, %v752_v41, %v790_v42 }
 0x148   :  { %v795_v45 = vadd.f32 %v794_v44, %v792_v43 }
 0x14a   :  { %796 = vst [vmem:[%s1378_s3] sm:$0x3] %v795_v45 }

// kernel: allcnn_forward.36
= control target key start
LH: loop header
LB: loop body
LE: loop exit
PB: predicated region body
PF: predicated region fallthrough
CT: control target
= control target key end

     0   :  { %v308_v7 = vmov 1966171168   ;;  %v33_v9 = vlaneseq  ;;  %s451_s1 = inlined_call_operand.vmem [shape: f32[1,2,128], index: 1, kind: input, shape index: {}]   ;;  %s452_s2 = inlined_call_operand.vmem [shape: f32[1,128], index: 2, kind: input, shape index: {}]   ;;  %s453_s0 = inlined_call_operand.vmem [shape: f32[128,128], index: 0, kind: input, shape index: {}]   ;;  %s454_s3 = inlined_call_operand.vmem [shape: f32[1,128], index: 3, kind: input, shape index: {}]   ;;  %s455_s4 = inlined_call_operand.vmem [shape: bf16[128,128], index: 4, kind: output, shape index: {}]  }
   0x1   :  { %v17_v0 = vld [vmem:[%s451_s1] sm:$0x3]  ;;  %v31_v8 = vunpack.c.l.s4 %v308_v7  ;;  %v51_v22 = vld [vmem:[%s453_s0 + $0x8] sm:$0xff]  ;;  %v52_v23 = vld [vmem:[%s453_s0 + $0x10] sm:$0xff] }
   0x2   :  { %v19_v1 = vmul.f32 0.0078125, %v17_v0  ;;  %v34_v11 = vshrl.u32 %v33_v9, 7  ;;  %v26_v16 = vld [vmem:[%s452_s2] sm:$0x1]  ;;  %v53_v24 = vld [vmem:[%s453_s0 + $0x18] sm:$0xff]  ;;  %v55_v28 = vld [vmem:[%s453_s0 + $0x28] sm:$0xff] }
   0x3   :  { %v32_v10 = vunpack.c.0.s8 %v31_v8  ;;  %v47_v20 = vld [vmem:[%s454_s3] sm:$0x1]  ;;  %v56_v29 = vld [vmem:[%s453_s0 + $0x30] sm:$0xff]  ;;  %v57_v30 = vld [vmem:[%s453_s0 + $0x38] sm:$0xff] }
   0x4   :  { %v20_v2 = vmul.f32 %v19_v1, %v19_v1  ;;  %v69_v18 = vsub.s32 0, %v34_v11  ;;  %v50_v21 = vld [vmem:[%s453_s0] sm:$0xff]  ;;  %v59_v32 = vld [vmem:[%s453_s0 + $0x48] sm:$0xff]  ;;  %v60_v33 = vld [vmem:[%s453_s0 + $0x50] sm:$0xff] }
   0x5   :  { %v35_v12 = vsub.s32 %v32_v10, %v34_v11  ;;  %v54_v25 = vld [vmem:[%s453_s0 + $0x20] sm:$0xff]  ;;  %v61_v38 = vld [vmem:[%s453_s0 + $0x58] sm:$0xff]  ;;  %v63_v40 = vld [vmem:[%s453_s0 + $0x68] sm:$0xff] }
   0x6   :  { %v22_v3 = vrot.slane %v20_v2, 7  ;;  %v58_v31 = vld [vmem:[%s453_s0 + $0x40] sm:$0xff] }
   0x7   :  { %v62_v39 = vld [vmem:[%s453_s0 + $0x60] sm:$0xff] }
   0x8   :  { %v24_v4 = vsub.f32 %v19_v1, %v22_v3 }
   0xa   :  { %v25_v5 = vmax.f32 %v24_v4, 0.0 }
   0xc   :  { %v27_v6 = vadd.f32 1e-05, %v25_v5 }
   0xe   :  { %306 = vrsqrt.f32 %v27_v6 }
  0x18   :  { %v307_v13 = vpop.eup %306 }
  0x19   :  { %v36_v14 = vrot.slane %v307_v13, %v35_v12 }
  0x1b   :  { %v37_v15 = vcombine.high %v36_v14, %v36_v14 }
  0x1d   :  { %v44_v17 = vrot.slane %v37_v15, %v35_v12 }
  0x1f   :  { %v46_v19 = vmul.f32 %v44_v17, %v26_v16  ;;  %v64_v17 = vld [vmem:[%s453_s0 + $0x70] sm:$0xff] }
  0x21   :  { %v48_v26 = vmul.f32 %v46_v19, %v19_v1  ;;  %v358_v27 = vrot.slane %v46_v19, %v69_v18 }
  0x23   :  { %v49_v34 = vsub.f32 %v47_v20, %v48_v26  ;;  %v72_v35 = vmul.f32 %v358_v27, %v50_v21  ;;  %v73_v36 = vmul.f32 %v358_v27, %v51_v22  ;;  %v74_v37 = vmul.f32 %v358_v27, %v52_v23  ;;  %v65_v22 = vld [vmem:[%s453_s0 + $0x78] sm:$0xff] }
  0x24   :  { %v75_v41 = vmul.f32 %v358_v27, %v53_v24  ;;  %v76_v42 = vmul.f32 %v358_v27, %v54_v25  ;;  %v77_v43 = vmul.f32 %v358_v27, %v55_v28  ;;  %v78_v44 = vmul.f32 %v358_v27, %v56_v29 }
  0x25   :  { %v394_v45 = vrot.slane %v49_v34, %v69_v18  ;;  %v79_v46 = vmul.f32 %v358_v27, %v57_v30  ;;  %v80_v47 = vmul.f32 %v358_v27, %v58_v31  ;;  %v81_v48 = vmul.f32 %v358_v27, %v59_v32 }
  0x26   :  { %v82_v49 = vmul.f32 %v358_v27, %v60_v33  ;;  %v83_v50 = vmul.f32 %v358_v27, %v61_v38  ;;  %v84_v51 = vmul.f32 %v358_v27, %v62_v39  ;;  %v85_v52 = vmul.f32 %v358_v27, %v63_v40 }
  0x27   :  { %v94_v53 = vadd.f32 %v394_v45, %v72_v35  ;;  %v95_v54 = vadd.f32 %v394_v45, %v73_v36  ;;  %v96_v55 = vadd.f32 %v394_v45, %v74_v37  ;;  %v97_v56 = vadd.f32 %v394_v45, %v75_v41 }
  0x28   :  { %v98_v57 = vadd.f32 %v394_v45, %v76_v42  ;;  %v99_v58 = vadd.f32 %v394_v45, %v77_v43  ;;  %v100_v59 = vadd.f32 %v394_v45, %v78_v44  ;;  %v101_v60 = vadd.f32 %v394_v45, %v79_v46 }
  0x29   :  { %v110_v61 = vmul.f32 0.1, %v94_v53  ;;  %v111_v62 = vmul.f32 0.1, %v95_v54  ;;  %v112_v63 = vmul.f32 0.1, %v96_v55  ;;  %v102_v0 = vadd.f32 %v394_v45, %v80_v47 }
  0x2a   :  { %v113_v1 = vmul.f32 0.1, %v97_v56  ;;  %v114_v2 = vmul.f32 0.1, %v98_v57  ;;  %v115_v3 = vmul.f32 0.1, %v99_v58  ;;  %v103_v4 = vadd.f32 %v394_v45, %v81_v48 }
  0x2b   :  { %v126_v5 = vmax.f32 %v94_v53, %v110_v61  ;;  %v127_v6 = vmax.f32 %v95_v54, %v111_v62  ;;  %v128_v7 = vmax.f32 %v96_v55, %v112_v63  ;;  %v116_v8 = vmul.f32 0.1, %v100_v59 }
  0x2c   :  { %v129_v9 = vmax.f32 %v97_v56, %v113_v1  ;;  %v130_v10 = vmax.f32 %v98_v57, %v114_v2  ;;  %v131_v11 = vmax.f32 %v99_v58, %v115_v3  ;;  %v117_v12 = vmul.f32 0.1, %v101_v60 }
  0x2d   :  { %v261_v13 = vpack.c.bf16 %v127_v6, %v126_v5  ;;  %v132_v14 = vmax.f32 %v100_v59, %v116_v8  ;;  %v118_v15 = vmul.f32 0.1, %v102_v0  ;;  %v119_v16 = vmul.f32 0.1, %v103_v4 }
  0x2e   :  { %v266_v18 = vpack.c.bf16 %v129_v9, %v128_v7  ;;  %v271_v19 = vpack.c.bf16 %v131_v11, %v130_v10  ;;  %v133_v20 = vmax.f32 %v101_v60, %v117_v12  ;;  %v104_v21 = vadd.f32 %v394_v45, %v82_v49 }
  0x2f   :  { %262 = vst [vmem:[%s455_s4] sm:$0xff] %v261_v13   ;;  %v134_v23 = vmax.f32 %v102_v0, %v118_v15  ;;  %v135_v24 = vmax.f32 %v103_v4, %v119_v16  ;;  %v105_v25 = vadd.f32 %v394_v45, %v83_v50  ;;  %v106_v26 = vadd.f32 %v394_v45, %v84_v51 }
  0x30   :  { %298 = vst [vmem:[%s455_s4 + $0x8] sm:$0xff] %v266_v18   ;;  %299 = vst [vmem:[%s455_s4 + $0x10] sm:$0xff] %v271_v19   ;;  %v276_v28 = vpack.c.bf16 %v133_v20, %v132_v14  ;;  %v120_v29 = vmul.f32 0.1, %v104_v21  ;;  %v107_v30 = vadd.f32 %v394_v45, %v85_v52  ;;  %v86_v31 = vmul.f32 %v358_v27, %v64_v17 }
  0x31   :  { %v281_v32 = vpack.c.bf16 %v135_v24, %v134_v23  ;;  %v121_v33 = vmul.f32 0.1, %v105_v25  ;;  %v122_v34 = vmul.f32 0.1, %v106_v26  ;;  %v87_v35 = vmul.f32 %v358_v27, %v65_v22 }
  0x32   :  { %300 = vst [vmem:[%s455_s4 + $0x18] sm:$0xff] %v276_v28   ;;  %v136_v36 = vmax.f32 %v104_v21, %v120_v29  ;;  %v123_v37 = vmul.f32 0.1, %v107_v30  ;;  %v108_v38 = vadd.f32 %v394_v45, %v86_v31 }
  0x33   :  { %301 = vst [vmem:[%s455_s4 + $0x20] sm:$0xff] %v281_v32   ;;  %v137_v39 = vmax.f32 %v105_v25, %v121_v33  ;;  %v138_v40 = vmax.f32 %v106_v26, %v122_v34  ;;  %v109_v41 = vadd.f32 %v394_v45, %v87_v35 }
  0x34   :  { %v139_v42 = vmax.f32 %v107_v30, %v123_v37  ;;  %v124_v43 = vmul.f32 0.1, %v108_v38 }
  0x35   :  { %v286_v44 = vpack.c.bf16 %v137_v39, %v136_v36  ;;  %v125_v27 = vmul.f32 0.1, %v109_v41 }
  0x36   :  { %v291_v46 = vpack.c.bf16 %v139_v42, %v138_v40  ;;  %v140_v47 = vmax.f32 %v108_v38, %v124_v43 }
  0x37   :  { %302 = vst [vmem:[%s455_s4 + $0x28] sm:$0xff] %v286_v44   ;;  %v141_v48 = vmax.f32 %v109_v41, %v125_v27 }
  0x38   :  { %303 = vst [vmem:[%s455_s4 + $0x30] sm:$0xff] %v291_v46  }
  0x39   :  { %v296_v49 = vpack.c.bf16 %v141_v48, %v140_v47 }
  0x3b   :  { %304 = vst [vmem:[%s455_s4 + $0x38] sm:$0xff] %v296_v49  }

// kernel: allcnn_forward.39
= control target key start
LH: loop header
LB: loop body
LE: loop exit
PB: predicated region body
PF: predicated region fallthrough
CT: control target
= control target key end

     0   :  { %vm1018_vm0 = vcmask 1040384   ;;  %s1787_s1 = inlined_call_operand.vmem [shape: bf16[640,128], index: 1, kind: input, shape index: {}]   ;;  %s1788_s0 = inlined_call_operand.vmem [shape: bf16[128,640], index: 0, kind: input, shape index: {}]   ;;  %s1789_s3 = inlined_call_operand.vmem [shape: f32[1,2,128], index: 3, kind: output, shape index: {1}]   ;;  %s1790_s2 = inlined_call_operand.vmem [shape: f32[128,128], index: 2, kind: output, shape index: {0}]  }
   0x1   :  { %v1331_v0 = vld [vmem:[%s1787_s1 + $0x40] sm:$0xff]   ;;  %v1335_v4 = vld [vmem:[%s1787_s1 + $0x48] sm:$0xff]   ;;  %v1339_v8 = vld [vmem:[%s1787_s1 + $0x50] sm:$0xff]  }
   0x2   :  { %v1332_v1 = vld [vmem:[%s1787_s1 + $0xc0] sm:$0xff]   ;;  %1138 = vmatprep.subr.bf16.mxu0 %v1331_v0  ;;  %v1336_v5 = vld [vmem:[%s1787_s1 + $0xc8] sm:$0xff]   ;;  %v1340_v9 = vld [vmem:[%s1787_s1 + $0xd0] sm:$0xff]  }
   0x3   :  { %v1333_v2 = vld [vmem:[%s1787_s1] sm:$0xff]   ;;  %1202 = vmatprep.subr.bf16.mxu1 %v1332_v1  ;;  %v1337_v6 = vld [vmem:[%s1787_s1 + $0x8] sm:$0xff]   ;;  %v1341_v10 = vld [vmem:[%s1787_s1 + $0x10] sm:$0xff]  }
   0x4   :  { %v1334_v3 = vld [vmem:[%s1787_s1 + $0x80] sm:$0xff]   ;;  %1139 = vmatpush3.bf16.msra.mxu0 %v1333_v2  ;;  %v1338_v7 = vld [vmem:[%s1787_s1 + $0x88] sm:$0xff]   ;;  %v1342_v11 = vld [vmem:[%s1787_s1 + $0x90] sm:$0xff]  }
   0x5   :  { %1203 = vmatpush3.bf16.msra.mxu1 %v1334_v3  ;;  %1140 = vmatprep.subr.bf16.mxu0 %v1335_v4  ;;  %v1343_v12 = vld [vmem:[%s1787_s1 + $0x58] sm:$0xff]   ;;  %v1347_v16 = vld [vmem:[%s1787_s1 + $0x60] sm:$0xff]   ;;  %v1351_v20 = vld [vmem:[%s1787_s1 + $0x68] sm:$0xff]  }
   0x6   :  { %1204 = vmatprep.subr.bf16.mxu1 %v1336_v5  ;;  %v1344_v13 = vld [vmem:[%s1787_s1 + $0xd8] sm:$0xff]   ;;  %v1348_v17 = vld [vmem:[%s1787_s1 + $0xe0] sm:$0xff]   ;;  %v1352_v21 = vld [vmem:[%s1787_s1 + $0xe8] sm:$0xff]  }
   0x7   :  { %v1345_v14 = vld [vmem:[%s1787_s1 + $0x18] sm:$0xff]   ;;  %v1349_v18 = vld [vmem:[%s1787_s1 + $0x20] sm:$0xff]   ;;  %v1353_v22 = vld [vmem:[%s1787_s1 + $0x28] sm:$0xff]  }
   0x8   :  { %1141 = vmatpush3.bf16.msra.mxu0 %v1337_v6  ;;  %v1346_v15 = vld [vmem:[%s1787_s1 + $0x98] sm:$0xff]   ;;  %v1350_v19 = vld [vmem:[%s1787_s1 + $0xa0] sm:$0xff]   ;;  %v1354_v23 = vld [vmem:[%s1787_s1 + $0xa8] sm:$0xff]  }
   0x9   :  { %1205 = vmatpush3.bf16.msra.mxu1 %v1338_v7  ;;  %1142 = vmatprep.subr.bf16.mxu0 %v1339_v8  ;;  %v1355_v24 = vld [vmem:[%s1787_s1 + $0x70] sm:$0xff]   ;;  %v1359_v28 = vld [vmem:[%s1787_s1 + $0x78] sm:$0xff]   ;;  %v1368_v35 = vld [vmem:[%s1788_s0 + $0xc] ss:$20 sps:$4 sm:$0xff]  }
   0xa   :  { %1206 = vmatprep.subr.bf16.mxu1 %v1340_v9  ;;  %v1356_v25 = vld [vmem:[%s1787_s1 + $0xf0] sm:$0xff]   ;;  %v1360_v29 = vld [vmem:[%s1787_s1 + $0xf8] sm:$0xff]   ;;  %v1369_v36 = vld [vmem:[%s1787_s1 + $0x100] sm:$0xff]   ;;  %763 = vmatprep.mubr.bf16.mxu1 %v1368_v35 }
   0xb   :  { %v1357_v26 = vld [vmem:[%s1787_s1 + $0x30] sm:$0xff]   ;;  %v1361_v30 = vld [vmem:[%s1787_s1 + $0x38] sm:$0xff]   ;;  %v1370_v37 = vld [vmem:[%s1788_s0 + $0x2c] ss:$20 sps:$4 sm:$0xff]  }
   0xc   :  { %1143 = vmatpush3.bf16.msra.mxu0 %v1341_v10  ;;  %v1358_v27 = vld [vmem:[%s1787_s1 + $0xb0] sm:$0xff]   ;;  %v1362_v31 = vld [vmem:[%s1787_s1 + $0xb8] sm:$0xff]   ;;  %v1376_v39 = vld [vmem:[%s1787_s1 + $0x108] sm:$0xff]  }
   0xd   :  { %1207 = vmatpush3.bf16.msra.mxu1 %v1342_v11  ;;  %1144 = vmatprep.subr.bf16.mxu0 %v1343_v12  ;;  %v1363_v32 = vld [vmem:[%s1788_s0] ss:$20 sps:$4 sm:$0xff]   ;;  %v1365_v33 = vld [vmem:[%s1788_s0 + $0x4] ss:$20 sps:$4 sm:$0xff]   ;;  %v1366_v34 = vld [vmem:[%s1788_s0 + $0x8] ss:$20 sps:$4 sm:$0xff]  }
   0xe   :  { %1208 = vmatprep.subr.bf16.mxu1 %v1344_v13  ;;  %666 = vmatprep.mubr.bf16.mxu0 %v1365_v33  ;;  %v1372_v38 = vld [vmem:[%s1788_s0 + $0x34] ss:$20 sps:$4 sm:$0xff]   ;;  %v1375_v41 = vld [vmem:[%s1788_s0 + $0x30] ss:$20 sps:$4 sm:$0xff]   ;;  %v1390_v45 = vld [vmem:[%s1787_s1 + $0x118] sm:$0xff]  }
   0xf   :  { %v1374_v40 = vld [vmem:[%s1788_s0 + $0x28] ss:$20 sps:$4 sm:$0xff]   ;;  %v1383_v44 = vld [vmem:[%s1787_s1 + $0x110] sm:$0xff]   ;;  %v1382_v47 = vld [vmem:[%s1788_s0 + $0x58] ss:$20 sps:$4 sm:$0xff]  }
  0x10   :  { %1145 = vmatpush3.bf16.msra.mxu0 %v1345_v14  ;;  %v1377_v42 = vld [vmem:[%s1788_s0 + $0x54] ss:$20 sps:$4 sm:$0xff]   ;;  %v1379_v43 = vld [vmem:[%s1788_s0 + $0x5c] ss:$20 sps:$4 sm:$0xff]   ;;  %v1386_v49 = vld [vmem:[%s1788_s0 + $0x84] ss:$20 sps:$4 sm:$0xff]  }
  0x11   :  { %1209 = vmatpush3.bf16.msra.mxu1 %v1346_v15  ;;  %1146 = vmatprep.subr.bf16.mxu0 %v1347_v16  ;;  %v1381_v46 = vld [vmem:[%s1788_s0 + $0x50] ss:$20 sps:$4 sm:$0xff]   ;;  %v1404_v51 = vld [vmem:[%s1787_s1 + $0x128] sm:$0xff]   ;;  %v1389_v53 = vld [vmem:[%s1788_s0 + $0x80] ss:$20 sps:$4 sm:$0xff]   ;;  %v1427_v16 = vmov 0.0  }
  0x12   :  { %1210 = vmatprep.subr.bf16.mxu1 %v1348_v17  ;;  %v1384_v48 = vld [vmem:[%s1788_s0 + $0x7c] ss:$20 sps:$4 sm:$0xff]   ;;  %v1397_v50 = vld [vmem:[%s1787_s1 + $0x120] sm:$0xff]   ;;  %v1388_v52 = vld [vmem:[%s1788_s0 + $0x78] ss:$20 sps:$4 sm:$0xff]   ;;  %57 = vst [vmem:[%s1789_s3] sm:$0x3] %v1427_v16 }
  0x13   :  { %v1391_v54 = vld [vmem:[%s1788_s0 + $0xa4] ss:$20 sps:$4 sm:$0xff]   ;;  %v1411_v55 = vld [vmem:[%s1787_s1 + $0x130] sm:$0xff]   ;;  %v1393_v56 = vld [vmem:[%s1788_s0 + $0xac] ss:$20 sps:$4 sm:$0xff]  }
  0x14   :  { %1147 = vmatpush3.bf16.msra.mxu0 %v1349_v18  ;;  %v1418_v57 = vld [vmem:[%s1787_s1 + $0x138] sm:$0xff]   ;;  %v1395_v58 = vld [vmem:[%s1788_s0 + $0xa0] ss:$20 sps:$4 sm:$0xff]   ;;  %v1403_v63 = vld [vmem:[%s1788_s0 + $0xd0] ss:$20 sps:$4 sm:$0xff]  }
  0x15   :  { %1211 = vmatpush3.bf16.msra.mxu1 %v1350_v19  ;;  %1148 = vmatprep.subr.bf16.mxu0 %v1351_v20  ;;  %v1396_v59 = vld [vmem:[%s1788_s0 + $0xa8] ss:$20 sps:$4 sm:$0xff]   ;;  %v1398_v60 = vld [vmem:[%s1788_s0 + $0xcc] ss:$20 sps:$4 sm:$0xff]   ;;  %v1409_v2 = vld [vmem:[%s1788_s0 + $0xf0] ss:$20 sps:$4 sm:$0xff]  }
  0x16   :  { %1212 = vmatprep.subr.bf16.mxu1 %v1352_v21  ;;  %v1400_v61 = vld [vmem:[%s1788_s0 + $0xd4] ss:$20 sps:$4 sm:$0xff]   ;;  %v1407_v1 = vld [vmem:[%s1788_s0 + $0xfc] ss:$20 sps:$4 sm:$0xff]   ;;  %v1410_v3 = vld [vmem:[%s1788_s0 + $0xf8] ss:$20 sps:$4 sm:$0xff]  }
  0x17   :  { %v1402_v62 = vld [vmem:[%s1788_s0 + $0xc8] ss:$20 sps:$4 sm:$0xff]   ;;  %v1414_v5 = vld [vmem:[%s1788_s0 + $0x124] ss:$20 sps:$4 sm:$0xff]   ;;  %v1417_v7 = vld [vmem:[%s1788_s0 + $0x120] ss:$20 sps:$4 sm:$0xff]  }
  0x18   :  { %1149 = vmatpush3.bf16.msra.mxu0 %v1353_v22  ;;  %v1405_v0 = vld [vmem:[%s1788_s0 + $0xf4] ss:$20 sps:$4 sm:$0xff]   ;;  %v1412_v4 = vld [vmem:[%s1788_s0 + $0x11c] ss:$20 sps:$4 sm:$0xff]   ;;  %v1416_v6 = vld [vmem:[%s1788_s0 + $0x118] ss:$20 sps:$4 sm:$0xff]  }
  0x19   :  { %1213 = vmatpush3.bf16.msra.mxu1 %v1354_v23  ;;  %1150 = vmatprep.subr.bf16.mxu0 %v1355_v24  ;;  %v1419_v8 = vld [vmem:[%s1788_s0 + $0x10] ss:$20 sps:$4 sm:$0xff]   ;;  %v1421_v10 = vld [vmem:[%s1788_s0 + $0x38] ss:$20 sps:$4 sm:$0xff]   ;;  %v1423_v12 = vld [vmem:[%s1788_s0 + $0x60] ss:$20 sps:$4 sm:$0xff]  }
  0x1a   :  { %1214 = vmatprep.subr.bf16.mxu1 %v1356_v25  ;;  %v1420_v9 = vld [vmem:[%s1788_s0 + $0xb0] ss:$20 sps:$4 sm:$0xff]   ;;  %v1422_v11 = vld [vmem:[%s1788_s0 + $0xd8] ss:$20 sps:$4 sm:$0xff]   ;;  %v1424_v13 = vld [vmem:[%s1788_s0 + $0x100] ss:$20 sps:$4 sm:$0xff]  }
  0x1b   :  { %v1425_v14 = vld [vmem:[%s1788_s0 + $0x88] ss:$20 sps:$4 sm:$0xff]  }
  0x1c   :  { %1151 = vmatpush3.bf16.msra.mxu0 %v1357_v26  ;;  %v1426_v15 = vld [vmem:[%s1788_s0 + $0x128] ss:$20 sps:$4 sm:$0xff]  }
  0x1d   :  { %1215 = vmatpush3.bf16.msra.mxu1 %v1358_v27  ;;  %1152 = vmatprep.subr.bf16.mxu0 %v1359_v28 }
  0x1e   :  { %1216 = vmatprep.subr.bf16.mxu1 %v1360_v29 }
  0x20   :  { %1153 = vmatpush3.bf16.msra.mxu0 %v1361_v30 }
  0x21   :  { %1217 = vmatpush3.bf16.msra.mxu1 %v1362_v31  ;;  %1282 = vmatprep.subr.bf16.mxu0 %v1369_v36 }
  0x22   :  { %1314 = vmatprep.subr.bf16.mxu1 %v1369_v36 }
  0x23   :  { %667 = vmatmul.mubr.bf16.vlgmr.msra.gmra.mrb[0].mxu0 %v1363_v32 }
  0x24   :  { %764 = vmatmul.mubr.bf16.vlgmr.msra.gmra.mrb[0].mxu1 %v1366_v34  ;;  %1283 = vmatpush3.bf16.msra.mxu0 %v1369_v36 }
  0x25   :  { %674 = vmatprep.mubr.bf16.mxu0 %v1370_v37  ;;  %771 = vmatprep.mubr.bf16.mxu1 %v1372_v38 }
  0x26   :  { %1322 = vmatpush3.bf16.msra.mxu1 %v1369_v36  ;;  %1284 = vmatprep.subr.bf16.mxu0 %v1376_v39 }
  0x27   :  { %1315 = vmatprep.subr.bf16.mxu1 %v1376_v39 }
  0x28   :  { %1285 = vmatpush3.bf16.msra.mxu0 %v1376_v39 }
  0x29   :  { %1286 = vmatprep.subr.bf16.mxu0 %v1383_v44 }
  0x2a   :  { %1323 = vmatpush3.bf16.msra.mxu1 %v1376_v39 }
  0x2b   :  { %675 = vmatmul.mubr.bf16.gmra.mrb[4].mxu0 %v1374_v40  ;;  %1316 = vmatprep.subr.bf16.mxu1 %v1383_v44 }
  0x2c   :  { %772 = vmatmul.mubr.bf16.gmra.mrb[4].mxu1 %v1375_v41  ;;  %682 = vmatprep.mubr.bf16.mxu0 %v1377_v42 }
  0x2d   :  { %779 = vmatprep.mubr.bf16.mxu1 %v1379_v43  ;;  %1287 = vmatpush3.bf16.msra.mxu0 %v1383_v44 }
  0x2e   :  { %1288 = vmatprep.subr.bf16.mxu0 %v1390_v45  ;;  %1324 = vmatpush3.bf16.msra.mxu1 %v1383_v44 }
  0x2f   :  { %1317 = vmatprep.subr.bf16.mxu1 %v1390_v45 }
  0x31   :  { %1289 = vmatpush3.bf16.msra.mxu0 %v1390_v45 }
  0x32   :  { %1290 = vmatprep.subr.bf16.mxu0 %v1397_v50  ;;  %1325 = vmatpush3.bf16.msra.mxu1 %v1390_v45 }
  0x33   :  { %683 = vmatmul.mubr.bf16.gmra.mrb[8].mxu0 %v1381_v46  ;;  %1318 = vmatprep.subr.bf16.mxu1 %v1397_v50 }
  0x34   :  { %780 = vmatmul.mubr.bf16.gmra.mrb[8].mxu1 %v1382_v47  ;;  %690 = vmatprep.mubr.bf16.mxu0 %v1384_v48 }
  0x35   :  { %787 = vmatprep.mubr.bf16.mxu1 %v1386_v49  ;;  %1291 = vmatpush3.bf16.msra.mxu0 %v1397_v50 }
  0x36   :  { %1292 = vmatprep.subr.bf16.mxu0 %v1404_v51  ;;  %1326 = vmatpush3.bf16.msra.mxu1 %v1397_v50 }
  0x37   :  { %1319 = vmatprep.subr.bf16.mxu1 %v1404_v51 }
  0x39   :  { %1293 = vmatpush3.bf16.msra.mxu0 %v1404_v51 }
  0x3a   :  { %1294 = vmatprep.subr.bf16.mxu0 %v1411_v55  ;;  %1327 = vmatpush3.bf16.msra.mxu1 %v1404_v51 }
  0x3b   :  { %691 = vmatmul.mubr.bf16.gmra.mrb[12].mxu0 %v1388_v52  ;;  %1320 = vmatprep.subr.bf16.mxu1 %v1411_v55 }
  0x3c   :  { %788 = vmatmul.mubr.bf16.gmra.mrb[12].mxu1 %v1389_v53  ;;  %698 = vmatprep.mubr.bf16.mxu0 %v1391_v54 }
  0x3d   :  { %795 = vmatprep.mubr.bf16.mxu1 %v1393_v56  ;;  %1295 = vmatpush3.bf16.msra.mxu0 %v1411_v55 }
  0x3e   :  { %1296 = vmatprep.subr.bf16.mxu0 %v1418_v57  ;;  %1328 = vmatpush3.bf16.msra.mxu1 %v1411_v55 }
  0x3f   :  { %1321 = vmatprep.subr.bf16.mxu1 %v1418_v57 }
  0x41   :  { %1297 = vmatpush3.bf16.msra.mxu0 %v1418_v57 }
  0x42   :  { %1329 = vmatpush3.bf16.msra.mxu1 %v1418_v57 }
  0x43   :  { %699 = vmatmul.mubr.bf16.gmra.mrb[16].mxu0 %v1395_v58 }
  0x44   :  { %796 = vmatmul.mubr.bf16.gmra.mrb[16].mxu1 %v1396_v59  ;;  %706 = vmatprep.mubr.bf16.mxu0 %v1398_v60 }
  0x45   :  { %803 = vmatprep.mubr.bf16.mxu1 %v1400_v61 }
  0x4b   :  { %707 = vmatmul.mubr.bf16.gmra.mrb[20].mxu0 %v1402_v62 }
  0x4c   :  { %804 = vmatmul.mubr.bf16.gmra.mrb[20].mxu1 %v1403_v63  ;;  %714 = vmatprep.mubr.bf16.mxu0 %v1405_v0 }
  0x4d   :  { %811 = vmatprep.mubr.bf16.mxu1 %v1407_v1 }
  0x53   :  { %715 = vmatmul.mubr.bf16.gmra.mrb[24].mxu0 %v1409_v2 }
  0x54   :  { %812 = vmatmul.mubr.bf16.gmra.mrb[24].mxu1 %v1410_v3  ;;  %722 = vmatprep.mubr.bf16.mxu0 %v1412_v4 }
  0x55   :  { %819 = vmatprep.mubr.bf16.mxu1 %v1414_v5 }
  0x5b   :  { %723 = vmatmul.mubr.bf16.gmra.mrb[28].mxu0 %v1416_v6 }
  0x5c   :  { %820 = vmatmul.mubr.bf16.gmra.mrb[28].mxu1 %v1417_v7  ;;  %1298 = vmatprep.mubr.bf16.mxu0 %v1419_v8 }
  0x5d   :  { %1306 = vmatprep.mubr.bf16.mxu1 %v1420_v9 }
  0x63   :  { %1299 = vmatmul.mubr.bf16.vlgmr.msra.gmra.mrb[32].mxu0 %v1421_v10 }
  0x64   :  { %1307 = vmatmul.mubr.bf16.vlgmr.msra.gmra.mrb[32].mxu1 %v1422_v11  ;;  %1302 = vmatprep.mubr.bf16.mxu0 %v1423_v12 }
  0x65   :  { %1310 = vmatprep.mubr.bf16.mxu1 %v1424_v13 }
  0x6b   :  { %1303 = vmatmul.mubr.bf16.gmra.mrb[36].mxu0 %v1425_v14 }
  0x6c   :  { %1311 = vmatmul.mubr.bf16.gmra.mrb[36].mxu1 %v1426_v15 }
  0xf6   :  { %v1154_v17 = vpop.f32.mrb[0].mxu0 }
  0xf7   :  { %v1218_v18 = vpop.f32.mrb[0].mxu1  ;;  %v1155_v19 = vpop.f32.mrb[1].mxu0 }
  0xf8   :  { %v1156_v20 = vadd.f32 %v1155_v19, %v1154_v17  ;;  %v1219_v21 = vpop.f32.mrb[1].mxu1  ;;  %v1157_v22 = vpop.f32.mrb[2].mxu0 }
  0xf9   :  { %v1220_v23 = vadd.f32 %v1219_v21, %v1218_v18  ;;  %v1221_v24 = vpop.f32.mrb[2].mxu1  ;;  %v1158_v25 = vpop.f32.mrb[3].mxu0 }
  0xfa   :  { %v1159_v26 = vadd.f32 %v1158_v25, %v1157_v22  ;;  %v1222_v27 = vpop.f32.mrb[3].mxu1 }
  0xfb   :  { %v1223_v28 = vadd.f32 %v1222_v27, %v1221_v24  ;;  %v1691_v29 = vadd.f32 %v1220_v23, %v1156_v20 }
  0xfd   :  { %v1693_v30 = vadd.f32 %v1223_v28, %v1159_v26 }
  0xfe   :  { %v1160_v31 = vpop.f32.mrb[4].mxu0 }
  0xff   :  { %v1224_v32 = vpop.f32.mrb[4].mxu1  ;;  %v1161_v33 = vpop.f32.mrb[5].mxu0 }
 0x100   :  { %v1162_v34 = vadd.f32 %v1161_v33, %v1160_v31  ;;  %v1225_v35 = vpop.f32.mrb[5].mxu1  ;;  %v1163_v36 = vpop.f32.mrb[6].mxu0 }
 0x101   :  { %v1226_v37 = vadd.f32 %v1225_v35, %v1224_v32  ;;  %v1227_v38 = vpop.f32.mrb[6].mxu1  ;;  %v1164_v39 = vpop.f32.mrb[7].mxu0 }
 0x102   :  { %v1165_v40 = vadd.f32 %v1164_v39, %v1163_v36  ;;  %v1228_v41 = vpop.f32.mrb[7].mxu1 }
 0x103   :  { %v1229_v42 = vadd.f32 %v1228_v41, %v1227_v38  ;;  %v1695_v43 = vadd.f32 %v1226_v37, %v1162_v34 }
 0x105   :  { %v1697_v44 = vadd.f32 %v1229_v42, %v1165_v40 }
 0x106   :  { %v1166_v45 = vpop.f32.mrb[8].mxu0 }
 0x107   :  { %v1230_v46 = vpop.f32.mrb[8].mxu1  ;;  %v1167_v47 = vpop.f32.mrb[9].mxu0 }
 0x108   :  { %v1168_v48 = vadd.f32 %v1167_v47, %v1166_v45  ;;  %v1231_v49 = vpop.f32.mrb[9].mxu1  ;;  %v1169_v50 = vpop.f32.mrb[10].mxu0 }
 0x109   :  { %v1232_v51 = vadd.f32 %v1231_v49, %v1230_v46  ;;  %v1233_v52 = vpop.f32.mrb[10].mxu1  ;;  %v1170_v53 = vpop.f32.mrb[11].mxu0 }
 0x10a   :  { %v1171_v54 = vadd.f32 %v1170_v53, %v1169_v50  ;;  %v1234_v55 = vpop.f32.mrb[11].mxu1 }
 0x10b   :  { %v1235_v56 = vadd.f32 %v1234_v55, %v1233_v52  ;;  %v1699_v57 = vadd.f32 %v1232_v51, %v1168_v48 }
 0x10d   :  { %v1701_v58 = vadd.f32 %v1235_v56, %v1171_v54 }
 0x10e   :  { %v1172_v59 = vpop.f32.mrb[12].mxu0 }
 0x10f   :  { %v1236_v60 = vpop.f32.mrb[12].mxu1  ;;  %v1173_v61 = vpop.f32.mrb[13].mxu0 }
 0x110   :  { %v1174_v62 = vadd.f32 %v1173_v61, %v1172_v59  ;;  %v1237_v63 = vpop.f32.mrb[13].mxu1  ;;  %v1175_v0 = vpop.f32.mrb[14].mxu0 }
 0x111   :  { %v1238_v1 = vadd.f32 %v1237_v63, %v1236_v60  ;;  %v1239_v2 = vpop.f32.mrb[14].mxu1  ;;  %v1176_v3 = vpop.f32.mrb[15].mxu0 }
 0x112   :  { %v1177_v4 = vadd.f32 %v1176_v3, %v1175_v0  ;;  %v1240_v5 = vpop.f32.mrb[15].mxu1 }
 0x113   :  { %v1241_v6 = vadd.f32 %v1240_v5, %v1239_v2  ;;  %v1703_v7 = vadd.f32 %v1238_v1, %v1174_v62 }
 0x115   :  { %v1705_v8 = vadd.f32 %v1241_v6, %v1177_v4 }
 0x116   :  { %v1178_v9 = vpop.f32.mrb[16].mxu0 }
 0x117   :  { %v1242_v10 = vpop.f32.mrb[16].mxu1  ;;  %v1179_v11 = vpop.f32.mrb[17].mxu0 }
 0x118   :  { %v1180_v12 = vadd.f32 %v1179_v11, %v1178_v9  ;;  %v1243_v13 = vpop.f32.mrb[17].mxu1  ;;  %v1181_v14 = vpop.f32.mrb[18].mxu0 }
 0x119   :  { %v1244_v15 = vadd.f32 %v1243_v13, %v1242_v10  ;;  %v1245_v16 = vpop.f32.mrb[18].mxu1  ;;  %v1182_v17 = vpop.f32.mrb[19].mxu0 }
 0x11a   :  { %v1183_v18 = vadd.f32 %v1182_v17, %v1181_v14  ;;  %v1246_v19 = vpop.f32.mrb[19].mxu1 }
 0x11b   :  { %v1247_v20 = vadd.f32 %v1246_v19, %v1245_v16  ;;  %v798_v21 = vadd.f32 %v1244_v15, %v1180_v12 }
 0x11d   :  { %v1707_v22 = vadd.f32 %v1247_v20, %v1183_v18 }
 0x11e   :  { %v1184_v23 = vpop.f32.mrb[20].mxu0 }
 0x11f   :  { %v1248_v24 = vpop.f32.mrb[20].mxu1  ;;  %v1185_v25 = vpop.f32.mrb[21].mxu0 }
 0x120   :  { %v1186_v26 = vadd.f32 %v1185_v25, %v1184_v23  ;;  %v1249_v27 = vpop.f32.mrb[21].mxu1  ;;  %v1187_v28 = vpop.f32.mrb[22].mxu0 }
 0x121   :  { %v1250_v31 = vadd.f32 %v1249_v27, %v1248_v24  ;;  %v1251_v32 = vpop.f32.mrb[22].mxu1  ;;  %v1188_v33 = vpop.f32.mrb[23].mxu0 }
 0x122   :  { %v1189_v34 = vadd.f32 %v1188_v33, %v1187_v28  ;;  %v1252_v35 = vpop.f32.mrb[23].mxu1 }
 0x123   :  { %v1253_v36 = vadd.f32 %v1252_v35, %v1251_v32  ;;  %v806_v37 = vadd.f32 %v1250_v31, %v1186_v26 }
 0x125   :  { %v809_v38 = vadd.f32 %v1253_v36, %v1189_v34 }
 0x126   :  { %v1190_v39 = vpop.f32.mrb[24].mxu0 }
 0x127   :  { %v1254_v40 = vpop.f32.mrb[24].mxu1  ;;  %v1191_v41 = vpop.f32.mrb[25].mxu0 }
 0x128   :  { %v1192_v42 = vadd.f32 %v1191_v41, %v1190_v39  ;;  %v1255_v45 = vpop.f32.mrb[25].mxu1  ;;  %v1193_v46 = vpop.f32.mrb[26].mxu0 }
 0x129   :  { %v1256_v47 = vadd.f32 %v1255_v45, %v1254_v40  ;;  %v1257_v48 = vpop.f32.mrb[26].mxu1  ;;  %v1194_v49 = vpop.f32.mrb[27].mxu0 }
 0x12a   :  { %v1195_v50 = vadd.f32 %v1194_v49, %v1193_v46  ;;  %v1258_v51 = vpop.f32.mrb[27].mxu1 }
 0x12b   :  { %v1259_v52 = vadd.f32 %v1258_v51, %v1257_v48  ;;  %v814_v53 = vadd.f32 %v1256_v47, %v1192_v42 }
 0x12d   :  { %v1709_v54 = vadd.f32 %v1259_v52, %v1195_v50 }
 0x12e   :  { %v1196_v55 = vpop.f32.mrb[28].mxu0 }
 0x12f   :  { %v1260_v56 = vpop.f32.mrb[28].mxu1  ;;  %v1197_v59 = vpop.f32.mrb[29].mxu0 }
 0x130   :  { %v1198_v60 = vadd.f32 %v1197_v59, %v1196_v55  ;;  %v1261_v61 = vpop.f32.mrb[29].mxu1  ;;  %v1199_v62 = vpop.f32.mrb[30].mxu0 }
 0x131   :  { %v1262_v63 = vadd.f32 %v1261_v61, %v1260_v56  ;;  %v1263_v0 = vpop.f32.mrb[30].mxu1  ;;  %v1200_v1 = vpop.f32.mrb[31].mxu0 }
 0x132   :  { %v1201_v2 = vadd.f32 %v1200_v1, %v1199_v62  ;;  %v1264_v3 = vpop.f32.mrb[31].mxu1 }
 0x133   :  { %v1265_v4 = vadd.f32 %v1264_v3, %v1263_v0  ;;  %v822_v5 = vadd.f32 %v1262_v63, %v1198_v60 }
 0x135   :  { %v825_v6 = vadd.f32 %v1265_v4, %v1201_v2 }
 0x136   :  { %v1300_v9 = vpop.f32.mrb[32].mxu0 }
 0x137   :  { %v871_v10 = vadd.f32 %v1300_v9, %v1695_v43  ;;  %v1308_v11 = vpop.f32.mrb[32].mxu1  ;;  %v862_v12 = vpop.f32.mrb[33].mxu0 }
 0x138   :  { %v1712_v13 = vadd.f32 %v1308_v11, %v806_v37  ;;  %v863_v14 = vadd.f32 %v862_v12, %v1691_v29  ;;  %v894_v15 = vpop.f32.mrb[33].mxu1  ;;  %v1301_v16 = vpop.f32.mrb[34].mxu0 }
 0x139   :  { %927 = vst [vmem:[%s1790_s2 + $0x10] sm:$0xff] %v871_v10  ;;  %v895_v17 = vadd.f32 %v894_v15, %v798_v21  ;;  %v874_v18 = vadd.f32 %v1301_v16, %v1697_v44  ;;  %v1309_v19 = vpop.f32.mrb[34].mxu1  ;;  %v865_v20 = vpop.f32.mrb[35].mxu0  ;;  %v981_v25 = vmul.f32 %v871_v10, %v871_v10 }
 0x13a   :  { %935 = vst [vmem:[%s1790_s2 + $0x50] sm:$0xff] %v1712_v13  ;;  %925 = vst [vmem:[%s1790_s2] sm:$0xff] %v863_v14  ;;  %v1726_v29 = vadd.f32 %v1309_v19, %v809_v38  ;;  %v866_v43 = vadd.f32 %v865_v20, %v1693_v30  ;;  %v897_v23 = vpop.f32.mrb[35].mxu1  ;;  %v979_v21 = vmul.f32 %v863_v14, %v863_v14 }
 0x13b   :  { %933 = vst [vmem:[%s1790_s2 + $0x40] sm:$0xff] %v895_v17  ;;  %928 = vst [vmem:[%s1790_s2 + $0x18] sm:$0xff] %v874_v18  ;;  %v898_v44 = vadd.f32 %v897_v23, %v1707_v22  ;;  %v982_v28 = vmul.f32 %v874_v18, %v874_v18  ;;  %v987_v60 = vmul.f32 %v895_v17, %v895_v17 }
 0x13c   :  { %936 = vst [vmem:[%s1790_s2 + $0x58] sm:$0xff] %v1726_v29  ;;  %926 = vst [vmem:[%s1790_s2 + $0x8] sm:$0xff] %v866_v43  ;;  %v957_v30 = vadd.f32 %v866_v43, %v863_v14  ;;  %v980_v24 = vmul.f32 %v866_v43, %v866_v43  ;;  %v989_v2 = vmul.f32 %v1712_v13, %v1712_v13 }
 0x13d   :  { %934 = vst [vmem:[%s1790_s2 + $0x48] sm:$0xff] %v898_v44  ;;  %v988_v63 = vmul.f32 %v898_v44, %v898_v44 }
 0x13e   :  { %v958_v26 = vadd.f32 %v957_v30, %v871_v10  ;;  %v995_v27 = vadd.f32 %v980_v24, %v979_v21  ;;  %v1304_v22 = vpop.f32.mrb[36].mxu0 }
 0x13f   :  { %v887_v31 = vadd.f32 %v1304_v22, %v1703_v7  ;;  %v1312_v32 = vpop.f32.mrb[36].mxu1  ;;  %v878_v33 = vpop.f32.mrb[37].mxu0 }
 0x140   :  { %v996_v34 = vadd.f32 %v995_v27, %v981_v25  ;;  %v919_v35 = vadd.f32 %v1312_v32, %v822_v5  ;;  %v879_v36 = vadd.f32 %v878_v33, %v1699_v57  ;;  %v959_v37 = vadd.f32 %v958_v26, %v874_v18  ;;  %v910_v38 = vpop.f32.mrb[37].mxu1  ;;  %v1305_v39 = vpop.f32.mrb[38].mxu0  ;;  %v1017_v33 = vld [vmem:[%s1789_s3] sm:$0x3] }
 0x141   :  { %931 = vst [vmem:[%s1790_s2 + $0x30] sm:$0xff] %v887_v31  ;;  %v911_v40 = vadd.f32 %v910_v38, %v814_v53  ;;  %v890_v41 = vadd.f32 %v1305_v39, %v1705_v8  ;;  %v1313_v42 = vpop.f32.mrb[38].mxu1  ;;  %v881_v45 = vpop.f32.mrb[39].mxu0  ;;  %v985_v53 = vmul.f32 %v887_v31, %v887_v31  ;;  %v990_v5 = vmul.f32 %v1726_v29, %v1726_v29 }
 0x142   :  { %939 = vst [vmem:[%s1790_s2 + $0x70] sm:$0xff] %v919_v35  ;;  %929 = vst [vmem:[%s1790_s2 + $0x20] sm:$0xff] %v879_v36  ;;  %v960_v57 = vadd.f32 %v959_v37, %v879_v36  ;;  %v983_v7 = vmul.f32 %v879_v36, %v879_v36  ;;  %v997_v46 = vadd.f32 %v996_v34, %v982_v28  ;;  %v913_v47 = vpop.f32.mrb[39].mxu1 }
 0x143   :  { %937 = vst [vmem:[%s1790_s2 + $0x60] sm:$0xff] %v911_v40  ;;  %932 = vst [vmem:[%s1790_s2 + $0x38] sm:$0xff] %v890_v41  ;;  %v922_v8 = vadd.f32 %v1313_v42, %v825_v6  ;;  %v882_v48 = vadd.f32 %v881_v45, %v1701_v58  ;;  %v914_v50 = vadd.f32 %v913_v47, %v1709_v54 }
 0x144   :  { %v998_v49 = vadd.f32 %v997_v46, %v983_v7  ;;  %v986_v56 = vmul.f32 %v890_v41, %v890_v41  ;;  %v991_v10 = vmul.f32 %v911_v40, %v911_v40 }
 0x145   :  { %940 = vst [vmem:[%s1790_s2 + $0x78] sm:$0xff] %v922_v8  ;;  %930 = vst [vmem:[%s1790_s2 + $0x28] sm:$0xff] %v882_v48  ;;  %v961_v51 = vadd.f32 %v960_v57, %v882_v48  ;;  %v984_v52 = vmul.f32 %v882_v48, %v882_v48  ;;  %v992_v15 = vmul.f32 %v914_v50, %v914_v50 }
 0x146   :  { %938 = vst [vmem:[%s1790_s2 + $0x68] sm:$0xff] %v914_v50  ;;  %v994_v20 = vmul.f32 %v922_v8, %v922_v8 }
 0x147   :  { %v962_v55 = vadd.f32 %v961_v51, %v887_v31  ;;  %v999_v58 = vadd.f32 %v998_v49, %v984_v52 }
 0x149   :  { %v963_v59 = vadd.f32 %v962_v55, %v890_v41  ;;  %v1000_v54 = vadd.f32 %v999_v58, %v985_v53 }
 0x14b   :  { %v964_v61 = vadd.f32 %v963_v59, %v895_v17  ;;  %v1001_v62 = vadd.f32 %v1000_v54, %v986_v56  ;;  %v993_v17 = vmul.f32 %v919_v35, %v919_v35 }
 0x14d   :  { %v1002_v0 = vadd.f32 %v1001_v62, %v987_v60  ;;  %v965_v1 = vadd.f32 %v964_v61, %v898_v44 }
 0x14f   :  { %v966_v3 = vadd.f32 %v965_v1, %v1712_v13  ;;  %v1003_v4 = vadd.f32 %v1002_v0, %v988_v63 }
 0x151   :  { %v967_v6 = vadd.f32 %v966_v3, %v1726_v29  ;;  %v1004_v9 = vadd.f32 %v1003_v4, %v989_v2 }
 0x153   :  { %v968_v11 = vadd.f32 %v967_v6, %v911_v40  ;;  %v1005_v12 = vadd.f32 %v1004_v9, %v990_v5 }
 0x155   :  { %v969_v14 = vadd.f32 %v968_v11, %v914_v50  ;;  %v1006_v16 = vadd.f32 %v1005_v12, %v991_v10 }
 0x157   :  { %v970_v18 = vadd.f32 %v969_v14, %v919_v35  ;;  %v1007_v19 = vadd.f32 %v1006_v16, %v992_v15 }
 0x159   :  { %v971_v43 = vadd.f32 %v970_v18, %v922_v8  ;;  %v1008_v23 = vadd.f32 %v1007_v19, %v993_v17 }
 0x15b   :  { %v972_v13 = vrot.slane %v971_v43, 4  ;;  %v1009_v44 = vadd.f32 %v1008_v23, %v994_v20 }
 0x15d   :  { %v973_v21 = vadd.f32 %v972_v13, %v971_v43  ;;  %v1010_v30 = vrot.slane %v1009_v44, 4 }
 0x15f   :  { %v974_v24 = vrot.slane %v973_v21, 2  ;;  %v1011_v25 = vadd.f32 %v1010_v30, %v1009_v44 }
 0x161   :  { %v975_v29 = vadd.f32 %v974_v24, %v973_v21  ;;  %v1012_v26 = vrot.slane %v1011_v25, 2 }
 0x163   :  { %v976_v27 = vrot.slane %v975_v29, 1  ;;  %v1013_v22 = vadd.f32 %v1012_v26, %v1011_v25 }
 0x165   :  { %v1014_v28 = vrot.slane %v1013_v22, 1  ;;  %v977_v31 = vadd.f32 %v976_v27, %v975_v29 }
 0x167   :  { %v1015_v32 = vadd.f32 %v1014_v28, %v1013_v22 }
 0x169   :  { %v1019_v34 = vsel %vm1018_vm0, %v977_v31, %v1015_v32 }
 0x16a   :  { %v1020_v35 = vadd.f32 %v1019_v34, %v1017_v33 }
 0x16c   :  { %1021 = vst [vmem:[%s1789_s3] sm:$0x3] %v1020_v35 }

// kernel: allcnn_forward.41
= control target key start
LH: loop header
LB: loop body
LE: loop exit
PB: predicated region body
PF: predicated region fallthrough
CT: control target
= control target key end

     0   :  { %v853_v50 = vmov 0.0   ;;  %vm622_vm0 = vcmask 1040384   ;;  %s1045_s1 = inlined_call_operand.vmem [shape: bf16[640,128], index: 1, kind: input, shape index: {}]   ;;  %s1046_s0 = inlined_call_operand.vmem [shape: bf16[32,640], index: 0, kind: input, shape index: {}]   ;;  %s1047_s3 = inlined_call_operand.vmem [shape: f32[1,2,128], index: 3, kind: output, shape index: {1}]   ;;  %s1048_s2 = inlined_call_operand.vmem [shape: f32[32,128], index: 2, kind: output, shape index: {0}]  }
   0x1   :  { %v799_v0 = vld [vmem:[%s1045_s1 + $0x40] sm:$0xff]   ;;  %v803_v4 = vld [vmem:[%s1045_s1 + $0x48] sm:$0xff]   ;;  %v807_v8 = vld [vmem:[%s1045_s1 + $0x50] sm:$0xff]   ;;  %57 = vst [vmem:[%s1047_s3] sm:$0x3] %v853_v50 }
   0x2   :  { %v800_v1 = vld [vmem:[%s1045_s1 + $0xc0] sm:$0xff]   ;;  %712 = vmatprep.subr.bf16.mxu0 %v799_v0  ;;  %v804_v5 = vld [vmem:[%s1045_s1 + $0xc8] sm:$0xff]   ;;  %v808_v9 = vld [vmem:[%s1045_s1 + $0xd0] sm:$0xff]  }
   0x3   :  { %v801_v2 = vld [vmem:[%s1045_s1] sm:$0xff]   ;;  %740 = vmatprep.subr.bf16.mxu1 %v800_v1  ;;  %v805_v6 = vld [vmem:[%s1045_s1 + $0x8] sm:$0xff]   ;;  %v809_v10 = vld [vmem:[%s1045_s1 + $0x10] sm:$0xff]  }
   0x4   :  { %v802_v3 = vld [vmem:[%s1045_s1 + $0x80] sm:$0xff]   ;;  %713 = vmatpush3.bf16.msra.mxu0 %v801_v2  ;;  %v806_v7 = vld [vmem:[%s1045_s1 + $0x88] sm:$0xff]   ;;  %v810_v11 = vld [vmem:[%s1045_s1 + $0x90] sm:$0xff]  }
   0x5   :  { %741 = vmatpush3.bf16.msra.mxu1 %v802_v3  ;;  %714 = vmatprep.subr.bf16.mxu0 %v803_v4  ;;  %v811_v12 = vld [vmem:[%s1045_s1 + $0x58] sm:$0xff]   ;;  %v815_v16 = vld [vmem:[%s1045_s1 + $0x60] sm:$0xff]   ;;  %v819_v20 = vld [vmem:[%s1045_s1 + $0x68] sm:$0xff]  }
   0x6   :  { %742 = vmatprep.subr.bf16.mxu1 %v804_v5  ;;  %v812_v13 = vld [vmem:[%s1045_s1 + $0xd8] sm:$0xff]   ;;  %v816_v17 = vld [vmem:[%s1045_s1 + $0xe0] sm:$0xff]   ;;  %v820_v21 = vld [vmem:[%s1045_s1 + $0xe8] sm:$0xff]  }
   0x7   :  { %v813_v14 = vld [vmem:[%s1045_s1 + $0x18] sm:$0xff]   ;;  %v817_v18 = vld [vmem:[%s1045_s1 + $0x20] sm:$0xff]   ;;  %v821_v22 = vld [vmem:[%s1045_s1 + $0x28] sm:$0xff]  }
   0x8   :  { %715 = vmatpush3.bf16.msra.mxu0 %v805_v6  ;;  %v814_v15 = vld [vmem:[%s1045_s1 + $0x98] sm:$0xff]   ;;  %v818_v19 = vld [vmem:[%s1045_s1 + $0xa0] sm:$0xff]   ;;  %v822_v23 = vld [vmem:[%s1045_s1 + $0xa8] sm:$0xff]  }
   0x9   :  { %743 = vmatpush3.bf16.msra.mxu1 %v806_v7  ;;  %716 = vmatprep.subr.bf16.mxu0 %v807_v8  ;;  %v823_v24 = vld [vmem:[%s1045_s1 + $0x70] sm:$0xff]   ;;  %v827_v28 = vld [vmem:[%s1045_s1 + $0x78] sm:$0xff]   ;;  %v836_v35 = vld [vmem:[%s1046_s0 + $0xc] ss:$20 sps:$4 sm:$0xff]  }
   0xa   :  { %744 = vmatprep.subr.bf16.mxu1 %v808_v9  ;;  %v824_v25 = vld [vmem:[%s1045_s1 + $0xf0] sm:$0xff]   ;;  %v828_v29 = vld [vmem:[%s1045_s1 + $0xf8] sm:$0xff]   ;;  %v837_v36 = vld [vmem:[%s1045_s1 + $0x100] sm:$0xff]   ;;  %523 = vmatprep.mubr.bf16.mxu1 %v836_v35 }
   0xb   :  { %v825_v26 = vld [vmem:[%s1045_s1 + $0x30] sm:$0xff]   ;;  %v829_v30 = vld [vmem:[%s1045_s1 + $0x38] sm:$0xff]   ;;  %v838_v37 = vld [vmem:[%s1045_s1 + $0x108] sm:$0xff]  }
   0xc   :  { %717 = vmatpush3.bf16.msra.mxu0 %v809_v10  ;;  %v826_v27 = vld [vmem:[%s1045_s1 + $0xb0] sm:$0xff]   ;;  %v830_v31 = vld [vmem:[%s1045_s1 + $0xb8] sm:$0xff]   ;;  %v842_v39 = vld [vmem:[%s1046_s0 + $0x2c] ss:$20 sps:$4 sm:$0xff]  }
   0xd   :  { %745 = vmatpush3.bf16.msra.mxu1 %v810_v11  ;;  %718 = vmatprep.subr.bf16.mxu0 %v811_v12  ;;  %v831_v32 = vld [vmem:[%s1046_s0] ss:$20 sps:$4 sm:$0xff]   ;;  %v833_v33 = vld [vmem:[%s1046_s0 + $0x4] ss:$20 sps:$4 sm:$0xff]   ;;  %v834_v34 = vld [vmem:[%s1046_s0 + $0x8] ss:$20 sps:$4 sm:$0xff]  }
   0xe   :  { %746 = vmatprep.subr.bf16.mxu1 %v812_v13  ;;  %474 = vmatprep.mubr.bf16.mxu0 %v833_v33  ;;  %v839_v38 = vld [vmem:[%s1045_s1 + $0x110] sm:$0xff]   ;;  %v840_v41 = vld [vmem:[%s1045_s1 + $0x118] sm:$0xff]   ;;  %v841_v45 = vld [vmem:[%s1045_s1 + $0x120] sm:$0xff]  }
   0xf   :  { %v844_v40 = vld [vmem:[%s1046_s0 + $0x34] ss:$20 sps:$4 sm:$0xff]   ;;  %v848_v43 = vld [vmem:[%s1046_s0 + $0x30] ss:$20 sps:$4 sm:$0xff]   ;;  %v850_v48 = vld [vmem:[%s1045_s1 + $0x138] sm:$0xff]  }
  0x10   :  { %719 = vmatpush3.bf16.msra.mxu0 %v813_v14  ;;  %v847_v42 = vld [vmem:[%s1046_s0 + $0x28] ss:$20 sps:$4 sm:$0xff]   ;;  %v851_v44 = vld [vmem:[%s1046_s0 + $0x10] ss:$20 sps:$4 sm:$0xff]   ;;  %v852_v49 = vld [vmem:[%s1046_s0 + $0x38] ss:$20 sps:$4 sm:$0xff]  }
  0x11   :  { %747 = vmatpush3.bf16.msra.mxu1 %v814_v15  ;;  %720 = vmatprep.subr.bf16.mxu0 %v815_v16  ;;  %v846_v46 = vld [vmem:[%s1045_s1 + $0x128] sm:$0xff]   ;;  %v849_v47 = vld [vmem:[%s1045_s1 + $0x130] sm:$0xff]  }
  0x12   :  { %748 = vmatprep.subr.bf16.mxu1 %v816_v17 }
  0x14   :  { %721 = vmatpush3.bf16.msra.mxu0 %v817_v18 }
  0x15   :  { %749 = vmatpush3.bf16.msra.mxu1 %v818_v19  ;;  %722 = vmatprep.subr.bf16.mxu0 %v819_v20 }
  0x16   :  { %750 = vmatprep.subr.bf16.mxu1 %v820_v21 }
  0x18   :  { %723 = vmatpush3.bf16.msra.mxu0 %v821_v22 }
  0x19   :  { %751 = vmatpush3.bf16.msra.mxu1 %v822_v23  ;;  %724 = vmatprep.subr.bf16.mxu0 %v823_v24 }
  0x1a   :  { %752 = vmatprep.subr.bf16.mxu1 %v824_v25 }
  0x1c   :  { %725 = vmatpush3.bf16.msra.mxu0 %v825_v26 }
  0x1d   :  { %753 = vmatpush3.bf16.msra.mxu1 %v826_v27  ;;  %726 = vmatprep.subr.bf16.mxu0 %v827_v28 }
  0x1e   :  { %754 = vmatprep.subr.bf16.mxu1 %v828_v29 }
  0x20   :  { %727 = vmatpush3.bf16.msra.mxu0 %v829_v30 }
  0x21   :  { %755 = vmatpush3.bf16.msra.mxu1 %v830_v31  ;;  %778 = vmatprep.subr.bf16.mxu0 %v837_v36 }
  0x23   :  { %475 = vmatmul.mubr.bf16.vlgmr.msra.gmra.mrb[0].mxu0 %v831_v32 }
  0x24   :  { %524 = vmatmul.mubr.bf16.vlgmr.msra.gmra.mrb[0].mxu1 %v834_v34  ;;  %779 = vmatpush3.bf16.msra.mxu0 %v837_v36 }
  0x25   :  { %780 = vmatprep.subr.bf16.mxu0 %v838_v37  ;;  %482 = vmatprep.mubr.bf16.mxu0 %v842_v39 }
  0x26   :  { %531 = vmatprep.mubr.bf16.mxu1 %v844_v40 }
  0x28   :  { %781 = vmatpush3.bf16.msra.mxu0 %v838_v37 }
  0x29   :  { %782 = vmatprep.subr.bf16.mxu0 %v839_v38 }
  0x2b   :  { %483 = vmatmul.mubr.bf16.gmra.mrb[4].mxu0 %v847_v42 }
  0x2c   :  { %532 = vmatmul.mubr.bf16.gmra.mrb[4].mxu1 %v848_v43  ;;  %783 = vmatpush3.bf16.msra.mxu0 %v839_v38 }
  0x2d   :  { %784 = vmatprep.subr.bf16.mxu0 %v840_v41  ;;  %794 = vmatprep.mubr.bf16.mxu0 %v851_v44 }
  0x30   :  { %785 = vmatpush3.bf16.msra.mxu0 %v840_v41 }
  0x31   :  { %786 = vmatprep.subr.bf16.mxu0 %v841_v45 }
  0x34   :  { %787 = vmatpush3.bf16.msra.mxu0 %v841_v45  ;;  %v621_v45 = vld [vmem:[%s1047_s3] sm:$0x3] }
  0x35   :  { %788 = vmatprep.subr.bf16.mxu0 %v846_v46 }
  0x38   :  { %789 = vmatpush3.bf16.msra.mxu0 %v846_v46 }
  0x39   :  { %790 = vmatprep.subr.bf16.mxu0 %v849_v47 }
  0x3c   :  { %791 = vmatpush3.bf16.msra.mxu0 %v849_v47 }
  0x3d   :  { %792 = vmatprep.subr.bf16.mxu0 %v850_v48 }
  0x40   :  { %793 = vmatpush3.bf16.msra.mxu0 %v850_v48 }
  0x43   :  { %795 = vmatmul.mubr.bf16.vlgmr.msra.gmra.mrb[8].mxu0 %v852_v49 }
  0xf6   :  { %v728_v51 = vpop.f32.mrb[0].mxu0 }
  0xf7   :  { %v756_v52 = vpop.f32.mrb[0].mxu1  ;;  %v729_v53 = vpop.f32.mrb[1].mxu0 }
  0xf8   :  { %v730_v54 = vadd.f32 %v729_v53, %v728_v51  ;;  %v757_v55 = vpop.f32.mrb[1].mxu1  ;;  %v731_v56 = vpop.f32.mrb[2].mxu0 }
  0xf9   :  { %v758_v57 = vadd.f32 %v757_v55, %v756_v52  ;;  %v759_v58 = vpop.f32.mrb[2].mxu1  ;;  %v732_v59 = vpop.f32.mrb[3].mxu0 }
  0xfa   :  { %v733_v60 = vadd.f32 %v732_v59, %v731_v56  ;;  %v760_v61 = vpop.f32.mrb[3].mxu1 }
  0xfb   :  { %v761_v62 = vadd.f32 %v760_v61, %v759_v58  ;;  %v526_v63 = vadd.f32 %v758_v57, %v730_v54 }
  0xfd   :  { %v529_v0 = vadd.f32 %v761_v62, %v733_v60 }
  0xfe   :  { %v734_v1 = vpop.f32.mrb[4].mxu0 }
  0xff   :  { %v762_v2 = vpop.f32.mrb[4].mxu1  ;;  %v735_v3 = vpop.f32.mrb[5].mxu0 }
 0x100   :  { %v736_v4 = vadd.f32 %v735_v3, %v734_v1  ;;  %v763_v5 = vpop.f32.mrb[5].mxu1  ;;  %v737_v6 = vpop.f32.mrb[6].mxu0 }
 0x101   :  { %v764_v7 = vadd.f32 %v763_v5, %v762_v2  ;;  %v765_v8 = vpop.f32.mrb[6].mxu1  ;;  %v738_v9 = vpop.f32.mrb[7].mxu0 }
 0x102   :  { %v739_v10 = vadd.f32 %v738_v9, %v737_v6  ;;  %v766_v11 = vpop.f32.mrb[7].mxu1 }
 0x103   :  { %v767_v12 = vadd.f32 %v766_v11, %v765_v8  ;;  %v534_v13 = vadd.f32 %v764_v7, %v736_v4 }
 0x105   :  { %v537_v14 = vadd.f32 %v767_v12, %v739_v10 }
 0x116   :  { %v796_v15 = vpop.f32.mrb[8].mxu0 }
 0x117   :  { %v583_v16 = vadd.f32 %v796_v15, %v534_v13  ;;  %v574_v17 = vpop.f32.mrb[9].mxu0 }
 0x118   :  { %v575_v18 = vadd.f32 %v574_v17, %v526_v63  ;;  %v797_v19 = vpop.f32.mrb[10].mxu0 }
 0x119   :  { %591 = vst [vmem:[%s1048_s2 + $0x10] sm:$0xff] %v583_v16  ;;  %v586_v20 = vadd.f32 %v797_v19, %v537_v14  ;;  %v577_v21 = vpop.f32.mrb[11].mxu0  ;;  %v609_v26 = vmul.f32 %v583_v16, %v583_v16 }
 0x11a   :  { %589 = vst [vmem:[%s1048_s2] sm:$0xff] %v575_v18  ;;  %v578_v22 = vadd.f32 %v577_v21, %v529_v0  ;;  %v607_v23 = vmul.f32 %v575_v18, %v575_v18 }
 0x11b   :  { %592 = vst [vmem:[%s1048_s2 + $0x18] sm:$0xff] %v586_v20  ;;  %v610_v29 = vmul.f32 %v586_v20, %v586_v20 }
 0x11c   :  { %590 = vst [vmem:[%s1048_s2 + $0x8] sm:$0xff] %v578_v22  ;;  %v597_v24 = vadd.f32 %v578_v22, %v575_v18  ;;  %v608_v25 = vmul.f32 %v578_v22, %v578_v22 }
 0x11e   :  { %v598_v27 = vadd.f32 %v597_v24, %v583_v16  ;;  %v611_v28 = vadd.f32 %v608_v25, %v607_v23 }
 0x120   :  { %v599_v30 = vadd.f32 %v598_v27, %v586_v20  ;;  %v612_v31 = vadd.f32 %v611_v28, %v609_v26 }
 0x122   :  { %v600_v32 = vrot.slane %v599_v30, 4  ;;  %v613_v33 = vadd.f32 %v612_v31, %v610_v29 }
 0x124   :  { %v601_v34 = vadd.f32 %v600_v32, %v599_v30  ;;  %v614_v35 = vrot.slane %v613_v33, 4 }
 0x126   :  { %v602_v36 = vrot.slane %v601_v34, 2  ;;  %v615_v37 = vadd.f32 %v614_v35, %v613_v33 }
 0x128   :  { %v603_v38 = vadd.f32 %v602_v36, %v601_v34  ;;  %v616_v39 = vrot.slane %v615_v37, 2 }
 0x12a   :  { %v604_v40 = vrot.slane %v603_v38, 1  ;;  %v617_v41 = vadd.f32 %v616_v39, %v615_v37 }
 0x12c   :  { %v618_v42 = vrot.slane %v617_v41, 1  ;;  %v605_v43 = vadd.f32 %v604_v40, %v603_v38 }
 0x12e   :  { %v619_v44 = vadd.f32 %v618_v42, %v617_v41 }
 0x130   :  { %v623_v46 = vsel %vm622_vm0, %v605_v43, %v619_v44 }
 0x131   :  { %v624_v47 = vadd.f32 %v623_v46, %v621_v45 }
 0x133   :  { %625 = vst [vmem:[%s1047_s3] sm:$0x3] %v624_v47 }

// kernel: allcnn_forward.42
= control target key start
LH: loop header
LB: loop body
LE: loop exit
PB: predicated region body
PF: predicated region fallthrough
CT: control target
= control target key end

     0   :  { %v128_v7 = vmov 1966171168   ;;  %v33_v9 = vlaneseq  ;;  %s181_s1 = inlined_call_operand.vmem [shape: f32[1,2,128], index: 1, kind: input, shape index: {}]   ;;  %s182_s2 = inlined_call_operand.vmem [shape: f32[1,128], index: 2, kind: input, shape index: {}]   ;;  %s183_s3 = inlined_call_operand.vmem [shape: f32[1,128], index: 3, kind: input, shape index: {}]   ;;  %s184_s0 = inlined_call_operand.vmem [shape: f32[32,128], index: 0, kind: input, shape index: {}]   ;;  %s185_s4 = inlined_call_operand.vmem [shape: bf16[32,128], index: 4, kind: output, shape index: {}]  }
   0x1   :  { %v17_v0 = vld [vmem:[%s181_s1] sm:$0x3]  ;;  %v31_v8 = vunpack.c.l.s4 %v128_v7  ;;  %v51_v22 = vld [vmem:[%s184_s0 + $0x8] sm:$0xff]  ;;  %v52_v23 = vld [vmem:[%s184_s0 + $0x10] sm:$0xff] }
   0x2   :  { %v19_v1 = vmul.f32 0.03125, %v17_v0  ;;  %v34_v11 = vshrl.u32 %v33_v9, 7  ;;  %v26_v16 = vld [vmem:[%s182_s2] sm:$0x1]  ;;  %v53_v26 = vld [vmem:[%s184_s0 + $0x18] sm:$0xff] }
   0x3   :  { %v32_v10 = vunpack.c.0.s8 %v31_v8  ;;  %v47_v20 = vld [vmem:[%s183_s3] sm:$0x1] }
   0x4   :  { %v20_v2 = vmul.f32 %v19_v1, %v19_v1  ;;  %v57_v18 = vsub.s32 0, %v34_v11  ;;  %v50_v21 = vld [vmem:[%s184_s0] sm:$0xff] }
   0x5   :  { %v35_v12 = vsub.s32 %v32_v10, %v34_v11 }
   0x6   :  { %v22_v3 = vrot.slane %v20_v2, 7 }
   0x8   :  { %v24_v4 = vsub.f32 %v19_v1, %v22_v3 }
   0xa   :  { %v25_v5 = vmax.f32 %v24_v4, 0.0 }
   0xc   :  { %v27_v6 = vadd.f32 1e-05, %v25_v5 }
   0xe   :  { %126 = vrsqrt.f32 %v27_v6 }
  0x18   :  { %v127_v13 = vpop.eup %126 }
  0x19   :  { %v36_v14 = vrot.slane %v127_v13, %v35_v12 }
  0x1b   :  { %v37_v15 = vcombine.high %v36_v14, %v36_v14 }
  0x1d   :  { %v44_v17 = vrot.slane %v37_v15, %v35_v12 }
  0x1f   :  { %v46_v19 = vmul.f32 %v44_v17, %v26_v16 }
  0x21   :  { %v48_v24 = vmul.f32 %v46_v19, %v19_v1  ;;  %v58_v25 = vrot.slane %v46_v19, %v57_v18 }
  0x23   :  { %v49_v27 = vsub.f32 %v47_v20, %v48_v24  ;;  %v60_v28 = vmul.f32 %v58_v25, %v50_v21  ;;  %v61_v29 = vmul.f32 %v58_v25, %v51_v22  ;;  %v62_v30 = vmul.f32 %v58_v25, %v52_v23 }
  0x24   :  { %v63_v31 = vmul.f32 %v58_v25, %v53_v26 }
  0x25   :  { %v68_v32 = vrot.slane %v49_v27, %v57_v18 }
  0x27   :  { %v70_v33 = vadd.f32 %v68_v32, %v60_v28  ;;  %v71_v34 = vadd.f32 %v68_v32, %v61_v29  ;;  %v72_v35 = vadd.f32 %v68_v32, %v62_v30  ;;  %v73_v36 = vadd.f32 %v68_v32, %v63_v31 }
  0x29   :  { %v74_v37 = vmul.f32 0.1, %v70_v33  ;;  %v75_v38 = vmul.f32 0.1, %v71_v34  ;;  %v76_v39 = vmul.f32 0.1, %v72_v35 }
  0x2a   :  { %v77_v40 = vmul.f32 0.1, %v73_v36 }
  0x2b   :  { %v78_v41 = vmax.f32 %v70_v33, %v74_v37  ;;  %v79_v42 = vmax.f32 %v71_v34, %v75_v38  ;;  %v80_v43 = vmax.f32 %v72_v35, %v76_v39 }
  0x2c   :  { %v81_v44 = vmax.f32 %v73_v36, %v77_v40 }
  0x2d   :  { %v117_v45 = vpack.c.bf16 %v79_v42, %v78_v41 }
  0x2e   :  { %v122_v46 = vpack.c.bf16 %v81_v44, %v80_v43 }
  0x2f   :  { %118 = vst [vmem:[%s185_s4] sm:$0xff] %v117_v45  }
  0x30   :  { %124 = vst [vmem:[%s185_s4 + $0x8] sm:$0xff] %v122_v46  }

// kernel: allcnn_forward.49
= control target key start
LH: loop header
LB: loop body
LE: loop exit
PB: predicated region body
PF: predicated region fallthrough
CT: control target
= control target key end

     0   :  { %v193_v0 = vmov 0.0|0.0   ;;  %vm194_vm0 = vmmov 0   ;;  %v195_v4 = vmov 0.0   ;;  %s273_s1 = inlined_call_operand.vmem [shape: f32[128,128], index: 1, kind: input, shape index: {}]   ;;  %s274_s0 = inlined_call_operand.vmem [shape: f32[8,128], index: 0, kind: input, shape index: {}]   ;;  %s275_s2 = inlined_call_operand.vmem [shape: f32[1,128], index: 2, kind: input, shape index: {}]   ;;  %s276_s3 = inlined_call_operand.vmem [shape: f32[8,128], index: 3, kind: output, shape index: {}]  }
   0x1   :  { %166 = vmatprep.subr.bf16.mxu0 %v193_v0  ;;  %v15_v1 = vld [vmem:[%s273_s1] sm:$0xff]  ;;  %v16_v2 = vld [vmem:[%s273_s1 + $0x8] sm:$0xff]  ;;  %v17_v3 = vld [vmem:[%s273_s1 + $0x10] sm:$0xff]  ;;  %163 = vmatprep.mubr.msk.f32.mxu0 %vm194_vm0, %v195_v4 }
   0x2   :  { %v167_v5 = vpack.c.bf16 %v16_v2, %v15_v1  ;;  %v18_v6 = vld [vmem:[%s273_s1 + $0x18] sm:$0xff]  ;;  %v19_v8 = vld [vmem:[%s273_s1 + $0x20] sm:$0xff]  ;;  %v20_v9 = vld [vmem:[%s273_s1 + $0x28] sm:$0xff] }
   0x3   :  { %v170_v7 = vpack.c.bf16 %v18_v6, %v17_v3  ;;  %v173_v10 = vpack.c.bf16 %v20_v9, %v19_v8  ;;  %v21_v11 = vld [vmem:[%s273_s1 + $0x30] sm:$0xff]  ;;  %v22_v12 = vld [vmem:[%s273_s1 + $0x38] sm:$0xff]  ;;  %v23_v14 = vld [vmem:[%s273_s1 + $0x40] sm:$0xff] }
   0x4   :  { %168 = vmatpush3.bf16.msra.mxu0 %v167_v5  ;;  %v176_v13 = vpack.c.bf16 %v22_v12, %v21_v11  ;;  %v24_v15 = vld [vmem:[%s273_s1 + $0x48] sm:$0xff]  ;;  %v25_v17 = vld [vmem:[%s273_s1 + $0x50] sm:$0xff]  ;;  %v26_v18 = vld [vmem:[%s273_s1 + $0x58] sm:$0xff] }
   0x5   :  { %169 = vmatprep.subr.bf16.mxu0 %v193_v0  ;;  %v179_v16 = vpack.c.bf16 %v24_v15, %v23_v14  ;;  %v182_v19 = vpack.c.bf16 %v26_v18, %v25_v17  ;;  %v27_v20 = vld [vmem:[%s273_s1 + $0x60] sm:$0xff]  ;;  %v28_v21 = vld [vmem:[%s273_s1 + $0x68] sm:$0xff]  ;;  %v29_v23 = vld [vmem:[%s273_s1 + $0x70] sm:$0xff] }
   0x6   :  { %v185_v22 = vpack.c.bf16 %v28_v21, %v27_v20  ;;  %v30_v24 = vld [vmem:[%s273_s1 + $0x78] sm:$0xff]  ;;  %v14_v26 = vld [vmem:[%s274_s0] sm:$0xff] }
   0x7   :  { %v188_v25 = vpack.c.bf16 %v30_v24, %v29_v23  ;;  %v113_v27 = vld [vmem:[%s275_s2] ss:$0 sm:$0xff] }
   0x8   :  { %171 = vmatpush3.bf16.msra.mxu0 %v170_v7 }
   0x9   :  { %172 = vmatprep.subr.bf16.mxu0 %v193_v0 }
   0xc   :  { %174 = vmatpush3.bf16.msra.mxu0 %v173_v10 }
   0xd   :  { %175 = vmatprep.subr.bf16.mxu0 %v193_v0 }
  0x10   :  { %177 = vmatpush3.bf16.msra.mxu0 %v176_v13 }
  0x11   :  { %178 = vmatprep.subr.bf16.mxu0 %v193_v0 }
  0x14   :  { %180 = vmatpush3.bf16.msra.mxu0 %v179_v16 }
  0x15   :  { %181 = vmatprep.subr.bf16.mxu0 %v193_v0 }
  0x18   :  { %183 = vmatpush3.bf16.msra.mxu0 %v182_v19 }
  0x19   :  { %184 = vmatprep.subr.bf16.mxu0 %v193_v0 }
  0x1c   :  { %186 = vmatpush3.bf16.msra.mxu0 %v185_v22 }
  0x1d   :  { %187 = vmatprep.subr.bf16.mxu0 %v193_v0 }
  0x20   :  { %189 = vmatpush3.bf16.msra.mxu0 %v188_v25 }
  0x23   :  { %164 = vmatmul.mubr.f32.vlgmr.msra.gmra.mrb[0].mxu0 %v14_v26 }
  0xf6   :  { %v104_v28 = vpop.f32.mrb[0].mxu0 }
  0xf7   :  { %v105_v29 = vadd.f32 %v113_v27, %v104_v28  ;;  %v165_v30 = vpop.f32.mrb[1].mxu0 }
  0xf9   :  { %108 = vst [vmem:[%s276_s3] sm:$0xff] %v105_v29 }

// kernel: allcnn_forward.47
= control target key start
LH: loop header
LB: loop body
LE: loop exit
PB: predicated region body
PF: predicated region fallthrough
CT: control target
= control target key end

     0   :  { %v308_v10 = vmov 0.0   ;;  %vm217_vm0 = vcmask 1040384   ;;  %s380_s1 = inlined_call_operand.vmem [shape: bf16[128,128], index: 1, kind: input, shape index: {}]   ;;  %s381_s0 = inlined_call_operand.vmem [shape: bf16[32,128], index: 0, kind: input, shape index: {}]   ;;  %s382_s3 = inlined_call_operand.vmem [shape: f32[1,2,128], index: 3, kind: output, shape index: {1}]   ;;  %s383_s2 = inlined_call_operand.vmem [shape: f32[32,128], index: 2, kind: output, shape index: {0}]  }
   0x1   :  { %v298_v0 = vld [vmem:[%s380_s1] sm:$0xff]   ;;  %v299_v1 = vld [vmem:[%s380_s1 + $0x8] sm:$0xff]   ;;  %v300_v2 = vld [vmem:[%s380_s1 + $0x10] sm:$0xff]   ;;  %54 = vst [vmem:[%s382_s3] sm:$0x3] %v308_v10 }
   0x2   :  { %277 = vmatprep.subr.bf16.mxu0 %v298_v0  ;;  %v301_v3 = vld [vmem:[%s380_s1 + $0x18] sm:$0xff]   ;;  %v306_v4 = vld [vmem:[%s381_s0] sm:$0xff]   ;;  %v303_v6 = vld [vmem:[%s380_s1 + $0x28] sm:$0xff]  }
   0x3   :  { %278 = vmatpush3.bf16.msra.mxu0 %v298_v0  ;;  %293 = vmatprep.mubr.bf16.mxu0 %v306_v4  ;;  %v302_v5 = vld [vmem:[%s380_s1 + $0x20] sm:$0xff]   ;;  %v304_v7 = vld [vmem:[%s380_s1 + $0x30] sm:$0xff]   ;;  %v305_v8 = vld [vmem:[%s380_s1 + $0x38] sm:$0xff]  }
   0x4   :  { %279 = vmatprep.subr.bf16.mxu0 %v299_v1  ;;  %v307_v9 = vld [vmem:[%s381_s0 + $0x8] sm:$0xff]  }
   0x7   :  { %280 = vmatpush3.bf16.msra.mxu0 %v299_v1 }
   0x8   :  { %281 = vmatprep.subr.bf16.mxu0 %v300_v2  ;;  %v216_v37 = vld [vmem:[%s382_s3] sm:$0x3] }
   0xb   :  { %282 = vmatpush3.bf16.msra.mxu0 %v300_v2 }
   0xc   :  { %283 = vmatprep.subr.bf16.mxu0 %v301_v3 }
   0xf   :  { %284 = vmatpush3.bf16.msra.mxu0 %v301_v3 }
  0x10   :  { %285 = vmatprep.subr.bf16.mxu0 %v302_v5 }
  0x13   :  { %286 = vmatpush3.bf16.msra.mxu0 %v302_v5 }
  0x14   :  { %287 = vmatprep.subr.bf16.mxu0 %v303_v6 }
  0x17   :  { %288 = vmatpush3.bf16.msra.mxu0 %v303_v6 }
  0x18   :  { %289 = vmatprep.subr.bf16.mxu0 %v304_v7 }
  0x1b   :  { %290 = vmatpush3.bf16.msra.mxu0 %v304_v7 }
  0x1c   :  { %291 = vmatprep.subr.bf16.mxu0 %v305_v8 }
  0x1f   :  { %292 = vmatpush3.bf16.msra.mxu0 %v305_v8 }
  0x22   :  { %294 = vmatmul.mubr.bf16.vlgmr.msra.gmra.mrb[0].mxu0 %v307_v9 }
  0xf5   :  { %v295_v11 = vpop.f32.mrb[0].mxu0 }
  0xf6   :  { %186 = vst [vmem:[%s383_s2 + $0x10] sm:$0xff] %v295_v11  ;;  %v169_v12 = vpop.f32.mrb[1].mxu0  ;;  %v204_v18 = vmul.f32 %v295_v11, %v295_v11 }
  0xf7   :  { %184 = vst [vmem:[%s383_s2] sm:$0xff] %v169_v12  ;;  %v296_v13 = vpop.f32.mrb[2].mxu0  ;;  %v202_v15 = vmul.f32 %v169_v12, %v169_v12 }
  0xf8   :  { %187 = vst [vmem:[%s383_s2 + $0x18] sm:$0xff] %v296_v13  ;;  %v172_v14 = vpop.f32.mrb[3].mxu0  ;;  %v205_v21 = vmul.f32 %v296_v13, %v296_v13 }
  0xf9   :  { %185 = vst [vmem:[%s383_s2 + $0x8] sm:$0xff] %v172_v14  ;;  %v192_v16 = vadd.f32 %v172_v14, %v169_v12  ;;  %v203_v17 = vmul.f32 %v172_v14, %v172_v14 }
  0xfb   :  { %v193_v19 = vadd.f32 %v295_v11, %v192_v16  ;;  %v206_v20 = vadd.f32 %v203_v17, %v202_v15 }
  0xfd   :  { %v194_v22 = vadd.f32 %v296_v13, %v193_v19  ;;  %v207_v23 = vadd.f32 %v206_v20, %v204_v18 }
  0xff   :  { %v195_v24 = vrot.slane %v194_v22, 4  ;;  %v208_v25 = vadd.f32 %v207_v23, %v205_v21 }
 0x101   :  { %v196_v26 = vadd.f32 %v195_v24, %v194_v22  ;;  %v209_v27 = vrot.slane %v208_v25, 4 }
 0x103   :  { %v197_v28 = vrot.slane %v196_v26, 2  ;;  %v210_v29 = vadd.f32 %v209_v27, %v208_v25 }
 0x105   :  { %v198_v30 = vadd.f32 %v197_v28, %v196_v26  ;;  %v211_v31 = vrot.slane %v210_v29, 2 }
 0x107   :  { %v199_v32 = vrot.slane %v198_v30, 1  ;;  %v212_v33 = vadd.f32 %v211_v31, %v210_v29 }
 0x109   :  { %v213_v34 = vrot.slane %v212_v33, 1  ;;  %v200_v35 = vadd.f32 %v199_v32, %v198_v30 }
 0x10b   :  { %v214_v36 = vadd.f32 %v213_v34, %v212_v33 }
 0x10d   :  { %v218_v38 = vsel %vm217_vm0, %v200_v35, %v214_v36 }
 0x10e   :  { %v219_v39 = vadd.f32 %v218_v38, %v216_v37 }
 0x110   :  { %220 = vst [vmem:[%s382_s3] sm:$0x3] %v219_v39 }

// kernel: allcnn_forward.45
= control target key start
LH: loop header
LB: loop body
LE: loop exit
PB: predicated region body
PF: predicated region fallthrough
CT: control target
= control target key end

     0   :  { %vm823_vm0 = vcmask 1040384   ;;  %s1376_s1 = inlined_call_operand.vmem [shape: bf16[896,128], index: 1, kind: input, shape index: {}]   ;;  %s1377_s0 = inlined_call_operand.vmem [shape: bf16[32,896], index: 0, kind: input, shape index: {}]   ;;  %s1378_s3 = inlined_call_operand.vmem [shape: f32[1,2,128], index: 3, kind: output, shape index: {1}]   ;;  %s1379_s2 = inlined_call_operand.vmem [shape: f32[32,128], index: 2, kind: output, shape index: {0}]  }
   0x1   :  { %v1048_v0 = vld [vmem:[%s1376_s1 + $0x40] sm:$0xff]   ;;  %v1052_v4 = vld [vmem:[%s1376_s1 + $0x48] sm:$0xff]   ;;  %v1056_v8 = vld [vmem:[%s1376_s1 + $0x50] sm:$0xff]  }
   0x2   :  { %v1049_v1 = vld [vmem:[%s1376_s1 + $0xc0] sm:$0xff]   ;;  %933 = vmatprep.subr.bf16.mxu0 %v1048_v0  ;;  %v1053_v5 = vld [vmem:[%s1376_s1 + $0xc8] sm:$0xff]   ;;  %v1057_v9 = vld [vmem:[%s1376_s1 + $0xd0] sm:$0xff]  }
   0x3   :  { %v1050_v2 = vld [vmem:[%s1376_s1] sm:$0xff]   ;;  %961 = vmatprep.subr.bf16.mxu1 %v1049_v1  ;;  %v1054_v6 = vld [vmem:[%s1376_s1 + $0x8] sm:$0xff]   ;;  %v1058_v10 = vld [vmem:[%s1376_s1 + $0x10] sm:$0xff]  }
   0x4   :  { %v1051_v3 = vld [vmem:[%s1376_s1 + $0x80] sm:$0xff]   ;;  %934 = vmatpush3.bf16.msra.mxu0 %v1050_v2  ;;  %v1055_v7 = vld [vmem:[%s1376_s1 + $0x88] sm:$0xff]   ;;  %v1059_v11 = vld [vmem:[%s1376_s1 + $0x90] sm:$0xff]  }
   0x5   :  { %962 = vmatpush3.bf16.msra.mxu1 %v1051_v3  ;;  %935 = vmatprep.subr.bf16.mxu0 %v1052_v4  ;;  %v1060_v12 = vld [vmem:[%s1376_s1 + $0x58] sm:$0xff]   ;;  %v1064_v16 = vld [vmem:[%s1376_s1 + $0x60] sm:$0xff]   ;;  %v1068_v20 = vld [vmem:[%s1376_s1 + $0x68] sm:$0xff]  }
   0x6   :  { %963 = vmatprep.subr.bf16.mxu1 %v1053_v5  ;;  %v1061_v13 = vld [vmem:[%s1376_s1 + $0xd8] sm:$0xff]   ;;  %v1065_v17 = vld [vmem:[%s1376_s1 + $0xe0] sm:$0xff]   ;;  %v1069_v21 = vld [vmem:[%s1376_s1 + $0xe8] sm:$0xff]  }
   0x7   :  { %v1062_v14 = vld [vmem:[%s1376_s1 + $0x18] sm:$0xff]   ;;  %v1066_v18 = vld [vmem:[%s1376_s1 + $0x20] sm:$0xff]   ;;  %v1070_v22 = vld [vmem:[%s1376_s1 + $0x28] sm:$0xff]  }
   0x8   :  { %936 = vmatpush3.bf16.msra.mxu0 %v1054_v6  ;;  %v1063_v15 = vld [vmem:[%s1376_s1 + $0x98] sm:$0xff]   ;;  %v1067_v19 = vld [vmem:[%s1376_s1 + $0xa0] sm:$0xff]   ;;  %v1071_v23 = vld [vmem:[%s1376_s1 + $0xa8] sm:$0xff]   ;;  %v1124_v6 = vmov 0.0  }
   0x9   :  { %964 = vmatpush3.bf16.msra.mxu1 %v1055_v7  ;;  %937 = vmatprep.subr.bf16.mxu0 %v1056_v8  ;;  %v1072_v24 = vld [vmem:[%s1376_s1 + $0x70] sm:$0xff]   ;;  %v1076_v28 = vld [vmem:[%s1376_s1 + $0x78] sm:$0xff]   ;;  %v1082_v33 = vld [vmem:[%s1377_s0 + $0x4] ss:$28 sps:$4 sm:$0xff]   ;;  %57 = vst [vmem:[%s1378_s3] sm:$0x3] %v1124_v6 }
   0xa   :  { %965 = vmatprep.subr.bf16.mxu1 %v1057_v9  ;;  %v1073_v25 = vld [vmem:[%s1376_s1 + $0xf0] sm:$0xff]   ;;  %v1077_v29 = vld [vmem:[%s1376_s1 + $0xf8] sm:$0xff]   ;;  %v1083_v34 = vld [vmem:[%s1377_s0 + $0x8] ss:$28 sps:$4 sm:$0xff]   ;;  %626 = vmatprep.mubr.bf16.mxu0 %v1082_v33 }
   0xb   :  { %v1074_v26 = vld [vmem:[%s1376_s1 + $0x30] sm:$0xff]   ;;  %v1078_v30 = vld [vmem:[%s1376_s1 + $0x38] sm:$0xff]   ;;  %v1085_v35 = vld [vmem:[%s1377_s0 + $0xc] ss:$28 sps:$4 sm:$0xff]  }
   0xc   :  { %938 = vmatpush3.bf16.msra.mxu0 %v1058_v10  ;;  %v1075_v27 = vld [vmem:[%s1376_s1 + $0xb0] sm:$0xff]   ;;  %v1079_v31 = vld [vmem:[%s1376_s1 + $0xb8] sm:$0xff]   ;;  %v1086_v36 = vld [vmem:[%s1376_s1 + $0x140] sm:$0xff]   ;;  %675 = vmatprep.mubr.bf16.mxu1 %v1085_v35 }
   0xd   :  { %966 = vmatpush3.bf16.msra.mxu1 %v1059_v11  ;;  %939 = vmatprep.subr.bf16.mxu0 %v1060_v12  ;;  %v1080_v32 = vld [vmem:[%s1377_s0] ss:$28 sps:$4 sm:$0xff]   ;;  %v1088_v38 = vld [vmem:[%s1376_s1 + $0x148] sm:$0xff]   ;;  %v1091_v41 = vld [vmem:[%s1376_s1 + $0x150] sm:$0xff]  }
   0xe   :  { %967 = vmatprep.subr.bf16.mxu1 %v1061_v13  ;;  %v1087_v37 = vld [vmem:[%s1376_s1 + $0x100] sm:$0xff]   ;;  %v1090_v40 = vld [vmem:[%s1376_s1 + $0x108] sm:$0xff]   ;;  %v1093_v43 = vld [vmem:[%s1376_s1 + $0x110] sm:$0xff]  }
   0xf   :  { %v1089_v39 = vld [vmem:[%s1376_s1 + $0x180] sm:$0xff]   ;;  %v1092_v42 = vld [vmem:[%s1376_s1 + $0x188] sm:$0xff]   ;;  %v1094_v44 = vld [vmem:[%s1376_s1 + $0x158] sm:$0xff]  }
  0x10   :  { %940 = vmatpush3.bf16.msra.mxu0 %v1062_v14  ;;  %v1095_v45 = vld [vmem:[%s1376_s1 + $0x190] sm:$0xff]   ;;  %v1096_v46 = vld [vmem:[%s1376_s1 + $0x118] sm:$0xff]   ;;  %v1097_v47 = vld [vmem:[%s1376_s1 + $0x160] sm:$0xff]  }
  0x11   :  { %968 = vmatpush3.bf16.msra.mxu1 %v1063_v15  ;;  %941 = vmatprep.subr.bf16.mxu0 %v1064_v16  ;;  %v1098_v48 = vld [vmem:[%s1376_s1 + $0x198] sm:$0xff]   ;;  %v1099_v49 = vld [vmem:[%s1376_s1 + $0x120] sm:$0xff]   ;;  %v1104_v52 = vld [vmem:[%s1376_s1 + $0x168] sm:$0xff]  }
  0x12   :  { %969 = vmatprep.subr.bf16.mxu1 %v1065_v17  ;;  %v1100_v50 = vld [vmem:[%s1377_s0 + $0x3c] ss:$28 sps:$4 sm:$0xff]   ;;  %v1102_v51 = vld [vmem:[%s1377_s0 + $0x44] ss:$28 sps:$4 sm:$0xff]   ;;  %v1108_v56 = vld [vmem:[%s1376_s1 + $0x128] sm:$0xff]  }
  0x13   :  { %v1105_v53 = vld [vmem:[%s1376_s1 + $0x1a0] sm:$0xff]   ;;  %v1106_v54 = vld [vmem:[%s1377_s0 + $0x38] ss:$28 sps:$4 sm:$0xff]   ;;  %v1110_v58 = vld [vmem:[%s1376_s1 + $0x1a8] sm:$0xff]  }
  0x14   :  { %942 = vmatpush3.bf16.msra.mxu0 %v1066_v18  ;;  %v1107_v55 = vld [vmem:[%s1377_s0 + $0x40] ss:$28 sps:$4 sm:$0xff]   ;;  %v1109_v57 = vld [vmem:[%s1376_s1 + $0x170] sm:$0xff]   ;;  %v1121_v3 = vld [vmem:[%s1377_s0 + $0x4c] ss:$28 sps:$4 sm:$0xff]  }
  0x15   :  { %970 = vmatpush3.bf16.msra.mxu1 %v1067_v19  ;;  %943 = vmatprep.subr.bf16.mxu0 %v1068_v20  ;;  %v1111_v59 = vld [vmem:[%s1376_s1 + $0x130] sm:$0xff]   ;;  %v1112_v60 = vld [vmem:[%s1376_s1 + $0x178] sm:$0xff]   ;;  %v1123_v5 = vld [vmem:[%s1377_s0 + $0x48] ss:$28 sps:$4 sm:$0xff]  }
  0x16   :  { %971 = vmatprep.subr.bf16.mxu1 %v1069_v21  ;;  %v1113_v61 = vld [vmem:[%s1376_s1 + $0x1b0] sm:$0xff]   ;;  %v1114_v62 = vld [vmem:[%s1376_s1 + $0x138] sm:$0xff]  }
  0x17   :  { %v1117_v63 = vld [vmem:[%s1377_s0 + $0x14] ss:$28 sps:$4 sm:$0xff]   ;;  %v1118_v0 = vld [vmem:[%s1376_s1 + $0x1b8] sm:$0xff]  }
  0x18   :  { %944 = vmatpush3.bf16.msra.mxu0 %v1070_v22  ;;  %v1119_v1 = vld [vmem:[%s1377_s0 + $0x18] ss:$28 sps:$4 sm:$0xff]   ;;  %v1115_v2 = vld [vmem:[%s1377_s0 + $0x10] ss:$28 sps:$4 sm:$0xff]  }
  0x19   :  { %972 = vmatpush3.bf16.msra.mxu1 %v1071_v23  ;;  %945 = vmatprep.subr.bf16.mxu0 %v1072_v24  ;;  %v1120_v4 = vld [vmem:[%s1377_s0 + $0x50] ss:$28 sps:$4 sm:$0xff]  }
  0x1a   :  { %973 = vmatprep.subr.bf16.mxu1 %v1073_v25 }
  0x1c   :  { %946 = vmatpush3.bf16.msra.mxu0 %v1074_v26 }
  0x1d   :  { %974 = vmatpush3.bf16.msra.mxu1 %v1075_v27  ;;  %947 = vmatprep.subr.bf16.mxu0 %v1076_v28 }
  0x1e   :  { %975 = vmatprep.subr.bf16.mxu1 %v1077_v29 }
  0x20   :  { %948 = vmatpush3.bf16.msra.mxu0 %v1078_v30 }
  0x21   :  { %976 = vmatpush3.bf16.msra.mxu1 %v1079_v31  ;;  %989 = vmatprep.subr.bf16.mxu0 %v1086_v36 }
  0x22   :  { %1027 = vmatprep.subr.bf16.mxu1 %v1089_v39 }
  0x23   :  { %627 = vmatmul.mubr.bf16.vlgmr.msra.gmra.mrb[0].mxu0 %v1080_v32 }
  0x24   :  { %676 = vmatmul.mubr.bf16.vlgmr.msra.gmra.mrb[0].mxu1 %v1083_v34  ;;  %990 = vmatpush3.bf16.msra.mxu0 %v1087_v37 }
  0x25   :  { %991 = vmatprep.subr.bf16.mxu0 %v1088_v38  ;;  %1028 = vmatpush3.bf16.msra.mxu1 %v1089_v39 }
  0x26   :  { %1029 = vmatprep.subr.bf16.mxu1 %v1092_v42  ;;  %634 = vmatprep.mubr.bf16.mxu0 %v1100_v50 }
  0x27   :  { %683 = vmatprep.mubr.bf16.mxu1 %v1102_v51 }
  0x28   :  { %992 = vmatpush3.bf16.msra.mxu0 %v1090_v40 }
  0x29   :  { %993 = vmatprep.subr.bf16.mxu0 %v1091_v41  ;;  %1030 = vmatpush3.bf16.msra.mxu1 %v1092_v42 }
  0x2a   :  { %1031 = vmatprep.subr.bf16.mxu1 %v1095_v45 }
  0x2b   :  { %635 = vmatmul.mubr.bf16.gmra.mrb[4].mxu0 %v1106_v54 }
  0x2c   :  { %994 = vmatpush3.bf16.msra.mxu0 %v1093_v43  ;;  %684 = vmatmul.mubr.bf16.gmra.mrb[4].mxu1 %v1107_v55 }
  0x2d   :  { %995 = vmatprep.subr.bf16.mxu0 %v1094_v44  ;;  %1032 = vmatpush3.bf16.msra.mxu1 %v1095_v45 }
  0x2e   :  { %1033 = vmatprep.subr.bf16.mxu1 %v1098_v48  ;;  %724 = vmatprep.mubr.bf16.mxu0 %v1117_v63 }
  0x2f   :  { %1043 = vmatprep.mubr.bf16.mxu1 %v1119_v1 }
  0x30   :  { %996 = vmatpush3.bf16.msra.mxu0 %v1096_v46 }
  0x31   :  { %997 = vmatprep.subr.bf16.mxu0 %v1097_v47  ;;  %1034 = vmatpush3.bf16.msra.mxu1 %v1098_v48 }
  0x32   :  { %1035 = vmatprep.subr.bf16.mxu1 %v1105_v53 }
  0x34   :  { %998 = vmatpush3.bf16.msra.mxu0 %v1099_v49 }
  0x35   :  { %999 = vmatprep.subr.bf16.mxu0 %v1104_v52  ;;  %1036 = vmatpush3.bf16.msra.mxu1 %v1105_v53 }
  0x36   :  { %1037 = vmatprep.subr.bf16.mxu1 %v1110_v58 }
  0x38   :  { %1000 = vmatpush3.bf16.msra.mxu0 %v1108_v56 }
  0x39   :  { %1001 = vmatprep.subr.bf16.mxu0 %v1109_v57  ;;  %1038 = vmatpush3.bf16.msra.mxu1 %v1110_v58 }
  0x3a   :  { %1039 = vmatprep.subr.bf16.mxu1 %v1113_v61 }
  0x3c   :  { %1002 = vmatpush3.bf16.msra.mxu0 %v1111_v59 }
  0x3d   :  { %1003 = vmatprep.subr.bf16.mxu0 %v1112_v60  ;;  %1040 = vmatpush3.bf16.msra.mxu1 %v1113_v61 }
  0x3e   :  { %1041 = vmatprep.subr.bf16.mxu1 %v1118_v0 }
  0x40   :  { %1004 = vmatpush3.bf16.msra.mxu0 %v1114_v62 }
  0x41   :  { %1042 = vmatpush3.bf16.msra.mxu1 %v1118_v0 }
  0x43   :  { %725 = vmatmul.mubr.bf16.vlgmr.msra.gmra.mrb[8].mxu0 %v1115_v2 }
  0x44   :  { %732 = vmatprep.mubr.bf16.mxu0 %v1121_v3  ;;  %1044 = vmatmul.mubr.bf16.vlgmr.msra.gmra.mrb[8].mxu1 %v1120_v4 }
  0x4b   :  { %733 = vmatmul.mubr.bf16.gmra.mrb[12].mxu0 %v1123_v5 }
  0xf6   :  { %v949_v7 = vpop.f32.mrb[0].mxu0 }
  0xf7   :  { %v977_v8 = vpop.f32.mrb[0].mxu1  ;;  %v950_v9 = vpop.f32.mrb[1].mxu0 }
  0xf8   :  { %v951_v10 = vadd.f32 %v950_v9, %v949_v7  ;;  %v978_v11 = vpop.f32.mrb[1].mxu1  ;;  %v952_v12 = vpop.f32.mrb[2].mxu0 }
  0xf9   :  { %v979_v13 = vadd.f32 %v978_v11, %v977_v8  ;;  %v980_v14 = vpop.f32.mrb[2].mxu1  ;;  %v953_v15 = vpop.f32.mrb[3].mxu0 }
  0xfa   :  { %v954_v16 = vadd.f32 %v953_v15, %v952_v12  ;;  %v981_v17 = vpop.f32.mrb[3].mxu1 }
  0xfb   :  { %v678_v18 = vadd.f32 %v979_v13, %v951_v10  ;;  %v982_v19 = vadd.f32 %v981_v17, %v980_v14  ;;  %v822_v17 = vld [vmem:[%s1378_s3] sm:$0x3] }
  0xfd   :  { %v681_v20 = vadd.f32 %v982_v19, %v954_v16 }
  0xfe   :  { %v955_v21 = vpop.f32.mrb[4].mxu0 }
  0xff   :  { %v983_v22 = vpop.f32.mrb[4].mxu1  ;;  %v956_v23 = vpop.f32.mrb[5].mxu0 }
 0x100   :  { %v957_v24 = vadd.f32 %v956_v23, %v955_v21  ;;  %v984_v25 = vpop.f32.mrb[5].mxu1  ;;  %v958_v26 = vpop.f32.mrb[6].mxu0 }
 0x101   :  { %v985_v27 = vadd.f32 %v984_v25, %v983_v22  ;;  %v986_v28 = vpop.f32.mrb[6].mxu1  ;;  %v959_v29 = vpop.f32.mrb[7].mxu0 }
 0x102   :  { %v960_v30 = vadd.f32 %v959_v29, %v958_v26  ;;  %v987_v31 = vpop.f32.mrb[7].mxu1 }
 0x103   :  { %v686_v32 = vadd.f32 %v985_v27, %v957_v24  ;;  %v988_v33 = vadd.f32 %v987_v31, %v986_v28 }
 0x105   :  { %v689_v34 = vadd.f32 %v988_v33, %v960_v30 }
 0x116   :  { %v1005_v35 = vpop.f32.mrb[8].mxu0 }
 0x117   :  { %v1006_v36 = vpop.f32.mrb[9].mxu0  ;;  %v1045_v40 = vpop.f32.mrb[8].mxu1 }
 0x118   :  { %v1007_v37 = vadd.f32 %v1006_v36, %v1005_v35  ;;  %v1008_v38 = vpop.f32.mrb[10].mxu0  ;;  %v775_v43 = vpop.f32.mrb[9].mxu1 }
 0x119   :  { %v1009_v39 = vpop.f32.mrb[11].mxu0  ;;  %v1046_v44 = vpop.f32.mrb[10].mxu1 }
 0x11a   :  { %v1010_v41 = vadd.f32 %v1009_v39, %v1008_v38  ;;  %v727_v42 = vadd.f32 %v1007_v37, %v678_v18  ;;  %v778_v47 = vpop.f32.mrb[11].mxu1 }
 0x11c   :  { %v776_v45 = vadd.f32 %v775_v43, %v727_v42  ;;  %v730_v46 = vadd.f32 %v1010_v41, %v681_v20 }
 0x11e   :  { %790 = vst [vmem:[%s1379_s2] sm:$0xff] %v776_v45  ;;  %v779_v48 = vadd.f32 %v778_v47, %v730_v46  ;;  %v1011_v49 = vpop.f32.mrb[12].mxu0  ;;  %v808_v51 = vmul.f32 %v776_v45, %v776_v45 }
 0x11f   :  { %v1012_v50 = vpop.f32.mrb[13].mxu0 }
 0x120   :  { %791 = vst [vmem:[%s1379_s2 + $0x8] sm:$0xff] %v779_v48  ;;  %v798_v52 = vadd.f32 %v779_v48, %v776_v45  ;;  %v809_v53 = vmul.f32 %v779_v48, %v779_v48  ;;  %v1013_v54 = vadd.f32 %v1012_v50, %v1011_v49  ;;  %v1014_v55 = vpop.f32.mrb[14].mxu0 }
 0x121   :  { %v1015_v56 = vpop.f32.mrb[15].mxu0 }
 0x122   :  { %v812_v57 = vadd.f32 %v809_v53, %v808_v51  ;;  %v735_v58 = vadd.f32 %v1013_v54, %v686_v32  ;;  %v1016_v59 = vadd.f32 %v1015_v56, %v1014_v55 }
 0x124   :  { %v784_v60 = vadd.f32 %v1045_v40, %v735_v58  ;;  %v738_v61 = vadd.f32 %v1016_v59, %v689_v34 }
 0x126   :  { %792 = vst [vmem:[%s1379_s2 + $0x10] sm:$0xff] %v784_v60  ;;  %v799_v62 = vadd.f32 %v798_v52, %v784_v60  ;;  %v810_v63 = vmul.f32 %v784_v60, %v784_v60  ;;  %v787_v0 = vadd.f32 %v1046_v44, %v738_v61 }
 0x128   :  { %v813_v1 = vadd.f32 %v812_v57, %v810_v63  ;;  %793 = vst [vmem:[%s1379_s2 + $0x18] sm:$0xff] %v787_v0  ;;  %v800_v2 = vadd.f32 %v799_v62, %v787_v0  ;;  %v811_v3 = vmul.f32 %v787_v0, %v787_v0 }
 0x12a   :  { %v801_v4 = vrot.slane %v800_v2, 4  ;;  %v814_v5 = vadd.f32 %v813_v1, %v811_v3 }
 0x12c   :  { %v802_v6 = vadd.f32 %v801_v4, %v800_v2  ;;  %v815_v7 = vrot.slane %v814_v5, 4 }
 0x12e   :  { %v803_v8 = vrot.slane %v802_v6, 2  ;;  %v816_v9 = vadd.f32 %v815_v7, %v814_v5 }
 0x130   :  { %v804_v10 = vadd.f32 %v803_v8, %v802_v6  ;;  %v817_v11 = vrot.slane %v816_v9, 2 }
 0x132   :  { %v805_v12 = vrot.slane %v804_v10, 1  ;;  %v818_v13 = vadd.f32 %v817_v11, %v816_v9 }
 0x134   :  { %v819_v14 = vrot.slane %v818_v13, 1  ;;  %v806_v15 = vadd.f32 %v805_v12, %v804_v10 }
 0x136   :  { %v820_v16 = vadd.f32 %v819_v14, %v818_v13 }
 0x138   :  { %v824_v18 = vsel %vm823_vm0, %v806_v15, %v820_v16 }
 0x139   :  { %v825_v19 = vadd.f32 %v824_v18, %v822_v17 }
 0x13b   :  { %826 = vst [vmem:[%s1378_s3] sm:$0x3] %v825_v19 }

</bundles_post_ra>
